<compile_context>
chip_gen: v6e
topology: v6e:2x2x1
jax: 0.10.0
libtpu: 0.0.40
codegen_flags: <defaults>
</compile_context>

<pallas_src>
import functools
import numpy as np
import jax
import jax.numpy as jnp
from jax import lax
from jax.experimental import pallas as pl
from jax.experimental.pallas import tpu as pltpu

LANE = 128
FEATURES = [8, 16, 32, 64]
POOL_SIZES = [1, 2, 4, 8]
IN_CH = 1
OUT_CH = 1
# Layers with fewer output rows than this run as plain XLA dots: a 128-padded MXU tile
# plus a pallas_call launch is pure overhead for 8^3-and-below levels.
PALLAS_MIN_M = 2048


def _rup(x, m):
    return ((x + m - 1) // m) * m


# ----------------------------- packed conv params (pytree) ----------------------
class PConv:
    """Conv weights packed ONCE at init:
         w  : (K, ncols)  bf16  compact   (XLA path, small-M layers)
         b  : (ncols,)    f32
         wp : (Kp, Np)    bf16  128-padded (Pallas MXU path)
         bp : (1, Np)     f32
       (kind, k, cin, cout, ncols) are static aux data."""

    def __init__(self, kind, k, cin, cout, ncols, w, b, wp, bp):
        self.kind, self.k, self.cin, self.cout, self.ncols = kind, k, cin, cout, ncols
        self.w, self.b, self.wp, self.bp = w, b, wp, bp


jax.tree_util.register_pytree_node(
    PConv,
    lambda c: ((c.w, c.b, c.wp, c.bp), (c.kind, c.k, c.cin, c.cout, c.ncols)),
    lambda aux, ch: PConv(*aux, *ch),
)


# ----------------------------- Pallas matmul kernel -----------------------------
def _mm_kernel(x_ref, w_ref, b_ref, o_ref, *, act):
    # Full-K block: one bf16 MXU pass, f32 accumulation, fused bias (+ReLU) in f32
    # (f32 epilogue keeps v5e's non-bf16 VPU happy).
    y = jnp.dot(x_ref[...], w_ref[...], preferred_element_type=jnp.float32)
    y = y + b_ref[...]
    if act == "relu":
        y = jnp.maximum(y, 0.0)
    o_ref[...] = y.astype(o_ref.dtype)


def _pick_tm(m):
    # Big M tiles amortize the ~0.35us per-grid-step overhead; keep >=2 "parallel"
    # M-blocks so both v7x TensorCores get work (v5e/v6e only pay one extra step).
    if m >= 4096:
        return 2048
    return 1024   # 2048 <= m < 4096


def matmul_bias_act(pat, p, act="none", out_dtype=jnp.bfloat16):
    """y = act(pat @ W + b).  pat: (M, K) bf16 compact (or already Kp-padded) matrix.

    Large-M layers use the Pallas MXU kernel with pre-padded (Kp, Np) weights and are
    sliced back to the real column count; small-M layers stay as XLA dots."""
    M, K = pat.shape

    if M < PALLAS_MIN_M:
        y = jnp.dot(pat, p.w, preferred_element_type=jnp.float32) + p.b
        if act == "relu":
            y = jnp.maximum(y, 0.0)
        return y.astype(out_dtype)

    Kp, Np = p.wp.shape
    tm = _pick_tm(M)
    tn = 256 if (Np % 256 == 0) else 128
    Mp = _rup(M, tm)
    xp = pat
    if Kp > K:
        xp = jnp.pad(xp, ((0, 0), (0, Kp - K)))
    if Mp > M:
        xp = jnp.pad(xp, ((0, Mp - M), (0, 0)))

    cost = pl.CostEstimate(
        flops=2 * Mp * Kp * Np,
        transcendentals=0,
        bytes_accessed=Mp * Kp * 2 + Kp * Np * 2 + Np * 4 + Mp * Np * 2,
    )
    out = pl.pallas_call(
        functools.partial(_mm_kernel, act=act),
        out_shape=jax.ShapeDtypeStruct((Mp, Np), out_dtype),
        grid_spec=pltpu.PrefetchScalarGridSpec(
            num_scalar_prefetch=0,
            grid=(Mp // tm, Np // tn),
            in_specs=[
                pl.BlockSpec((tm, Kp), lambda i, j: (i, 0)),   # full-K activation block
                pl.BlockSpec((Kp, tn), lambda i, j: (0, j)),   # full-K weight block
                pl.BlockSpec((1, tn), lambda i, j: (0, j)),    # bias (f32)
            ],
            out_specs=pl.BlockSpec((tm, tn), lambda i, j: (i, j)),
        ),
        compiler_params=pltpu.CompilerParams(
            dimension_semantics=("parallel", "parallel"),
            vmem_limit_bytes=32 * 1024 * 1024,
        ),
        cost_estimate=cost,
    )(xp, p.wp, p.bp)
    return out[:M, :p.ncols]


# ----------------------------- layers --------------------------------------------
def conv3d(x, p, act="none"):
    """x: (N, D, H, W, Cin) bf16; 'same' padding, stride 1."""
    k, cin, cout = p.k, p.cin, p.cout
    N, D, H, W, _ = x.shape
    Kreal = k * k * k * cin
    Kp = p.wp.shape[0]
    use_pallas = (N * D * H * W) >= PALLAS_MIN_M

    if k == 1:
        pat = x.reshape(-1, cin).astype(jnp.bfloat16)
        if use_pallas and Kp > Kreal:
            pat = jnp.pad(pat, ((0, 0), (0, Kp - Kreal)))
    else:
        pad = k // 2
        xpad = jnp.pad(x, ((0, 0), (pad, pad), (pad, pad), (pad, pad), (0, 0)))
        cols = [xpad[:, i:i + D, j:j + H, l:l + W, :]
                for i in range(k) for j in range(k) for l in range(k)]
        width = Kreal
        if use_pallas and Kp > Kreal:
            # build the patch directly at the padded K width: one materialization only
            cols.append(jnp.zeros((N, D, H, W, Kp - Kreal), x.dtype))
            width = Kp
        pat = jnp.concatenate(cols, axis=-1).reshape(-1, width).astype(jnp.bfloat16)

    y = matmul_bias_act(pat, p, act)
    return y.reshape(N, D, H, W, cout)


def conv_transpose3d_2x(x, p):
    """ConvTranspose3d(kernel=2, stride=2): per-voxel (cin -> 8*cout) matmul + depth-to-space."""
    N, D, H, W, cin = x.shape
    cout = p.cout
    pat = x.reshape(-1, cin).astype(jnp.bfloat16)
    y = matmul_bias_act(pat, p, "none")
    y = y.reshape(N, D, H, W, 2, 2, 2, cout)
    y = y.transpose(0, 1, 4, 2, 5, 3, 6, 7).reshape(N, 2 * D, 2 * H, 2 * W, cout)
    return y


def max_pool3d_2x(x):
    N, D, H, W, C = x.shape
    return x.reshape(N, D // 2, 2, H // 2, 2, W // 2, 2, C).max(axis=(2, 4, 6))


def adaptive_avg_pool3d(x, out_size):
    xf = x.astype(jnp.float32)

    def pool_axis(arr, axis, out_s):
        in_s = arr.shape[axis]
        parts = []
        for i in range(out_s):
            s = (i * in_s) // out_s
            e = -((-(i + 1) * in_s) // out_s)  # ceil
            sl = lax.slice_in_dim(arr, s, e, axis=axis)
            parts.append(sl.mean(axis=axis, keepdims=True))
        return jnp.concatenate(parts, axis=axis)

    y = pool_axis(xf, 1, out_size)
    y = pool_axis(y, 2, out_size)
    y = pool_axis(y, 3, out_size)
    return y.astype(x.dtype)


def upsample_nearest3d(x, out_size):
    N, D, H, W, C = x.shape
    idx_d = (np.arange(out_size) * D) // out_size
    idx_h = (np.arange(out_size) * H) // out_size
    idx_w = (np.arange(out_size) * W) // out_size
    return x[:, idx_d][:, :, idx_h][:, :, :, idx_w]


def se_block(x, w1, b1, w2, b2):
    # Tiny (M = batch) FCs stay on the XLA/VPU path — never the padded MXU kernel.
    s = x.astype(jnp.float32).mean(axis=(1, 2, 3))            # squeeze
    h = jnp.maximum(jnp.dot(s, w1) + b1, 0.0)                 # excite FC1 + ReLU
    g = 1.0 / (1.0 + jnp.exp(-(jnp.dot(h, w2) + b2)))         # excite FC2 + sigmoid
    return x * g[:, None, None, None, :].astype(x.dtype)      # scale


def pyramid_pooling(x, branches, fuse):
    D = x.shape[1]
    feats = [x]
    for s, p in zip(POOL_SIZES, branches):
        q = adaptive_avg_pool3d(x, s)
        q = conv3d(q, p, act="relu")
        q = upsample_nearest3d(q, D)
        feats.append(q)
    cat = jnp.concatenate(feats, axis=-1)
    return conv3d(cat, fuse, act="relu")


# ----------------------------- deterministic parameter init ---------------------
def _conv_param(key, k, cin, cout):
    bound = 1.0 / np.sqrt(k * k * k * cin)
    kw, kb = jax.random.split(key)
    w = jax.random.uniform(kw, (k, k, k, cin, cout), jnp.float32, -bound, bound)
    b = jax.random.uniform(kb, (cout,), jnp.float32, -bound, bound)
    K = k * k * k * cin
    Kp, Np = _rup(K, LANE), _rup(cout, LANE)
    w2 = w.reshape(K, cout).astype(jnp.bfloat16)
    wp = jnp.pad(w2, ((0, Kp - K), (0, Np - cout)))
    bp = jnp.pad(b, (0, Np - cout)).reshape(1, Np).astype(jnp.float32)
    return PConv("conv", k, cin, cout, cout, w2, b, wp, bp)


def _upconv_param(key, cin, cout):
    # TODO(synk): PyTorch ConvTranspose3d default init uses fan_in=cout*k^3; harmless
    #             for random weights but adjust if porting real torch weights.
    bound = 1.0 / np.sqrt(8 * cin)
    kw, kb = jax.random.split(key)
    w = jax.random.uniform(kw, (cin, 2, 2, 2, cout), jnp.float32, -bound, bound)
    b = jax.random.uniform(kb, (cout,), jnp.float32, -bound, bound)
    Nf = 8 * cout
    Kp, Np = _rup(cin, LANE), _rup(Nf, LANE)
    w2 = w.reshape(cin, Nf).astype(jnp.bfloat16)
    bfull = jnp.tile(b, 8)                                   # per (2,2,2,cout) column order
    wp = jnp.pad(w2, ((0, Kp - cin), (0, Np - Nf)))
    bp = jnp.pad(bfull, (0, Np - Nf)).reshape(1, Np).astype(jnp.float32)
    return PConv("up", 2, cin, cout, Nf, w2, bfull, wp, bp)


def _lin_param(key, cin, cout):
    bound = 1.0 / np.sqrt(cin)
    kw, kb = jax.random.split(key)
    w = jax.random.uniform(kw, (cin, cout), jnp.float32, -bound, bound)
    b = jax.random.uniform(kb, (cout,), jnp.float32, -bound, bound)
    return w, b


def init_params(key):
    # TODO(synk): sub-module internals (encoder/decoder blocks, SE ratio=2, PPM branch
    #             width = bneck/4, concat order [upsampled, skip]) are assumed; verify
    #             against the real PyTorch PyP3DUcsSENet sub-modules.
    keys = iter(jax.random.split(key, 128))
    params = {}
    enc = []
    cin = IN_CH
    for f in FEATURES:
        hidden = max(f // 2, 1)
        enc.append({
            "c1": _conv_param(next(keys), 3, cin, f),
            "c2": _conv_param(next(keys), 3, f, f),
            "se1": _lin_param(next(keys), f, hidden),
            "se2": _lin_param(next(keys), hidden, f),
        })
        cin = f
    params["enc"] = enc

    bneck = FEATURES[-1] * 2
    params["bottleneck"] = _conv_param(next(keys), 1, FEATURES[-1], bneck)

    branch_c = bneck // len(POOL_SIZES)
    params["ppm_branches"] = [_conv_param(next(keys), 1, bneck, branch_c) for _ in POOL_SIZES]
    params["ppm_fuse"] = _conv_param(next(keys), 1, bneck + branch_c * len(POOL_SIZES), bneck)

    dec = []
    cur = bneck
    for f in FEATURES[::-1]:
        hidden = max(f // 2, 1)
        dec.append({
            "up": _upconv_param(next(keys), cur, f),
            "c1": _conv_param(next(keys), 3, 2 * f, f),
            "c2": _conv_param(next(keys), 3, f, f),
            "se1": _lin_param(next(keys), f, hidden),
            "se2": _lin_param(next(keys), hidden, f),
        })
        cur = f
    params["dec"] = dec
    params["final"] = _conv_param(next(keys), 1, FEATURES[0], OUT_CH)
    return params


# ----------------------------- forward ------------------------------------------
def forward(params, x):
    h = x.astype(jnp.bfloat16)
    skips = []
    # encoder
    for lvl in params["enc"]:
        h = conv3d(h, lvl["c1"], act="relu")
        h = conv3d(h, lvl["c2"], act="relu")
        h = se_block(h, *lvl["se1"], *lvl["se2"])
        skips.append(h)
        h = max_pool3d_2x(h)
    # bottleneck (plain 1x1x1 Conv3d, no activation)
    h = conv3d(h, params["bottleneck"], act="none")
    # pyramid pooling
    h = pyramid_pooling(h, params["ppm_branches"], params["ppm_fuse"])
    # decoder
    for lvl, skip in zip(params["dec"], skips[::-1]):
        h = conv_transpose3d_2x(h, lvl["up"])
        h = jnp.concatenate([h, skip], axis=-1)
        h = conv3d(h, lvl["c1"], act="relu")
        h = conv3d(h, lvl["c2"], act="relu")
        h = se_block(h, *lvl["se1"], *lvl["se2"])
    # final 1x1x1 conv
    h = conv3d(h, params["final"], act="none")
    return h.astype(jnp.float32)


if __name__ == "__main__":
    key = jax.random.PRNGKey(0)
    pkey, xkey = jax.random.split(key)
    params = init_params(pkey)
    # torch input (N, C, D, H, W) = (1, 1, 16, 16, 16)  ->  NDHWC (1, 16, 16, 16, 1)
    x = jax.random.normal(xkey, (1, 16, 16, 16, 1), jnp.float32)
    fwd = jax.jit(forward)
    y = fwd(params, x)
    jax.block_until_ready(y)
    assert y.shape == (1, 16, 16, 16, OUT_CH)
    assert bool(jnp.all(jnp.isfinite(y)))
    print("KERNEL_OK")
</pallas_src>

<mosaic_0001>
module attributes {stable_mosaic.version = 11 : i64} {
  func.func @_mm_kernel(%arg0: i32, %arg1: i32, %arg2: memref<2048x128xbf16, #tpu.memory_space<vmem>>, %arg3: memref<128x128xbf16, #tpu.memory_space<vmem>>, %arg4: memref<1x128xf32, #tpu.memory_space<vmem>>, %arg5: memref<2048x128xbf16, #tpu.memory_space<vmem>>) attributes {dimension_semantics = [#tpu.dimension_semantics<parallel>, #tpu.dimension_semantics<parallel>], iteration_bounds = array<i64: 2, 1>, scalar_prefetch = 0 : i64, scratch_operands = 0 : i64, tpu.core_type = #tpu.core_type<tc>, window_params = [{transform_indices = @transform_0, window_bounds = array<i64: 2048, 128>}, {transform_indices = @transform_1, window_bounds = array<i64: 128, 128>}, {transform_indices = @transform_2, window_bounds = array<i64: 1, 128>}, {transform_indices = @transform_3, window_bounds = array<i64: 2048, 128>}]} {
    %c0 = arith.constant 0 : index
    %c0_0 = arith.constant 0 : index
    %0 = vector.load %arg2[%c0, %c0_0] : memref<2048x128xbf16, #tpu.memory_space<vmem>>, vector<2048x128xbf16>
    %c0_1 = arith.constant 0 : index
    %c0_2 = arith.constant 0 : index
    %1 = vector.load %arg3[%c0_1, %c0_2] : memref<128x128xbf16, #tpu.memory_space<vmem>>, vector<128x128xbf16>
    %cst = arith.constant dense<0.000000e+00> : vector<2048x128xf32>
    %2 = tpu.matmul %0, %1, %cst {dimension_numbers = #tpu.dot_dimension_numbers<[1], [0], [0], [1], [0, 0, 1, 1], [], []>} : vector<2048x128xbf16>, vector<128x128xbf16>, vector<2048x128xf32> -> vector<2048x128xf32>
    %c0_3 = arith.constant 0 : index
    %c0_4 = arith.constant 0 : index
    %3 = vector.load %arg4[%c0_3, %c0_4] : memref<1x128xf32, #tpu.memory_space<vmem>>, vector<1x128xf32>
    %4 = vector.broadcast %3 : vector<1x128xf32> to vector<2048x128xf32>
    %5 = arith.addf %2, %4 : vector<2048x128xf32>
    %cst_5 = arith.constant 0.000000e+00 : f32
    %6 = vector.broadcast %cst_5 : f32 to vector<2048x128xf32>
    %7 = arith.maximumf %5, %6 : vector<2048x128xf32>
    %8 = arith.truncf %7 : vector<2048x128xf32> to vector<2048x128xbf16>
    %c0_6 = arith.constant 0 : index
    %c0_7 = arith.constant 0 : index
    %9 = vector.load %arg5[%c0_6, %c0_7] : memref<2048x128xbf16, #tpu.memory_space<vmem>>, vector<2048x128xbf16>
    tpu.vector_store %arg5[%c0_6, %c0_7], %8 {strides = array<i32>} : memref<2048x128xbf16, #tpu.memory_space<vmem>>, vector<2048x128xbf16>,
    return
  }
  func.func @transform_0(%arg0: i32, %arg1: i32) -> (i32, i32) {
    %c0_i32 = arith.constant 0 : i32
    %c0_i32_0 = arith.constant 0 : i32
    return %arg0, %c0_i32 : i32, i32
  }
  func.func @transform_1(%arg0: i32, %arg1: i32) -> (i32, i32) {
    %c0_i32 = arith.constant 0 : i32
    %c0_i32_0 = arith.constant 0 : i32
    return %c0_i32, %arg1 : i32, i32
  }
  func.func @transform_2(%arg0: i32, %arg1: i32) -> (i32, i32) {
    %c0_i32 = arith.constant 0 : i32
    %c0_i32_0 = arith.constant 0 : i32
    return %c0_i32, %arg1 : i32, i32
  }
  func.func @transform_3(%arg0: i32, %arg1: i32) -> (i32, i32) {
    %c0_i32 = arith.constant 0 : i32
    return %arg0, %arg1 : i32, i32
  }
}

module attributes {stable_mosaic.version = 11 : i64} {
  func.func @_mm_kernel(%arg0: i32, %arg1: i32, %arg2: memref<2048x256xbf16, #tpu.memory_space<vmem>>, %arg3: memref<256x128xbf16, #tpu.memory_space<vmem>>, %arg4: memref<1x128xf32, #tpu.memory_space<vmem>>, %arg5: memref<2048x128xbf16, #tpu.memory_space<vmem>>) attributes {dimension_semantics = [#tpu.dimension_semantics<parallel>, #tpu.dimension_semantics<parallel>], iteration_bounds = array<i64: 2, 1>, scalar_prefetch = 0 : i64, scratch_operands = 0 : i64, tpu.core_type = #tpu.core_type<tc>, window_params = [{transform_indices = @transform_0, window_bounds = array<i64: 2048, 256>}, {transform_indices = @transform_1, window_bounds = array<i64: 256, 128>}, {transform_indices = @transform_2, window_bounds = array<i64: 1, 128>}, {transform_indices = @transform_3, window_bounds = array<i64: 2048, 128>}]} {
    %c0 = arith.constant 0 : index
    %c0_0 = arith.constant 0 : index
    %0 = vector.load %arg2[%c0, %c0_0] : memref<2048x256xbf16, #tpu.memory_space<vmem>>, vector<2048x256xbf16>
    %c0_1 = arith.constant 0 : index
    %c0_2 = arith.constant 0 : index
    %1 = vector.load %arg3[%c0_1, %c0_2] : memref<256x128xbf16, #tpu.memory_space<vmem>>, vector<256x128xbf16>
    %cst = arith.constant dense<0.000000e+00> : vector<2048x128xf32>
    %2 = tpu.matmul %0, %1, %cst {dimension_numbers = #tpu.dot_dimension_numbers<[1], [0], [0], [1], [0, 0, 1, 1], [], []>} : vector<2048x256xbf16>, vector<256x128xbf16>, vector<2048x128xf32> -> vector<2048x128xf32>
    %c0_3 = arith.constant 0 : index
    %c0_4 = arith.constant 0 : index
    %3 = vector.load %arg4[%c0_3, %c0_4] : memref<1x128xf32, #tpu.memory_space<vmem>>, vector<1x128xf32>
    %4 = vector.broadcast %3 : vector<1x128xf32> to vector<2048x128xf32>
    %5 = arith.addf %2, %4 : vector<2048x128xf32>
    %cst_5 = arith.constant 0.000000e+00 : f32
    %6 = vector.broadcast %cst_5 : f32 to vector<2048x128xf32>
    %7 = arith.maximumf %5, %6 : vector<2048x128xf32>
    %8 = arith.truncf %7 : vector<2048x128xf32> to vector<2048x128xbf16>
    %c0_6 = arith.constant 0 : index
    %c0_7 = arith.constant 0 : index
    %9 = vector.load %arg5[%c0_6, %c0_7] : memref<2048x128xbf16, #tpu.memory_space<vmem>>, vector<2048x128xbf16>
    tpu.vector_store %arg5[%c0_6, %c0_7], %8 {strides = array<i32>} : memref<2048x128xbf16, #tpu.memory_space<vmem>>, vector<2048x128xbf16>,
    return
  }
  func.func @transform_0(%arg0: i32, %arg1: i32) -> (i32, i32) {
    %c0_i32 = arith.constant 0 : i32
    %c0_i32_0 = arith.constant 0 : i32
    return %arg0, %c0_i32 : i32, i32
  }
  func.func @transform_1(%arg0: i32, %arg1: i32) -> (i32, i32) {
    %c0_i32 = arith.constant 0 : i32
    %c0_i32_0 = arith.constant 0 : i32
    return %c0_i32, %arg1 : i32, i32
  }
  func.func @transform_2(%arg0: i32, %arg1: i32) -> (i32, i32) {
    %c0_i32 = arith.constant 0 : i32
    %c0_i32_0 = arith.constant 0 : i32
    return %c0_i32, %arg1 : i32, i32
  }
  func.func @transform_3(%arg0: i32, %arg1: i32) -> (i32, i32) {
    %c0_i32 = arith.constant 0 : i32
    return %arg0, %arg1 : i32, i32
  }
}

module attributes {stable_mosaic.version = 11 : i64} {
  func.func @_mm_kernel(%arg0: i32, %arg1: i32, %arg2: memref<2048x512xbf16, #tpu.memory_space<vmem>>, %arg3: memref<512x128xbf16, #tpu.memory_space<vmem>>, %arg4: memref<1x128xf32, #tpu.memory_space<vmem>>, %arg5: memref<2048x128xbf16, #tpu.memory_space<vmem>>) attributes {dimension_semantics = [#tpu.dimension_semantics<parallel>, #tpu.dimension_semantics<parallel>], iteration_bounds = array<i64: 2, 1>, scalar_prefetch = 0 : i64, scratch_operands = 0 : i64, tpu.core_type = #tpu.core_type<tc>, window_params = [{transform_indices = @transform_0, window_bounds = array<i64: 2048, 512>}, {transform_indices = @transform_1, window_bounds = array<i64: 512, 128>}, {transform_indices = @transform_2, window_bounds = array<i64: 1, 128>}, {transform_indices = @transform_3, window_bounds = array<i64: 2048, 128>}]} {
    %c0 = arith.constant 0 : index
    %c0_0 = arith.constant 0 : index
    %0 = vector.load %arg2[%c0, %c0_0] : memref<2048x512xbf16, #tpu.memory_space<vmem>>, vector<2048x512xbf16>
    %c0_1 = arith.constant 0 : index
    %c0_2 = arith.constant 0 : index
    %1 = vector.load %arg3[%c0_1, %c0_2] : memref<512x128xbf16, #tpu.memory_space<vmem>>, vector<512x128xbf16>
    %cst = arith.constant dense<0.000000e+00> : vector<2048x128xf32>
    %2 = tpu.matmul %0, %1, %cst {dimension_numbers = #tpu.dot_dimension_numbers<[1], [0], [0], [1], [0, 0, 1, 1], [], []>} : vector<2048x512xbf16>, vector<512x128xbf16>, vector<2048x128xf32> -> vector<2048x128xf32>
    %c0_3 = arith.constant 0 : index
    %c0_4 = arith.constant 0 : index
    %3 = vector.load %arg4[%c0_3, %c0_4] : memref<1x128xf32, #tpu.memory_space<vmem>>, vector<1x128xf32>
    %4 = vector.broadcast %3 : vector<1x128xf32> to vector<2048x128xf32>
    %5 = arith.addf %2, %4 : vector<2048x128xf32>
    %cst_5 = arith.constant 0.000000e+00 : f32
    %6 = vector.broadcast %cst_5 : f32 to vector<2048x128xf32>
    %7 = arith.maximumf %5, %6 : vector<2048x128xf32>
    %8 = arith.truncf %7 : vector<2048x128xf32> to vector<2048x128xbf16>
    %c0_6 = arith.constant 0 : index
    %c0_7 = arith.constant 0 : index
    %9 = vector.load %arg5[%c0_6, %c0_7] : memref<2048x128xbf16, #tpu.memory_space<vmem>>, vector<2048x128xbf16>
    tpu.vector_store %arg5[%c0_6, %c0_7], %8 {strides = array<i32>} : memref<2048x128xbf16, #tpu.memory_space<vmem>>, vector<2048x128xbf16>,
    return
  }
  func.func @transform_0(%arg0: i32, %arg1: i32) -> (i32, i32) {
    %c0_i32 = arith.constant 0 : i32
    %c0_i32_0 = arith.constant 0 : i32
    return %arg0, %c0_i32 : i32, i32
  }
  func.func @transform_1(%arg0: i32, %arg1: i32) -> (i32, i32) {
    %c0_i32 = arith.constant 0 : i32
    %c0_i32_0 = arith.constant 0 : i32
    return %c0_i32, %arg1 : i32, i32
  }
  func.func @transform_2(%arg0: i32, %arg1: i32) -> (i32, i32) {
    %c0_i32 = arith.constant 0 : i32
    %c0_i32_0 = arith.constant 0 : i32
    return %c0_i32, %arg1 : i32, i32
  }
  func.func @transform_3(%arg0: i32, %arg1: i32) -> (i32, i32) {
    %c0_i32 = arith.constant 0 : i32
    return %arg0, %arg1 : i32, i32
  }
}

module attributes {stable_mosaic.version = 11 : i64} {
  func.func @_mm_kernel(%arg0: i32, %arg1: i32, %arg2: memref<2048x128xbf16, #tpu.memory_space<vmem>>, %arg3: memref<128x128xbf16, #tpu.memory_space<vmem>>, %arg4: memref<1x128xf32, #tpu.memory_space<vmem>>, %arg5: memref<2048x128xbf16, #tpu.memory_space<vmem>>) attributes {dimension_semantics = [#tpu.dimension_semantics<parallel>, #tpu.dimension_semantics<parallel>], iteration_bounds = array<i64: 2, 1>, scalar_prefetch = 0 : i64, scratch_operands = 0 : i64, tpu.core_type = #tpu.core_type<tc>, window_params = [{transform_indices = @transform_0, window_bounds = array<i64: 2048, 128>}, {transform_indices = @transform_1, window_bounds = array<i64: 128, 128>}, {transform_indices = @transform_2, window_bounds = array<i64: 1, 128>}, {transform_indices = @transform_3, window_bounds = array<i64: 2048, 128>}]} {
    %c0 = arith.constant 0 : index
    %c0_0 = arith.constant 0 : index
    %0 = vector.load %arg2[%c0, %c0_0] : memref<2048x128xbf16, #tpu.memory_space<vmem>>, vector<2048x128xbf16>
    %c0_1 = arith.constant 0 : index
    %c0_2 = arith.constant 0 : index
    %1 = vector.load %arg3[%c0_1, %c0_2] : memref<128x128xbf16, #tpu.memory_space<vmem>>, vector<128x128xbf16>
    %cst = arith.constant dense<0.000000e+00> : vector<2048x128xf32>
    %2 = tpu.matmul %0, %1, %cst {dimension_numbers = #tpu.dot_dimension_numbers<[1], [0], [0], [1], [0, 0, 1, 1], [], []>} : vector<2048x128xbf16>, vector<128x128xbf16>, vector<2048x128xf32> -> vector<2048x128xf32>
    %c0_3 = arith.constant 0 : index
    %c0_4 = arith.constant 0 : index
    %3 = vector.load %arg4[%c0_3, %c0_4] : memref<1x128xf32, #tpu.memory_space<vmem>>, vector<1x128xf32>
    %4 = vector.broadcast %3 : vector<1x128xf32> to vector<2048x128xf32>
    %5 = arith.addf %2, %4 : vector<2048x128xf32>
    %6 = arith.truncf %5 : vector<2048x128xf32> to vector<2048x128xbf16>
    %c0_5 = arith.constant 0 : index
    %c0_6 = arith.constant 0 : index
    %7 = vector.load %arg5[%c0_5, %c0_6] : memref<2048x128xbf16, #tpu.memory_space<vmem>>, vector<2048x128xbf16>
    tpu.vector_store %arg5[%c0_5, %c0_6], %6 {strides = array<i32>} : memref<2048x128xbf16, #tpu.memory_space<vmem>>, vector<2048x128xbf16>,
    return
  }
  func.func @transform_0(%arg0: i32, %arg1: i32) -> (i32, i32) {
    %c0_i32 = arith.constant 0 : i32
    %c0_i32_0 = arith.constant 0 : i32
    return %arg0, %c0_i32 : i32, i32
  }
  func.func @transform_1(%arg0: i32, %arg1: i32) -> (i32, i32) {
    %c0_i32 = arith.constant 0 : i32
    %c0_i32_0 = arith.constant 0 : i32
    return %c0_i32, %arg1 : i32, i32
  }
  func.func @transform_2(%arg0: i32, %arg1: i32) -> (i32, i32) {
    %c0_i32 = arith.constant 0 : i32
    %c0_i32_0 = arith.constant 0 : i32
    return %c0_i32, %arg1 : i32, i32
  }
  func.func @transform_3(%arg0: i32, %arg1: i32) -> (i32, i32) {
    %c0_i32 = arith.constant 0 : i32
    return %arg0, %arg1 : i32, i32
  }
}

</mosaic_0001>

<bundles_post_ra>
// kernel: forward.5
= control target key start
LH: loop header
LB: loop body
LE: loop exit
PB: predicated region body
PF: predicated region fallthrough
CT: control target
= control target key end

     0   :  { %s6075_s12 = smov 0   ;;  %s6077_s13 = smov 0   ;;  %s6656_s0 = inlined_call_operand.vmem [shape: bf16[4096,128], index: 0, kind: input, shape index: {}]   ;;  %s6657_s1 = inlined_call_operand.vmem [shape: bf16[128,128], index: 1, kind: input, shape index: {}]   ;;  %s6658_s2 = inlined_call_operand.vmem [shape: f32[1,128], index: 2, kind: input, shape index: {}]   ;;  %s6659_s3 = inlined_call_operand.vmem [shape: bf16[4096,128], index: 3, kind: output, shape index: {}]  }
   0x1   :  { %s6079_s14 = smov 0  }
   0x2 LB: > { %s25_s15 = sadd.s32 1, %s6049_s13  ;;  %p4022_p0 = scmp.ge.s32.totalorder %s6053_s14, 1  ;;  %s6053_s14 = sphi %s6079_s14, %s13_s14   ;;  %s6049_s13 = sphi %s6077_s13, %s6661_s13   ;;  %s6045_s12 = sphi %s6075_s12, %s6660_s12  }
   0x3   : > { %p27_p1 = scmp.ge.s32.totalorder %s25_s15, 2  ;;  %p169_p2 = scmp.lt.s32.totalorder %s6053_s14, 3 }
   0x5   : > { %s6663_s15 = smov (%p27_p1, %s25_s15), 0  ;;  %p170_p3 = pnand %p4022_p0, %p169_p2 }
   0x6   : > { %s4023_s18 = sshll.u32 (!%p170_p3), %s6045_s12, 8 }
   0x7   : > { %173 = sbr.rel (%p170_p3) target bundleno = 499 (0x1f3), region = 32  ;;  %p204_p4 = scmp.lt.s32.totalorder (!%p170_p3), %s4023_s18, 511 }
   0xc   : > { %v5893_v0 = vld [vmem:[%s6657_s1 + $0x38] sm:$0xff]   ;;  %v5894_v1 = vld [vmem:[%s6657_s1 + $0x30] sm:$0xff]   ;;  %s6665_s18 = smov (!%p204_p4, %s4023_s18), 511  ;;  %v5895_v2 = vld [vmem:[%s6657_s1 + $0x28] sm:$0xff]  }
   0xd   : > { %5581 = vmatprep.subr.bf16.mxu0 %v5893_v0  ;;  %5853 = vmatprep.subr.bf16.mxu1 %v5893_v0  ;;  %s4024_s23 = sshll.u32 %s6665_s18, 2  ;;  %v5896_v3 = vld [vmem:[%s6657_s1 + $0x20] sm:$0xff]   ;;  %v5897_v6 = vld [vmem:[%s6657_s1 + $0x18] sm:$0xff]   ;;  %v5898_v7 = vld [vmem:[%s6657_s1 + $0x10] sm:$0xff]  }
   0xe   : > { %5582 = vmatpush3.bf16.msra.mxu0 %v5893_v0  ;;  %5861 = vmatpush3.bf16.msra.mxu1 %v5893_v0  ;;  %s6110_s26 = scalar_lea.vmem %s6656_s0, %s4024_s23  ;;  %v5899_v8 = vld [vmem:[%s6657_s1 + $0x8] sm:$0xff]   ;;  %v5900_v9 = vld [vmem:[%s6657_s1] sm:$0xff]   ;;  %s6251_s17 = scalar_lea.vmem %s6659_s3, %s4024_s23 }
   0xf   : > { %5583 = vmatprep.subr.bf16.mxu0 %v5894_v1  ;;  %5854 = vmatprep.subr.bf16.mxu1 %v5894_v1  ;;  %v5901_v4 = vld [vmem:[%s6110_s26] sm:$0xff]   ;;  %v5903_v10 = vld [vmem:[%s6110_s26 + $0x8] sm:$0xff]   ;;  %v5905_v12 = vld [vmem:[%s6110_s26 + $0x10] sm:$0xff]  }
  0x10   : > { %v5902_v5 = vld [vmem:[%s6110_s26 + $0x200] sm:$0xff]   ;;  %5597 = vmatprep.mubr.bf16.mxu0 %v5901_v4  ;;  %v5904_v11 = vld [vmem:[%s6110_s26 + $0x208] sm:$0xff]   ;;  %v5906_v13 = vld [vmem:[%s6110_s26 + $0x210] sm:$0xff]  }
  0x11   : > { %5725 = vmatprep.mubr.bf16.mxu1 %v5902_v5  ;;  %v5907_v14 = vld [vmem:[%s6110_s26 + $0x18] sm:$0xff]   ;;  %v5909_v16 = vld [vmem:[%s6110_s26 + $0x20] sm:$0xff]   ;;  %v5911_v18 = vld [vmem:[%s6110_s26 + $0x28] sm:$0xff]  }
  0x12   : > { %5584 = vmatpush3.bf16.msra.mxu0 %v5894_v1  ;;  %5862 = vmatpush3.bf16.msra.mxu1 %v5894_v1  ;;  %v5908_v15 = vld [vmem:[%s6110_s26 + $0x218] sm:$0xff]   ;;  %v5910_v17 = vld [vmem:[%s6110_s26 + $0x220] sm:$0xff]   ;;  %v5912_v19 = vld [vmem:[%s6110_s26 + $0x228] sm:$0xff]  }
  0x13   : > { %5585 = vmatprep.subr.bf16.mxu0 %v5895_v2  ;;  %5855 = vmatprep.subr.bf16.mxu1 %v5895_v2  ;;  %v5913_v20 = vld [vmem:[%s6110_s26 + $0x30] sm:$0xff]   ;;  %v5915_v22 = vld [vmem:[%s6110_s26 + $0x38] sm:$0xff]   ;;  %v5917_v24 = vld [vmem:[%s6110_s26 + $0x40] sm:$0xff]  }
  0x14   : > { %v5914_v21 = vld [vmem:[%s6110_s26 + $0x230] sm:$0xff]   ;;  %v5916_v23 = vld [vmem:[%s6110_s26 + $0x238] sm:$0xff]   ;;  %v5918_v25 = vld [vmem:[%s6110_s26 + $0x240] sm:$0xff]  }
  0x15   : > { %v5919_v26 = vld [vmem:[%s6110_s26 + $0x48] sm:$0xff]   ;;  %v5921_v28 = vld [vmem:[%s6110_s26 + $0x50] sm:$0xff]   ;;  %v5923_v30 = vld [vmem:[%s6110_s26 + $0x58] sm:$0xff]  }
  0x16   : > { %5586 = vmatpush3.bf16.msra.mxu0 %v5895_v2  ;;  %5863 = vmatpush3.bf16.msra.mxu1 %v5895_v2  ;;  %v5920_v27 = vld [vmem:[%s6110_s26 + $0x248] sm:$0xff]   ;;  %v5922_v29 = vld [vmem:[%s6110_s26 + $0x250] sm:$0xff]   ;;  %v5924_v31 = vld [vmem:[%s6110_s26 + $0x258] sm:$0xff]  }
  0x17   : > { %5587 = vmatprep.subr.bf16.mxu0 %v5896_v3  ;;  %5856 = vmatprep.subr.bf16.mxu1 %v5896_v3  ;;  %v5925_v32 = vld [vmem:[%s6110_s26 + $0x60] sm:$0xff]   ;;  %v5927_v34 = vld [vmem:[%s6110_s26 + $0x68] sm:$0xff]   ;;  %v5929_v36 = vld [vmem:[%s6110_s26 + $0x70] sm:$0xff]  }
  0x18   : > { %v5926_v33 = vld [vmem:[%s6110_s26 + $0x260] sm:$0xff]   ;;  %v5928_v35 = vld [vmem:[%s6110_s26 + $0x268] sm:$0xff]   ;;  %v5930_v37 = vld [vmem:[%s6110_s26 + $0x270] sm:$0xff]  }
  0x19   : > { %v5931_v38 = vld [vmem:[%s6110_s26 + $0x78] sm:$0xff]   ;;  %v5933_v40 = vld [vmem:[%s6110_s26 + $0x80] sm:$0xff]   ;;  %v5935_v42 = vld [vmem:[%s6110_s26 + $0x88] sm:$0xff]  }
  0x1a   : > { %5588 = vmatpush3.bf16.msra.mxu0 %v5896_v3  ;;  %5864 = vmatpush3.bf16.msra.mxu1 %v5896_v3  ;;  %v5932_v39 = vld [vmem:[%s6110_s26 + $0x278] sm:$0xff]   ;;  %v5934_v41 = vld [vmem:[%s6110_s26 + $0x280] sm:$0xff]   ;;  %v5936_v43 = vld [vmem:[%s6110_s26 + $0x288] sm:$0xff]  }
  0x1b   : > { %5589 = vmatprep.subr.bf16.mxu0 %v5897_v6  ;;  %5857 = vmatprep.subr.bf16.mxu1 %v5897_v6  ;;  %v5937_v44 = vld [vmem:[%s6110_s26 + $0x90] sm:$0xff]   ;;  %v5939_v46 = vld [vmem:[%s6110_s26 + $0x98] sm:$0xff]   ;;  %v5941_v48 = vld [vmem:[%s6110_s26 + $0xa0] sm:$0xff]  }
  0x1c   : > { %v5938_v45 = vld [vmem:[%s6110_s26 + $0x290] sm:$0xff]   ;;  %v5940_v47 = vld [vmem:[%s6110_s26 + $0x298] sm:$0xff]   ;;  %v5942_v49 = vld [vmem:[%s6110_s26 + $0x2a0] sm:$0xff]  }
  0x1d   : > { %v5943_v50 = vld [vmem:[%s6110_s26 + $0xa8] sm:$0xff]   ;;  %v5945_v52 = vld [vmem:[%s6110_s26 + $0xb0] sm:$0xff]   ;;  %v5947_v54 = vld [vmem:[%s6110_s26 + $0xb8] sm:$0xff]  }
  0x1e   : > { %5590 = vmatpush3.bf16.msra.mxu0 %v5897_v6  ;;  %5865 = vmatpush3.bf16.msra.mxu1 %v5897_v6  ;;  %v5944_v51 = vld [vmem:[%s6110_s26 + $0x2a8] sm:$0xff]   ;;  %v5946_v53 = vld [vmem:[%s6110_s26 + $0x2b0] sm:$0xff]   ;;  %v5948_v55 = vld [vmem:[%s6110_s26 + $0x2b8] sm:$0xff]  }
  0x1f   : > { %5591 = vmatprep.subr.bf16.mxu0 %v5898_v7  ;;  %5858 = vmatprep.subr.bf16.mxu1 %v5898_v7  ;;  %v5949_v56 = vld [vmem:[%s6110_s26 + $0xc0] sm:$0xff]   ;;  %v5951_v58 = vld [vmem:[%s6110_s26 + $0xc8] sm:$0xff]   ;;  %v5953_v60 = vld [vmem:[%s6110_s26 + $0xd0] sm:$0xff]  }
  0x20   : > { %v5950_v57 = vld [vmem:[%s6110_s26 + $0x2c0] sm:$0xff]   ;;  %v5952_v59 = vld [vmem:[%s6110_s26 + $0x2c8] sm:$0xff]   ;;  %v5954_v61 = vld [vmem:[%s6110_s26 + $0x2d0] sm:$0xff]  }
  0x21   : > { %v5955_v62 = vld [vmem:[%s6110_s26 + $0xd8] sm:$0xff]   ;;  %v5957_v0 = vld [vmem:[%s6110_s26 + $0xe0] sm:$0xff]   ;;  %v5959_v2 = vld [vmem:[%s6110_s26 + $0xe8] sm:$0xff]  }
  0x22   : > { %5592 = vmatpush3.bf16.msra.mxu0 %v5898_v7  ;;  %5866 = vmatpush3.bf16.msra.mxu1 %v5898_v7  ;;  %v5956_v63 = vld [vmem:[%s6110_s26 + $0x2d8] sm:$0xff]   ;;  %v5958_v1 = vld [vmem:[%s6110_s26 + $0x2e0] sm:$0xff]   ;;  %v5960_v3 = vld [vmem:[%s6110_s26 + $0x2e8] sm:$0xff]  }
  0x23   : > { %5593 = vmatprep.subr.bf16.mxu0 %v5899_v8  ;;  %5859 = vmatprep.subr.bf16.mxu1 %v5899_v8  ;;  %v5961_v4 = vld [vmem:[%s6110_s26 + $0xf0] sm:$0xff]   ;;  %v5963_v6 = vld [vmem:[%s6110_s26 + $0xf8] sm:$0xff]  }
  0x24   : > { %v5962_v5 = vld [vmem:[%s6110_s26 + $0x2f0] sm:$0xff]   ;;  %v5964_v7 = vld [vmem:[%s6110_s26 + $0x2f8] sm:$0xff]  }
  0x26   : > { %5594 = vmatpush3.bf16.msra.mxu0 %v5899_v8  ;;  %5867 = vmatpush3.bf16.msra.mxu1 %v5899_v8  ;;  %v5965_v8 = vld [vmem:[%s6110_s26 + $0x100] sm:$0xff]  }
  0x27   : > { %5595 = vmatprep.subr.bf16.mxu0 %v5900_v9  ;;  %5860 = vmatprep.subr.bf16.mxu1 %v5900_v9 }
  0x2a   : > { %5596 = vmatpush3.bf16.msra.mxu0 %v5900_v9  ;;  %5868 = vmatpush3.bf16.msra.mxu1 %v5900_v9  ;;  %v5966_v9 = vld [vmem:[%s6110_s26 + $0x300] sm:$0xff]  }
  0x2d   : > { %5598 = vmatmul.mubr.bf16.vlgmr.msra.gmra.mxu0 %v5903_v10  ;;  %5726 = vmatmul.mubr.bf16.vlgmr.msra.gmra.mxu1 %v5904_v11  ;;  %v5967_v10 = vld [vmem:[%s6110_s26 + $0x108] sm:$0xff]  }
  0x2e   : > { %5601 = vmatprep.mubr.bf16.mxu0 %v5905_v12  ;;  %5729 = vmatprep.mubr.bf16.mxu1 %v5906_v13  ;;  %v5968_v11 = vld [vmem:[%s6110_s26 + $0x308] sm:$0xff]   ;;  %v5969_v12 = vld [vmem:[%s6110_s26 + $0x110] sm:$0xff]  }
  0x2f   : > { %v5970_v13 = vld [vmem:[%s6110_s26 + $0x310] sm:$0xff]  }
  0x35   : > { %5602 = vmatmul.mubr.bf16.gmra.mxu0 %v5907_v14  ;;  %5730 = vmatmul.mubr.bf16.gmra.mxu1 %v5908_v15  ;;  %v5971_v14 = vld [vmem:[%s6110_s26 + $0x118] sm:$0xff]  }
  0x36   : > { %5605 = vmatprep.mubr.bf16.mxu0 %v5909_v16  ;;  %5733 = vmatprep.mubr.bf16.mxu1 %v5910_v17  ;;  %v5972_v15 = vld [vmem:[%s6110_s26 + $0x318] sm:$0xff]   ;;  %v5973_v16 = vld [vmem:[%s6110_s26 + $0x120] sm:$0xff]  }
  0x37   : > { %v5974_v17 = vld [vmem:[%s6110_s26 + $0x320] sm:$0xff]  }
  0x3d   : > { %5606 = vmatmul.mubr.bf16.gmra.mxu0 %v5911_v18  ;;  %5734 = vmatmul.mubr.bf16.gmra.mxu1 %v5912_v19  ;;  %v5975_v18 = vld [vmem:[%s6110_s26 + $0x128] sm:$0xff]  }
  0x3e   : > { %5609 = vmatprep.mubr.bf16.mxu0 %v5913_v20  ;;  %5737 = vmatprep.mubr.bf16.mxu1 %v5914_v21  ;;  %v5976_v19 = vld [vmem:[%s6110_s26 + $0x328] sm:$0xff]   ;;  %v5977_v20 = vld [vmem:[%s6110_s26 + $0x130] sm:$0xff]  }
  0x3f   : > { %v5978_v21 = vld [vmem:[%s6110_s26 + $0x330] sm:$0xff]  }
  0x45   : > { %5610 = vmatmul.mubr.bf16.gmra.mxu0 %v5915_v22  ;;  %5738 = vmatmul.mubr.bf16.gmra.mxu1 %v5916_v23  ;;  %v5979_v22 = vld [vmem:[%s6110_s26 + $0x138] sm:$0xff]  }
  0x46   : > { %5613 = vmatprep.mubr.bf16.mxu0 %v5917_v24  ;;  %5741 = vmatprep.mubr.bf16.mxu1 %v5918_v25  ;;  %v5980_v23 = vld [vmem:[%s6110_s26 + $0x338] sm:$0xff]   ;;  %v5981_v24 = vld [vmem:[%s6110_s26 + $0x140] sm:$0xff]  }
  0x47   : > { %v5982_v25 = vld [vmem:[%s6110_s26 + $0x340] sm:$0xff]  }
  0x4d   : > { %5614 = vmatmul.mubr.bf16.gmra.mxu0 %v5919_v26  ;;  %5742 = vmatmul.mubr.bf16.gmra.mxu1 %v5920_v27  ;;  %v5983_v26 = vld [vmem:[%s6110_s26 + $0x148] sm:$0xff]  }
  0x4e   : > { %5617 = vmatprep.mubr.bf16.mxu0 %v5921_v28  ;;  %5745 = vmatprep.mubr.bf16.mxu1 %v5922_v29  ;;  %v5984_v27 = vld [vmem:[%s6110_s26 + $0x348] sm:$0xff]   ;;  %v5985_v28 = vld [vmem:[%s6110_s26 + $0x150] sm:$0xff]  }
  0x4f   : > { %v5986_v29 = vld [vmem:[%s6110_s26 + $0x350] sm:$0xff]  }
  0x55   : > { %5618 = vmatmul.mubr.bf16.gmra.mxu0 %v5923_v30  ;;  %5746 = vmatmul.mubr.bf16.gmra.mxu1 %v5924_v31  ;;  %v5987_v30 = vld [vmem:[%s6110_s26 + $0x158] sm:$0xff]  }
  0x56   : > { %5621 = vmatprep.mubr.bf16.mxu0 %v5925_v32  ;;  %5749 = vmatprep.mubr.bf16.mxu1 %v5926_v33  ;;  %v5988_v31 = vld [vmem:[%s6110_s26 + $0x358] sm:$0xff]   ;;  %v5989_v32 = vld [vmem:[%s6110_s26 + $0x160] sm:$0xff]  }
  0x57   : > { %v5990_v33 = vld [vmem:[%s6110_s26 + $0x360] sm:$0xff]  }
  0x5d   : > { %5622 = vmatmul.mubr.bf16.gmra.mxu0 %v5927_v34  ;;  %5750 = vmatmul.mubr.bf16.gmra.mxu1 %v5928_v35  ;;  %v5991_v34 = vld [vmem:[%s6110_s26 + $0x168] sm:$0xff]  }
  0x5e   : > { %5625 = vmatprep.mubr.bf16.mxu0 %v5929_v36  ;;  %5753 = vmatprep.mubr.bf16.mxu1 %v5930_v37  ;;  %v5992_v35 = vld [vmem:[%s6110_s26 + $0x368] sm:$0xff]   ;;  %v5993_v36 = vld [vmem:[%s6110_s26 + $0x170] sm:$0xff]  }
  0x5f   : > { %v5994_v37 = vld [vmem:[%s6110_s26 + $0x370] sm:$0xff]  }
  0x65   : > { %5626 = vmatmul.mubr.bf16.gmra.mxu0 %v5931_v38  ;;  %5754 = vmatmul.mubr.bf16.gmra.mxu1 %v5932_v39  ;;  %v5995_v38 = vld [vmem:[%s6110_s26 + $0x178] sm:$0xff]  }
  0x66   : > { %5629 = vmatprep.mubr.bf16.mxu0 %v5933_v40  ;;  %5757 = vmatprep.mubr.bf16.mxu1 %v5934_v41  ;;  %v5996_v39 = vld [vmem:[%s6110_s26 + $0x378] sm:$0xff]   ;;  %v5997_v40 = vld [vmem:[%s6110_s26 + $0x180] sm:$0xff]  }
  0x67   : > { %v5998_v41 = vld [vmem:[%s6110_s26 + $0x380] sm:$0xff]  }
  0x6d   : > { %5630 = vmatmul.mubr.bf16.gmra.mxu0 %v5935_v42  ;;  %5758 = vmatmul.mubr.bf16.gmra.mxu1 %v5936_v43  ;;  %v5999_v42 = vld [vmem:[%s6110_s26 + $0x188] sm:$0xff]  }
  0x6e   : > { %5633 = vmatprep.mubr.bf16.mxu0 %v5937_v44  ;;  %5761 = vmatprep.mubr.bf16.mxu1 %v5938_v45  ;;  %v6000_v43 = vld [vmem:[%s6110_s26 + $0x388] sm:$0xff]   ;;  %v6001_v44 = vld [vmem:[%s6110_s26 + $0x190] sm:$0xff]  }
  0x6f   : > { %v6002_v45 = vld [vmem:[%s6110_s26 + $0x390] sm:$0xff]  }
  0x75   : > { %5634 = vmatmul.mubr.bf16.gmra.mxu0 %v5939_v46  ;;  %5762 = vmatmul.mubr.bf16.gmra.mxu1 %v5940_v47  ;;  %v6232_v46 = vld [vmem:[%s6658_s2] ss:$0 sm:$0xff] }
  0x76   : > { %5637 = vmatprep.mubr.bf16.mxu0 %v5941_v48  ;;  %5765 = vmatprep.mubr.bf16.mxu1 %v5942_v49 }
  0x7d   : > { %5638 = vmatmul.mubr.bf16.gmra.mxu0 %v5943_v50  ;;  %5766 = vmatmul.mubr.bf16.gmra.mxu1 %v5944_v51 }
  0x7e   : > { %5641 = vmatprep.mubr.bf16.mxu0 %v5945_v52  ;;  %5769 = vmatprep.mubr.bf16.mxu1 %v5946_v53 }
  0x85   : > { %5642 = vmatmul.mubr.bf16.gmra.mxu0 %v5947_v54  ;;  %5770 = vmatmul.mubr.bf16.gmra.mxu1 %v5948_v55 }
  0x86   : > { %5645 = vmatprep.mubr.bf16.mxu0 %v5949_v56  ;;  %5773 = vmatprep.mubr.bf16.mxu1 %v5950_v57  ;;  %v6003_v57 = vld [vmem:[%s6110_s26 + $0x198] sm:$0xff]  }
  0x8d   : > { %5646 = vmatmul.mubr.bf16.gmra.mxu0 %v5951_v58  ;;  %5774 = vmatmul.mubr.bf16.gmra.mxu1 %v5952_v59  ;;  %v6004_v58 = vld [vmem:[%s6110_s26 + $0x398] sm:$0xff]  }
  0x8e   : > { %5649 = vmatprep.mubr.bf16.mxu0 %v5953_v60  ;;  %5777 = vmatprep.mubr.bf16.mxu1 %v5954_v61  ;;  %v6005_v61 = vld [vmem:[%s6110_s26 + $0x1a0] sm:$0xff]  }
  0x95   : > { %5650 = vmatmul.mubr.bf16.gmra.mxu0 %v5955_v62  ;;  %5778 = vmatmul.mubr.bf16.gmra.mxu1 %v5956_v63  ;;  %v6006_v62 = vld [vmem:[%s6110_s26 + $0x3a0] sm:$0xff]  }
  0x96   : > { %5653 = vmatprep.mubr.bf16.mxu0 %v5957_v0  ;;  %5781 = vmatprep.mubr.bf16.mxu1 %v5958_v1 }
  0x9d   : > { %5654 = vmatmul.mubr.bf16.gmra.mxu0 %v5959_v2  ;;  %5782 = vmatmul.mubr.bf16.gmra.mxu1 %v5960_v3 }
  0x9e   : > { %5657 = vmatprep.mubr.bf16.mxu0 %v5961_v4  ;;  %5785 = vmatprep.mubr.bf16.mxu1 %v5962_v5 }
  0xa5   : > { %5658 = vmatmul.mubr.bf16.gmra.mxu0 %v5963_v6  ;;  %5786 = vmatmul.mubr.bf16.gmra.mxu1 %v5964_v7 }
  0xa6   : > { %5661 = vmatprep.mubr.bf16.mxu0 %v5965_v8  ;;  %5789 = vmatprep.mubr.bf16.mxu1 %v5966_v9 }
  0xad   : > { %5662 = vmatmul.mubr.bf16.gmra.mxu0 %v5967_v10  ;;  %5790 = vmatmul.mubr.bf16.gmra.mxu1 %v5968_v11 }
  0xae   : > { %5665 = vmatprep.mubr.bf16.mxu0 %v5969_v12  ;;  %5793 = vmatprep.mubr.bf16.mxu1 %v5970_v13 }
  0xb5   : > { %5666 = vmatmul.mubr.bf16.gmra.mxu0 %v5971_v14  ;;  %5794 = vmatmul.mubr.bf16.gmra.mxu1 %v5972_v15 }
  0xb6   : > { %5669 = vmatprep.mubr.bf16.mxu0 %v5973_v16  ;;  %5797 = vmatprep.mubr.bf16.mxu1 %v5974_v17 }
  0xbd   : > { %5670 = vmatmul.mubr.bf16.gmra.mxu0 %v5975_v18  ;;  %5798 = vmatmul.mubr.bf16.gmra.mxu1 %v5976_v19 }
  0xbe   : > { %5673 = vmatprep.mubr.bf16.mxu0 %v5977_v20  ;;  %5801 = vmatprep.mubr.bf16.mxu1 %v5978_v21 }
  0xc5   : > { %5674 = vmatmul.mubr.bf16.gmra.mxu0 %v5979_v22  ;;  %5802 = vmatmul.mubr.bf16.gmra.mxu1 %v5980_v23 }
  0xc6   : > { %5677 = vmatprep.mubr.bf16.mxu0 %v5981_v24  ;;  %5805 = vmatprep.mubr.bf16.mxu1 %v5982_v25  ;;  %v6007_v25 = vld [vmem:[%s6110_s26 + $0x1a8] sm:$0xff]  }
  0xcd   : > { %5678 = vmatmul.mubr.bf16.gmra.mxu0 %v5983_v26  ;;  %5806 = vmatmul.mubr.bf16.gmra.mxu1 %v5984_v27  ;;  %v6008_v26 = vld [vmem:[%s6110_s26 + $0x3a8] sm:$0xff]  }
  0xce   : > { %5681 = vmatprep.mubr.bf16.mxu0 %v5985_v28  ;;  %5809 = vmatprep.mubr.bf16.mxu1 %v5986_v29  ;;  %v6009_v29 = vld [vmem:[%s6110_s26 + $0x1b0] sm:$0xff]  }
  0xd5   : > { %5682 = vmatmul.mubr.bf16.gmra.mxu0 %v5987_v30  ;;  %5810 = vmatmul.mubr.bf16.gmra.mxu1 %v5988_v31  ;;  %v6010_v30 = vld [vmem:[%s6110_s26 + $0x3b0] sm:$0xff]  }
  0xd6   : > { %5685 = vmatprep.mubr.bf16.mxu0 %v5989_v32  ;;  %5813 = vmatprep.mubr.bf16.mxu1 %v5990_v33 }
  0xdd   : > { %5686 = vmatmul.mubr.bf16.gmra.mxu0 %v5991_v34  ;;  %5814 = vmatmul.mubr.bf16.gmra.mxu1 %v5992_v35 }
  0xde   : > { %5689 = vmatprep.mubr.bf16.mxu0 %v5993_v36  ;;  %5817 = vmatprep.mubr.bf16.mxu1 %v5994_v37 }
  0xe5   : > { %5690 = vmatmul.mubr.bf16.gmra.mxu0 %v5995_v38  ;;  %5818 = vmatmul.mubr.bf16.gmra.mxu1 %v5996_v39 }
  0xe6   : > { %5693 = vmatprep.mubr.bf16.mxu0 %v5997_v40  ;;  %5821 = vmatprep.mubr.bf16.mxu1 %v5998_v41 }
  0xed   : > { %v5599_v47 = vpop.f32.mrf.mxu0  ;;  %5694 = vmatmul.mubr.bf16.gmra.mxu0 %v5999_v42  ;;  %v5727_v48 = vpop.f32.mrf.mxu1  ;;  %5822 = vmatmul.mubr.bf16.gmra.mxu1 %v6000_v43 }
  0xee   : > { %5697 = vmatprep.mubr.bf16.mxu0 %v6001_v44  ;;  %5825 = vmatprep.mubr.bf16.mxu1 %v6002_v45  ;;  %v1364_v49 = vadd.f32 %v5599_v47, %v6232_v46  ;;  %v1876_v50 = vadd.f32 %v5727_v48, %v6232_v46 }
  0xef   : > { %v1355_v51 = vpop.f32.mrf.mxu0  ;;  %v1867_v52 = vpop.f32.mrf.mxu1 }
  0xf0   : > { %v1356_v53 = vadd.f32 %v6232_v46, %v1355_v51  ;;  %v1868_v54 = vadd.f32 %v6232_v46, %v1867_v52  ;;  %v2380_v63 = vmax.f32 %v1364_v49, 0.0  ;;  %v2508_v0 = vmax.f32 %v1876_v50, 0.0 }
  0xf1   : > { %v5600_v55 = vpop.f32.mrf.mxu0  ;;  %v5728_v56 = vpop.f32.mrf.mxu1 }
  0xf2   : > { %v1367_v59 = vadd.f32 %v5600_v55, %v6232_v46  ;;  %v1879_v60 = vadd.f32 %v5728_v56, %v6232_v46  ;;  %v2378_v7 = vmax.f32 %v1356_v53, 0.0  ;;  %v2506_v8 = vmax.f32 %v1868_v54, 0.0 }
  0xf3   : > { %v1358_v1 = vpop.f32.mrf.mxu0  ;;  %v1870_v2 = vpop.f32.mrf.mxu1 }
  0xf4   : > { %v2381_v3 = vmax.f32 %v1367_v59, 0.0  ;;  %v2509_v4 = vmax.f32 %v1879_v60, 0.0  ;;  %v1359_v5 = vadd.f32 %v6232_v46, %v1358_v1  ;;  %v1871_v6 = vadd.f32 %v6232_v46, %v1870_v2  ;;  %v6012_v59 = vld [vmem:[%s6110_s26 + $0x3b8] sm:$0xff]  }
  0xf5   : > { %v5603_v9 = vpop.f32.mrf.mxu0  ;;  %5698 = vmatmul.mubr.bf16.gmra.mxu0 %v6003_v57  ;;  %v5731_v10 = vpop.f32.mrf.mxu1  ;;  %5826 = vmatmul.mubr.bf16.gmra.mxu1 %v6004_v58  ;;  %v6011_v58 = vld [vmem:[%s6110_s26 + $0x1b8] sm:$0xff]  }
  0xf6   : > { %v4686_v11 = vpack.c.bf16 %v2381_v3, %v2380_v63  ;;  %v5006_v12 = vpack.c.bf16 %v2509_v4, %v2508_v0  ;;  %v2379_v13 = vmax.f32 %v1359_v5, 0.0  ;;  %v2507_v14 = vmax.f32 %v1871_v6, 0.0  ;;  %5701 = vmatprep.mubr.bf16.mxu0 %v6005_v61  ;;  %5829 = vmatprep.mubr.bf16.mxu1 %v6006_v62  ;;  %v6013_v62 = vld [vmem:[%s6110_s26 + $0x1c0] sm:$0xff]  }
  0xf7   : > { %v1380_v15 = vadd.f32 %v5603_v9, %v6232_v46  ;;  %v1892_v16 = vadd.f32 %v5731_v10, %v6232_v46  ;;  %v1371_v17 = vpop.f32.mrf.mxu0  ;;  %v1883_v18 = vpop.f32.mrf.mxu1  ;;  %v6014_v63 = vld [vmem:[%s6110_s26 + $0x3c0] sm:$0xff]  }
  0xf8   : > { %5318 = vst [vmem:[%s6251_s17 + $0x8] sm:$0xff] %v4686_v11   ;;  %5382 = vst [vmem:[%s6251_s17 + $0x208] sm:$0xff] %v5006_v12   ;;  %v4681_v19 = vpack.c.bf16 %v2379_v13, %v2378_v7  ;;  %v5001_v20 = vpack.c.bf16 %v2507_v14, %v2506_v8  ;;  %v1372_v21 = vadd.f32 %v6232_v46, %v1371_v17 }
  0xf9   : > { %v1884_v22 = vadd.f32 %v6232_v46, %v1883_v18  ;;  %v5604_v23 = vpop.f32.mrf.mxu0  ;;  %v5732_v24 = vpop.f32.mrf.mxu1  ;;  %v2384_v31 = vmax.f32 %v1380_v15, 0.0  ;;  %v2512_v32 = vmax.f32 %v1892_v16, 0.0 }
  0xfa   : > { %4682 = vst [vmem:[%s6251_s17] sm:$0xff] %v4681_v19   ;;  %5381 = vst [vmem:[%s6251_s17 + $0x200] sm:$0xff] %v5001_v20   ;;  %v1383_v27 = vadd.f32 %v5604_v23, %v6232_v46  ;;  %v1895_v28 = vadd.f32 %v5732_v24, %v6232_v46  ;;  %v2382_v39 = vmax.f32 %v1372_v21, 0.0 }
  0xfb   : > { %v1374_v33 = vpop.f32.mrf.mxu0  ;;  %v1886_v34 = vpop.f32.mrf.mxu1  ;;  %v2510_v40 = vmax.f32 %v1884_v22, 0.0 }
  0xfc   : > { %v2385_v35 = vmax.f32 %v1383_v27, 0.0  ;;  %v2513_v36 = vmax.f32 %v1895_v28, 0.0  ;;  %v1375_v37 = vadd.f32 %v6232_v46, %v1374_v33  ;;  %v1887_v38 = vadd.f32 %v6232_v46, %v1886_v34  ;;  %v6016_v27 = vld [vmem:[%s6110_s26 + $0x3c8] sm:$0xff]  }
  0xfd   : > { %v5607_v41 = vpop.f32.mrf.mxu0  ;;  %5702 = vmatmul.mubr.bf16.gmra.mxu0 %v6007_v25  ;;  %v5735_v42 = vpop.f32.mrf.mxu1  ;;  %5830 = vmatmul.mubr.bf16.gmra.mxu1 %v6008_v26  ;;  %v6015_v26 = vld [vmem:[%s6110_s26 + $0x1c8] sm:$0xff]  }
  0xfe   : > { %v4696_v43 = vpack.c.bf16 %v2385_v35, %v2384_v31  ;;  %v5016_v44 = vpack.c.bf16 %v2513_v36, %v2512_v32  ;;  %v2383_v45 = vmax.f32 %v1375_v37, 0.0  ;;  %v2511_v47 = vmax.f32 %v1887_v38, 0.0  ;;  %5705 = vmatprep.mubr.bf16.mxu0 %v6009_v29  ;;  %5833 = vmatprep.mubr.bf16.mxu1 %v6010_v30  ;;  %v6017_v30 = vld [vmem:[%s6110_s26 + $0x1d0] sm:$0xff]  }
  0xff   : > { %v1396_v48 = vadd.f32 %v5607_v41, %v6232_v46  ;;  %v1908_v49 = vadd.f32 %v5735_v42, %v6232_v46  ;;  %v1387_v50 = vpop.f32.mrf.mxu0  ;;  %v1899_v51 = vpop.f32.mrf.mxu1  ;;  %v6018_v31 = vld [vmem:[%s6110_s26 + $0x3d0] sm:$0xff]  }
 0x100   : > { %5320 = vst [vmem:[%s6251_s17 + $0x18] sm:$0xff] %v4696_v43   ;;  %5384 = vst [vmem:[%s6251_s17 + $0x218] sm:$0xff] %v5016_v44   ;;  %v4691_v52 = vpack.c.bf16 %v2383_v45, %v2382_v39  ;;  %v5011_v53 = vpack.c.bf16 %v2511_v47, %v2510_v40  ;;  %v1388_v54 = vadd.f32 %v6232_v46, %v1387_v50 }
 0x101   : > { %v1900_v55 = vadd.f32 %v6232_v46, %v1899_v51  ;;  %v5608_v56 = vpop.f32.mrf.mxu0  ;;  %v5736_v57 = vpop.f32.mrf.mxu1  ;;  %v2388_v0 = vmax.f32 %v1396_v48, 0.0  ;;  %v2516_v1 = vmax.f32 %v1908_v49, 0.0 }
 0x102   : > { %5319 = vst [vmem:[%s6251_s17 + $0x10] sm:$0xff] %v4691_v52   ;;  %5383 = vst [vmem:[%s6251_s17 + $0x210] sm:$0xff] %v5011_v53   ;;  %v1399_v60 = vadd.f32 %v5608_v56, %v6232_v46  ;;  %v1911_v61 = vadd.f32 %v5736_v57, %v6232_v46  ;;  %v2386_v8 = vmax.f32 %v1388_v54, 0.0 }
 0x103   : > { %v1390_v2 = vpop.f32.mrf.mxu0  ;;  %v1902_v3 = vpop.f32.mrf.mxu1  ;;  %v2514_v9 = vmax.f32 %v1900_v55, 0.0 }
 0x104   : > { %v2389_v4 = vmax.f32 %v1399_v60, 0.0  ;;  %v2517_v5 = vmax.f32 %v1911_v61, 0.0  ;;  %v1391_v6 = vadd.f32 %v6232_v46, %v1390_v2  ;;  %v1903_v7 = vadd.f32 %v6232_v46, %v1902_v3  ;;  %v6020_v60 = vld [vmem:[%s6110_s26 + $0x3d8] sm:$0xff]  }
 0x105   : > { %v5611_v10 = vpop.f32.mrf.mxu0  ;;  %5706 = vmatmul.mubr.bf16.gmra.mxu0 %v6011_v58  ;;  %v5739_v11 = vpop.f32.mrf.mxu1  ;;  %5834 = vmatmul.mubr.bf16.gmra.mxu1 %v6012_v59  ;;  %v6019_v59 = vld [vmem:[%s6110_s26 + $0x1d8] sm:$0xff]  }
 0x106   : > { %v4706_v12 = vpack.c.bf16 %v2389_v4, %v2388_v0  ;;  %v5026_v13 = vpack.c.bf16 %v2517_v5, %v2516_v1  ;;  %v2387_v14 = vmax.f32 %v1391_v6, 0.0  ;;  %v2515_v15 = vmax.f32 %v1903_v7, 0.0  ;;  %5709 = vmatprep.mubr.bf16.mxu0 %v6013_v62  ;;  %5837 = vmatprep.mubr.bf16.mxu1 %v6014_v63  ;;  %v6021_v63 = vld [vmem:[%s6110_s26 + $0x1e0] sm:$0xff]  }
 0x107   : > { %v1412_v16 = vadd.f32 %v5611_v10, %v6232_v46  ;;  %v1924_v17 = vadd.f32 %v5739_v11, %v6232_v46  ;;  %v1403_v18 = vpop.f32.mrf.mxu0  ;;  %v1915_v19 = vpop.f32.mrf.mxu1  ;;  %v6022_v0 = vld [vmem:[%s6110_s26 + $0x3e0] sm:$0xff]  }
 0x108   : > { %5322 = vst [vmem:[%s6251_s17 + $0x28] sm:$0xff] %v4706_v12   ;;  %5386 = vst [vmem:[%s6251_s17 + $0x228] sm:$0xff] %v5026_v13   ;;  %v4701_v20 = vpack.c.bf16 %v2387_v14, %v2386_v8  ;;  %v5021_v21 = vpack.c.bf16 %v2515_v15, %v2514_v9  ;;  %v1404_v22 = vadd.f32 %v6232_v46, %v1403_v18 }
 0x109   : > { %v1916_v23 = vadd.f32 %v6232_v46, %v1915_v19  ;;  %v5612_v24 = vpop.f32.mrf.mxu0  ;;  %v5740_v25 = vpop.f32.mrf.mxu1  ;;  %v2392_v32 = vmax.f32 %v1412_v16, 0.0  ;;  %v2520_v33 = vmax.f32 %v1924_v17, 0.0 }
 0x10a   : > { %5321 = vst [vmem:[%s6251_s17 + $0x20] sm:$0xff] %v4701_v20   ;;  %5385 = vst [vmem:[%s6251_s17 + $0x220] sm:$0xff] %v5021_v21   ;;  %v1415_v28 = vadd.f32 %v5612_v24, %v6232_v46  ;;  %v1927_v29 = vadd.f32 %v5740_v25, %v6232_v46  ;;  %v2390_v40 = vmax.f32 %v1404_v22, 0.0 }
 0x10b   : > { %v1406_v34 = vpop.f32.mrf.mxu0  ;;  %v1918_v35 = vpop.f32.mrf.mxu1  ;;  %v2518_v41 = vmax.f32 %v1916_v23, 0.0 }
 0x10c   : > { %v2393_v36 = vmax.f32 %v1415_v28, 0.0  ;;  %v2521_v37 = vmax.f32 %v1927_v29, 0.0  ;;  %v1407_v38 = vadd.f32 %v6232_v46, %v1406_v34  ;;  %v1919_v39 = vadd.f32 %v6232_v46, %v1918_v35  ;;  %v6024_v28 = vld [vmem:[%s6110_s26 + $0x3e8] sm:$0xff]  }
 0x10d   : > { %v5615_v42 = vpop.f32.mrf.mxu0  ;;  %5710 = vmatmul.mubr.bf16.gmra.mxu0 %v6015_v26  ;;  %v5743_v43 = vpop.f32.mrf.mxu1  ;;  %5838 = vmatmul.mubr.bf16.gmra.mxu1 %v6016_v27  ;;  %v6023_v27 = vld [vmem:[%s6110_s26 + $0x1e8] sm:$0xff]  }
 0x10e   : > { %v4716_v44 = vpack.c.bf16 %v2393_v36, %v2392_v32  ;;  %v5036_v45 = vpack.c.bf16 %v2521_v37, %v2520_v33  ;;  %v2391_v47 = vmax.f32 %v1407_v38, 0.0  ;;  %v2519_v48 = vmax.f32 %v1919_v39, 0.0  ;;  %5713 = vmatprep.mubr.bf16.mxu0 %v6017_v30  ;;  %5841 = vmatprep.mubr.bf16.mxu1 %v6018_v31  ;;  %v6025_v31 = vld [vmem:[%s6110_s26 + $0x1f0] sm:$0xff]  }
 0x10f   : > { %v1428_v49 = vadd.f32 %v5615_v42, %v6232_v46  ;;  %v1940_v50 = vadd.f32 %v5743_v43, %v6232_v46  ;;  %v1419_v51 = vpop.f32.mrf.mxu0  ;;  %v1931_v52 = vpop.f32.mrf.mxu1  ;;  %v6026_v32 = vld [vmem:[%s6110_s26 + $0x3f0] sm:$0xff]  }
 0x110   : > { %5324 = vst [vmem:[%s6251_s17 + $0x38] sm:$0xff] %v4716_v44   ;;  %5388 = vst [vmem:[%s6251_s17 + $0x238] sm:$0xff] %v5036_v45   ;;  %v4711_v53 = vpack.c.bf16 %v2391_v47, %v2390_v40  ;;  %v5031_v54 = vpack.c.bf16 %v2519_v48, %v2518_v41  ;;  %v1420_v55 = vadd.f32 %v6232_v46, %v1419_v51 }
 0x111   : > { %v1932_v56 = vadd.f32 %v6232_v46, %v1931_v52  ;;  %v5616_v57 = vpop.f32.mrf.mxu0  ;;  %v5744_v58 = vpop.f32.mrf.mxu1  ;;  %v2396_v1 = vmax.f32 %v1428_v49, 0.0  ;;  %v2524_v2 = vmax.f32 %v1940_v50, 0.0 }
 0x112   : > { %5323 = vst [vmem:[%s6251_s17 + $0x30] sm:$0xff] %v4711_v53   ;;  %5387 = vst [vmem:[%s6251_s17 + $0x230] sm:$0xff] %v5031_v54   ;;  %v1431_v61 = vadd.f32 %v5616_v57, %v6232_v46  ;;  %v1943_v62 = vadd.f32 %v5744_v58, %v6232_v46  ;;  %v2394_v9 = vmax.f32 %v1420_v55, 0.0 }
 0x113   : > { %v1422_v3 = vpop.f32.mrf.mxu0  ;;  %v1934_v4 = vpop.f32.mrf.mxu1  ;;  %v2522_v10 = vmax.f32 %v1932_v56, 0.0 }
 0x114   : > { %v2397_v5 = vmax.f32 %v1431_v61, 0.0  ;;  %v2525_v6 = vmax.f32 %v1943_v62, 0.0  ;;  %v1423_v7 = vadd.f32 %v6232_v46, %v1422_v3  ;;  %v1935_v8 = vadd.f32 %v6232_v46, %v1934_v4  ;;  %v6028_v61 = vld [vmem:[%s6110_s26 + $0x3f8] sm:$0xff]  }
 0x115   : > { %v5619_v11 = vpop.f32.mrf.mxu0  ;;  %5714 = vmatmul.mubr.bf16.gmra.mxu0 %v6019_v59  ;;  %v5747_v12 = vpop.f32.mrf.mxu1  ;;  %5842 = vmatmul.mubr.bf16.gmra.mxu1 %v6020_v60  ;;  %v6027_v60 = vld [vmem:[%s6110_s26 + $0x1f8] sm:$0xff]  }
 0x116   : > { %v4726_v13 = vpack.c.bf16 %v2397_v5, %v2396_v1  ;;  %v5046_v14 = vpack.c.bf16 %v2525_v6, %v2524_v2  ;;  %v2395_v15 = vmax.f32 %v1423_v7, 0.0  ;;  %v2523_v16 = vmax.f32 %v1935_v8, 0.0  ;;  %5717 = vmatprep.mubr.bf16.mxu0 %v6021_v63  ;;  %5845 = vmatprep.mubr.bf16.mxu1 %v6022_v0 }
 0x117   : > { %v1444_v17 = vadd.f32 %v5619_v11, %v6232_v46  ;;  %v1956_v18 = vadd.f32 %v5747_v12, %v6232_v46  ;;  %v1435_v19 = vpop.f32.mrf.mxu0  ;;  %v1947_v20 = vpop.f32.mrf.mxu1 }
 0x118   : > { %5326 = vst [vmem:[%s6251_s17 + $0x48] sm:$0xff] %v4726_v13   ;;  %5390 = vst [vmem:[%s6251_s17 + $0x248] sm:$0xff] %v5046_v14   ;;  %v4721_v21 = vpack.c.bf16 %v2395_v15, %v2394_v9  ;;  %v5041_v22 = vpack.c.bf16 %v2523_v16, %v2522_v10  ;;  %v1436_v23 = vadd.f32 %v6232_v46, %v1435_v19 }
 0x119   : > { %v1948_v24 = vadd.f32 %v6232_v46, %v1947_v20  ;;  %v5620_v25 = vpop.f32.mrf.mxu0  ;;  %v5748_v26 = vpop.f32.mrf.mxu1  ;;  %v2400_v33 = vmax.f32 %v1444_v17, 0.0  ;;  %v2528_v34 = vmax.f32 %v1956_v18, 0.0 }
 0x11a   : > { %5325 = vst [vmem:[%s6251_s17 + $0x40] sm:$0xff] %v4721_v21   ;;  %5389 = vst [vmem:[%s6251_s17 + $0x240] sm:$0xff] %v5041_v22   ;;  %v1447_v29 = vadd.f32 %v5620_v25, %v6232_v46  ;;  %v1959_v30 = vadd.f32 %v5748_v26, %v6232_v46  ;;  %v2398_v41 = vmax.f32 %v1436_v23, 0.0 }
 0x11b   : > { %v1438_v35 = vpop.f32.mrf.mxu0  ;;  %v1950_v36 = vpop.f32.mrf.mxu1  ;;  %v2526_v42 = vmax.f32 %v1948_v24, 0.0 }
 0x11c   : > { %v2401_v37 = vmax.f32 %v1447_v29, 0.0  ;;  %v2529_v38 = vmax.f32 %v1959_v30, 0.0  ;;  %v1439_v39 = vadd.f32 %v6232_v46, %v1438_v35  ;;  %v1951_v40 = vadd.f32 %v6232_v46, %v1950_v36 }
 0x11d   : > { %v5623_v43 = vpop.f32.mrf.mxu0  ;;  %5718 = vmatmul.mubr.bf16.gmra.mxu0 %v6023_v27  ;;  %v5751_v44 = vpop.f32.mrf.mxu1  ;;  %5846 = vmatmul.mubr.bf16.gmra.mxu1 %v6024_v28 }
 0x11e   : > { %v4736_v45 = vpack.c.bf16 %v2401_v37, %v2400_v33  ;;  %v5056_v47 = vpack.c.bf16 %v2529_v38, %v2528_v34  ;;  %v2399_v48 = vmax.f32 %v1439_v39, 0.0  ;;  %v2527_v49 = vmax.f32 %v1951_v40, 0.0  ;;  %5721 = vmatprep.mubr.bf16.mxu0 %v6025_v31  ;;  %5849 = vmatprep.mubr.bf16.mxu1 %v6026_v32 }
 0x11f   : > { %v1460_v50 = vadd.f32 %v5623_v43, %v6232_v46  ;;  %v1972_v51 = vadd.f32 %v5751_v44, %v6232_v46  ;;  %v1451_v52 = vpop.f32.mrf.mxu0  ;;  %v1963_v53 = vpop.f32.mrf.mxu1 }
 0x120   : > { %5328 = vst [vmem:[%s6251_s17 + $0x58] sm:$0xff] %v4736_v45   ;;  %5392 = vst [vmem:[%s6251_s17 + $0x258] sm:$0xff] %v5056_v47   ;;  %v4731_v54 = vpack.c.bf16 %v2399_v48, %v2398_v41  ;;  %v5051_v55 = vpack.c.bf16 %v2527_v49, %v2526_v42  ;;  %v1452_v56 = vadd.f32 %v6232_v46, %v1451_v52 }
 0x121   : > { %v1964_v57 = vadd.f32 %v6232_v46, %v1963_v53  ;;  %v5624_v58 = vpop.f32.mrf.mxu0  ;;  %v5752_v59 = vpop.f32.mrf.mxu1  ;;  %v2404_v0 = vmax.f32 %v1460_v50, 0.0  ;;  %v2532_v1 = vmax.f32 %v1972_v51, 0.0 }
 0x122   : > { %5327 = vst [vmem:[%s6251_s17 + $0x50] sm:$0xff] %v4731_v54   ;;  %5391 = vst [vmem:[%s6251_s17 + $0x250] sm:$0xff] %v5051_v55   ;;  %v1463_v62 = vadd.f32 %v5624_v58, %v6232_v46  ;;  %v1975_v63 = vadd.f32 %v5752_v59, %v6232_v46  ;;  %v2402_v8 = vmax.f32 %v1452_v56, 0.0 }
 0x123   : > { %v1454_v2 = vpop.f32.mrf.mxu0  ;;  %v1966_v3 = vpop.f32.mrf.mxu1  ;;  %v2530_v9 = vmax.f32 %v1964_v57, 0.0 }
 0x124   : > { %v2405_v4 = vmax.f32 %v1463_v62, 0.0  ;;  %v2533_v5 = vmax.f32 %v1975_v63, 0.0  ;;  %v1455_v6 = vadd.f32 %v6232_v46, %v1454_v2  ;;  %v1967_v7 = vadd.f32 %v6232_v46, %v1966_v3 }
 0x125   : > { %v5627_v10 = vpop.f32.mrf.mxu0  ;;  %5722 = vmatmul.mubr.bf16.gmra.mxu0 %v6027_v60  ;;  %v5755_v11 = vpop.f32.mrf.mxu1  ;;  %5850 = vmatmul.mubr.bf16.gmra.mxu1 %v6028_v61 }
 0x126   : > { %v4746_v12 = vpack.c.bf16 %v2405_v4, %v2404_v0  ;;  %v5066_v13 = vpack.c.bf16 %v2533_v5, %v2532_v1  ;;  %v2403_v14 = vmax.f32 %v1455_v6, 0.0  ;;  %v2531_v15 = vmax.f32 %v1967_v7, 0.0 }
 0x127   : > { %v1476_v16 = vadd.f32 %v5627_v10, %v6232_v46  ;;  %v1988_v17 = vadd.f32 %v5755_v11, %v6232_v46  ;;  %v1467_v18 = vpop.f32.mrf.mxu0  ;;  %v1979_v19 = vpop.f32.mrf.mxu1 }
 0x128   : > { %5330 = vst [vmem:[%s6251_s17 + $0x68] sm:$0xff] %v4746_v12   ;;  %5394 = vst [vmem:[%s6251_s17 + $0x268] sm:$0xff] %v5066_v13   ;;  %v4741_v20 = vpack.c.bf16 %v2403_v14, %v2402_v8  ;;  %v5061_v21 = vpack.c.bf16 %v2531_v15, %v2530_v9  ;;  %v1468_v22 = vadd.f32 %v6232_v46, %v1467_v18 }
 0x129   : > { %v1980_v23 = vadd.f32 %v6232_v46, %v1979_v19  ;;  %v5628_v24 = vpop.f32.mrf.mxu0  ;;  %v5756_v25 = vpop.f32.mrf.mxu1  ;;  %v2408_v28 = vmax.f32 %v1476_v16, 0.0  ;;  %v2536_v29 = vmax.f32 %v1988_v17, 0.0 }
 0x12a   : > { %5329 = vst [vmem:[%s6251_s17 + $0x60] sm:$0xff] %v4741_v20   ;;  %5393 = vst [vmem:[%s6251_s17 + $0x260] sm:$0xff] %v5061_v21   ;;  %v1479_v26 = vadd.f32 %v5628_v24, %v6232_v46  ;;  %v1991_v27 = vadd.f32 %v5756_v25, %v6232_v46  ;;  %v2406_v36 = vmax.f32 %v1468_v22, 0.0 }
 0x12b   : > { %v1470_v30 = vpop.f32.mrf.mxu0  ;;  %v1982_v31 = vpop.f32.mrf.mxu1  ;;  %v2534_v37 = vmax.f32 %v1980_v23, 0.0 }
 0x12c   : > { %v2409_v32 = vmax.f32 %v1479_v26, 0.0  ;;  %v2537_v33 = vmax.f32 %v1991_v27, 0.0  ;;  %v1471_v34 = vadd.f32 %v6232_v46, %v1470_v30  ;;  %v1983_v35 = vadd.f32 %v6232_v46, %v1982_v31 }
 0x12d   : > { %v5631_v38 = vpop.f32.mrf.mxu0  ;;  %v5759_v39 = vpop.f32.mrf.mxu1 }
 0x12e   : > { %v4756_v40 = vpack.c.bf16 %v2409_v32, %v2408_v28  ;;  %v5076_v41 = vpack.c.bf16 %v2537_v33, %v2536_v29  ;;  %v2407_v42 = vmax.f32 %v1471_v34, 0.0  ;;  %v2535_v43 = vmax.f32 %v1983_v35, 0.0 }
 0x12f   : > { %v1492_v44 = vadd.f32 %v5631_v38, %v6232_v46  ;;  %v2004_v45 = vadd.f32 %v5759_v39, %v6232_v46  ;;  %v1483_v47 = vpop.f32.mrf.mxu0  ;;  %v1995_v48 = vpop.f32.mrf.mxu1 }
 0x130   : > { %5332 = vst [vmem:[%s6251_s17 + $0x78] sm:$0xff] %v4756_v40   ;;  %5396 = vst [vmem:[%s6251_s17 + $0x278] sm:$0xff] %v5076_v41   ;;  %v4751_v49 = vpack.c.bf16 %v2407_v42, %v2406_v36  ;;  %v5071_v50 = vpack.c.bf16 %v2535_v43, %v2534_v37  ;;  %v1484_v51 = vadd.f32 %v6232_v46, %v1483_v47 }
 0x131   : > { %v1996_v52 = vadd.f32 %v6232_v46, %v1995_v48  ;;  %v5632_v53 = vpop.f32.mrf.mxu0  ;;  %v5760_v54 = vpop.f32.mrf.mxu1  ;;  %v2412_v57 = vmax.f32 %v1492_v44, 0.0  ;;  %v2540_v58 = vmax.f32 %v2004_v45, 0.0 }
 0x132   : > { %5331 = vst [vmem:[%s6251_s17 + $0x70] sm:$0xff] %v4751_v49   ;;  %5395 = vst [vmem:[%s6251_s17 + $0x270] sm:$0xff] %v5071_v50   ;;  %v1495_v55 = vadd.f32 %v5632_v53, %v6232_v46  ;;  %v2007_v56 = vadd.f32 %v5760_v54, %v6232_v46  ;;  %v2410_v1 = vmax.f32 %v1484_v51, 0.0 }
 0x133   : > { %v1486_v59 = vpop.f32.mrf.mxu0  ;;  %v1998_v60 = vpop.f32.mrf.mxu1  ;;  %v2538_v2 = vmax.f32 %v1996_v52, 0.0 }
 0x134   : > { %v2413_v61 = vmax.f32 %v1495_v55, 0.0  ;;  %v2541_v62 = vmax.f32 %v2007_v56, 0.0  ;;  %v1487_v63 = vadd.f32 %v6232_v46, %v1486_v59  ;;  %v1999_v0 = vadd.f32 %v6232_v46, %v1998_v60 }
 0x135   : > { %v5635_v3 = vpop.f32.mrf.mxu0  ;;  %v5763_v4 = vpop.f32.mrf.mxu1 }
 0x136   : > { %v4766_v5 = vpack.c.bf16 %v2413_v61, %v2412_v57  ;;  %v5086_v6 = vpack.c.bf16 %v2541_v62, %v2540_v58  ;;  %v2411_v7 = vmax.f32 %v1487_v63, 0.0  ;;  %v2539_v8 = vmax.f32 %v1999_v0, 0.0 }
 0x137   : > { %v1508_v9 = vadd.f32 %v5635_v3, %v6232_v46  ;;  %v2020_v10 = vadd.f32 %v5763_v4, %v6232_v46  ;;  %v1499_v11 = vpop.f32.mrf.mxu0  ;;  %v2011_v12 = vpop.f32.mrf.mxu1 }
 0x138   : > { %5334 = vst [vmem:[%s6251_s17 + $0x88] sm:$0xff] %v4766_v5   ;;  %5398 = vst [vmem:[%s6251_s17 + $0x288] sm:$0xff] %v5086_v6   ;;  %v4761_v13 = vpack.c.bf16 %v2411_v7, %v2410_v1  ;;  %v5081_v14 = vpack.c.bf16 %v2539_v8, %v2538_v2  ;;  %v1500_v15 = vadd.f32 %v6232_v46, %v1499_v11 }
 0x139   : > { %v2012_v16 = vadd.f32 %v6232_v46, %v2011_v12  ;;  %v5636_v17 = vpop.f32.mrf.mxu0  ;;  %v5764_v18 = vpop.f32.mrf.mxu1  ;;  %v2416_v21 = vmax.f32 %v1508_v9, 0.0  ;;  %v2544_v22 = vmax.f32 %v2020_v10, 0.0 }
 0x13a   : > { %5333 = vst [vmem:[%s6251_s17 + $0x80] sm:$0xff] %v4761_v13   ;;  %5397 = vst [vmem:[%s6251_s17 + $0x280] sm:$0xff] %v5081_v14   ;;  %v1511_v19 = vadd.f32 %v5636_v17, %v6232_v46  ;;  %v2023_v20 = vadd.f32 %v5764_v18, %v6232_v46  ;;  %v2414_v29 = vmax.f32 %v1500_v15, 0.0 }
 0x13b   : > { %v1502_v23 = vpop.f32.mrf.mxu0  ;;  %v2014_v24 = vpop.f32.mrf.mxu1  ;;  %v2542_v30 = vmax.f32 %v2012_v16, 0.0 }
 0x13c   : > { %v2417_v25 = vmax.f32 %v1511_v19, 0.0  ;;  %v2545_v26 = vmax.f32 %v2023_v20, 0.0  ;;  %v1503_v27 = vadd.f32 %v6232_v46, %v1502_v23  ;;  %v2015_v28 = vadd.f32 %v6232_v46, %v2014_v24 }
 0x13d   : > { %v5639_v31 = vpop.f32.mrf.mxu0  ;;  %v5767_v32 = vpop.f32.mrf.mxu1 }
 0x13e   : > { %v4776_v33 = vpack.c.bf16 %v2417_v25, %v2416_v21  ;;  %v5096_v34 = vpack.c.bf16 %v2545_v26, %v2544_v22  ;;  %v2415_v35 = vmax.f32 %v1503_v27, 0.0  ;;  %v2543_v36 = vmax.f32 %v2015_v28, 0.0 }
 0x13f   : > { %v1524_v37 = vadd.f32 %v5639_v31, %v6232_v46  ;;  %v2036_v38 = vadd.f32 %v5767_v32, %v6232_v46  ;;  %v1515_v39 = vpop.f32.mrf.mxu0  ;;  %v2027_v40 = vpop.f32.mrf.mxu1 }
 0x140   : > { %5336 = vst [vmem:[%s6251_s17 + $0x98] sm:$0xff] %v4776_v33   ;;  %5400 = vst [vmem:[%s6251_s17 + $0x298] sm:$0xff] %v5096_v34   ;;  %v4771_v41 = vpack.c.bf16 %v2415_v35, %v2414_v29  ;;  %v5091_v42 = vpack.c.bf16 %v2543_v36, %v2542_v30  ;;  %v1516_v43 = vadd.f32 %v6232_v46, %v1515_v39 }
 0x141   : > { %v2028_v44 = vadd.f32 %v6232_v46, %v2027_v40  ;;  %v5640_v45 = vpop.f32.mrf.mxu0  ;;  %v5768_v47 = vpop.f32.mrf.mxu1  ;;  %v2420_v50 = vmax.f32 %v1524_v37, 0.0  ;;  %v2548_v51 = vmax.f32 %v2036_v38, 0.0 }
 0x142   : > { %5335 = vst [vmem:[%s6251_s17 + $0x90] sm:$0xff] %v4771_v41   ;;  %5399 = vst [vmem:[%s6251_s17 + $0x290] sm:$0xff] %v5091_v42   ;;  %v1527_v48 = vadd.f32 %v5640_v45, %v6232_v46  ;;  %v2039_v49 = vadd.f32 %v5768_v47, %v6232_v46  ;;  %v2418_v58 = vmax.f32 %v1516_v43, 0.0 }
 0x143   : > { %v1518_v52 = vpop.f32.mrf.mxu0  ;;  %v2030_v53 = vpop.f32.mrf.mxu1  ;;  %v2546_v59 = vmax.f32 %v2028_v44, 0.0 }
 0x144   : > { %v2421_v54 = vmax.f32 %v1527_v48, 0.0  ;;  %v2549_v55 = vmax.f32 %v2039_v49, 0.0  ;;  %v1519_v56 = vadd.f32 %v6232_v46, %v1518_v52  ;;  %v2031_v57 = vadd.f32 %v6232_v46, %v2030_v53 }
 0x145   : > { %v5643_v60 = vpop.f32.mrf.mxu0  ;;  %v5771_v61 = vpop.f32.mrf.mxu1 }
 0x146   : > { %v4786_v62 = vpack.c.bf16 %v2421_v54, %v2420_v50  ;;  %v5106_v63 = vpack.c.bf16 %v2549_v55, %v2548_v51  ;;  %v2419_v0 = vmax.f32 %v1519_v56, 0.0  ;;  %v2547_v1 = vmax.f32 %v2031_v57, 0.0 }
 0x147   : > { %v1540_v2 = vadd.f32 %v5643_v60, %v6232_v46  ;;  %v2052_v3 = vadd.f32 %v5771_v61, %v6232_v46  ;;  %v1531_v4 = vpop.f32.mrf.mxu0  ;;  %v2043_v5 = vpop.f32.mrf.mxu1 }
 0x148   : > { %5338 = vst [vmem:[%s6251_s17 + $0xa8] sm:$0xff] %v4786_v62   ;;  %5402 = vst [vmem:[%s6251_s17 + $0x2a8] sm:$0xff] %v5106_v63   ;;  %v4781_v6 = vpack.c.bf16 %v2419_v0, %v2418_v58  ;;  %v5101_v7 = vpack.c.bf16 %v2547_v1, %v2546_v59  ;;  %v1532_v8 = vadd.f32 %v6232_v46, %v1531_v4 }
 0x149   : > { %v2044_v9 = vadd.f32 %v6232_v46, %v2043_v5  ;;  %v5644_v10 = vpop.f32.mrf.mxu0  ;;  %v5772_v11 = vpop.f32.mrf.mxu1  ;;  %v2424_v14 = vmax.f32 %v1540_v2, 0.0  ;;  %v2552_v15 = vmax.f32 %v2052_v3, 0.0 }
 0x14a   : > { %5337 = vst [vmem:[%s6251_s17 + $0xa0] sm:$0xff] %v4781_v6   ;;  %5401 = vst [vmem:[%s6251_s17 + $0x2a0] sm:$0xff] %v5101_v7   ;;  %v1543_v12 = vadd.f32 %v5644_v10, %v6232_v46  ;;  %v2055_v13 = vadd.f32 %v5772_v11, %v6232_v46  ;;  %v2422_v22 = vmax.f32 %v1532_v8, 0.0 }
 0x14b   : > { %v1534_v16 = vpop.f32.mrf.mxu0  ;;  %v2046_v17 = vpop.f32.mrf.mxu1  ;;  %v2550_v23 = vmax.f32 %v2044_v9, 0.0 }
 0x14c   : > { %v2425_v18 = vmax.f32 %v1543_v12, 0.0  ;;  %v2553_v19 = vmax.f32 %v2055_v13, 0.0  ;;  %v1535_v20 = vadd.f32 %v6232_v46, %v1534_v16  ;;  %v2047_v21 = vadd.f32 %v6232_v46, %v2046_v17 }
 0x14d   : > { %v5647_v24 = vpop.f32.mrf.mxu0  ;;  %v5775_v25 = vpop.f32.mrf.mxu1 }
 0x14e   : > { %v4796_v26 = vpack.c.bf16 %v2425_v18, %v2424_v14  ;;  %v5116_v27 = vpack.c.bf16 %v2553_v19, %v2552_v15  ;;  %v2423_v28 = vmax.f32 %v1535_v20, 0.0  ;;  %v2551_v29 = vmax.f32 %v2047_v21, 0.0 }
 0x14f   : > { %v1556_v30 = vadd.f32 %v5647_v24, %v6232_v46  ;;  %v2068_v31 = vadd.f32 %v5775_v25, %v6232_v46  ;;  %v1547_v32 = vpop.f32.mrf.mxu0  ;;  %v2059_v33 = vpop.f32.mrf.mxu1 }
 0x150   : > { %5340 = vst [vmem:[%s6251_s17 + $0xb8] sm:$0xff] %v4796_v26   ;;  %5404 = vst [vmem:[%s6251_s17 + $0x2b8] sm:$0xff] %v5116_v27   ;;  %v4791_v34 = vpack.c.bf16 %v2423_v28, %v2422_v22  ;;  %v5111_v35 = vpack.c.bf16 %v2551_v29, %v2550_v23  ;;  %v1548_v36 = vadd.f32 %v6232_v46, %v1547_v32 }
 0x151   : > { %v2060_v37 = vadd.f32 %v6232_v46, %v2059_v33  ;;  %v5648_v38 = vpop.f32.mrf.mxu0  ;;  %v5776_v39 = vpop.f32.mrf.mxu1  ;;  %v2428_v42 = vmax.f32 %v1556_v30, 0.0  ;;  %v2556_v43 = vmax.f32 %v2068_v31, 0.0  ;;  %v6442_v33 = vld [vmem:[%s6658_s2] ss:$0 sm:$0xff] }
 0x152   : > { %5339 = vst [vmem:[%s6251_s17 + $0xb0] sm:$0xff] %v4791_v34   ;;  %5403 = vst [vmem:[%s6251_s17 + $0x2b0] sm:$0xff] %v5111_v35   ;;  %v1559_v40 = vadd.f32 %v5648_v38, %v6232_v46  ;;  %v2071_v41 = vadd.f32 %v5776_v39, %v6232_v46  ;;  %v2426_v51 = vmax.f32 %v1548_v36, 0.0 }
 0x153   : > { %v1550_v44 = vpop.f32.mrf.mxu0  ;;  %v2062_v45 = vpop.f32.mrf.mxu1  ;;  %v2554_v52 = vmax.f32 %v2060_v37, 0.0 }
 0x154   : > { %v2429_v47 = vmax.f32 %v1559_v40, 0.0  ;;  %v2557_v48 = vmax.f32 %v2071_v41, 0.0  ;;  %v1551_v49 = vadd.f32 %v6232_v46, %v1550_v44  ;;  %v2063_v50 = vadd.f32 %v6232_v46, %v2062_v45 }
 0x155   : > { %v5651_v53 = vpop.f32.mrf.mxu0  ;;  %v5779_v54 = vpop.f32.mrf.mxu1 }
 0x156   : > { %v4806_v55 = vpack.c.bf16 %v2429_v47, %v2428_v42  ;;  %v5126_v56 = vpack.c.bf16 %v2557_v48, %v2556_v43  ;;  %v2427_v57 = vmax.f32 %v1551_v49, 0.0  ;;  %v2555_v58 = vmax.f32 %v2063_v50, 0.0 }
 0x157   : > { %v1572_v59 = vadd.f32 %v5651_v53, %v6232_v46  ;;  %v2084_v60 = vadd.f32 %v5779_v54, %v6232_v46  ;;  %v1563_v61 = vpop.f32.mrf.mxu0  ;;  %v2075_v62 = vpop.f32.mrf.mxu1 }
 0x158   : > { %5342 = vst [vmem:[%s6251_s17 + $0xc8] sm:$0xff] %v4806_v55   ;;  %5406 = vst [vmem:[%s6251_s17 + $0x2c8] sm:$0xff] %v5126_v56   ;;  %v4801_v63 = vpack.c.bf16 %v2427_v57, %v2426_v51  ;;  %v5121_v0 = vpack.c.bf16 %v2555_v58, %v2554_v52  ;;  %v1564_v1 = vadd.f32 %v6232_v46, %v1563_v61 }
 0x159   : > { %v2076_v2 = vadd.f32 %v6232_v46, %v2075_v62  ;;  %v5652_v3 = vpop.f32.mrf.mxu0  ;;  %v5780_v4 = vpop.f32.mrf.mxu1  ;;  %v2432_v7 = vmax.f32 %v1572_v59, 0.0  ;;  %v2560_v8 = vmax.f32 %v2084_v60, 0.0 }
 0x15a   : > { %5341 = vst [vmem:[%s6251_s17 + $0xc0] sm:$0xff] %v4801_v63   ;;  %5405 = vst [vmem:[%s6251_s17 + $0x2c0] sm:$0xff] %v5121_v0   ;;  %v1575_v5 = vadd.f32 %v5652_v3, %v6232_v46  ;;  %v2087_v6 = vadd.f32 %v5780_v4, %v6232_v46  ;;  %v2430_v15 = vmax.f32 %v1564_v1, 0.0 }
 0x15b   : > { %v1566_v9 = vpop.f32.mrf.mxu0  ;;  %v2078_v10 = vpop.f32.mrf.mxu1  ;;  %v2558_v16 = vmax.f32 %v2076_v2, 0.0 }
 0x15c   : > { %v2433_v11 = vmax.f32 %v1575_v5, 0.0  ;;  %v2561_v12 = vmax.f32 %v2087_v6, 0.0  ;;  %v1567_v13 = vadd.f32 %v6232_v46, %v1566_v9  ;;  %v2079_v14 = vadd.f32 %v6232_v46, %v2078_v10 }
 0x15d   : > { %v5655_v17 = vpop.f32.mrf.mxu0  ;;  %v5783_v18 = vpop.f32.mrf.mxu1 }
 0x15e   : > { %v4816_v19 = vpack.c.bf16 %v2433_v11, %v2432_v7  ;;  %v5136_v20 = vpack.c.bf16 %v2561_v12, %v2560_v8  ;;  %v2431_v21 = vmax.f32 %v1567_v13, 0.0  ;;  %v2559_v22 = vmax.f32 %v2079_v14, 0.0 }
 0x15f   : > { %v1588_v23 = vadd.f32 %v5655_v17, %v6232_v46  ;;  %v2100_v24 = vadd.f32 %v5783_v18, %v6232_v46  ;;  %v1579_v25 = vpop.f32.mrf.mxu0  ;;  %v2091_v26 = vpop.f32.mrf.mxu1 }
 0x160   : > { %5344 = vst [vmem:[%s6251_s17 + $0xd8] sm:$0xff] %v4816_v19   ;;  %5408 = vst [vmem:[%s6251_s17 + $0x2d8] sm:$0xff] %v5136_v20   ;;  %v4811_v27 = vpack.c.bf16 %v2431_v21, %v2430_v15  ;;  %v5131_v28 = vpack.c.bf16 %v2559_v22, %v2558_v16  ;;  %v1580_v29 = vadd.f32 %v6232_v46, %v1579_v25 }
 0x161   : > { %v2092_v30 = vadd.f32 %v6232_v46, %v2091_v26  ;;  %v5656_v31 = vpop.f32.mrf.mxu0  ;;  %v5784_v32 = vpop.f32.mrf.mxu1  ;;  %v2436_v36 = vmax.f32 %v1588_v23, 0.0  ;;  %v2564_v37 = vmax.f32 %v2100_v24, 0.0 }
 0x162   : > { %5343 = vst [vmem:[%s6251_s17 + $0xd0] sm:$0xff] %v4811_v27   ;;  %5407 = vst [vmem:[%s6251_s17 + $0x2d0] sm:$0xff] %v5131_v28   ;;  %v1591_v34 = vadd.f32 %v6442_v33, %v5656_v31  ;;  %v2103_v35 = vadd.f32 %v6442_v33, %v5784_v32  ;;  %v2434_v43 = vmax.f32 %v1580_v29, 0.0 }
 0x163   : > { %v1582_v38 = vpop.f32.mrf.mxu0  ;;  %v2094_v39 = vpop.f32.mrf.mxu1  ;;  %v2562_v44 = vmax.f32 %v2092_v30, 0.0 }
 0x164   : > { %v2437_v40 = vmax.f32 %v1591_v34, 0.0  ;;  %v2565_v46 = vmax.f32 %v2103_v35, 0.0  ;;  %v1583_v41 = vadd.f32 %v6442_v33, %v1582_v38  ;;  %v2095_v42 = vadd.f32 %v6442_v33, %v2094_v39 }
 0x165   : > { %v5659_v45 = vpop.f32.mrf.mxu0  ;;  %v5787_v47 = vpop.f32.mrf.mxu1 }
 0x166   : > { %v4826_v48 = vpack.c.bf16 %v2437_v40, %v2436_v36  ;;  %v5146_v49 = vpack.c.bf16 %v2565_v46, %v2564_v37  ;;  %v2435_v50 = vmax.f32 %v1583_v41, 0.0  ;;  %v2563_v51 = vmax.f32 %v2095_v42, 0.0 }
 0x167   : > { %v1604_v52 = vadd.f32 %v6442_v33, %v5659_v45  ;;  %v2116_v53 = vadd.f32 %v6442_v33, %v5787_v47  ;;  %v1595_v54 = vpop.f32.mrf.mxu0  ;;  %v2107_v55 = vpop.f32.mrf.mxu1 }
 0x168   : > { %5346 = vst [vmem:[%s6251_s17 + $0xe8] sm:$0xff] %v4826_v48   ;;  %5410 = vst [vmem:[%s6251_s17 + $0x2e8] sm:$0xff] %v5146_v49   ;;  %v4821_v56 = vpack.c.bf16 %v2435_v50, %v2434_v43  ;;  %v5141_v57 = vpack.c.bf16 %v2563_v51, %v2562_v44  ;;  %v1596_v58 = vadd.f32 %v6442_v33, %v1595_v54 }
 0x169   : > { %v2108_v59 = vadd.f32 %v6442_v33, %v2107_v55  ;;  %v5660_v60 = vpop.f32.mrf.mxu0  ;;  %v5788_v61 = vpop.f32.mrf.mxu1  ;;  %v2440_v0 = vmax.f32 %v1604_v52, 0.0  ;;  %v2568_v1 = vmax.f32 %v2116_v53, 0.0 }
 0x16a   : > { %5345 = vst [vmem:[%s6251_s17 + $0xe0] sm:$0xff] %v4821_v56   ;;  %5409 = vst [vmem:[%s6251_s17 + $0x2e0] sm:$0xff] %v5141_v57   ;;  %v1607_v62 = vadd.f32 %v6442_v33, %v5660_v60  ;;  %v2119_v63 = vadd.f32 %v6442_v33, %v5788_v61  ;;  %v2438_v8 = vmax.f32 %v1596_v58, 0.0 }
 0x16b   : > { %v1598_v2 = vpop.f32.mrf.mxu0  ;;  %v2110_v3 = vpop.f32.mrf.mxu1  ;;  %v2566_v9 = vmax.f32 %v2108_v59, 0.0 }
 0x16c   : > { %v2441_v4 = vmax.f32 %v1607_v62, 0.0  ;;  %v2569_v5 = vmax.f32 %v2119_v63, 0.0  ;;  %v1599_v6 = vadd.f32 %v6442_v33, %v1598_v2  ;;  %v2111_v7 = vadd.f32 %v6442_v33, %v2110_v3 }
 0x16d   : > { %v5663_v10 = vpop.f32.mrf.mxu0  ;;  %v5791_v11 = vpop.f32.mrf.mxu1 }
 0x16e   : > { %v4836_v12 = vpack.c.bf16 %v2441_v4, %v2440_v0  ;;  %v5156_v13 = vpack.c.bf16 %v2569_v5, %v2568_v1  ;;  %v2439_v14 = vmax.f32 %v1599_v6, 0.0  ;;  %v2567_v15 = vmax.f32 %v2111_v7, 0.0 }
 0x16f   : > { %v1620_v16 = vadd.f32 %v6442_v33, %v5663_v10  ;;  %v2132_v17 = vadd.f32 %v6442_v33, %v5791_v11  ;;  %v1611_v18 = vpop.f32.mrf.mxu0  ;;  %v2123_v19 = vpop.f32.mrf.mxu1 }
 0x170   : > { %5348 = vst [vmem:[%s6251_s17 + $0xf8] sm:$0xff] %v4836_v12   ;;  %5412 = vst [vmem:[%s6251_s17 + $0x2f8] sm:$0xff] %v5156_v13   ;;  %v4831_v20 = vpack.c.bf16 %v2439_v14, %v2438_v8  ;;  %v5151_v21 = vpack.c.bf16 %v2567_v15, %v2566_v9  ;;  %v1612_v22 = vadd.f32 %v6442_v33, %v1611_v18 }
 0x171   : > { %v2124_v23 = vadd.f32 %v6442_v33, %v2123_v19  ;;  %v5664_v24 = vpop.f32.mrf.mxu0  ;;  %v5792_v25 = vpop.f32.mrf.mxu1  ;;  %v2444_v28 = vmax.f32 %v1620_v16, 0.0  ;;  %v2572_v29 = vmax.f32 %v2132_v17, 0.0 }
 0x172   : > { %5347 = vst [vmem:[%s6251_s17 + $0xf0] sm:$0xff] %v4831_v20   ;;  %5411 = vst [vmem:[%s6251_s17 + $0x2f0] sm:$0xff] %v5151_v21   ;;  %v1623_v26 = vadd.f32 %v6442_v33, %v5664_v24  ;;  %v2135_v27 = vadd.f32 %v6442_v33, %v5792_v25  ;;  %v2442_v37 = vmax.f32 %v1612_v22, 0.0 }
 0x173   : > { %v1614_v30 = vpop.f32.mrf.mxu0  ;;  %v2126_v31 = vpop.f32.mrf.mxu1  ;;  %v2570_v38 = vmax.f32 %v2124_v23, 0.0 }
 0x174   : > { %v2445_v32 = vmax.f32 %v1623_v26, 0.0  ;;  %v2573_v34 = vmax.f32 %v2135_v27, 0.0  ;;  %v1615_v35 = vadd.f32 %v6442_v33, %v1614_v30  ;;  %v2127_v36 = vadd.f32 %v6442_v33, %v2126_v31 }
 0x175   : > { %v5667_v39 = vpop.f32.mrf.mxu0  ;;  %v5795_v40 = vpop.f32.mrf.mxu1 }
 0x176   : > { %v4846_v46 = vpack.c.bf16 %v2445_v32, %v2444_v28  ;;  %v5166_v41 = vpack.c.bf16 %v2573_v34, %v2572_v29  ;;  %v2443_v42 = vmax.f32 %v1615_v35, 0.0  ;;  %v2571_v43 = vmax.f32 %v2127_v36, 0.0 }
 0x177   : > { %v1636_v44 = vadd.f32 %v6442_v33, %v5667_v39  ;;  %v2148_v45 = vadd.f32 %v6442_v33, %v5795_v40  ;;  %v1627_v47 = vpop.f32.mrf.mxu0  ;;  %v2139_v48 = vpop.f32.mrf.mxu1 }
 0x178   : > { %5350 = vst [vmem:[%s6251_s17 + $0x108] sm:$0xff] %v4846_v46   ;;  %5414 = vst [vmem:[%s6251_s17 + $0x308] sm:$0xff] %v5166_v41   ;;  %v4841_v49 = vpack.c.bf16 %v2443_v42, %v2442_v37  ;;  %v5161_v50 = vpack.c.bf16 %v2571_v43, %v2570_v38  ;;  %v1628_v51 = vadd.f32 %v6442_v33, %v1627_v47 }
 0x179   : > { %v2140_v52 = vadd.f32 %v6442_v33, %v2139_v48  ;;  %v5668_v53 = vpop.f32.mrf.mxu0  ;;  %v5796_v54 = vpop.f32.mrf.mxu1  ;;  %v2448_v57 = vmax.f32 %v1636_v44, 0.0  ;;  %v2576_v58 = vmax.f32 %v2148_v45, 0.0 }
 0x17a   : > { %5349 = vst [vmem:[%s6251_s17 + $0x100] sm:$0xff] %v4841_v49   ;;  %5413 = vst [vmem:[%s6251_s17 + $0x300] sm:$0xff] %v5161_v50   ;;  %v1639_v55 = vadd.f32 %v6442_v33, %v5668_v53  ;;  %v2151_v56 = vadd.f32 %v6442_v33, %v5796_v54  ;;  %v2446_v1 = vmax.f32 %v1628_v51, 0.0 }
 0x17b   : > { %v1630_v59 = vpop.f32.mrf.mxu0  ;;  %v2142_v60 = vpop.f32.mrf.mxu1  ;;  %v2574_v2 = vmax.f32 %v2140_v52, 0.0 }
 0x17c   : > { %v2449_v61 = vmax.f32 %v1639_v55, 0.0  ;;  %v2577_v62 = vmax.f32 %v2151_v56, 0.0  ;;  %v1631_v63 = vadd.f32 %v6442_v33, %v1630_v59  ;;  %v2143_v0 = vadd.f32 %v6442_v33, %v2142_v60 }
 0x17d   : > { %v5671_v3 = vpop.f32.mrf.mxu0  ;;  %v5799_v4 = vpop.f32.mrf.mxu1 }
 0x17e   : > { %v4856_v5 = vpack.c.bf16 %v2449_v61, %v2448_v57  ;;  %v5176_v6 = vpack.c.bf16 %v2577_v62, %v2576_v58  ;;  %v2447_v7 = vmax.f32 %v1631_v63, 0.0  ;;  %v2575_v8 = vmax.f32 %v2143_v0, 0.0 }
 0x17f   : > { %v1652_v9 = vadd.f32 %v6442_v33, %v5671_v3  ;;  %v2164_v10 = vadd.f32 %v6442_v33, %v5799_v4  ;;  %v1643_v11 = vpop.f32.mrf.mxu0  ;;  %v2155_v12 = vpop.f32.mrf.mxu1 }
 0x180   : > { %5352 = vst [vmem:[%s6251_s17 + $0x118] sm:$0xff] %v4856_v5   ;;  %5416 = vst [vmem:[%s6251_s17 + $0x318] sm:$0xff] %v5176_v6   ;;  %v4851_v13 = vpack.c.bf16 %v2447_v7, %v2446_v1  ;;  %v5171_v14 = vpack.c.bf16 %v2575_v8, %v2574_v2  ;;  %v1644_v15 = vadd.f32 %v6442_v33, %v1643_v11 }
 0x181   : > { %v2156_v16 = vadd.f32 %v6442_v33, %v2155_v12  ;;  %v5672_v17 = vpop.f32.mrf.mxu0  ;;  %v5800_v18 = vpop.f32.mrf.mxu1  ;;  %v2452_v21 = vmax.f32 %v1652_v9, 0.0  ;;  %v2580_v22 = vmax.f32 %v2164_v10, 0.0 }
 0x182   : > { %5351 = vst [vmem:[%s6251_s17 + $0x110] sm:$0xff] %v4851_v13   ;;  %5415 = vst [vmem:[%s6251_s17 + $0x310] sm:$0xff] %v5171_v14   ;;  %v1655_v19 = vadd.f32 %v6442_v33, %v5672_v17  ;;  %v2167_v20 = vadd.f32 %v6442_v33, %v5800_v18  ;;  %v2450_v29 = vmax.f32 %v1644_v15, 0.0 }
 0x183   : > { %v1646_v23 = vpop.f32.mrf.mxu0  ;;  %v2158_v24 = vpop.f32.mrf.mxu1  ;;  %v2578_v30 = vmax.f32 %v2156_v16, 0.0 }
 0x184   : > { %v2453_v25 = vmax.f32 %v1655_v19, 0.0  ;;  %v2581_v26 = vmax.f32 %v2167_v20, 0.0  ;;  %v1647_v27 = vadd.f32 %v6442_v33, %v1646_v23  ;;  %v2159_v28 = vadd.f32 %v6442_v33, %v2158_v24 }
 0x185   : > { %v5675_v31 = vpop.f32.mrf.mxu0  ;;  %v5803_v32 = vpop.f32.mrf.mxu1 }
 0x186   : > { %v4866_v34 = vpack.c.bf16 %v2453_v25, %v2452_v21  ;;  %v5186_v35 = vpack.c.bf16 %v2581_v26, %v2580_v22  ;;  %v2451_v36 = vmax.f32 %v1647_v27, 0.0  ;;  %v2579_v37 = vmax.f32 %v2159_v28, 0.0 }
 0x187   : > { %v1668_v38 = vadd.f32 %v6442_v33, %v5675_v31  ;;  %v2180_v39 = vadd.f32 %v6442_v33, %v5803_v32  ;;  %v1659_v40 = vpop.f32.mrf.mxu0  ;;  %v2171_v46 = vpop.f32.mrf.mxu1 }
 0x188   : > { %5354 = vst [vmem:[%s6251_s17 + $0x128] sm:$0xff] %v4866_v34   ;;  %5418 = vst [vmem:[%s6251_s17 + $0x328] sm:$0xff] %v5186_v35   ;;  %v4861_v41 = vpack.c.bf16 %v2451_v36, %v2450_v29  ;;  %v5181_v42 = vpack.c.bf16 %v2579_v37, %v2578_v30  ;;  %v1660_v43 = vadd.f32 %v6442_v33, %v1659_v40 }
 0x189   : > { %v2172_v44 = vadd.f32 %v6442_v33, %v2171_v46  ;;  %v5676_v45 = vpop.f32.mrf.mxu0  ;;  %v5804_v47 = vpop.f32.mrf.mxu1  ;;  %v2456_v50 = vmax.f32 %v1668_v38, 0.0  ;;  %v2584_v51 = vmax.f32 %v2180_v39, 0.0 }
 0x18a   : > { %5353 = vst [vmem:[%s6251_s17 + $0x120] sm:$0xff] %v4861_v41   ;;  %5417 = vst [vmem:[%s6251_s17 + $0x320] sm:$0xff] %v5181_v42   ;;  %v1671_v48 = vadd.f32 %v6442_v33, %v5676_v45  ;;  %v2183_v49 = vadd.f32 %v6442_v33, %v5804_v47  ;;  %v2454_v58 = vmax.f32 %v1660_v43, 0.0 }
 0x18b   : > { %v1662_v52 = vpop.f32.mrf.mxu0  ;;  %v2174_v53 = vpop.f32.mrf.mxu1  ;;  %v2582_v59 = vmax.f32 %v2172_v44, 0.0 }
 0x18c   : > { %v2457_v54 = vmax.f32 %v1671_v48, 0.0  ;;  %v2585_v55 = vmax.f32 %v2183_v49, 0.0  ;;  %v1663_v56 = vadd.f32 %v6442_v33, %v1662_v52  ;;  %v2175_v57 = vadd.f32 %v6442_v33, %v2174_v53 }
 0x18d   : > { %v5679_v60 = vpop.f32.mrf.mxu0  ;;  %v5807_v61 = vpop.f32.mrf.mxu1 }
 0x18e   : > { %v4876_v62 = vpack.c.bf16 %v2457_v54, %v2456_v50  ;;  %v5196_v63 = vpack.c.bf16 %v2585_v55, %v2584_v51  ;;  %v2455_v0 = vmax.f32 %v1663_v56, 0.0  ;;  %v2583_v1 = vmax.f32 %v2175_v57, 0.0 }
 0x18f   : > { %v1684_v2 = vadd.f32 %v6442_v33, %v5679_v60  ;;  %v2196_v3 = vadd.f32 %v6442_v33, %v5807_v61  ;;  %v1675_v4 = vpop.f32.mrf.mxu0  ;;  %v2187_v5 = vpop.f32.mrf.mxu1 }
 0x190   : > { %5356 = vst [vmem:[%s6251_s17 + $0x138] sm:$0xff] %v4876_v62   ;;  %5420 = vst [vmem:[%s6251_s17 + $0x338] sm:$0xff] %v5196_v63   ;;  %v4871_v6 = vpack.c.bf16 %v2455_v0, %v2454_v58  ;;  %v5191_v7 = vpack.c.bf16 %v2583_v1, %v2582_v59  ;;  %v1676_v8 = vadd.f32 %v6442_v33, %v1675_v4 }
 0x191   : > { %v2188_v9 = vadd.f32 %v6442_v33, %v2187_v5  ;;  %v5680_v10 = vpop.f32.mrf.mxu0  ;;  %v5808_v11 = vpop.f32.mrf.mxu1  ;;  %v2460_v14 = vmax.f32 %v1684_v2, 0.0  ;;  %v2588_v15 = vmax.f32 %v2196_v3, 0.0 }
 0x192   : > { %5355 = vst [vmem:[%s6251_s17 + $0x130] sm:$0xff] %v4871_v6   ;;  %5419 = vst [vmem:[%s6251_s17 + $0x330] sm:$0xff] %v5191_v7   ;;  %v1687_v12 = vadd.f32 %v6442_v33, %v5680_v10  ;;  %v2199_v13 = vadd.f32 %v6442_v33, %v5808_v11  ;;  %v2458_v22 = vmax.f32 %v1676_v8, 0.0 }
 0x193   : > { %v1678_v16 = vpop.f32.mrf.mxu0  ;;  %v2190_v17 = vpop.f32.mrf.mxu1  ;;  %v2586_v23 = vmax.f32 %v2188_v9, 0.0 }
 0x194   : > { %v2461_v18 = vmax.f32 %v1687_v12, 0.0  ;;  %v2589_v19 = vmax.f32 %v2199_v13, 0.0  ;;  %v1679_v20 = vadd.f32 %v6442_v33, %v1678_v16  ;;  %v2191_v21 = vadd.f32 %v6442_v33, %v2190_v17 }
 0x195   : > { %v5683_v24 = vpop.f32.mrf.mxu0  ;;  %v5811_v25 = vpop.f32.mrf.mxu1 }
 0x196   : > { %v4886_v26 = vpack.c.bf16 %v2461_v18, %v2460_v14  ;;  %v5206_v27 = vpack.c.bf16 %v2589_v19, %v2588_v15  ;;  %v2459_v28 = vmax.f32 %v1679_v20, 0.0  ;;  %v2587_v29 = vmax.f32 %v2191_v21, 0.0 }
 0x197   : > { %v1700_v30 = vadd.f32 %v6442_v33, %v5683_v24  ;;  %v2212_v31 = vadd.f32 %v6442_v33, %v5811_v25  ;;  %v1691_v32 = vpop.f32.mrf.mxu0  ;;  %v2203_v34 = vpop.f32.mrf.mxu1 }
 0x198   : > { %5358 = vst [vmem:[%s6251_s17 + $0x148] sm:$0xff] %v4886_v26   ;;  %5422 = vst [vmem:[%s6251_s17 + $0x348] sm:$0xff] %v5206_v27   ;;  %v4881_v35 = vpack.c.bf16 %v2459_v28, %v2458_v22  ;;  %v5201_v36 = vpack.c.bf16 %v2587_v29, %v2586_v23  ;;  %v1692_v37 = vadd.f32 %v6442_v33, %v1691_v32 }
 0x199   : > { %v2204_v38 = vadd.f32 %v6442_v33, %v2203_v34  ;;  %v5684_v39 = vpop.f32.mrf.mxu0  ;;  %v5812_v40 = vpop.f32.mrf.mxu1  ;;  %v2464_v42 = vmax.f32 %v1700_v30, 0.0  ;;  %v2592_v43 = vmax.f32 %v2212_v31, 0.0 }
 0x19a   : > { %5357 = vst [vmem:[%s6251_s17 + $0x140] sm:$0xff] %v4881_v35   ;;  %5421 = vst [vmem:[%s6251_s17 + $0x340] sm:$0xff] %v5201_v36   ;;  %v1703_v46 = vadd.f32 %v6442_v33, %v5684_v39  ;;  %v2215_v41 = vadd.f32 %v6442_v33, %v5812_v40  ;;  %v2462_v51 = vmax.f32 %v1692_v37, 0.0 }
 0x19b   : > { %v1694_v44 = vpop.f32.mrf.mxu0  ;;  %v2206_v45 = vpop.f32.mrf.mxu1  ;;  %v2590_v52 = vmax.f32 %v2204_v38, 0.0 }
 0x19c   : > { %v2465_v47 = vmax.f32 %v1703_v46, 0.0  ;;  %v2593_v48 = vmax.f32 %v2215_v41, 0.0  ;;  %v1695_v49 = vadd.f32 %v6442_v33, %v1694_v44  ;;  %v2207_v50 = vadd.f32 %v6442_v33, %v2206_v45 }
 0x19d   : > { %v5687_v53 = vpop.f32.mrf.mxu0  ;;  %v5815_v54 = vpop.f32.mrf.mxu1 }
 0x19e   : > { %v4896_v55 = vpack.c.bf16 %v2465_v47, %v2464_v42  ;;  %v5216_v56 = vpack.c.bf16 %v2593_v48, %v2592_v43  ;;  %v2463_v57 = vmax.f32 %v1695_v49, 0.0  ;;  %v2591_v58 = vmax.f32 %v2207_v50, 0.0 }
 0x19f   : > { %v1716_v59 = vadd.f32 %v6442_v33, %v5687_v53  ;;  %v2228_v60 = vadd.f32 %v6442_v33, %v5815_v54  ;;  %v1707_v61 = vpop.f32.mrf.mxu0  ;;  %v2219_v62 = vpop.f32.mrf.mxu1 }
 0x1a0   : > { %5360 = vst [vmem:[%s6251_s17 + $0x158] sm:$0xff] %v4896_v55   ;;  %5424 = vst [vmem:[%s6251_s17 + $0x358] sm:$0xff] %v5216_v56   ;;  %v4891_v63 = vpack.c.bf16 %v2463_v57, %v2462_v51  ;;  %v5211_v0 = vpack.c.bf16 %v2591_v58, %v2590_v52  ;;  %v1708_v1 = vadd.f32 %v6442_v33, %v1707_v61 }
 0x1a1   : > { %v2220_v2 = vadd.f32 %v6442_v33, %v2219_v62  ;;  %v5688_v3 = vpop.f32.mrf.mxu0  ;;  %v5816_v4 = vpop.f32.mrf.mxu1  ;;  %v2468_v7 = vmax.f32 %v1716_v59, 0.0  ;;  %v2596_v8 = vmax.f32 %v2228_v60, 0.0 }
 0x1a2   : > { %5359 = vst [vmem:[%s6251_s17 + $0x150] sm:$0xff] %v4891_v63   ;;  %5423 = vst [vmem:[%s6251_s17 + $0x350] sm:$0xff] %v5211_v0   ;;  %v1719_v5 = vadd.f32 %v6442_v33, %v5688_v3  ;;  %v2231_v6 = vadd.f32 %v6442_v33, %v5816_v4  ;;  %v2466_v15 = vmax.f32 %v1708_v1, 0.0 }
 0x1a3   : > { %v1710_v9 = vpop.f32.mrf.mxu0  ;;  %v2222_v10 = vpop.f32.mrf.mxu1  ;;  %v2594_v16 = vmax.f32 %v2220_v2, 0.0 }
 0x1a4   : > { %v2469_v11 = vmax.f32 %v1719_v5, 0.0  ;;  %v2597_v12 = vmax.f32 %v2231_v6, 0.0  ;;  %v1711_v13 = vadd.f32 %v6442_v33, %v1710_v9  ;;  %v2223_v14 = vadd.f32 %v6442_v33, %v2222_v10 }
 0x1a5   : > { %v5691_v17 = vpop.f32.mrf.mxu0  ;;  %v5819_v18 = vpop.f32.mrf.mxu1 }
 0x1a6   : > { %v4906_v19 = vpack.c.bf16 %v2469_v11, %v2468_v7  ;;  %v5226_v20 = vpack.c.bf16 %v2597_v12, %v2596_v8  ;;  %v2467_v21 = vmax.f32 %v1711_v13, 0.0  ;;  %v2595_v22 = vmax.f32 %v2223_v14, 0.0 }
 0x1a7   : > { %v1732_v23 = vadd.f32 %v6442_v33, %v5691_v17  ;;  %v2244_v24 = vadd.f32 %v6442_v33, %v5819_v18  ;;  %v1723_v25 = vpop.f32.mrf.mxu0  ;;  %v2235_v26 = vpop.f32.mrf.mxu1 }
 0x1a8   : > { %5362 = vst [vmem:[%s6251_s17 + $0x168] sm:$0xff] %v4906_v19   ;;  %5426 = vst [vmem:[%s6251_s17 + $0x368] sm:$0xff] %v5226_v20   ;;  %v4901_v27 = vpack.c.bf16 %v2467_v21, %v2466_v15  ;;  %v5221_v28 = vpack.c.bf16 %v2595_v22, %v2594_v16  ;;  %v1724_v29 = vadd.f32 %v6442_v33, %v1723_v25 }
 0x1a9   : > { %v2236_v30 = vadd.f32 %v6442_v33, %v2235_v26  ;;  %v5692_v31 = vpop.f32.mrf.mxu0  ;;  %v5820_v32 = vpop.f32.mrf.mxu1  ;;  %v2472_v36 = vmax.f32 %v1732_v23, 0.0  ;;  %v2600_v37 = vmax.f32 %v2244_v24, 0.0 }
 0x1aa   : > { %5361 = vst [vmem:[%s6251_s17 + $0x160] sm:$0xff] %v4901_v27   ;;  %5425 = vst [vmem:[%s6251_s17 + $0x360] sm:$0xff] %v5221_v28   ;;  %v1735_v34 = vadd.f32 %v6442_v33, %v5692_v31  ;;  %v2247_v35 = vadd.f32 %v6442_v33, %v5820_v32  ;;  %v2470_v43 = vmax.f32 %v1724_v29, 0.0 }
 0x1ab   : > { %v1726_v38 = vpop.f32.mrf.mxu0  ;;  %v2238_v39 = vpop.f32.mrf.mxu1  ;;  %v2598_v44 = vmax.f32 %v2236_v30, 0.0 }
 0x1ac   : > { %v2473_v40 = vmax.f32 %v1735_v34, 0.0  ;;  %v2601_v46 = vmax.f32 %v2247_v35, 0.0  ;;  %v1727_v41 = vadd.f32 %v6442_v33, %v1726_v38  ;;  %v2239_v42 = vadd.f32 %v6442_v33, %v2238_v39 }
 0x1ad   : > { %v5695_v45 = vpop.f32.mrf.mxu0  ;;  %v5823_v47 = vpop.f32.mrf.mxu1 }
 0x1ae   : > { %v4916_v48 = vpack.c.bf16 %v2473_v40, %v2472_v36  ;;  %v5236_v49 = vpack.c.bf16 %v2601_v46, %v2600_v37  ;;  %v2471_v50 = vmax.f32 %v1727_v41, 0.0  ;;  %v2599_v51 = vmax.f32 %v2239_v42, 0.0 }
 0x1af   : > { %v1748_v52 = vadd.f32 %v6442_v33, %v5695_v45  ;;  %v2260_v53 = vadd.f32 %v6442_v33, %v5823_v47  ;;  %v1739_v54 = vpop.f32.mrf.mxu0  ;;  %v2251_v55 = vpop.f32.mrf.mxu1 }
 0x1b0   : > { %5364 = vst [vmem:[%s6251_s17 + $0x178] sm:$0xff] %v4916_v48   ;;  %5428 = vst [vmem:[%s6251_s17 + $0x378] sm:$0xff] %v5236_v49   ;;  %v4911_v56 = vpack.c.bf16 %v2471_v50, %v2470_v43  ;;  %v5231_v57 = vpack.c.bf16 %v2599_v51, %v2598_v44  ;;  %v1740_v58 = vadd.f32 %v6442_v33, %v1739_v54 }
 0x1b1   : > { %v2252_v59 = vadd.f32 %v6442_v33, %v2251_v55  ;;  %v5696_v60 = vpop.f32.mrf.mxu0  ;;  %v5824_v61 = vpop.f32.mrf.mxu1  ;;  %v2476_v0 = vmax.f32 %v1748_v52, 0.0  ;;  %v2604_v1 = vmax.f32 %v2260_v53, 0.0 }
 0x1b2   : > { %5363 = vst [vmem:[%s6251_s17 + $0x170] sm:$0xff] %v4911_v56   ;;  %5427 = vst [vmem:[%s6251_s17 + $0x370] sm:$0xff] %v5231_v57   ;;  %v1751_v62 = vadd.f32 %v6442_v33, %v5696_v60  ;;  %v2263_v63 = vadd.f32 %v6442_v33, %v5824_v61  ;;  %v2474_v8 = vmax.f32 %v1740_v58, 0.0 }
 0x1b3   : > { %v1742_v2 = vpop.f32.mrf.mxu0  ;;  %v2254_v3 = vpop.f32.mrf.mxu1  ;;  %v2602_v9 = vmax.f32 %v2252_v59, 0.0 }
 0x1b4   : > { %v2477_v4 = vmax.f32 %v1751_v62, 0.0  ;;  %v2605_v5 = vmax.f32 %v2263_v63, 0.0  ;;  %v1743_v6 = vadd.f32 %v6442_v33, %v1742_v2  ;;  %v2255_v7 = vadd.f32 %v6442_v33, %v2254_v3 }
 0x1b5   : > { %v5699_v10 = vpop.f32.mrf.mxu0  ;;  %v5827_v11 = vpop.f32.mrf.mxu1 }
 0x1b6   : > { %v4926_v12 = vpack.c.bf16 %v2477_v4, %v2476_v0  ;;  %v5246_v13 = vpack.c.bf16 %v2605_v5, %v2604_v1  ;;  %v2475_v14 = vmax.f32 %v1743_v6, 0.0  ;;  %v2603_v15 = vmax.f32 %v2255_v7, 0.0 }
 0x1b7   : > { %v1764_v16 = vadd.f32 %v6442_v33, %v5699_v10  ;;  %v2276_v17 = vadd.f32 %v6442_v33, %v5827_v11  ;;  %v1755_v18 = vpop.f32.mrf.mxu0  ;;  %v2267_v19 = vpop.f32.mrf.mxu1 }
 0x1b8   : > { %5366 = vst [vmem:[%s6251_s17 + $0x188] sm:$0xff] %v4926_v12   ;;  %5430 = vst [vmem:[%s6251_s17 + $0x388] sm:$0xff] %v5246_v13   ;;  %v4921_v20 = vpack.c.bf16 %v2475_v14, %v2474_v8  ;;  %v5241_v21 = vpack.c.bf16 %v2603_v15, %v2602_v9  ;;  %v1756_v22 = vadd.f32 %v6442_v33, %v1755_v18 }
 0x1b9   : > { %v2268_v23 = vadd.f32 %v6442_v33, %v2267_v19  ;;  %v5700_v24 = vpop.f32.mrf.mxu0  ;;  %v5828_v25 = vpop.f32.mrf.mxu1  ;;  %v2480_v28 = vmax.f32 %v1764_v16, 0.0  ;;  %v2608_v29 = vmax.f32 %v2276_v17, 0.0 }
 0x1ba   : > { %5365 = vst [vmem:[%s6251_s17 + $0x180] sm:$0xff] %v4921_v20   ;;  %5429 = vst [vmem:[%s6251_s17 + $0x380] sm:$0xff] %v5241_v21   ;;  %v1767_v26 = vadd.f32 %v6442_v33, %v5700_v24  ;;  %v2279_v27 = vadd.f32 %v6442_v33, %v5828_v25  ;;  %v2478_v37 = vmax.f32 %v1756_v22, 0.0 }
 0x1bb   : > { %v1758_v30 = vpop.f32.mrf.mxu0  ;;  %v2270_v31 = vpop.f32.mrf.mxu1  ;;  %v2606_v38 = vmax.f32 %v2268_v23, 0.0 }
 0x1bc   : > { %v2481_v32 = vmax.f32 %v1767_v26, 0.0  ;;  %v2609_v34 = vmax.f32 %v2279_v27, 0.0  ;;  %v1759_v35 = vadd.f32 %v6442_v33, %v1758_v30  ;;  %v2271_v36 = vadd.f32 %v6442_v33, %v2270_v31 }
 0x1bd   : > { %v5703_v39 = vpop.f32.mrf.mxu0  ;;  %v5831_v40 = vpop.f32.mrf.mxu1 }
 0x1be   : > { %v4936_v46 = vpack.c.bf16 %v2481_v32, %v2480_v28  ;;  %v5256_v41 = vpack.c.bf16 %v2609_v34, %v2608_v29  ;;  %v2479_v42 = vmax.f32 %v1759_v35, 0.0  ;;  %v2607_v43 = vmax.f32 %v2271_v36, 0.0 }
 0x1bf   : > { %v1780_v44 = vadd.f32 %v6442_v33, %v5703_v39  ;;  %v2292_v45 = vadd.f32 %v6442_v33, %v5831_v40  ;;  %v1771_v47 = vpop.f32.mrf.mxu0  ;;  %v2283_v48 = vpop.f32.mrf.mxu1 }
 0x1c0   : > { %5368 = vst [vmem:[%s6251_s17 + $0x198] sm:$0xff] %v4936_v46   ;;  %5432 = vst [vmem:[%s6251_s17 + $0x398] sm:$0xff] %v5256_v41   ;;  %v4931_v49 = vpack.c.bf16 %v2479_v42, %v2478_v37  ;;  %v5251_v50 = vpack.c.bf16 %v2607_v43, %v2606_v38  ;;  %v1772_v51 = vadd.f32 %v6442_v33, %v1771_v47 }
 0x1c1   : > { %v2284_v52 = vadd.f32 %v6442_v33, %v2283_v48  ;;  %v5704_v53 = vpop.f32.mrf.mxu0  ;;  %v5832_v54 = vpop.f32.mrf.mxu1  ;;  %v2484_v57 = vmax.f32 %v1780_v44, 0.0  ;;  %v2612_v58 = vmax.f32 %v2292_v45, 0.0 }
 0x1c2   : > { %5367 = vst [vmem:[%s6251_s17 + $0x190] sm:$0xff] %v4931_v49   ;;  %5431 = vst [vmem:[%s6251_s17 + $0x390] sm:$0xff] %v5251_v50   ;;  %v1783_v55 = vadd.f32 %v6442_v33, %v5704_v53  ;;  %v2295_v56 = vadd.f32 %v6442_v33, %v5832_v54  ;;  %v2482_v1 = vmax.f32 %v1772_v51, 0.0 }
 0x1c3   : > { %v1774_v59 = vpop.f32.mrf.mxu0  ;;  %v2286_v60 = vpop.f32.mrf.mxu1  ;;  %v2610_v2 = vmax.f32 %v2284_v52, 0.0 }
 0x1c4   : > { %v2485_v61 = vmax.f32 %v1783_v55, 0.0  ;;  %v2613_v62 = vmax.f32 %v2295_v56, 0.0  ;;  %v1775_v63 = vadd.f32 %v6442_v33, %v1774_v59  ;;  %v2287_v0 = vadd.f32 %v6442_v33, %v2286_v60 }
 0x1c5   : > { %v5707_v3 = vpop.f32.mrf.mxu0  ;;  %v5835_v4 = vpop.f32.mrf.mxu1 }
 0x1c6   : > { %v4946_v5 = vpack.c.bf16 %v2485_v61, %v2484_v57  ;;  %v5266_v6 = vpack.c.bf16 %v2613_v62, %v2612_v58  ;;  %v2483_v7 = vmax.f32 %v1775_v63, 0.0  ;;  %v2611_v8 = vmax.f32 %v2287_v0, 0.0 }
 0x1c7   : > { %v1796_v9 = vadd.f32 %v6442_v33, %v5707_v3  ;;  %v2308_v10 = vadd.f32 %v6442_v33, %v5835_v4  ;;  %v1787_v11 = vpop.f32.mrf.mxu0  ;;  %v2299_v12 = vpop.f32.mrf.mxu1 }
 0x1c8   : > { %5370 = vst [vmem:[%s6251_s17 + $0x1a8] sm:$0xff] %v4946_v5   ;;  %5434 = vst [vmem:[%s6251_s17 + $0x3a8] sm:$0xff] %v5266_v6   ;;  %v4941_v13 = vpack.c.bf16 %v2483_v7, %v2482_v1  ;;  %v5261_v14 = vpack.c.bf16 %v2611_v8, %v2610_v2  ;;  %v1788_v15 = vadd.f32 %v6442_v33, %v1787_v11 }
 0x1c9   : > { %v2300_v16 = vadd.f32 %v6442_v33, %v2299_v12  ;;  %v5708_v17 = vpop.f32.mrf.mxu0  ;;  %v5836_v18 = vpop.f32.mrf.mxu1  ;;  %v2488_v21 = vmax.f32 %v1796_v9, 0.0  ;;  %v2616_v22 = vmax.f32 %v2308_v10, 0.0 }
 0x1ca   : > { %5369 = vst [vmem:[%s6251_s17 + $0x1a0] sm:$0xff] %v4941_v13   ;;  %5433 = vst [vmem:[%s6251_s17 + $0x3a0] sm:$0xff] %v5261_v14   ;;  %v1799_v19 = vadd.f32 %v6442_v33, %v5708_v17  ;;  %v2311_v20 = vadd.f32 %v6442_v33, %v5836_v18  ;;  %v2486_v29 = vmax.f32 %v1788_v15, 0.0 }
 0x1cb   : > { %v1790_v23 = vpop.f32.mrf.mxu0  ;;  %v2302_v24 = vpop.f32.mrf.mxu1  ;;  %v2614_v30 = vmax.f32 %v2300_v16, 0.0 }
 0x1cc   : > { %v2489_v25 = vmax.f32 %v1799_v19, 0.0  ;;  %v2617_v26 = vmax.f32 %v2311_v20, 0.0  ;;  %v1791_v27 = vadd.f32 %v6442_v33, %v1790_v23  ;;  %v2303_v28 = vadd.f32 %v6442_v33, %v2302_v24 }
 0x1cd   : > { %v5711_v31 = vpop.f32.mrf.mxu0  ;;  %v5839_v32 = vpop.f32.mrf.mxu1 }
 0x1ce   : > { %v4956_v34 = vpack.c.bf16 %v2489_v25, %v2488_v21  ;;  %v5276_v35 = vpack.c.bf16 %v2617_v26, %v2616_v22  ;;  %v2487_v36 = vmax.f32 %v1791_v27, 0.0  ;;  %v2615_v37 = vmax.f32 %v2303_v28, 0.0 }
 0x1cf   : > { %v1812_v38 = vadd.f32 %v6442_v33, %v5711_v31  ;;  %v2324_v39 = vadd.f32 %v6442_v33, %v5839_v32  ;;  %v1803_v40 = vpop.f32.mrf.mxu0  ;;  %v2315_v46 = vpop.f32.mrf.mxu1 }
 0x1d0   : > { %5372 = vst [vmem:[%s6251_s17 + $0x1b8] sm:$0xff] %v4956_v34   ;;  %5436 = vst [vmem:[%s6251_s17 + $0x3b8] sm:$0xff] %v5276_v35   ;;  %v4951_v41 = vpack.c.bf16 %v2487_v36, %v2486_v29  ;;  %v5271_v42 = vpack.c.bf16 %v2615_v37, %v2614_v30  ;;  %v1804_v43 = vadd.f32 %v6442_v33, %v1803_v40 }
 0x1d1   : > { %v2316_v44 = vadd.f32 %v6442_v33, %v2315_v46  ;;  %v5712_v45 = vpop.f32.mrf.mxu0  ;;  %v5840_v47 = vpop.f32.mrf.mxu1  ;;  %v2492_v50 = vmax.f32 %v1812_v38, 0.0  ;;  %v2620_v51 = vmax.f32 %v2324_v39, 0.0  ;;  %v6030_v46 = vld [vmem:[%s6658_s2] ss:$0 sm:$0xff] }
 0x1d2   : > { %5371 = vst [vmem:[%s6251_s17 + $0x1b0] sm:$0xff] %v4951_v41   ;;  %5435 = vst [vmem:[%s6251_s17 + $0x3b0] sm:$0xff] %v5271_v42   ;;  %v1815_v48 = vadd.f32 %v6442_v33, %v5712_v45  ;;  %v2327_v49 = vadd.f32 %v6442_v33, %v5840_v47  ;;  %v2490_v58 = vmax.f32 %v1804_v43, 0.0 }
 0x1d3   : > { %v1806_v52 = vpop.f32.mrf.mxu0  ;;  %v2318_v53 = vpop.f32.mrf.mxu1  ;;  %v2618_v59 = vmax.f32 %v2316_v44, 0.0 }
 0x1d4   : > { %v2493_v54 = vmax.f32 %v1815_v48, 0.0  ;;  %v2621_v55 = vmax.f32 %v2327_v49, 0.0  ;;  %v1807_v56 = vadd.f32 %v6442_v33, %v1806_v52  ;;  %v2319_v57 = vadd.f32 %v6442_v33, %v2318_v53 }
 0x1d5   : > { %v5715_v60 = vpop.f32.mrf.mxu0  ;;  %v5843_v61 = vpop.f32.mrf.mxu1 }
 0x1d6   : > { %v4966_v62 = vpack.c.bf16 %v2493_v54, %v2492_v50  ;;  %v5286_v63 = vpack.c.bf16 %v2621_v55, %v2620_v51  ;;  %v2491_v0 = vmax.f32 %v1807_v56, 0.0  ;;  %v2619_v1 = vmax.f32 %v2319_v57, 0.0 }
 0x1d7   : > { %v1828_v2 = vadd.f32 %v6442_v33, %v5715_v60  ;;  %v2340_v3 = vadd.f32 %v6442_v33, %v5843_v61  ;;  %v1819_v4 = vpop.f32.mrf.mxu0  ;;  %v2331_v5 = vpop.f32.mrf.mxu1 }
 0x1d8   : > { %5374 = vst [vmem:[%s6251_s17 + $0x1c8] sm:$0xff] %v4966_v62   ;;  %5438 = vst [vmem:[%s6251_s17 + $0x3c8] sm:$0xff] %v5286_v63   ;;  %v4961_v6 = vpack.c.bf16 %v2491_v0, %v2490_v58  ;;  %v5281_v7 = vpack.c.bf16 %v2619_v1, %v2618_v59  ;;  %v1820_v8 = vadd.f32 %v6442_v33, %v1819_v4 }
 0x1d9   : > { %v2332_v9 = vadd.f32 %v6442_v33, %v2331_v5  ;;  %v5716_v10 = vpop.f32.mrf.mxu0  ;;  %v5844_v11 = vpop.f32.mrf.mxu1  ;;  %v2496_v14 = vmax.f32 %v1828_v2, 0.0  ;;  %v2624_v15 = vmax.f32 %v2340_v3, 0.0 }
 0x1da   : > { %5373 = vst [vmem:[%s6251_s17 + $0x1c0] sm:$0xff] %v4961_v6   ;;  %5437 = vst [vmem:[%s6251_s17 + $0x3c0] sm:$0xff] %v5281_v7   ;;  %v1831_v12 = vadd.f32 %v6442_v33, %v5716_v10  ;;  %v2343_v13 = vadd.f32 %v6442_v33, %v5844_v11  ;;  %v2494_v22 = vmax.f32 %v1820_v8, 0.0 }
 0x1db   : > { %v1822_v16 = vpop.f32.mrf.mxu0  ;;  %v2334_v17 = vpop.f32.mrf.mxu1  ;;  %v2622_v23 = vmax.f32 %v2332_v9, 0.0 }
 0x1dc   : > { %v2497_v18 = vmax.f32 %v1831_v12, 0.0  ;;  %v2625_v19 = vmax.f32 %v2343_v13, 0.0  ;;  %v1823_v20 = vadd.f32 %v6442_v33, %v1822_v16  ;;  %v2335_v21 = vadd.f32 %v6442_v33, %v2334_v17 }
 0x1dd   : > { %v5719_v24 = vpop.f32.mrf.mxu0  ;;  %v5847_v25 = vpop.f32.mrf.mxu1 }
 0x1de   : > { %v4976_v26 = vpack.c.bf16 %v2497_v18, %v2496_v14  ;;  %v5296_v27 = vpack.c.bf16 %v2625_v19, %v2624_v15  ;;  %v2495_v28 = vmax.f32 %v1823_v20, 0.0  ;;  %v2623_v29 = vmax.f32 %v2335_v21, 0.0 }
 0x1df   : > { %v1844_v30 = vadd.f32 %v6442_v33, %v5719_v24  ;;  %v2356_v31 = vadd.f32 %v6442_v33, %v5847_v25  ;;  %v1835_v32 = vpop.f32.mrf.mxu0  ;;  %v2347_v34 = vpop.f32.mrf.mxu1 }
 0x1e0   : > { %5376 = vst [vmem:[%s6251_s17 + $0x1d8] sm:$0xff] %v4976_v26   ;;  %5440 = vst [vmem:[%s6251_s17 + $0x3d8] sm:$0xff] %v5296_v27   ;;  %v4971_v35 = vpack.c.bf16 %v2495_v28, %v2494_v22  ;;  %v5291_v36 = vpack.c.bf16 %v2623_v29, %v2622_v23  ;;  %v1836_v37 = vadd.f32 %v6442_v33, %v1835_v32 }
 0x1e1   : > { %v2348_v38 = vadd.f32 %v6442_v33, %v2347_v34  ;;  %v5720_v39 = vpop.f32.mrf.mxu0  ;;  %v5848_v40 = vpop.f32.mrf.mxu1  ;;  %v2500_v43 = vmax.f32 %v1844_v30, 0.0  ;;  %v2628_v44 = vmax.f32 %v2356_v31, 0.0 }
 0x1e2   : > { %5375 = vst [vmem:[%s6251_s17 + $0x1d0] sm:$0xff] %v4971_v35   ;;  %5439 = vst [vmem:[%s6251_s17 + $0x3d0] sm:$0xff] %v5291_v36   ;;  %v1847_v41 = vadd.f32 %v6030_v46, %v5720_v39  ;;  %v2359_v42 = vadd.f32 %v6030_v46, %v5848_v40  ;;  %v2498_v51 = vmax.f32 %v1836_v37, 0.0 }
 0x1e3   : > { %v1838_v45 = vpop.f32.mrf.mxu0  ;;  %v2350_v47 = vpop.f32.mrf.mxu1  ;;  %v2626_v52 = vmax.f32 %v2348_v38, 0.0 }
 0x1e4   : > { %v2501_v48 = vmax.f32 %v1847_v41, 0.0  ;;  %v2629_v49 = vmax.f32 %v2359_v42, 0.0  ;;  %v1839_v50 = vadd.f32 %v6030_v46, %v1838_v45  ;;  %v2351_v33 = vadd.f32 %v6030_v46, %v2350_v47 }
 0x1e5   : > { %v5723_v53 = vpop.f32.mrf.mxu0  ;;  %v5851_v54 = vpop.f32.mrf.mxu1 }
 0x1e6   : > { %v4986_v55 = vpack.c.bf16 %v2501_v48, %v2500_v43  ;;  %v5306_v56 = vpack.c.bf16 %v2629_v49, %v2628_v44  ;;  %v2499_v57 = vmax.f32 %v1839_v50, 0.0  ;;  %v2627_v58 = vmax.f32 %v2351_v33, 0.0 }
 0x1e7   : > { %v1860_v59 = vadd.f32 %v6030_v46, %v5723_v53  ;;  %v2372_v60 = vadd.f32 %v6030_v46, %v5851_v54  ;;  %v1851_v61 = vpop.f32.mrf.mxu0  ;;  %v2363_v62 = vpop.f32.mrf.mxu1 }
 0x1e8   : > { %5378 = vst [vmem:[%s6251_s17 + $0x1e8] sm:$0xff] %v4986_v55   ;;  %5442 = vst [vmem:[%s6251_s17 + $0x3e8] sm:$0xff] %v5306_v56   ;;  %v4981_v63 = vpack.c.bf16 %v2499_v57, %v2498_v51  ;;  %v5301_v0 = vpack.c.bf16 %v2627_v58, %v2626_v52  ;;  %v1852_v1 = vadd.f32 %v6030_v46, %v1851_v61 }
 0x1e9   : > { %v2364_v2 = vadd.f32 %v6030_v46, %v2363_v62  ;;  %v5724_v3 = vpop.f32.mrf.mxu0  ;;  %v5852_v4 = vpop.f32.mrf.mxu1  ;;  %v2504_v7 = vmax.f32 %v1860_v59, 0.0  ;;  %v2632_v8 = vmax.f32 %v2372_v60, 0.0 }
 0x1ea   : > { %5377 = vst [vmem:[%s6251_s17 + $0x1e0] sm:$0xff] %v4981_v63   ;;  %5441 = vst [vmem:[%s6251_s17 + $0x3e0] sm:$0xff] %v5301_v0   ;;  %v1863_v5 = vadd.f32 %v6030_v46, %v5724_v3  ;;  %v2375_v6 = vadd.f32 %v6030_v46, %v5852_v4  ;;  %v2502_v15 = vmax.f32 %v1852_v1, 0.0 }
 0x1eb   : > { %v1854_v9 = vpop.f32.mrf.mxu0  ;;  %v2366_v10 = vpop.f32.mrf.mxu1  ;;  %v2630_v16 = vmax.f32 %v2364_v2, 0.0 }
 0x1ec   : > { %v2505_v11 = vmax.f32 %v1863_v5, 0.0  ;;  %v2633_v12 = vmax.f32 %v2375_v6, 0.0  ;;  %v1855_v13 = vadd.f32 %v6030_v46, %v1854_v9  ;;  %v2367_v14 = vadd.f32 %v6030_v46, %v2366_v10 }
 0x1ee   : > { %v4996_v17 = vpack.c.bf16 %v2505_v11, %v2504_v7  ;;  %v5316_v18 = vpack.c.bf16 %v2633_v12, %v2632_v8  ;;  %v2503_v19 = vmax.f32 %v1855_v13, 0.0  ;;  %v2631_v20 = vmax.f32 %v2367_v14, 0.0 }
 0x1f0   : > { %5380 = vst [vmem:[%s6251_s17 + $0x1f8] sm:$0xff] %v4996_v17   ;;  %5444 = vst [vmem:[%s6251_s17 + $0x3f8] sm:$0xff] %v5316_v18   ;;  %v4991_v21 = vpack.c.bf16 %v2503_v19, %v2502_v15  ;;  %v5311_v22 = vpack.c.bf16 %v2631_v20, %v2630_v16 }
 0x1f2   : > { %5379 = vst [vmem:[%s6251_s17 + $0x1f0] sm:$0xff] %v4991_v21   ;;  %5443 = vst [vmem:[%s6251_s17 + $0x3f0] sm:$0xff] %v5311_v22  }
 0x1f3 PF: > { %s13_s14 = sadd.s32 1, %s6053_s14   ;;  %s6660_s12 = smov %s6049_s13 }
 0x1f4   : > { %p10_p5 = scmp.ge.s32.totalorder %s13_s14, 4   ;;  %s6661_s13 = smov %s6663_s15 }
 0x1f6   :  { %12 = sbr.rel (!%p10_p5) target bundleno = 2 (0x2), region = 68 }

// kernel: forward.6
= control target key start
LH: loop header
LB: loop body
LE: loop exit
PB: predicated region body
PF: predicated region fallthrough
CT: control target
= control target key end

     0   :  { %s6667_s12 = smov 0   ;;  %s6669_s13 = smov 0   ;;  %s7438_s0 = inlined_call_operand.vmem [shape: bf16[4096,256], index: 0, kind: input, shape index: {}]   ;;  %s7439_s1 = inlined_call_operand.vmem [shape: bf16[256,128], index: 1, kind: input, shape index: {}]   ;;  %s7440_s2 = inlined_call_operand.vmem [shape: f32[1,128], index: 2, kind: input, shape index: {}]   ;;  %s7441_s3 = inlined_call_operand.vmem [shape: bf16[4096,128], index: 3, kind: output, shape index: {}]  }
   0x1   :  { %s6671_s14 = smov 0  }
   0x2 LB: > { %s25_s15 = sadd.s32 1, %s6640_s13  ;;  %p4601_p0 = scmp.ge.s32.totalorder %s6644_s14, 1  ;;  %s6644_s14 = sphi %s6671_s14, %s13_s14   ;;  %s6640_s13 = sphi %s6669_s13, %s7443_s13   ;;  %s6636_s12 = sphi %s6667_s12, %s7442_s12  }
   0x3   : > { %p27_p1 = scmp.ge.s32.totalorder %s25_s15, 2  ;;  %p170_p2 = scmp.lt.s32.totalorder %s6644_s14, 3 }
   0x5   : > { %s7445_s15 = smov (%p27_p1, %s25_s15), 0  ;;  %p171_p3 = pnand %p4601_p0, %p170_p2 }
   0x6   : > { %s4602_s18 = sshll.u32 (!%p171_p3), %s6636_s12, 8 }
   0x7   : > { %174 = sbr.rel (%p171_p3) target bundleno = 785 (0x311), region = 32  ;;  %p206_p4 = scmp.lt.s32.totalorder (!%p171_p3), %s4602_s18, 511 }
   0xc   : > { %v6219_v0 = vld [vmem:[%s7439_s1 + $0x38] sm:$0xff]   ;;  %v6646_v1 = vmov 0   ;;  %v6220_v2 = vld [vmem:[%s7439_s1 + $0x30] sm:$0xff]   ;;  %v6221_v3 = vld [vmem:[%s7439_s1 + $0x28] sm:$0xff]   ;;  %s7447_s18 = smov (!%p206_p4, %s4602_s18), 511 }
   0xd   : > { %1900 = vmatprep.subr.bf16.mxu0 %v6646_v1  ;;  %6162 = vmatprep.subr.bf16.mxu1 %v6646_v1  ;;  %v6222_v4 = vld [vmem:[%s7439_s1 + $0x20] sm:$0xff]   ;;  %s5138_s25 = sshll.u32 %s7447_s18, 3  ;;  %v6223_v5 = vld [vmem:[%s7439_s1 + $0x18] sm:$0xff]   ;;  %v6224_v7 = vld [vmem:[%s7439_s1 + $0x10] sm:$0xff]   ;;  %s4606_s6 = sshll.u32 %s7447_s18, 2 }
   0xe   : > { %1901 = vmatpush1.bf16.msra.mxu0 %v6219_v0  ;;  %6178 = vmatpush1.bf16.msra.mxu1 %v6219_v0  ;;  %s6714_s30 = scalar_lea.vmem %s7438_s0, %s5138_s25  ;;  %v6225_v9 = vld [vmem:[%s7439_s1 + $0x8] sm:$0xff]   ;;  %v6226_v10 = vld [vmem:[%s7439_s1] sm:$0xff]   ;;  %v6227_v11 = vld [vmem:[%s7439_s1 + $0x78] sm:$0xff]   ;;  %s6892_s9 = scalar_lea.vmem %s7441_s3, %s4606_s6 }
   0xf   : > { %1902 = vmatprep.subr.bf16.mxu0 %v6646_v1  ;;  %6163 = vmatprep.subr.bf16.mxu1 %v6646_v1  ;;  %v6237_v6 = vld [vmem:[%s6714_s30 + $0x4] ss:$8 sps:$4 sm:$0xff]   ;;  %v6228_v12 = vld [vmem:[%s7439_s1 + $0x70] sm:$0xff]   ;;  %v6231_v15 = vld [vmem:[%s7439_s1 + $0x58] sm:$0xff]  }
  0x10   : > { %v6240_v8 = vld [vmem:[%s6714_s30 + $0x404] ss:$8 sps:$4 sm:$0xff]   ;;  %1932 = vmatprep.mubr.bf16.mxu0 %v6237_v6  ;;  %v6232_v16 = vld [vmem:[%s7439_s1 + $0x50] sm:$0xff]   ;;  %v6235_v19 = vld [vmem:[%s6714_s30] ss:$8 sps:$4 sm:$0xff]  }
  0x11   : > { %2444 = vmatprep.mubr.bf16.mxu1 %v6240_v8  ;;  %v6229_v13 = vld [vmem:[%s7439_s1 + $0x68] sm:$0xff]   ;;  %v6230_v14 = vld [vmem:[%s7439_s1 + $0x60] sm:$0xff]   ;;  %v6241_v21 = vld [vmem:[%s6714_s30 + $0x14] ss:$8 sps:$4 sm:$0xff]  }
  0x12   : > { %1903 = vmatpush1.bf16.msra.mxu0 %v6220_v2  ;;  %6179 = vmatpush1.bf16.msra.mxu1 %v6220_v2  ;;  %v6233_v17 = vld [vmem:[%s7439_s1 + $0x48] sm:$0xff]   ;;  %v6234_v18 = vld [vmem:[%s7439_s1 + $0x40] sm:$0xff]   ;;  %v6243_v22 = vld [vmem:[%s6714_s30 + $0x414] ss:$8 sps:$4 sm:$0xff]  }
  0x13   : > { %1904 = vmatprep.subr.bf16.mxu0 %v6646_v1  ;;  %6164 = vmatprep.subr.bf16.mxu1 %v6646_v1  ;;  %v6238_v20 = vld [vmem:[%s6714_s30 + $0x400] ss:$8 sps:$4 sm:$0xff]   ;;  %v6245_v23 = vld [vmem:[%s6714_s30 + $0x10] ss:$8 sps:$4 sm:$0xff]   ;;  %v6247_v25 = vld [vmem:[%s6714_s30 + $0x24] ss:$8 sps:$4 sm:$0xff]  }
  0x14   : > { %v6246_v24 = vld [vmem:[%s6714_s30 + $0x410] ss:$8 sps:$4 sm:$0xff]   ;;  %v6249_v26 = vld [vmem:[%s6714_s30 + $0x424] ss:$8 sps:$4 sm:$0xff]   ;;  %v6251_v27 = vld [vmem:[%s6714_s30 + $0x20] ss:$8 sps:$4 sm:$0xff]  }
  0x15   : > { %v6252_v28 = vld [vmem:[%s6714_s30 + $0x420] ss:$8 sps:$4 sm:$0xff]   ;;  %v6253_v29 = vld [vmem:[%s6714_s30 + $0x34] ss:$8 sps:$4 sm:$0xff]   ;;  %v6257_v31 = vld [vmem:[%s6714_s30 + $0x30] ss:$8 sps:$4 sm:$0xff]  }
  0x16   : > { %1905 = vmatpush1.bf16.msra.mxu0 %v6221_v3  ;;  %6180 = vmatpush1.bf16.msra.mxu1 %v6221_v3  ;;  %v6255_v30 = vld [vmem:[%s6714_s30 + $0x434] ss:$8 sps:$4 sm:$0xff]   ;;  %v6258_v32 = vld [vmem:[%s6714_s30 + $0x430] ss:$8 sps:$4 sm:$0xff]   ;;  %v6259_v33 = vld [vmem:[%s6714_s30 + $0x44] ss:$8 sps:$4 sm:$0xff]  }
  0x17   : > { %1906 = vmatprep.subr.bf16.mxu0 %v6646_v1  ;;  %6165 = vmatprep.subr.bf16.mxu1 %v6646_v1  ;;  %v6261_v34 = vld [vmem:[%s6714_s30 + $0x444] ss:$8 sps:$4 sm:$0xff]   ;;  %v6263_v35 = vld [vmem:[%s6714_s30 + $0x40] ss:$8 sps:$4 sm:$0xff]   ;;  %v6265_v37 = vld [vmem:[%s6714_s30 + $0x54] ss:$8 sps:$4 sm:$0xff]  }
  0x18   : > { %v6264_v36 = vld [vmem:[%s6714_s30 + $0x440] ss:$8 sps:$4 sm:$0xff]   ;;  %v6267_v38 = vld [vmem:[%s6714_s30 + $0x454] ss:$8 sps:$4 sm:$0xff]   ;;  %v6269_v39 = vld [vmem:[%s6714_s30 + $0x50] ss:$8 sps:$4 sm:$0xff]  }
  0x19   : > { %v6270_v40 = vld [vmem:[%s6714_s30 + $0x450] ss:$8 sps:$4 sm:$0xff]   ;;  %v6271_v41 = vld [vmem:[%s6714_s30 + $0x64] ss:$8 sps:$4 sm:$0xff]   ;;  %v6275_v43 = vld [vmem:[%s6714_s30 + $0x60] ss:$8 sps:$4 sm:$0xff]  }
  0x1a   : > { %1907 = vmatpush1.bf16.msra.mxu0 %v6222_v4  ;;  %6181 = vmatpush1.bf16.msra.mxu1 %v6222_v4  ;;  %v6273_v42 = vld [vmem:[%s6714_s30 + $0x464] ss:$8 sps:$4 sm:$0xff]   ;;  %v6276_v44 = vld [vmem:[%s6714_s30 + $0x460] ss:$8 sps:$4 sm:$0xff]   ;;  %v6277_v45 = vld [vmem:[%s6714_s30 + $0x74] ss:$8 sps:$4 sm:$0xff]  }
  0x1b   : > { %1908 = vmatprep.subr.bf16.mxu0 %v6646_v1  ;;  %6166 = vmatprep.subr.bf16.mxu1 %v6646_v1  ;;  %v6279_v46 = vld [vmem:[%s6714_s30 + $0x474] ss:$8 sps:$4 sm:$0xff]   ;;  %v6281_v47 = vld [vmem:[%s6714_s30 + $0x70] ss:$8 sps:$4 sm:$0xff]   ;;  %v6283_v49 = vld [vmem:[%s6714_s30 + $0x84] ss:$8 sps:$4 sm:$0xff]  }
  0x1c   : > { %v6282_v48 = vld [vmem:[%s6714_s30 + $0x470] ss:$8 sps:$4 sm:$0xff]   ;;  %v6285_v50 = vld [vmem:[%s6714_s30 + $0x484] ss:$8 sps:$4 sm:$0xff]   ;;  %v6287_v51 = vld [vmem:[%s6714_s30 + $0x80] ss:$8 sps:$4 sm:$0xff]  }
  0x1d   : > { %v6288_v52 = vld [vmem:[%s6714_s30 + $0x480] ss:$8 sps:$4 sm:$0xff]   ;;  %v6289_v53 = vld [vmem:[%s6714_s30 + $0x94] ss:$8 sps:$4 sm:$0xff]   ;;  %v6293_v55 = vld [vmem:[%s6714_s30 + $0x90] ss:$8 sps:$4 sm:$0xff]  }
  0x1e   : > { %1909 = vmatpush1.bf16.msra.mxu0 %v6223_v5  ;;  %6182 = vmatpush1.bf16.msra.mxu1 %v6223_v5  ;;  %v6291_v54 = vld [vmem:[%s6714_s30 + $0x494] ss:$8 sps:$4 sm:$0xff]   ;;  %v6294_v56 = vld [vmem:[%s6714_s30 + $0x490] ss:$8 sps:$4 sm:$0xff]   ;;  %v6295_v57 = vld [vmem:[%s6714_s30 + $0xa4] ss:$8 sps:$4 sm:$0xff]  }
  0x1f   : > { %1910 = vmatprep.subr.bf16.mxu0 %v6646_v1  ;;  %6167 = vmatprep.subr.bf16.mxu1 %v6646_v1  ;;  %v6297_v58 = vld [vmem:[%s6714_s30 + $0x4a4] ss:$8 sps:$4 sm:$0xff]   ;;  %v6299_v59 = vld [vmem:[%s6714_s30 + $0xa0] ss:$8 sps:$4 sm:$0xff]   ;;  %v6301_v61 = vld [vmem:[%s6714_s30 + $0xb4] ss:$8 sps:$4 sm:$0xff]  }
  0x20   : > { %v6300_v60 = vld [vmem:[%s6714_s30 + $0x4a0] ss:$8 sps:$4 sm:$0xff]   ;;  %v6303_v62 = vld [vmem:[%s6714_s30 + $0x4b4] ss:$8 sps:$4 sm:$0xff]   ;;  %v6305_v63 = vld [vmem:[%s6714_s30 + $0xb0] ss:$8 sps:$4 sm:$0xff]  }
  0x21   : > { %v6306_v0 = vld [vmem:[%s6714_s30 + $0x4b0] ss:$8 sps:$4 sm:$0xff]   ;;  %v6309_v2 = vld [vmem:[%s6714_s30 + $0x4c4] ss:$8 sps:$4 sm:$0xff]   ;;  %v6311_v3 = vld [vmem:[%s6714_s30 + $0xc0] ss:$8 sps:$4 sm:$0xff]  }
  0x22   : > { %1911 = vmatpush1.bf16.msra.mxu0 %v6224_v7  ;;  %6183 = vmatpush1.bf16.msra.mxu1 %v6224_v7  ;;  %v6312_v4 = vld [vmem:[%s6714_s30 + $0x4c0] ss:$8 sps:$4 sm:$0xff]   ;;  %v6313_v5 = vld [vmem:[%s6714_s30 + $0xd4] ss:$8 sps:$4 sm:$0xff]   ;;  %v6317_v7 = vld [vmem:[%s6714_s30 + $0xd0] ss:$8 sps:$4 sm:$0xff]  }
  0x23   : > { %1912 = vmatprep.subr.bf16.mxu0 %v6646_v1  ;;  %6168 = vmatprep.subr.bf16.mxu1 %v6646_v1  ;;  %v6315_v6 = vld [vmem:[%s6714_s30 + $0x4d4] ss:$8 sps:$4 sm:$0xff]   ;;  %v6318_v8 = vld [vmem:[%s6714_s30 + $0x4d0] ss:$8 sps:$4 sm:$0xff]  }
  0x26   : > { %1913 = vmatpush1.bf16.msra.mxu0 %v6225_v9  ;;  %6184 = vmatpush1.bf16.msra.mxu1 %v6225_v9  ;;  %v6319_v9 = vld [vmem:[%s6714_s30 + $0xe4] ss:$8 sps:$4 sm:$0xff]  }
  0x27   : > { %1914 = vmatprep.subr.bf16.mxu0 %v6646_v1  ;;  %6169 = vmatprep.subr.bf16.mxu1 %v6646_v1 }
  0x2a   : > { %1915 = vmatpush1.bf16.msra.mxu0 %v6226_v10  ;;  %6185 = vmatpush1.bf16.msra.mxu1 %v6226_v10  ;;  %v6321_v10 = vld [vmem:[%s6714_s30 + $0x4e4] ss:$8 sps:$4 sm:$0xff]  }
  0x2b   : > { %1916 = vmatprep.subr.bf16.mxu0 %v6646_v1  ;;  %6170 = vmatprep.subr.bf16.mxu1 %v6646_v1 }
  0x2e   : > { %1917 = vmatpush2.bf16.msra.mxu0 %v6227_v11  ;;  %6186 = vmatpush2.bf16.msra.mxu1 %v6227_v11  ;;  %v6323_v11 = vld [vmem:[%s6714_s30 + $0xe0] ss:$8 sps:$4 sm:$0xff]  }
  0x2f   : > { %1918 = vmatprep.subr.bf16.mxu0 %v6646_v1  ;;  %6171 = vmatprep.subr.bf16.mxu1 %v6646_v1 }
  0x32   : > { %1919 = vmatpush2.bf16.msra.mxu0 %v6228_v12  ;;  %6187 = vmatpush2.bf16.msra.mxu1 %v6228_v12  ;;  %v6324_v12 = vld [vmem:[%s6714_s30 + $0x4e0] ss:$8 sps:$4 sm:$0xff]  }
  0x33   : > { %1920 = vmatprep.subr.bf16.mxu0 %v6646_v1  ;;  %6172 = vmatprep.subr.bf16.mxu1 %v6646_v1 }
  0x36   : > { %1921 = vmatpush2.bf16.msra.mxu0 %v6229_v13  ;;  %6188 = vmatpush2.bf16.msra.mxu1 %v6229_v13  ;;  %v6325_v13 = vld [vmem:[%s6714_s30 + $0xf4] ss:$8 sps:$4 sm:$0xff]  }
  0x37   : > { %1922 = vmatprep.subr.bf16.mxu0 %v6646_v1  ;;  %6173 = vmatprep.subr.bf16.mxu1 %v6646_v1 }
  0x3a   : > { %1923 = vmatpush2.bf16.msra.mxu0 %v6230_v14  ;;  %6189 = vmatpush2.bf16.msra.mxu1 %v6230_v14  ;;  %v6327_v14 = vld [vmem:[%s6714_s30 + $0x4f4] ss:$8 sps:$4 sm:$0xff]  }
  0x3b   : > { %1924 = vmatprep.subr.bf16.mxu0 %v6646_v1  ;;  %6174 = vmatprep.subr.bf16.mxu1 %v6646_v1 }
  0x3e   : > { %1925 = vmatpush2.bf16.msra.mxu0 %v6231_v15  ;;  %6190 = vmatpush2.bf16.msra.mxu1 %v6231_v15  ;;  %v6329_v15 = vld [vmem:[%s6714_s30 + $0xf0] ss:$8 sps:$4 sm:$0xff]  }
  0x3f   : > { %1926 = vmatprep.subr.bf16.mxu0 %v6646_v1  ;;  %6175 = vmatprep.subr.bf16.mxu1 %v6646_v1 }
  0x42   : > { %1927 = vmatpush2.bf16.msra.mxu0 %v6232_v16  ;;  %6191 = vmatpush2.bf16.msra.mxu1 %v6232_v16  ;;  %v6330_v16 = vld [vmem:[%s6714_s30 + $0x4f0] ss:$8 sps:$4 sm:$0xff]  }
  0x43   : > { %1928 = vmatprep.subr.bf16.mxu0 %v6646_v1  ;;  %6176 = vmatprep.subr.bf16.mxu1 %v6646_v1 }
  0x46   : > { %1929 = vmatpush2.bf16.msra.mxu0 %v6233_v17  ;;  %6192 = vmatpush2.bf16.msra.mxu1 %v6233_v17  ;;  %v6331_v17 = vld [vmem:[%s6714_s30 + $0x104] ss:$8 sps:$4 sm:$0xff]  }
  0x47   : > { %1930 = vmatprep.subr.bf16.mxu0 %v6646_v1  ;;  %6177 = vmatprep.subr.bf16.mxu1 %v6646_v1  ;;  %v6307_v1 = vld [vmem:[%s6714_s30 + $0xc4] ss:$8 sps:$4 sm:$0xff]  }
  0x4a   : > { %1931 = vmatpush2.bf16.msra.mxu0 %v6234_v18  ;;  %6193 = vmatpush2.bf16.msra.mxu1 %v6234_v18  ;;  %v6333_v18 = vld [vmem:[%s6714_s30 + $0x504] ss:$8 sps:$4 sm:$0xff]  }
  0x4d   : > { %1933 = vmatmul.mubr.bf16.vlgmr.msra.gmra.mxu0 %v6235_v19  ;;  %2445 = vmatmul.mubr.bf16.vlgmr.msra.gmra.mxu1 %v6238_v20  ;;  %v6335_v19 = vld [vmem:[%s6714_s30 + $0x100] ss:$8 sps:$4 sm:$0xff]  }
  0x4e   : > { %1940 = vmatprep.mubr.bf16.mxu0 %v6241_v21  ;;  %2452 = vmatprep.mubr.bf16.mxu1 %v6243_v22  ;;  %v6336_v20 = vld [vmem:[%s6714_s30 + $0x500] ss:$8 sps:$4 sm:$0xff]   ;;  %v6337_v21 = vld [vmem:[%s6714_s30 + $0x114] ss:$8 sps:$4 sm:$0xff]  }
  0x4f   : > { %v6339_v22 = vld [vmem:[%s6714_s30 + $0x514] ss:$8 sps:$4 sm:$0xff]  }
  0x55   : > { %1941 = vmatmul.mubr.bf16.gmra.mxu0 %v6245_v23  ;;  %2453 = vmatmul.mubr.bf16.gmra.mxu1 %v6246_v24  ;;  %v6341_v23 = vld [vmem:[%s6714_s30 + $0x110] ss:$8 sps:$4 sm:$0xff]  }
  0x56   : > { %1948 = vmatprep.mubr.bf16.mxu0 %v6247_v25  ;;  %2460 = vmatprep.mubr.bf16.mxu1 %v6249_v26  ;;  %v6342_v24 = vld [vmem:[%s6714_s30 + $0x510] ss:$8 sps:$4 sm:$0xff]   ;;  %v6343_v25 = vld [vmem:[%s6714_s30 + $0x124] ss:$8 sps:$4 sm:$0xff]  }
  0x57   : > { %v6345_v26 = vld [vmem:[%s6714_s30 + $0x524] ss:$8 sps:$4 sm:$0xff]  }
  0x5d   : > { %1949 = vmatmul.mubr.bf16.gmra.mxu0 %v6251_v27  ;;  %2461 = vmatmul.mubr.bf16.gmra.mxu1 %v6252_v28  ;;  %v6347_v27 = vld [vmem:[%s6714_s30 + $0x120] ss:$8 sps:$4 sm:$0xff]  }
  0x5e   : > { %1956 = vmatprep.mubr.bf16.mxu0 %v6253_v29  ;;  %2468 = vmatprep.mubr.bf16.mxu1 %v6255_v30  ;;  %v6348_v28 = vld [vmem:[%s6714_s30 + $0x520] ss:$8 sps:$4 sm:$0xff]   ;;  %v6349_v29 = vld [vmem:[%s6714_s30 + $0x134] ss:$8 sps:$4 sm:$0xff]  }
  0x5f   : > { %v6351_v30 = vld [vmem:[%s6714_s30 + $0x534] ss:$8 sps:$4 sm:$0xff]  }
  0x65   : > { %1957 = vmatmul.mubr.bf16.gmra.mxu0 %v6257_v31  ;;  %2469 = vmatmul.mubr.bf16.gmra.mxu1 %v6258_v32  ;;  %v6353_v31 = vld [vmem:[%s6714_s30 + $0x130] ss:$8 sps:$4 sm:$0xff]  }
  0x66   : > { %1964 = vmatprep.mubr.bf16.mxu0 %v6259_v33  ;;  %2476 = vmatprep.mubr.bf16.mxu1 %v6261_v34  ;;  %v6354_v32 = vld [vmem:[%s6714_s30 + $0x530] ss:$8 sps:$4 sm:$0xff]   ;;  %v6355_v33 = vld [vmem:[%s6714_s30 + $0x144] ss:$8 sps:$4 sm:$0xff]  }
  0x67   : > { %v6357_v34 = vld [vmem:[%s6714_s30 + $0x544] ss:$8 sps:$4 sm:$0xff]  }
  0x6d   : > { %1965 = vmatmul.mubr.bf16.gmra.mxu0 %v6263_v35  ;;  %2477 = vmatmul.mubr.bf16.gmra.mxu1 %v6264_v36  ;;  %v6359_v35 = vld [vmem:[%s6714_s30 + $0x140] ss:$8 sps:$4 sm:$0xff]  }
  0x6e   : > { %1972 = vmatprep.mubr.bf16.mxu0 %v6265_v37  ;;  %2484 = vmatprep.mubr.bf16.mxu1 %v6267_v38  ;;  %v6360_v36 = vld [vmem:[%s6714_s30 + $0x540] ss:$8 sps:$4 sm:$0xff]   ;;  %v6361_v37 = vld [vmem:[%s6714_s30 + $0x154] ss:$8 sps:$4 sm:$0xff]  }
  0x6f   : > { %v6363_v38 = vld [vmem:[%s6714_s30 + $0x554] ss:$8 sps:$4 sm:$0xff]  }
  0x75   : > { %1973 = vmatmul.mubr.bf16.gmra.mxu0 %v6269_v39  ;;  %2485 = vmatmul.mubr.bf16.gmra.mxu1 %v6270_v40  ;;  %v6365_v39 = vld [vmem:[%s6714_s30 + $0x150] ss:$8 sps:$4 sm:$0xff]  }
  0x76   : > { %1980 = vmatprep.mubr.bf16.mxu0 %v6271_v41  ;;  %2492 = vmatprep.mubr.bf16.mxu1 %v6273_v42  ;;  %v6366_v40 = vld [vmem:[%s6714_s30 + $0x550] ss:$8 sps:$4 sm:$0xff]   ;;  %v6367_v41 = vld [vmem:[%s6714_s30 + $0x164] ss:$8 sps:$4 sm:$0xff]  }
  0x77   : > { %v6369_v42 = vld [vmem:[%s6714_s30 + $0x564] ss:$8 sps:$4 sm:$0xff]  }
  0x7d   : > { %1981 = vmatmul.mubr.bf16.gmra.mxu0 %v6275_v43  ;;  %2493 = vmatmul.mubr.bf16.gmra.mxu1 %v6276_v44  ;;  %v6371_v43 = vld [vmem:[%s6714_s30 + $0x160] ss:$8 sps:$4 sm:$0xff]  }
  0x7e   : > { %1988 = vmatprep.mubr.bf16.mxu0 %v6277_v45  ;;  %2500 = vmatprep.mubr.bf16.mxu1 %v6279_v46  ;;  %v6372_v44 = vld [vmem:[%s6714_s30 + $0x560] ss:$8 sps:$4 sm:$0xff]   ;;  %v6373_v45 = vld [vmem:[%s6714_s30 + $0x174] ss:$8 sps:$4 sm:$0xff]  }
  0x7f   : > { %v6375_v46 = vld [vmem:[%s6714_s30 + $0x574] ss:$8 sps:$4 sm:$0xff]  }
  0x85   : > { %1989 = vmatmul.mubr.bf16.gmra.mxu0 %v6281_v47  ;;  %2501 = vmatmul.mubr.bf16.gmra.mxu1 %v6282_v48  ;;  %v6377_v47 = vld [vmem:[%s6714_s30 + $0x170] ss:$8 sps:$4 sm:$0xff]  }
  0x86   : > { %1996 = vmatprep.mubr.bf16.mxu0 %v6283_v49  ;;  %2508 = vmatprep.mubr.bf16.mxu1 %v6285_v50  ;;  %v6378_v48 = vld [vmem:[%s6714_s30 + $0x570] ss:$8 sps:$4 sm:$0xff]   ;;  %v6379_v49 = vld [vmem:[%s6714_s30 + $0x184] ss:$8 sps:$4 sm:$0xff]  }
  0x87   : > { %v6381_v50 = vld [vmem:[%s6714_s30 + $0x584] ss:$8 sps:$4 sm:$0xff]  }
  0x8d   : > { %1997 = vmatmul.mubr.bf16.gmra.mxu0 %v6287_v51  ;;  %2509 = vmatmul.mubr.bf16.gmra.mxu1 %v6288_v52  ;;  %v6383_v51 = vld [vmem:[%s6714_s30 + $0x180] ss:$8 sps:$4 sm:$0xff]  }
  0x8e   : > { %2004 = vmatprep.mubr.bf16.mxu0 %v6289_v53  ;;  %2516 = vmatprep.mubr.bf16.mxu1 %v6291_v54  ;;  %v6384_v52 = vld [vmem:[%s6714_s30 + $0x580] ss:$8 sps:$4 sm:$0xff]   ;;  %v6385_v53 = vld [vmem:[%s6714_s30 + $0x194] ss:$8 sps:$4 sm:$0xff]  }
  0x8f   : > { %v6387_v54 = vld [vmem:[%s6714_s30 + $0x594] ss:$8 sps:$4 sm:$0xff]  }
  0x95   : > { %2005 = vmatmul.mubr.bf16.gmra.mxu0 %v6293_v55  ;;  %2517 = vmatmul.mubr.bf16.gmra.mxu1 %v6294_v56  ;;  %v6878_v55 = vld [vmem:[%s7440_s2] ss:$0 sm:$0xff] }
  0x96   : > { %2012 = vmatprep.mubr.bf16.mxu0 %v6295_v57  ;;  %2524 = vmatprep.mubr.bf16.mxu1 %v6297_v58 }
  0x9d   : > { %2013 = vmatmul.mubr.bf16.gmra.mxu0 %v6299_v59  ;;  %2525 = vmatmul.mubr.bf16.gmra.mxu1 %v6300_v60 }
  0x9e   : > { %2020 = vmatprep.mubr.bf16.mxu0 %v6301_v61  ;;  %2532 = vmatprep.mubr.bf16.mxu1 %v6303_v62 }
  0xa5   : > { %2021 = vmatmul.mubr.bf16.gmra.mxu0 %v6305_v63  ;;  %2533 = vmatmul.mubr.bf16.gmra.mxu1 %v6306_v0  ;;  %v6389_v0 = vld [vmem:[%s6714_s30 + $0x190] ss:$8 sps:$4 sm:$0xff]  }
  0xa6   : > { %2028 = vmatprep.mubr.bf16.mxu0 %v6307_v1  ;;  %2540 = vmatprep.mubr.bf16.mxu1 %v6309_v2  ;;  %v6390_v1 = vld [vmem:[%s6714_s30 + $0x590] ss:$8 sps:$4 sm:$0xff]  }
  0xad   : > { %2029 = vmatmul.mubr.bf16.gmra.mxu0 %v6311_v3  ;;  %2541 = vmatmul.mubr.bf16.gmra.mxu1 %v6312_v4  ;;  %v6391_v4 = vld [vmem:[%s6714_s30 + $0x1a4] ss:$8 sps:$4 sm:$0xff]  }
  0xae   : > { %2036 = vmatprep.mubr.bf16.mxu0 %v6313_v5  ;;  %2548 = vmatprep.mubr.bf16.mxu1 %v6315_v6 }
  0xb5   : > { %2037 = vmatmul.mubr.bf16.gmra.mxu0 %v6317_v7  ;;  %2549 = vmatmul.mubr.bf16.gmra.mxu1 %v6318_v8  ;;  %v6393_v7 = vld [vmem:[%s6714_s30 + $0x5a4] ss:$8 sps:$4 sm:$0xff]  }
  0xb6   : > { %2044 = vmatprep.mubr.bf16.mxu0 %v6319_v9  ;;  %2556 = vmatprep.mubr.bf16.mxu1 %v6321_v10 }
  0xbd   : > { %2045 = vmatmul.mubr.bf16.gmra.mxu0 %v6323_v11  ;;  %2557 = vmatmul.mubr.bf16.gmra.mxu1 %v6324_v12 }
  0xbe   : > { %2052 = vmatprep.mubr.bf16.mxu0 %v6325_v13  ;;  %2564 = vmatprep.mubr.bf16.mxu1 %v6327_v14 }
  0xc5   : > { %2053 = vmatmul.mubr.bf16.gmra.mxu0 %v6329_v15  ;;  %2565 = vmatmul.mubr.bf16.gmra.mxu1 %v6330_v16 }
  0xc6   : > { %2060 = vmatprep.mubr.bf16.mxu0 %v6331_v17  ;;  %2572 = vmatprep.mubr.bf16.mxu1 %v6333_v18 }
  0xcd   : > { %2061 = vmatmul.mubr.bf16.gmra.mxu0 %v6335_v19  ;;  %2573 = vmatmul.mubr.bf16.gmra.mxu1 %v6336_v20 }
  0xce   : > { %2068 = vmatprep.mubr.bf16.mxu0 %v6337_v21  ;;  %2580 = vmatprep.mubr.bf16.mxu1 %v6339_v22  ;;  %v6395_v22 = vld [vmem:[%s6714_s30 + $0x1a0] ss:$8 sps:$4 sm:$0xff]  }
  0xd5   : > { %2069 = vmatmul.mubr.bf16.gmra.mxu0 %v6341_v23  ;;  %2581 = vmatmul.mubr.bf16.gmra.mxu1 %v6342_v24  ;;  %v6396_v23 = vld [vmem:[%s6714_s30 + $0x5a0] ss:$8 sps:$4 sm:$0xff]  }
  0xd6   : > { %2076 = vmatprep.mubr.bf16.mxu0 %v6343_v25  ;;  %2588 = vmatprep.mubr.bf16.mxu1 %v6345_v26  ;;  %v6397_v26 = vld [vmem:[%s6714_s30 + $0x1b4] ss:$8 sps:$4 sm:$0xff]  }
  0xdd   : > { %2077 = vmatmul.mubr.bf16.gmra.mxu0 %v6347_v27  ;;  %2589 = vmatmul.mubr.bf16.gmra.mxu1 %v6348_v28 }
  0xde   : > { %2084 = vmatprep.mubr.bf16.mxu0 %v6349_v29  ;;  %2596 = vmatprep.mubr.bf16.mxu1 %v6351_v30  ;;  %v6399_v29 = vld [vmem:[%s6714_s30 + $0x5b4] ss:$8 sps:$4 sm:$0xff]  }
  0xe5   : > { %2085 = vmatmul.mubr.bf16.gmra.mxu0 %v6353_v31  ;;  %2597 = vmatmul.mubr.bf16.gmra.mxu1 %v6354_v32 }
  0xe6   : > { %2092 = vmatprep.mubr.bf16.mxu0 %v6355_v33  ;;  %2604 = vmatprep.mubr.bf16.mxu1 %v6357_v34 }
  0xed   : > { %2093 = vmatmul.mubr.bf16.gmra.mxu0 %v6359_v35  ;;  %2605 = vmatmul.mubr.bf16.gmra.mxu1 %v6360_v36 }
  0xee   : > { %2100 = vmatprep.mubr.bf16.mxu0 %v6361_v37  ;;  %2612 = vmatprep.mubr.bf16.mxu1 %v6363_v38 }
  0xf5   : > { %2101 = vmatmul.mubr.bf16.gmra.mxu0 %v6365_v39  ;;  %2613 = vmatmul.mubr.bf16.gmra.mxu1 %v6366_v40 }
  0xf6   : > { %2108 = vmatprep.mubr.bf16.mxu0 %v6367_v41  ;;  %2620 = vmatprep.mubr.bf16.mxu1 %v6369_v42 }
  0xfd   : > { %2109 = vmatmul.mubr.bf16.gmra.mxu0 %v6371_v43  ;;  %2621 = vmatmul.mubr.bf16.gmra.mxu1 %v6372_v44  ;;  %v6401_v44 = vld [vmem:[%s6714_s30 + $0x1b0] ss:$8 sps:$4 sm:$0xff]  }
  0xfe   : > { %2116 = vmatprep.mubr.bf16.mxu0 %v6373_v45  ;;  %2628 = vmatprep.mubr.bf16.mxu1 %v6375_v46  ;;  %v6402_v45 = vld [vmem:[%s6714_s30 + $0x5b0] ss:$8 sps:$4 sm:$0xff]  }
 0x105   : > { %2117 = vmatmul.mubr.bf16.gmra.mxu0 %v6377_v47  ;;  %2629 = vmatmul.mubr.bf16.gmra.mxu1 %v6378_v48  ;;  %v6405_v48 = vld [vmem:[%s6714_s30 + $0x1c4] ss:$8 sps:$4 sm:$0xff]  }
 0x106   : > { %2124 = vmatprep.mubr.bf16.mxu0 %v6379_v49  ;;  %2636 = vmatprep.mubr.bf16.mxu1 %v6381_v50 }
 0x10d   : > { %v1934_v56 = vpop.f32.mrf.mxu0  ;;  %2125 = vmatmul.mubr.bf16.gmra.mxu0 %v6383_v51  ;;  %v2446_v57 = vpop.f32.mrf.mxu1  ;;  %2637 = vmatmul.mubr.bf16.gmra.mxu1 %v6384_v52  ;;  %v6408_v51 = vld [vmem:[%s6714_s30 + $0x5c4] ss:$8 sps:$4 sm:$0xff]  }
 0x10e   : > { %2132 = vmatprep.mubr.bf16.mxu0 %v6385_v53  ;;  %2644 = vmatprep.mubr.bf16.mxu1 %v6387_v54  ;;  %v1935_v60 = vadd.f32 %v6878_v55, %v1934_v56  ;;  %v2447_v61 = vadd.f32 %v6878_v55, %v2446_v57 }
 0x10f   : > { %v1936_v58 = vpop.f32.mrf.mxu0  ;;  %v2448_v59 = vpop.f32.mrf.mxu1 }
 0x110   : > { %v2957_v8 = vmax.f32 %v1935_v60, 0.0  ;;  %v3085_v9 = vmax.f32 %v2447_v61, 0.0 }
 0x111   : > { %v1937_v62 = vpop.f32.mrf.mxu0  ;;  %v2449_v63 = vpop.f32.mrf.mxu1 }
 0x112   : > { %v1938_v2 = vadd.f32 %v6878_v55, %v1937_v62  ;;  %v2450_v3 = vadd.f32 %v6878_v55, %v2449_v63 }
 0x113   : > { %v1939_v5 = vpop.f32.mrf.mxu0  ;;  %v2451_v6 = vpop.f32.mrf.mxu1 }
 0x114   : > { %v2958_v10 = vmax.f32 %v1938_v2, 0.0  ;;  %v3086_v11 = vmax.f32 %v2450_v3, 0.0  ;;  %v6403_v3 = vld [vmem:[%s6714_s30 + $0x1c0] ss:$8 sps:$4 sm:$0xff]  }
 0x115   : > { %v1942_v12 = vpop.f32.mrf.mxu0  ;;  %2133 = vmatmul.mubr.bf16.gmra.mxu0 %v6389_v0  ;;  %v2454_v13 = vpop.f32.mrf.mxu1  ;;  %2645 = vmatmul.mubr.bf16.gmra.mxu1 %v6390_v1 }
 0x116   : > { %v5398_v14 = vpack.c.bf16 %v2958_v10, %v2957_v8  ;;  %v5718_v15 = vpack.c.bf16 %v3086_v11, %v3085_v9  ;;  %2140 = vmatprep.mubr.bf16.mxu0 %v6391_v4  ;;  %2652 = vmatprep.mubr.bf16.mxu1 %v6393_v7  ;;  %v1943_v18 = vadd.f32 %v6878_v55, %v1942_v12  ;;  %v6406_v4 = vld [vmem:[%s6714_s30 + $0x5c0] ss:$8 sps:$4 sm:$0xff]   ;;  %v6411_v7 = vld [vmem:[%s6714_s30 + $0x1d4] ss:$8 sps:$4 sm:$0xff]  }
 0x117   : > { %v1944_v16 = vpop.f32.mrf.mxu0  ;;  %v2456_v17 = vpop.f32.mrf.mxu1  ;;  %v2455_v19 = vadd.f32 %v6878_v55, %v2454_v13  ;;  %v6414_v10 = vld [vmem:[%s6714_s30 + $0x5d4] ss:$8 sps:$4 sm:$0xff]  }
 0x118   : > { %5399 = vst [vmem:[%s6892_s9] sm:$0xff] %v5398_v14   ;;  %6098 = vst [vmem:[%s6892_s9 + $0x200] sm:$0xff] %v5718_v15   ;;  %v2959_v30 = vmax.f32 %v1943_v18, 0.0 }
 0x119   : > { %v1945_v20 = vpop.f32.mrf.mxu0  ;;  %v2457_v21 = vpop.f32.mrf.mxu1  ;;  %v3087_v31 = vmax.f32 %v2455_v19, 0.0 }
 0x11a   : > { %v1946_v24 = vadd.f32 %v6878_v55, %v1945_v20  ;;  %v2458_v25 = vadd.f32 %v6878_v55, %v2457_v21 }
 0x11b   : > { %v1947_v27 = vpop.f32.mrf.mxu0  ;;  %v2459_v28 = vpop.f32.mrf.mxu1 }
 0x11c   : > { %v2960_v32 = vmax.f32 %v1946_v24, 0.0  ;;  %v3088_v33 = vmax.f32 %v2458_v25, 0.0  ;;  %v6409_v25 = vld [vmem:[%s6714_s30 + $0x1d0] ss:$8 sps:$4 sm:$0xff]  }
 0x11d   : > { %v1950_v34 = vpop.f32.mrf.mxu0  ;;  %2141 = vmatmul.mubr.bf16.gmra.mxu0 %v6395_v22  ;;  %v2462_v35 = vpop.f32.mrf.mxu1  ;;  %2653 = vmatmul.mubr.bf16.gmra.mxu1 %v6396_v23 }
 0x11e   : > { %v5403_v36 = vpack.c.bf16 %v2960_v32, %v2959_v30  ;;  %v5723_v37 = vpack.c.bf16 %v3088_v33, %v3087_v31  ;;  %2148 = vmatprep.mubr.bf16.mxu0 %v6397_v26  ;;  %2660 = vmatprep.mubr.bf16.mxu1 %v6399_v29  ;;  %v1951_v40 = vadd.f32 %v6878_v55, %v1950_v34  ;;  %v6412_v26 = vld [vmem:[%s6714_s30 + $0x5d0] ss:$8 sps:$4 sm:$0xff]   ;;  %v6417_v29 = vld [vmem:[%s6714_s30 + $0x1e4] ss:$8 sps:$4 sm:$0xff]  }
 0x11f   : > { %v1952_v38 = vpop.f32.mrf.mxu0  ;;  %v2464_v39 = vpop.f32.mrf.mxu1  ;;  %v2463_v41 = vadd.f32 %v6878_v55, %v2462_v35  ;;  %v6420_v32 = vld [vmem:[%s6714_s30 + $0x5e4] ss:$8 sps:$4 sm:$0xff]  }
 0x120   : > { %6035 = vst [vmem:[%s6892_s9 + $0x8] sm:$0xff] %v5403_v36   ;;  %6099 = vst [vmem:[%s6892_s9 + $0x208] sm:$0xff] %v5723_v37   ;;  %v2961_v52 = vmax.f32 %v1951_v40, 0.0 }
 0x121   : > { %v1953_v42 = vpop.f32.mrf.mxu0  ;;  %v2465_v43 = vpop.f32.mrf.mxu1  ;;  %v3089_v53 = vmax.f32 %v2463_v41, 0.0 }
 0x122   : > { %v1954_v46 = vadd.f32 %v6878_v55, %v1953_v42  ;;  %v2466_v47 = vadd.f32 %v6878_v55, %v2465_v43 }
 0x123   : > { %v1955_v49 = vpop.f32.mrf.mxu0  ;;  %v2467_v50 = vpop.f32.mrf.mxu1 }
 0x124   : > { %v2962_v54 = vmax.f32 %v1954_v46, 0.0  ;;  %v3090_v56 = vmax.f32 %v2466_v47, 0.0  ;;  %v6415_v47 = vld [vmem:[%s6714_s30 + $0x1e0] ss:$8 sps:$4 sm:$0xff]  }
 0x125   : > { %v1958_v57 = vpop.f32.mrf.mxu0  ;;  %2149 = vmatmul.mubr.bf16.gmra.mxu0 %v6401_v44  ;;  %v2470_v58 = vpop.f32.mrf.mxu1  ;;  %2661 = vmatmul.mubr.bf16.gmra.mxu1 %v6402_v45 }
 0x126   : > { %v5408_v59 = vpack.c.bf16 %v2962_v54, %v2961_v52  ;;  %v5728_v60 = vpack.c.bf16 %v3090_v56, %v3089_v53  ;;  %2156 = vmatprep.mubr.bf16.mxu0 %v6405_v48  ;;  %2668 = vmatprep.mubr.bf16.mxu1 %v6408_v51  ;;  %v1959_v63 = vadd.f32 %v6878_v55, %v1958_v57  ;;  %v6418_v48 = vld [vmem:[%s6714_s30 + $0x5e0] ss:$8 sps:$4 sm:$0xff]   ;;  %v6423_v51 = vld [vmem:[%s6714_s30 + $0x1f4] ss:$8 sps:$4 sm:$0xff]  }
 0x127   : > { %v1960_v61 = vpop.f32.mrf.mxu0  ;;  %v2472_v62 = vpop.f32.mrf.mxu1  ;;  %v2471_v0 = vadd.f32 %v6878_v55, %v2470_v58  ;;  %v6426_v54 = vld [vmem:[%s6714_s30 + $0x5f4] ss:$8 sps:$4 sm:$0xff]  }
 0x128   : > { %6036 = vst [vmem:[%s6892_s9 + $0x10] sm:$0xff] %v5408_v59   ;;  %6100 = vst [vmem:[%s6892_s9 + $0x210] sm:$0xff] %v5728_v60   ;;  %v2963_v11 = vmax.f32 %v1959_v63, 0.0 }
 0x129   : > { %v1961_v1 = vpop.f32.mrf.mxu0  ;;  %v2473_v2 = vpop.f32.mrf.mxu1  ;;  %v3091_v12 = vmax.f32 %v2471_v0, 0.0 }
 0x12a   : > { %v1962_v5 = vadd.f32 %v6878_v55, %v1961_v1  ;;  %v2474_v6 = vadd.f32 %v6878_v55, %v2473_v2 }
 0x12b   : > { %v1963_v8 = vpop.f32.mrf.mxu0  ;;  %v2475_v9 = vpop.f32.mrf.mxu1 }
 0x12c   : > { %v2964_v13 = vmax.f32 %v1962_v5, 0.0  ;;  %v3092_v14 = vmax.f32 %v2474_v6, 0.0  ;;  %v6421_v6 = vld [vmem:[%s6714_s30 + $0x1f0] ss:$8 sps:$4 sm:$0xff]  }
 0x12d   : > { %v1966_v15 = vpop.f32.mrf.mxu0  ;;  %2157 = vmatmul.mubr.bf16.gmra.mxu0 %v6403_v3  ;;  %v2478_v16 = vpop.f32.mrf.mxu1  ;;  %2669 = vmatmul.mubr.bf16.gmra.mxu1 %v6406_v4 }
 0x12e   : > { %v5413_v17 = vpack.c.bf16 %v2964_v13, %v2963_v11  ;;  %v5733_v18 = vpack.c.bf16 %v3092_v14, %v3091_v12  ;;  %2164 = vmatprep.mubr.bf16.mxu0 %v6411_v7  ;;  %2676 = vmatprep.mubr.bf16.mxu1 %v6414_v10  ;;  %v1967_v21 = vadd.f32 %v6878_v55, %v1966_v15  ;;  %v6424_v7 = vld [vmem:[%s6714_s30 + $0x5f0] ss:$8 sps:$4 sm:$0xff]   ;;  %v6429_v10 = vld [vmem:[%s6714_s30 + $0x204] ss:$8 sps:$4 sm:$0xff]  }
 0x12f   : > { %v1968_v19 = vpop.f32.mrf.mxu0  ;;  %v2480_v20 = vpop.f32.mrf.mxu1  ;;  %v2479_v22 = vadd.f32 %v6878_v55, %v2478_v16  ;;  %v6432_v13 = vld [vmem:[%s6714_s30 + $0x604] ss:$8 sps:$4 sm:$0xff]  }
 0x130   : > { %6037 = vst [vmem:[%s6892_s9 + $0x18] sm:$0xff] %v5413_v17   ;;  %6101 = vst [vmem:[%s6892_s9 + $0x218] sm:$0xff] %v5733_v18   ;;  %v2965_v33 = vmax.f32 %v1967_v21, 0.0 }
 0x131   : > { %v1969_v23 = vpop.f32.mrf.mxu0  ;;  %v2481_v24 = vpop.f32.mrf.mxu1  ;;  %v3093_v34 = vmax.f32 %v2479_v22, 0.0 }
 0x132   : > { %v1970_v27 = vadd.f32 %v6878_v55, %v1969_v23  ;;  %v2482_v28 = vadd.f32 %v6878_v55, %v2481_v24 }
 0x133   : > { %v1971_v30 = vpop.f32.mrf.mxu0  ;;  %v2483_v31 = vpop.f32.mrf.mxu1 }
 0x134   : > { %v2966_v35 = vmax.f32 %v1970_v27, 0.0  ;;  %v3094_v36 = vmax.f32 %v2482_v28, 0.0  ;;  %v6427_v28 = vld [vmem:[%s6714_s30 + $0x200] ss:$8 sps:$4 sm:$0xff]  }
 0x135   : > { %v1974_v37 = vpop.f32.mrf.mxu0  ;;  %2165 = vmatmul.mubr.bf16.gmra.mxu0 %v6409_v25  ;;  %v2486_v38 = vpop.f32.mrf.mxu1  ;;  %2677 = vmatmul.mubr.bf16.gmra.mxu1 %v6412_v26 }
 0x136   : > { %v5418_v39 = vpack.c.bf16 %v2966_v35, %v2965_v33  ;;  %v5738_v40 = vpack.c.bf16 %v3094_v36, %v3093_v34  ;;  %2172 = vmatprep.mubr.bf16.mxu0 %v6417_v29  ;;  %2684 = vmatprep.mubr.bf16.mxu1 %v6420_v32  ;;  %v1975_v43 = vadd.f32 %v6878_v55, %v1974_v37  ;;  %v6430_v29 = vld [vmem:[%s6714_s30 + $0x600] ss:$8 sps:$4 sm:$0xff]   ;;  %v6435_v32 = vld [vmem:[%s6714_s30 + $0x214] ss:$8 sps:$4 sm:$0xff]  }
 0x137   : > { %v1976_v41 = vpop.f32.mrf.mxu0  ;;  %v2488_v42 = vpop.f32.mrf.mxu1  ;;  %v2487_v44 = vadd.f32 %v6878_v55, %v2486_v38  ;;  %v6438_v35 = vld [vmem:[%s6714_s30 + $0x614] ss:$8 sps:$4 sm:$0xff]  }
 0x138   : > { %6038 = vst [vmem:[%s6892_s9 + $0x20] sm:$0xff] %v5418_v39   ;;  %6102 = vst [vmem:[%s6892_s9 + $0x220] sm:$0xff] %v5738_v40   ;;  %v2967_v56 = vmax.f32 %v1975_v43, 0.0 }
 0x139   : > { %v1977_v45 = vpop.f32.mrf.mxu0  ;;  %v2489_v46 = vpop.f32.mrf.mxu1  ;;  %v3095_v57 = vmax.f32 %v2487_v44, 0.0 }
 0x13a   : > { %v1978_v49 = vadd.f32 %v6878_v55, %v1977_v45  ;;  %v2490_v50 = vadd.f32 %v6878_v55, %v2489_v46 }
 0x13b   : > { %v1979_v52 = vpop.f32.mrf.mxu0  ;;  %v2491_v53 = vpop.f32.mrf.mxu1 }
 0x13c   : > { %v2968_v58 = vmax.f32 %v1978_v49, 0.0  ;;  %v3096_v59 = vmax.f32 %v2490_v50, 0.0  ;;  %v6433_v50 = vld [vmem:[%s6714_s30 + $0x210] ss:$8 sps:$4 sm:$0xff]  }
 0x13d   : > { %v1982_v60 = vpop.f32.mrf.mxu0  ;;  %2173 = vmatmul.mubr.bf16.gmra.mxu0 %v6415_v47  ;;  %v2494_v61 = vpop.f32.mrf.mxu1  ;;  %2685 = vmatmul.mubr.bf16.gmra.mxu1 %v6418_v48 }
 0x13e   : > { %v5423_v62 = vpack.c.bf16 %v2968_v58, %v2967_v56  ;;  %v5743_v63 = vpack.c.bf16 %v3096_v59, %v3095_v57  ;;  %2180 = vmatprep.mubr.bf16.mxu0 %v6423_v51  ;;  %2692 = vmatprep.mubr.bf16.mxu1 %v6426_v54  ;;  %v1983_v2 = vadd.f32 %v6878_v55, %v1982_v60  ;;  %v6436_v51 = vld [vmem:[%s6714_s30 + $0x610] ss:$8 sps:$4 sm:$0xff]   ;;  %v6441_v54 = vld [vmem:[%s6714_s30 + $0x224] ss:$8 sps:$4 sm:$0xff]  }
 0x13f   : > { %v1984_v0 = vpop.f32.mrf.mxu0  ;;  %v2496_v1 = vpop.f32.mrf.mxu1  ;;  %v2495_v3 = vadd.f32 %v6878_v55, %v2494_v61  ;;  %v6444_v58 = vld [vmem:[%s6714_s30 + $0x624] ss:$8 sps:$4 sm:$0xff]  }
 0x140   : > { %6039 = vst [vmem:[%s6892_s9 + $0x28] sm:$0xff] %v5423_v62   ;;  %6103 = vst [vmem:[%s6892_s9 + $0x228] sm:$0xff] %v5743_v63   ;;  %v2969_v14 = vmax.f32 %v1983_v2, 0.0 }
 0x141   : > { %v1985_v4 = vpop.f32.mrf.mxu0  ;;  %v2497_v5 = vpop.f32.mrf.mxu1  ;;  %v3097_v15 = vmax.f32 %v2495_v3, 0.0 }
 0x142   : > { %v1986_v8 = vadd.f32 %v6878_v55, %v1985_v4  ;;  %v2498_v9 = vadd.f32 %v6878_v55, %v2497_v5 }
 0x143   : > { %v1987_v11 = vpop.f32.mrf.mxu0  ;;  %v2499_v12 = vpop.f32.mrf.mxu1 }
 0x144   : > { %v2970_v16 = vmax.f32 %v1986_v8, 0.0  ;;  %v3098_v17 = vmax.f32 %v2498_v9, 0.0  ;;  %v6439_v9 = vld [vmem:[%s6714_s30 + $0x220] ss:$8 sps:$4 sm:$0xff]  }
 0x145   : > { %v1990_v18 = vpop.f32.mrf.mxu0  ;;  %2181 = vmatmul.mubr.bf16.gmra.mxu0 %v6421_v6  ;;  %v2502_v19 = vpop.f32.mrf.mxu1  ;;  %2693 = vmatmul.mubr.bf16.gmra.mxu1 %v6424_v7 }
 0x146   : > { %v5428_v20 = vpack.c.bf16 %v2970_v16, %v2969_v14  ;;  %v5748_v21 = vpack.c.bf16 %v3098_v17, %v3097_v15  ;;  %2188 = vmatprep.mubr.bf16.mxu0 %v6429_v10  ;;  %2700 = vmatprep.mubr.bf16.mxu1 %v6432_v13  ;;  %v1991_v24 = vadd.f32 %v6878_v55, %v1990_v18  ;;  %v6442_v10 = vld [vmem:[%s6714_s30 + $0x620] ss:$8 sps:$4 sm:$0xff]   ;;  %v6447_v13 = vld [vmem:[%s6714_s30 + $0x234] ss:$8 sps:$4 sm:$0xff]  }
 0x147   : > { %v1992_v22 = vpop.f32.mrf.mxu0  ;;  %v2504_v23 = vpop.f32.mrf.mxu1  ;;  %v2503_v25 = vadd.f32 %v6878_v55, %v2502_v19  ;;  %v6450_v16 = vld [vmem:[%s6714_s30 + $0x634] ss:$8 sps:$4 sm:$0xff]  }
 0x148   : > { %6040 = vst [vmem:[%s6892_s9 + $0x30] sm:$0xff] %v5428_v20   ;;  %6104 = vst [vmem:[%s6892_s9 + $0x230] sm:$0xff] %v5748_v21   ;;  %v2971_v36 = vmax.f32 %v1991_v24, 0.0 }
 0x149   : > { %v1993_v26 = vpop.f32.mrf.mxu0  ;;  %v2505_v27 = vpop.f32.mrf.mxu1  ;;  %v3099_v37 = vmax.f32 %v2503_v25, 0.0 }
 0x14a   : > { %v1994_v30 = vadd.f32 %v6878_v55, %v1993_v26  ;;  %v2506_v31 = vadd.f32 %v6878_v55, %v2505_v27 }
 0x14b   : > { %v1995_v33 = vpop.f32.mrf.mxu0  ;;  %v2507_v34 = vpop.f32.mrf.mxu1 }
 0x14c   : > { %v2972_v38 = vmax.f32 %v1994_v30, 0.0  ;;  %v3100_v39 = vmax.f32 %v2506_v31, 0.0  ;;  %v6445_v31 = vld [vmem:[%s6714_s30 + $0x230] ss:$8 sps:$4 sm:$0xff]  }
 0x14d   : > { %v1998_v40 = vpop.f32.mrf.mxu0  ;;  %2189 = vmatmul.mubr.bf16.gmra.mxu0 %v6427_v28  ;;  %v2510_v41 = vpop.f32.mrf.mxu1  ;;  %2701 = vmatmul.mubr.bf16.gmra.mxu1 %v6430_v29 }
 0x14e   : > { %v5433_v42 = vpack.c.bf16 %v2972_v38, %v2971_v36  ;;  %v5753_v43 = vpack.c.bf16 %v3100_v39, %v3099_v37  ;;  %2196 = vmatprep.mubr.bf16.mxu0 %v6435_v32  ;;  %2708 = vmatprep.mubr.bf16.mxu1 %v6438_v35  ;;  %v1999_v46 = vadd.f32 %v6878_v55, %v1998_v40  ;;  %v6448_v32 = vld [vmem:[%s6714_s30 + $0x630] ss:$8 sps:$4 sm:$0xff]   ;;  %v6453_v35 = vld [vmem:[%s6714_s30 + $0x244] ss:$8 sps:$4 sm:$0xff]  }
 0x14f   : > { %v2000_v44 = vpop.f32.mrf.mxu0  ;;  %v2512_v45 = vpop.f32.mrf.mxu1  ;;  %v2511_v47 = vadd.f32 %v6878_v55, %v2510_v41  ;;  %v6456_v38 = vld [vmem:[%s6714_s30 + $0x644] ss:$8 sps:$4 sm:$0xff]  }
 0x150   : > { %6041 = vst [vmem:[%s6892_s9 + $0x38] sm:$0xff] %v5433_v42   ;;  %6105 = vst [vmem:[%s6892_s9 + $0x238] sm:$0xff] %v5753_v43   ;;  %v2973_v59 = vmax.f32 %v1999_v46, 0.0 }
 0x151   : > { %v2001_v48 = vpop.f32.mrf.mxu0  ;;  %v2513_v49 = vpop.f32.mrf.mxu1  ;;  %v3101_v60 = vmax.f32 %v2511_v47, 0.0 }
 0x152   : > { %v2002_v52 = vadd.f32 %v6878_v55, %v2001_v48  ;;  %v2514_v53 = vadd.f32 %v6878_v55, %v2513_v49 }
 0x153   : > { %v2003_v56 = vpop.f32.mrf.mxu0  ;;  %v2515_v57 = vpop.f32.mrf.mxu1 }
 0x154   : > { %v2974_v61 = vmax.f32 %v2002_v52, 0.0  ;;  %v3102_v62 = vmax.f32 %v2514_v53, 0.0  ;;  %v6451_v53 = vld [vmem:[%s6714_s30 + $0x240] ss:$8 sps:$4 sm:$0xff]  }
 0x155   : > { %v2006_v63 = vpop.f32.mrf.mxu0  ;;  %2197 = vmatmul.mubr.bf16.gmra.mxu0 %v6433_v50  ;;  %v2518_v0 = vpop.f32.mrf.mxu1  ;;  %2709 = vmatmul.mubr.bf16.gmra.mxu1 %v6436_v51 }
 0x156   : > { %v5438_v1 = vpack.c.bf16 %v2974_v61, %v2973_v59  ;;  %v5758_v2 = vpack.c.bf16 %v3102_v62, %v3101_v60  ;;  %2204 = vmatprep.mubr.bf16.mxu0 %v6441_v54  ;;  %2716 = vmatprep.mubr.bf16.mxu1 %v6444_v58  ;;  %v2007_v5 = vadd.f32 %v6878_v55, %v2006_v63  ;;  %v6454_v54 = vld [vmem:[%s6714_s30 + $0x640] ss:$8 sps:$4 sm:$0xff]   ;;  %v6459_v58 = vld [vmem:[%s6714_s30 + $0x254] ss:$8 sps:$4 sm:$0xff]  }
 0x157   : > { %v2008_v3 = vpop.f32.mrf.mxu0  ;;  %v2520_v4 = vpop.f32.mrf.mxu1  ;;  %v2519_v6 = vadd.f32 %v6878_v55, %v2518_v0  ;;  %v6462_v61 = vld [vmem:[%s6714_s30 + $0x654] ss:$8 sps:$4 sm:$0xff]  }
 0x158   : > { %6042 = vst [vmem:[%s6892_s9 + $0x40] sm:$0xff] %v5438_v1   ;;  %6106 = vst [vmem:[%s6892_s9 + $0x240] sm:$0xff] %v5758_v2   ;;  %v2975_v17 = vmax.f32 %v2007_v5, 0.0 }
 0x159   : > { %v2009_v7 = vpop.f32.mrf.mxu0  ;;  %v2521_v8 = vpop.f32.mrf.mxu1  ;;  %v3103_v18 = vmax.f32 %v2519_v6, 0.0 }
 0x15a   : > { %v2010_v11 = vadd.f32 %v6878_v55, %v2009_v7  ;;  %v2522_v12 = vadd.f32 %v6878_v55, %v2521_v8 }
 0x15b   : > { %v2011_v14 = vpop.f32.mrf.mxu0  ;;  %v2523_v15 = vpop.f32.mrf.mxu1 }
 0x15c   : > { %v2976_v19 = vmax.f32 %v2010_v11, 0.0  ;;  %v3104_v20 = vmax.f32 %v2522_v12, 0.0  ;;  %v6457_v12 = vld [vmem:[%s6714_s30 + $0x250] ss:$8 sps:$4 sm:$0xff]  }
 0x15d   : > { %v2014_v21 = vpop.f32.mrf.mxu0  ;;  %2205 = vmatmul.mubr.bf16.gmra.mxu0 %v6439_v9  ;;  %v2526_v22 = vpop.f32.mrf.mxu1  ;;  %2717 = vmatmul.mubr.bf16.gmra.mxu1 %v6442_v10 }
 0x15e   : > { %v5443_v23 = vpack.c.bf16 %v2976_v19, %v2975_v17  ;;  %v5763_v24 = vpack.c.bf16 %v3104_v20, %v3103_v18  ;;  %2212 = vmatprep.mubr.bf16.mxu0 %v6447_v13  ;;  %2724 = vmatprep.mubr.bf16.mxu1 %v6450_v16  ;;  %v2015_v27 = vadd.f32 %v6878_v55, %v2014_v21  ;;  %v6460_v13 = vld [vmem:[%s6714_s30 + $0x650] ss:$8 sps:$4 sm:$0xff]   ;;  %v6465_v16 = vld [vmem:[%s6714_s30 + $0x264] ss:$8 sps:$4 sm:$0xff]  }
 0x15f   : > { %v2016_v25 = vpop.f32.mrf.mxu0  ;;  %v2528_v26 = vpop.f32.mrf.mxu1  ;;  %v2527_v28 = vadd.f32 %v6878_v55, %v2526_v22  ;;  %v6468_v19 = vld [vmem:[%s6714_s30 + $0x664] ss:$8 sps:$4 sm:$0xff]  }
 0x160   : > { %6043 = vst [vmem:[%s6892_s9 + $0x48] sm:$0xff] %v5443_v23   ;;  %6107 = vst [vmem:[%s6892_s9 + $0x248] sm:$0xff] %v5763_v24   ;;  %v2977_v39 = vmax.f32 %v2015_v27, 0.0 }
 0x161   : > { %v2017_v29 = vpop.f32.mrf.mxu0  ;;  %v2529_v30 = vpop.f32.mrf.mxu1  ;;  %v3105_v40 = vmax.f32 %v2527_v28, 0.0 }
 0x162   : > { %v2018_v33 = vadd.f32 %v6878_v55, %v2017_v29  ;;  %v2530_v34 = vadd.f32 %v6878_v55, %v2529_v30 }
 0x163   : > { %v2019_v36 = vpop.f32.mrf.mxu0  ;;  %v2531_v37 = vpop.f32.mrf.mxu1 }
 0x164   : > { %v2978_v41 = vmax.f32 %v2018_v33, 0.0  ;;  %v3106_v42 = vmax.f32 %v2530_v34, 0.0  ;;  %v6463_v34 = vld [vmem:[%s6714_s30 + $0x260] ss:$8 sps:$4 sm:$0xff]  }
 0x165   : > { %v2022_v43 = vpop.f32.mrf.mxu0  ;;  %2213 = vmatmul.mubr.bf16.gmra.mxu0 %v6445_v31  ;;  %v2534_v44 = vpop.f32.mrf.mxu1  ;;  %2725 = vmatmul.mubr.bf16.gmra.mxu1 %v6448_v32 }
 0x166   : > { %v5448_v45 = vpack.c.bf16 %v2978_v41, %v2977_v39  ;;  %v5768_v46 = vpack.c.bf16 %v3106_v42, %v3105_v40  ;;  %2220 = vmatprep.mubr.bf16.mxu0 %v6453_v35  ;;  %2732 = vmatprep.mubr.bf16.mxu1 %v6456_v38  ;;  %v2023_v49 = vadd.f32 %v6878_v55, %v2022_v43  ;;  %v6466_v35 = vld [vmem:[%s6714_s30 + $0x660] ss:$8 sps:$4 sm:$0xff]   ;;  %v6471_v38 = vld [vmem:[%s6714_s30 + $0x274] ss:$8 sps:$4 sm:$0xff]  }
 0x167   : > { %v2024_v47 = vpop.f32.mrf.mxu0  ;;  %v2536_v48 = vpop.f32.mrf.mxu1  ;;  %v2535_v50 = vadd.f32 %v6878_v55, %v2534_v44  ;;  %v6474_v41 = vld [vmem:[%s6714_s30 + $0x674] ss:$8 sps:$4 sm:$0xff]  }
 0x168   : > { %6044 = vst [vmem:[%s6892_s9 + $0x50] sm:$0xff] %v5448_v45   ;;  %6108 = vst [vmem:[%s6892_s9 + $0x250] sm:$0xff] %v5768_v46   ;;  %v2979_v62 = vmax.f32 %v2023_v49, 0.0 }
 0x169   : > { %v2025_v51 = vpop.f32.mrf.mxu0  ;;  %v2537_v52 = vpop.f32.mrf.mxu1  ;;  %v3107_v63 = vmax.f32 %v2535_v50, 0.0 }
 0x16a   : > { %v2026_v56 = vadd.f32 %v6878_v55, %v2025_v51  ;;  %v2538_v57 = vadd.f32 %v6878_v55, %v2537_v52 }
 0x16b   : > { %v2027_v59 = vpop.f32.mrf.mxu0  ;;  %v2539_v60 = vpop.f32.mrf.mxu1 }
 0x16c   : > { %v2980_v0 = vmax.f32 %v2026_v56, 0.0  ;;  %v3108_v1 = vmax.f32 %v2538_v57, 0.0  ;;  %v6469_v57 = vld [vmem:[%s6714_s30 + $0x270] ss:$8 sps:$4 sm:$0xff]  }
 0x16d   : > { %v2030_v2 = vpop.f32.mrf.mxu0  ;;  %2221 = vmatmul.mubr.bf16.gmra.mxu0 %v6451_v53  ;;  %v2542_v3 = vpop.f32.mrf.mxu1  ;;  %2733 = vmatmul.mubr.bf16.gmra.mxu1 %v6454_v54 }
 0x16e   : > { %v5453_v4 = vpack.c.bf16 %v2980_v0, %v2979_v62  ;;  %v5773_v5 = vpack.c.bf16 %v3108_v1, %v3107_v63  ;;  %2228 = vmatprep.mubr.bf16.mxu0 %v6459_v58  ;;  %2740 = vmatprep.mubr.bf16.mxu1 %v6462_v61  ;;  %v2031_v8 = vadd.f32 %v6878_v55, %v2030_v2  ;;  %v6472_v58 = vld [vmem:[%s6714_s30 + $0x670] ss:$8 sps:$4 sm:$0xff]   ;;  %v6477_v61 = vld [vmem:[%s6714_s30 + $0x284] ss:$8 sps:$4 sm:$0xff]  }
 0x16f   : > { %v2032_v6 = vpop.f32.mrf.mxu0  ;;  %v2544_v7 = vpop.f32.mrf.mxu1  ;;  %v2543_v9 = vadd.f32 %v6878_v55, %v2542_v3  ;;  %v6480_v0 = vld [vmem:[%s6714_s30 + $0x684] ss:$8 sps:$4 sm:$0xff]  }
 0x170   : > { %6045 = vst [vmem:[%s6892_s9 + $0x58] sm:$0xff] %v5453_v4   ;;  %6109 = vst [vmem:[%s6892_s9 + $0x258] sm:$0xff] %v5773_v5   ;;  %v2981_v20 = vmax.f32 %v2031_v8, 0.0 }
 0x171   : > { %v2033_v10 = vpop.f32.mrf.mxu0  ;;  %v2545_v11 = vpop.f32.mrf.mxu1  ;;  %v3109_v21 = vmax.f32 %v2543_v9, 0.0 }
 0x172   : > { %v2034_v14 = vadd.f32 %v6878_v55, %v2033_v10  ;;  %v2546_v15 = vadd.f32 %v6878_v55, %v2545_v11 }
 0x173   : > { %v2035_v17 = vpop.f32.mrf.mxu0  ;;  %v2547_v18 = vpop.f32.mrf.mxu1 }
 0x174   : > { %v2982_v22 = vmax.f32 %v2034_v14, 0.0  ;;  %v3110_v23 = vmax.f32 %v2546_v15, 0.0  ;;  %v6475_v15 = vld [vmem:[%s6714_s30 + $0x280] ss:$8 sps:$4 sm:$0xff]  }
 0x175   : > { %v2038_v24 = vpop.f32.mrf.mxu0  ;;  %2229 = vmatmul.mubr.bf16.gmra.mxu0 %v6457_v12  ;;  %v2550_v25 = vpop.f32.mrf.mxu1  ;;  %2741 = vmatmul.mubr.bf16.gmra.mxu1 %v6460_v13 }
 0x176   : > { %v5458_v26 = vpack.c.bf16 %v2982_v22, %v2981_v20  ;;  %v5778_v27 = vpack.c.bf16 %v3110_v23, %v3109_v21  ;;  %2236 = vmatprep.mubr.bf16.mxu0 %v6465_v16  ;;  %2748 = vmatprep.mubr.bf16.mxu1 %v6468_v19  ;;  %v2039_v30 = vadd.f32 %v6878_v55, %v2038_v24  ;;  %v6478_v16 = vld [vmem:[%s6714_s30 + $0x680] ss:$8 sps:$4 sm:$0xff]   ;;  %v6483_v19 = vld [vmem:[%s6714_s30 + $0x294] ss:$8 sps:$4 sm:$0xff]  }
 0x177   : > { %v2040_v28 = vpop.f32.mrf.mxu0  ;;  %v2552_v29 = vpop.f32.mrf.mxu1  ;;  %v2551_v31 = vadd.f32 %v6878_v55, %v2550_v25  ;;  %v6486_v22 = vld [vmem:[%s6714_s30 + $0x694] ss:$8 sps:$4 sm:$0xff]  }
 0x178   : > { %6046 = vst [vmem:[%s6892_s9 + $0x60] sm:$0xff] %v5458_v26   ;;  %6110 = vst [vmem:[%s6892_s9 + $0x260] sm:$0xff] %v5778_v27   ;;  %v2983_v42 = vmax.f32 %v2039_v30, 0.0 }
 0x179   : > { %v2041_v32 = vpop.f32.mrf.mxu0  ;;  %v2553_v33 = vpop.f32.mrf.mxu1  ;;  %v3111_v43 = vmax.f32 %v2551_v31, 0.0 }
 0x17a   : > { %v2042_v36 = vadd.f32 %v6878_v55, %v2041_v32  ;;  %v2554_v37 = vadd.f32 %v6878_v55, %v2553_v33 }
 0x17b   : > { %v2043_v39 = vpop.f32.mrf.mxu0  ;;  %v2555_v40 = vpop.f32.mrf.mxu1 }
 0x17c   : > { %v2984_v44 = vmax.f32 %v2042_v36, 0.0  ;;  %v3112_v45 = vmax.f32 %v2554_v37, 0.0  ;;  %v6481_v37 = vld [vmem:[%s6714_s30 + $0x290] ss:$8 sps:$4 sm:$0xff]  }
 0x17d   : > { %v2046_v46 = vpop.f32.mrf.mxu0  ;;  %2237 = vmatmul.mubr.bf16.gmra.mxu0 %v6463_v34  ;;  %v2558_v47 = vpop.f32.mrf.mxu1  ;;  %2749 = vmatmul.mubr.bf16.gmra.mxu1 %v6466_v35 }
 0x17e   : > { %v5463_v48 = vpack.c.bf16 %v2984_v44, %v2983_v42  ;;  %v5783_v49 = vpack.c.bf16 %v3112_v45, %v3111_v43  ;;  %2244 = vmatprep.mubr.bf16.mxu0 %v6471_v38  ;;  %2756 = vmatprep.mubr.bf16.mxu1 %v6474_v41  ;;  %v2047_v52 = vadd.f32 %v6878_v55, %v2046_v46  ;;  %v6484_v38 = vld [vmem:[%s6714_s30 + $0x690] ss:$8 sps:$4 sm:$0xff]   ;;  %v6489_v41 = vld [vmem:[%s6714_s30 + $0x2a4] ss:$8 sps:$4 sm:$0xff]  }
 0x17f   : > { %v2048_v50 = vpop.f32.mrf.mxu0  ;;  %v2560_v51 = vpop.f32.mrf.mxu1  ;;  %v2559_v53 = vadd.f32 %v6878_v55, %v2558_v47  ;;  %v6492_v44 = vld [vmem:[%s6714_s30 + $0x6a4] ss:$8 sps:$4 sm:$0xff]  }
 0x180   : > { %6047 = vst [vmem:[%s6892_s9 + $0x68] sm:$0xff] %v5463_v48   ;;  %6111 = vst [vmem:[%s6892_s9 + $0x268] sm:$0xff] %v5783_v49   ;;  %v2985_v1 = vmax.f32 %v2047_v52, 0.0 }
 0x181   : > { %v2049_v54 = vpop.f32.mrf.mxu0  ;;  %v2561_v56 = vpop.f32.mrf.mxu1  ;;  %v3113_v2 = vmax.f32 %v2559_v53, 0.0 }
 0x182   : > { %v2050_v59 = vadd.f32 %v6878_v55, %v2049_v54  ;;  %v2562_v60 = vadd.f32 %v6878_v55, %v2561_v56 }
 0x183   : > { %v2051_v62 = vpop.f32.mrf.mxu0  ;;  %v2563_v63 = vpop.f32.mrf.mxu1 }
 0x184   : > { %v2986_v3 = vmax.f32 %v2050_v59, 0.0  ;;  %v3114_v4 = vmax.f32 %v2562_v60, 0.0  ;;  %v6487_v60 = vld [vmem:[%s6714_s30 + $0x2a0] ss:$8 sps:$4 sm:$0xff]  }
 0x185   : > { %v2054_v5 = vpop.f32.mrf.mxu0  ;;  %2245 = vmatmul.mubr.bf16.gmra.mxu0 %v6469_v57  ;;  %v2566_v6 = vpop.f32.mrf.mxu1  ;;  %2757 = vmatmul.mubr.bf16.gmra.mxu1 %v6472_v58 }
 0x186   : > { %v5468_v7 = vpack.c.bf16 %v2986_v3, %v2985_v1  ;;  %v5788_v8 = vpack.c.bf16 %v3114_v4, %v3113_v2  ;;  %2252 = vmatprep.mubr.bf16.mxu0 %v6477_v61  ;;  %2764 = vmatprep.mubr.bf16.mxu1 %v6480_v0  ;;  %v2055_v11 = vadd.f32 %v6878_v55, %v2054_v5  ;;  %v6490_v61 = vld [vmem:[%s6714_s30 + $0x6a0] ss:$8 sps:$4 sm:$0xff]   ;;  %v6495_v0 = vld [vmem:[%s6714_s30 + $0x2b4] ss:$8 sps:$4 sm:$0xff]  }
 0x187   : > { %v2056_v9 = vpop.f32.mrf.mxu0  ;;  %v2568_v10 = vpop.f32.mrf.mxu1  ;;  %v2567_v12 = vadd.f32 %v6878_v55, %v2566_v6  ;;  %v6498_v3 = vld [vmem:[%s6714_s30 + $0x6b4] ss:$8 sps:$4 sm:$0xff]  }
 0x188   : > { %6048 = vst [vmem:[%s6892_s9 + $0x70] sm:$0xff] %v5468_v7   ;;  %6112 = vst [vmem:[%s6892_s9 + $0x270] sm:$0xff] %v5788_v8   ;;  %v2987_v23 = vmax.f32 %v2055_v11, 0.0 }
 0x189   : > { %v2057_v13 = vpop.f32.mrf.mxu0  ;;  %v2569_v14 = vpop.f32.mrf.mxu1  ;;  %v3115_v24 = vmax.f32 %v2567_v12, 0.0 }
 0x18a   : > { %v2058_v17 = vadd.f32 %v6878_v55, %v2057_v13  ;;  %v2570_v18 = vadd.f32 %v6878_v55, %v2569_v14  ;;  %v7069_v13 = vld [vmem:[%s7440_s2] ss:$0 sm:$0xff] }
 0x18b   : > { %v2059_v20 = vpop.f32.mrf.mxu0  ;;  %v2571_v21 = vpop.f32.mrf.mxu1 }
 0x18c   : > { %v2988_v25 = vmax.f32 %v2058_v17, 0.0  ;;  %v3116_v26 = vmax.f32 %v2570_v18, 0.0  ;;  %v6493_v18 = vld [vmem:[%s6714_s30 + $0x2b0] ss:$8 sps:$4 sm:$0xff]  }
 0x18d   : > { %v2062_v27 = vpop.f32.mrf.mxu0  ;;  %2253 = vmatmul.mubr.bf16.gmra.mxu0 %v6475_v15  ;;  %v2574_v28 = vpop.f32.mrf.mxu1  ;;  %2765 = vmatmul.mubr.bf16.gmra.mxu1 %v6478_v16 }
 0x18e   : > { %v5473_v29 = vpack.c.bf16 %v2988_v25, %v2987_v23  ;;  %v5793_v30 = vpack.c.bf16 %v3116_v26, %v3115_v24  ;;  %2260 = vmatprep.mubr.bf16.mxu0 %v6483_v19  ;;  %2772 = vmatprep.mubr.bf16.mxu1 %v6486_v22  ;;  %v2063_v33 = vadd.f32 %v6878_v55, %v2062_v27  ;;  %v6496_v19 = vld [vmem:[%s6714_s30 + $0x6b0] ss:$8 sps:$4 sm:$0xff]   ;;  %v6501_v22 = vld [vmem:[%s6714_s30 + $0x2c4] ss:$8 sps:$4 sm:$0xff]  }
 0x18f   : > { %v2064_v31 = vpop.f32.mrf.mxu0  ;;  %v2576_v32 = vpop.f32.mrf.mxu1  ;;  %v2575_v34 = vadd.f32 %v6878_v55, %v2574_v28  ;;  %v6504_v25 = vld [vmem:[%s6714_s30 + $0x6c4] ss:$8 sps:$4 sm:$0xff]  }
 0x190   : > { %6049 = vst [vmem:[%s6892_s9 + $0x78] sm:$0xff] %v5473_v29   ;;  %6113 = vst [vmem:[%s6892_s9 + $0x278] sm:$0xff] %v5793_v30   ;;  %v2989_v45 = vmax.f32 %v2063_v33, 0.0 }
 0x191   : > { %v2065_v35 = vpop.f32.mrf.mxu0  ;;  %v2577_v36 = vpop.f32.mrf.mxu1  ;;  %v3117_v46 = vmax.f32 %v2575_v34, 0.0 }
 0x192   : > { %v2066_v39 = vadd.f32 %v6878_v55, %v2065_v35  ;;  %v2578_v40 = vadd.f32 %v6878_v55, %v2577_v36 }
 0x193   : > { %v2067_v42 = vpop.f32.mrf.mxu0  ;;  %v2579_v43 = vpop.f32.mrf.mxu1 }
 0x194   : > { %v2990_v47 = vmax.f32 %v2066_v39, 0.0  ;;  %v3118_v48 = vmax.f32 %v2578_v40, 0.0  ;;  %v6499_v40 = vld [vmem:[%s6714_s30 + $0x2c0] ss:$8 sps:$4 sm:$0xff]  }
 0x195   : > { %v2070_v49 = vpop.f32.mrf.mxu0  ;;  %2261 = vmatmul.mubr.bf16.gmra.mxu0 %v6481_v37  ;;  %v2582_v50 = vpop.f32.mrf.mxu1  ;;  %2773 = vmatmul.mubr.bf16.gmra.mxu1 %v6484_v38 }
 0x196   : > { %v5478_v51 = vpack.c.bf16 %v2990_v47, %v2989_v45  ;;  %v5798_v52 = vpack.c.bf16 %v3118_v48, %v3117_v46  ;;  %2268 = vmatprep.mubr.bf16.mxu0 %v6489_v41  ;;  %2780 = vmatprep.mubr.bf16.mxu1 %v6492_v44  ;;  %v2071_v56 = vadd.f32 %v6878_v55, %v2070_v49  ;;  %v6502_v41 = vld [vmem:[%s6714_s30 + $0x6c0] ss:$8 sps:$4 sm:$0xff]   ;;  %v6507_v44 = vld [vmem:[%s6714_s30 + $0x2d4] ss:$8 sps:$4 sm:$0xff]  }
 0x197   : > { %v2072_v53 = vpop.f32.mrf.mxu0  ;;  %v2584_v54 = vpop.f32.mrf.mxu1  ;;  %v2583_v57 = vadd.f32 %v6878_v55, %v2582_v50  ;;  %v6510_v47 = vld [vmem:[%s6714_s30 + $0x6d4] ss:$8 sps:$4 sm:$0xff]  }
 0x198   : > { %6050 = vst [vmem:[%s6892_s9 + $0x80] sm:$0xff] %v5478_v51   ;;  %6114 = vst [vmem:[%s6892_s9 + $0x280] sm:$0xff] %v5798_v52   ;;  %v2991_v4 = vmax.f32 %v2071_v56, 0.0 }
 0x199   : > { %v2073_v58 = vpop.f32.mrf.mxu0  ;;  %v2585_v59 = vpop.f32.mrf.mxu1  ;;  %v3119_v5 = vmax.f32 %v2583_v57, 0.0 }
 0x19a   : > { %v2074_v62 = vadd.f32 %v6878_v55, %v2073_v58  ;;  %v2586_v63 = vadd.f32 %v6878_v55, %v2585_v59 }
 0x19b   : > { %v2075_v1 = vpop.f32.mrf.mxu0  ;;  %v2587_v2 = vpop.f32.mrf.mxu1 }
 0x19c   : > { %v2992_v6 = vmax.f32 %v2074_v62, 0.0  ;;  %v3120_v7 = vmax.f32 %v2586_v63, 0.0  ;;  %v6505_v63 = vld [vmem:[%s6714_s30 + $0x2d0] ss:$8 sps:$4 sm:$0xff]  }
 0x19d   : > { %v2078_v8 = vpop.f32.mrf.mxu0  ;;  %2269 = vmatmul.mubr.bf16.gmra.mxu0 %v6487_v60  ;;  %v2590_v9 = vpop.f32.mrf.mxu1  ;;  %2781 = vmatmul.mubr.bf16.gmra.mxu1 %v6490_v61 }
 0x19e   : > { %v5483_v10 = vpack.c.bf16 %v2992_v6, %v2991_v4  ;;  %v5803_v11 = vpack.c.bf16 %v3120_v7, %v3119_v5  ;;  %2276 = vmatprep.mubr.bf16.mxu0 %v6495_v0  ;;  %2788 = vmatprep.mubr.bf16.mxu1 %v6498_v3  ;;  %v2079_v14 = vadd.f32 %v7069_v13, %v2078_v8  ;;  %v6508_v0 = vld [vmem:[%s6714_s30 + $0x6d0] ss:$8 sps:$4 sm:$0xff]   ;;  %v6513_v3 = vld [vmem:[%s6714_s30 + $0x2e4] ss:$8 sps:$4 sm:$0xff]  }
 0x19f   : > { %v2080_v55 = vpop.f32.mrf.mxu0  ;;  %v2592_v12 = vpop.f32.mrf.mxu1  ;;  %v2591_v15 = vadd.f32 %v7069_v13, %v2590_v9  ;;  %v6516_v6 = vld [vmem:[%s6714_s30 + $0x6e4] ss:$8 sps:$4 sm:$0xff]  }
 0x1a0   : > { %6051 = vst [vmem:[%s6892_s9 + $0x88] sm:$0xff] %v5483_v10   ;;  %6115 = vst [vmem:[%s6892_s9 + $0x288] sm:$0xff] %v5803_v11   ;;  %v2993_v26 = vmax.f32 %v2079_v14, 0.0 }
 0x1a1   : > { %v2081_v16 = vpop.f32.mrf.mxu0  ;;  %v2593_v17 = vpop.f32.mrf.mxu1  ;;  %v3121_v27 = vmax.f32 %v2591_v15, 0.0 }
 0x1a2   : > { %v2082_v20 = vadd.f32 %v7069_v13, %v2081_v16  ;;  %v2594_v21 = vadd.f32 %v7069_v13, %v2593_v17 }
 0x1a3   : > { %v2083_v23 = vpop.f32.mrf.mxu0  ;;  %v2595_v24 = vpop.f32.mrf.mxu1 }
 0x1a4   : > { %v2994_v28 = vmax.f32 %v2082_v20, 0.0  ;;  %v3122_v29 = vmax.f32 %v2594_v21, 0.0  ;;  %v6511_v21 = vld [vmem:[%s6714_s30 + $0x2e0] ss:$8 sps:$4 sm:$0xff]  }
 0x1a5   : > { %v2086_v30 = vpop.f32.mrf.mxu0  ;;  %2277 = vmatmul.mubr.bf16.gmra.mxu0 %v6493_v18  ;;  %v2598_v31 = vpop.f32.mrf.mxu1  ;;  %2789 = vmatmul.mubr.bf16.gmra.mxu1 %v6496_v19 }
 0x1a6   : > { %v5488_v32 = vpack.c.bf16 %v2994_v28, %v2993_v26  ;;  %v5808_v33 = vpack.c.bf16 %v3122_v29, %v3121_v27  ;;  %2284 = vmatprep.mubr.bf16.mxu0 %v6501_v22  ;;  %2796 = vmatprep.mubr.bf16.mxu1 %v6504_v25  ;;  %v2087_v36 = vadd.f32 %v7069_v13, %v2086_v30  ;;  %v6514_v22 = vld [vmem:[%s6714_s30 + $0x6e0] ss:$8 sps:$4 sm:$0xff]   ;;  %v6519_v25 = vld [vmem:[%s6714_s30 + $0x2f4] ss:$8 sps:$4 sm:$0xff]  }
 0x1a7   : > { %v2088_v34 = vpop.f32.mrf.mxu0  ;;  %v2600_v35 = vpop.f32.mrf.mxu1  ;;  %v2599_v37 = vadd.f32 %v7069_v13, %v2598_v31  ;;  %v6522_v28 = vld [vmem:[%s6714_s30 + $0x6f4] ss:$8 sps:$4 sm:$0xff]  }
 0x1a8   : > { %6052 = vst [vmem:[%s6892_s9 + $0x90] sm:$0xff] %v5488_v32   ;;  %6116 = vst [vmem:[%s6892_s9 + $0x290] sm:$0xff] %v5808_v33   ;;  %v2995_v48 = vmax.f32 %v2087_v36, 0.0 }
 0x1a9   : > { %v2089_v38 = vpop.f32.mrf.mxu0  ;;  %v2601_v39 = vpop.f32.mrf.mxu1  ;;  %v3123_v49 = vmax.f32 %v2599_v37, 0.0 }
 0x1aa   : > { %v2090_v42 = vadd.f32 %v7069_v13, %v2089_v38  ;;  %v2602_v43 = vadd.f32 %v7069_v13, %v2601_v39 }
 0x1ab   : > { %v2091_v45 = vpop.f32.mrf.mxu0  ;;  %v2603_v46 = vpop.f32.mrf.mxu1 }
 0x1ac   : > { %v2996_v50 = vmax.f32 %v2090_v42, 0.0  ;;  %v3124_v51 = vmax.f32 %v2602_v43, 0.0  ;;  %v6517_v43 = vld [vmem:[%s6714_s30 + $0x2f0] ss:$8 sps:$4 sm:$0xff]  }
 0x1ad   : > { %v2094_v52 = vpop.f32.mrf.mxu0  ;;  %2285 = vmatmul.mubr.bf16.gmra.mxu0 %v6499_v40  ;;  %v2606_v53 = vpop.f32.mrf.mxu1  ;;  %2797 = vmatmul.mubr.bf16.gmra.mxu1 %v6502_v41 }
 0x1ae   : > { %v5493_v54 = vpack.c.bf16 %v2996_v50, %v2995_v48  ;;  %v5813_v56 = vpack.c.bf16 %v3124_v51, %v3123_v49  ;;  %2292 = vmatprep.mubr.bf16.mxu0 %v6507_v44  ;;  %2804 = vmatprep.mubr.bf16.mxu1 %v6510_v47  ;;  %v2095_v59 = vadd.f32 %v7069_v13, %v2094_v52  ;;  %v6520_v44 = vld [vmem:[%s6714_s30 + $0x6f0] ss:$8 sps:$4 sm:$0xff]   ;;  %v6525_v47 = vld [vmem:[%s6714_s30 + $0x304] ss:$8 sps:$4 sm:$0xff]  }
 0x1af   : > { %v2096_v57 = vpop.f32.mrf.mxu0  ;;  %v2608_v58 = vpop.f32.mrf.mxu1  ;;  %v2607_v60 = vadd.f32 %v7069_v13, %v2606_v53  ;;  %v6528_v50 = vld [vmem:[%s6714_s30 + $0x704] ss:$8 sps:$4 sm:$0xff]  }
 0x1b0   : > { %6053 = vst [vmem:[%s6892_s9 + $0x98] sm:$0xff] %v5493_v54   ;;  %6117 = vst [vmem:[%s6892_s9 + $0x298] sm:$0xff] %v5813_v56   ;;  %v2997_v7 = vmax.f32 %v2095_v59, 0.0 }
 0x1b1   : > { %v2097_v61 = vpop.f32.mrf.mxu0  ;;  %v2609_v62 = vpop.f32.mrf.mxu1  ;;  %v3125_v8 = vmax.f32 %v2607_v60, 0.0 }
 0x1b2   : > { %v2098_v1 = vadd.f32 %v7069_v13, %v2097_v61  ;;  %v2610_v2 = vadd.f32 %v7069_v13, %v2609_v62 }
 0x1b3   : > { %v2099_v4 = vpop.f32.mrf.mxu0  ;;  %v2611_v5 = vpop.f32.mrf.mxu1 }
 0x1b4   : > { %v2998_v9 = vmax.f32 %v2098_v1, 0.0  ;;  %v3126_v10 = vmax.f32 %v2610_v2, 0.0  ;;  %v6523_v2 = vld [vmem:[%s6714_s30 + $0x300] ss:$8 sps:$4 sm:$0xff]  }
 0x1b5   : > { %v2102_v11 = vpop.f32.mrf.mxu0  ;;  %2293 = vmatmul.mubr.bf16.gmra.mxu0 %v6505_v63  ;;  %v2614_v55 = vpop.f32.mrf.mxu1  ;;  %2805 = vmatmul.mubr.bf16.gmra.mxu1 %v6508_v0 }
 0x1b6   : > { %v5498_v12 = vpack.c.bf16 %v2998_v9, %v2997_v7  ;;  %v5818_v14 = vpack.c.bf16 %v3126_v10, %v3125_v8  ;;  %2300 = vmatprep.mubr.bf16.mxu0 %v6513_v3  ;;  %2812 = vmatprep.mubr.bf16.mxu1 %v6516_v6  ;;  %v2103_v17 = vadd.f32 %v7069_v13, %v2102_v11  ;;  %v6526_v3 = vld [vmem:[%s6714_s30 + $0x700] ss:$8 sps:$4 sm:$0xff]   ;;  %v6531_v6 = vld [vmem:[%s6714_s30 + $0x314] ss:$8 sps:$4 sm:$0xff]  }
 0x1b7   : > { %v2104_v15 = vpop.f32.mrf.mxu0  ;;  %v2616_v16 = vpop.f32.mrf.mxu1  ;;  %v2615_v18 = vadd.f32 %v7069_v13, %v2614_v55  ;;  %v6534_v9 = vld [vmem:[%s6714_s30 + $0x714] ss:$8 sps:$4 sm:$0xff]  }
 0x1b8   : > { %6054 = vst [vmem:[%s6892_s9 + $0xa0] sm:$0xff] %v5498_v12   ;;  %6118 = vst [vmem:[%s6892_s9 + $0x2a0] sm:$0xff] %v5818_v14   ;;  %v2999_v29 = vmax.f32 %v2103_v17, 0.0 }
 0x1b9   : > { %v2105_v19 = vpop.f32.mrf.mxu0  ;;  %v2617_v20 = vpop.f32.mrf.mxu1  ;;  %v3127_v30 = vmax.f32 %v2615_v18, 0.0 }
 0x1ba   : > { %v2106_v23 = vadd.f32 %v7069_v13, %v2105_v19  ;;  %v2618_v24 = vadd.f32 %v7069_v13, %v2617_v20 }
 0x1bb   : > { %v2107_v26 = vpop.f32.mrf.mxu0  ;;  %v2619_v27 = vpop.f32.mrf.mxu1 }
 0x1bc   : > { %v3000_v31 = vmax.f32 %v2106_v23, 0.0  ;;  %v3128_v32 = vmax.f32 %v2618_v24, 0.0  ;;  %v6529_v24 = vld [vmem:[%s6714_s30 + $0x310] ss:$8 sps:$4 sm:$0xff]  }
 0x1bd   : > { %v2110_v33 = vpop.f32.mrf.mxu0  ;;  %2301 = vmatmul.mubr.bf16.gmra.mxu0 %v6511_v21  ;;  %v2622_v34 = vpop.f32.mrf.mxu1  ;;  %2813 = vmatmul.mubr.bf16.gmra.mxu1 %v6514_v22 }
 0x1be   : > { %v5503_v35 = vpack.c.bf16 %v3000_v31, %v2999_v29  ;;  %v5823_v36 = vpack.c.bf16 %v3128_v32, %v3127_v30  ;;  %2308 = vmatprep.mubr.bf16.mxu0 %v6519_v25  ;;  %2820 = vmatprep.mubr.bf16.mxu1 %v6522_v28  ;;  %v2111_v39 = vadd.f32 %v7069_v13, %v2110_v33  ;;  %v6532_v25 = vld [vmem:[%s6714_s30 + $0x710] ss:$8 sps:$4 sm:$0xff]   ;;  %v6537_v28 = vld [vmem:[%s6714_s30 + $0x324] ss:$8 sps:$4 sm:$0xff]  }
 0x1bf   : > { %v2112_v37 = vpop.f32.mrf.mxu0  ;;  %v2624_v38 = vpop.f32.mrf.mxu1  ;;  %v2623_v40 = vadd.f32 %v7069_v13, %v2622_v34  ;;  %v6540_v31 = vld [vmem:[%s6714_s30 + $0x724] ss:$8 sps:$4 sm:$0xff]  }
 0x1c0   : > { %6055 = vst [vmem:[%s6892_s9 + $0xa8] sm:$0xff] %v5503_v35   ;;  %6119 = vst [vmem:[%s6892_s9 + $0x2a8] sm:$0xff] %v5823_v36   ;;  %v3001_v51 = vmax.f32 %v2111_v39, 0.0 }
 0x1c1   : > { %v2113_v41 = vpop.f32.mrf.mxu0  ;;  %v2625_v42 = vpop.f32.mrf.mxu1  ;;  %v3129_v52 = vmax.f32 %v2623_v40, 0.0 }
 0x1c2   : > { %v2114_v45 = vadd.f32 %v7069_v13, %v2113_v41  ;;  %v2626_v46 = vadd.f32 %v7069_v13, %v2625_v42 }
 0x1c3   : > { %v2115_v48 = vpop.f32.mrf.mxu0  ;;  %v2627_v49 = vpop.f32.mrf.mxu1 }
 0x1c4   : > { %v3002_v53 = vmax.f32 %v2114_v45, 0.0  ;;  %v3130_v54 = vmax.f32 %v2626_v46, 0.0  ;;  %v6535_v46 = vld [vmem:[%s6714_s30 + $0x320] ss:$8 sps:$4 sm:$0xff]  }
 0x1c5   : > { %v2118_v56 = vpop.f32.mrf.mxu0  ;;  %2309 = vmatmul.mubr.bf16.gmra.mxu0 %v6517_v43  ;;  %v2630_v57 = vpop.f32.mrf.mxu1  ;;  %2821 = vmatmul.mubr.bf16.gmra.mxu1 %v6520_v44 }
 0x1c6   : > { %v5508_v58 = vpack.c.bf16 %v3002_v53, %v3001_v51  ;;  %v5828_v59 = vpack.c.bf16 %v3130_v54, %v3129_v52  ;;  %2316 = vmatprep.mubr.bf16.mxu0 %v6525_v47  ;;  %2828 = vmatprep.mubr.bf16.mxu1 %v6528_v50  ;;  %v2119_v62 = vadd.f32 %v7069_v13, %v2118_v56  ;;  %v6538_v47 = vld [vmem:[%s6714_s30 + $0x720] ss:$8 sps:$4 sm:$0xff]   ;;  %v6543_v50 = vld [vmem:[%s6714_s30 + $0x334] ss:$8 sps:$4 sm:$0xff]  }
 0x1c7   : > { %v2120_v60 = vpop.f32.mrf.mxu0  ;;  %v2632_v61 = vpop.f32.mrf.mxu1  ;;  %v2631_v63 = vadd.f32 %v7069_v13, %v2630_v57  ;;  %v6546_v53 = vld [vmem:[%s6714_s30 + $0x734] ss:$8 sps:$4 sm:$0xff]  }
 0x1c8   : > { %6056 = vst [vmem:[%s6892_s9 + $0xb0] sm:$0xff] %v5508_v58   ;;  %6120 = vst [vmem:[%s6892_s9 + $0x2b0] sm:$0xff] %v5828_v59   ;;  %v3003_v10 = vmax.f32 %v2119_v62, 0.0 }
 0x1c9   : > { %v2121_v0 = vpop.f32.mrf.mxu0  ;;  %v2633_v1 = vpop.f32.mrf.mxu1  ;;  %v3131_v11 = vmax.f32 %v2631_v63, 0.0 }
 0x1ca   : > { %v2122_v4 = vadd.f32 %v7069_v13, %v2121_v0  ;;  %v2634_v5 = vadd.f32 %v7069_v13, %v2633_v1 }
 0x1cb   : > { %v2123_v7 = vpop.f32.mrf.mxu0  ;;  %v2635_v8 = vpop.f32.mrf.mxu1 }
 0x1cc   : > { %v3004_v55 = vmax.f32 %v2122_v4, 0.0  ;;  %v3132_v12 = vmax.f32 %v2634_v5, 0.0  ;;  %v6541_v5 = vld [vmem:[%s6714_s30 + $0x330] ss:$8 sps:$4 sm:$0xff]  }
 0x1cd   : > { %v2126_v14 = vpop.f32.mrf.mxu0  ;;  %2317 = vmatmul.mubr.bf16.gmra.mxu0 %v6523_v2  ;;  %v2638_v15 = vpop.f32.mrf.mxu1  ;;  %2829 = vmatmul.mubr.bf16.gmra.mxu1 %v6526_v3 }
 0x1ce   : > { %v5513_v16 = vpack.c.bf16 %v3004_v55, %v3003_v10  ;;  %v5833_v17 = vpack.c.bf16 %v3132_v12, %v3131_v11  ;;  %2324 = vmatprep.mubr.bf16.mxu0 %v6531_v6  ;;  %2836 = vmatprep.mubr.bf16.mxu1 %v6534_v9  ;;  %v2127_v20 = vadd.f32 %v7069_v13, %v2126_v14  ;;  %v6544_v6 = vld [vmem:[%s6714_s30 + $0x730] ss:$8 sps:$4 sm:$0xff]   ;;  %v6549_v9 = vld [vmem:[%s6714_s30 + $0x344] ss:$8 sps:$4 sm:$0xff]  }
 0x1cf   : > { %v2128_v18 = vpop.f32.mrf.mxu0  ;;  %v2640_v19 = vpop.f32.mrf.mxu1  ;;  %v2639_v21 = vadd.f32 %v7069_v13, %v2638_v15  ;;  %v6552_v55 = vld [vmem:[%s6714_s30 + $0x744] ss:$8 sps:$4 sm:$0xff]  }
 0x1d0   : > { %6057 = vst [vmem:[%s6892_s9 + $0xb8] sm:$0xff] %v5513_v16   ;;  %6121 = vst [vmem:[%s6892_s9 + $0x2b8] sm:$0xff] %v5833_v17   ;;  %v3005_v32 = vmax.f32 %v2127_v20, 0.0 }
 0x1d1   : > { %v2129_v22 = vpop.f32.mrf.mxu0  ;;  %v2641_v23 = vpop.f32.mrf.mxu1  ;;  %v3133_v33 = vmax.f32 %v2639_v21, 0.0 }
 0x1d2   : > { %v2130_v26 = vadd.f32 %v7069_v13, %v2129_v22  ;;  %v2642_v27 = vadd.f32 %v7069_v13, %v2641_v23 }
 0x1d3   : > { %v2131_v29 = vpop.f32.mrf.mxu0  ;;  %v2643_v30 = vpop.f32.mrf.mxu1 }
 0x1d4   : > { %v3006_v34 = vmax.f32 %v2130_v26, 0.0  ;;  %v3134_v35 = vmax.f32 %v2642_v27, 0.0  ;;  %v6547_v27 = vld [vmem:[%s6714_s30 + $0x340] ss:$8 sps:$4 sm:$0xff]  }
 0x1d5   : > { %v2134_v36 = vpop.f32.mrf.mxu0  ;;  %2325 = vmatmul.mubr.bf16.gmra.mxu0 %v6529_v24  ;;  %v2646_v37 = vpop.f32.mrf.mxu1  ;;  %2837 = vmatmul.mubr.bf16.gmra.mxu1 %v6532_v25 }
 0x1d6   : > { %v5518_v38 = vpack.c.bf16 %v3006_v34, %v3005_v32  ;;  %v5838_v39 = vpack.c.bf16 %v3134_v35, %v3133_v33  ;;  %2332 = vmatprep.mubr.bf16.mxu0 %v6537_v28  ;;  %2844 = vmatprep.mubr.bf16.mxu1 %v6540_v31  ;;  %v2135_v42 = vadd.f32 %v7069_v13, %v2134_v36  ;;  %v6550_v28 = vld [vmem:[%s6714_s30 + $0x740] ss:$8 sps:$4 sm:$0xff]   ;;  %v6555_v31 = vld [vmem:[%s6714_s30 + $0x354] ss:$8 sps:$4 sm:$0xff]  }
 0x1d7   : > { %v2136_v40 = vpop.f32.mrf.mxu0  ;;  %v2648_v41 = vpop.f32.mrf.mxu1  ;;  %v2647_v43 = vadd.f32 %v7069_v13, %v2646_v37  ;;  %v6558_v34 = vld [vmem:[%s6714_s30 + $0x754] ss:$8 sps:$4 sm:$0xff]  }
 0x1d8   : > { %6058 = vst [vmem:[%s6892_s9 + $0xc0] sm:$0xff] %v5518_v38   ;;  %6122 = vst [vmem:[%s6892_s9 + $0x2c0] sm:$0xff] %v5838_v39   ;;  %v3007_v54 = vmax.f32 %v2135_v42, 0.0 }
 0x1d9   : > { %v2137_v44 = vpop.f32.mrf.mxu0  ;;  %v2649_v45 = vpop.f32.mrf.mxu1  ;;  %v3135_v56 = vmax.f32 %v2647_v43, 0.0 }
 0x1da   : > { %v2138_v48 = vadd.f32 %v7069_v13, %v2137_v44  ;;  %v2650_v49 = vadd.f32 %v7069_v13, %v2649_v45 }
 0x1db   : > { %v2139_v51 = vpop.f32.mrf.mxu0  ;;  %v2651_v52 = vpop.f32.mrf.mxu1 }
 0x1dc   : > { %v3008_v57 = vmax.f32 %v2138_v48, 0.0  ;;  %v3136_v58 = vmax.f32 %v2650_v49, 0.0  ;;  %v6553_v49 = vld [vmem:[%s6714_s30 + $0x350] ss:$8 sps:$4 sm:$0xff]  }
 0x1dd   : > { %v2142_v59 = vpop.f32.mrf.mxu0  ;;  %2333 = vmatmul.mubr.bf16.gmra.mxu0 %v6535_v46  ;;  %v2654_v60 = vpop.f32.mrf.mxu1  ;;  %2845 = vmatmul.mubr.bf16.gmra.mxu1 %v6538_v47 }
 0x1de   : > { %v5523_v61 = vpack.c.bf16 %v3008_v57, %v3007_v54  ;;  %v5843_v62 = vpack.c.bf16 %v3136_v58, %v3135_v56  ;;  %2340 = vmatprep.mubr.bf16.mxu0 %v6543_v50  ;;  %2852 = vmatprep.mubr.bf16.mxu1 %v6546_v53  ;;  %v2143_v1 = vadd.f32 %v7069_v13, %v2142_v59  ;;  %v6556_v50 = vld [vmem:[%s6714_s30 + $0x750] ss:$8 sps:$4 sm:$0xff]   ;;  %v6561_v53 = vld [vmem:[%s6714_s30 + $0x364] ss:$8 sps:$4 sm:$0xff]  }
 0x1df   : > { %v2144_v63 = vpop.f32.mrf.mxu0  ;;  %v2656_v0 = vpop.f32.mrf.mxu1  ;;  %v2655_v2 = vadd.f32 %v7069_v13, %v2654_v60  ;;  %v6564_v57 = vld [vmem:[%s6714_s30 + $0x764] ss:$8 sps:$4 sm:$0xff]  }
 0x1e0   : > { %6059 = vst [vmem:[%s6892_s9 + $0xc8] sm:$0xff] %v5523_v61   ;;  %6123 = vst [vmem:[%s6892_s9 + $0x2c8] sm:$0xff] %v5843_v62   ;;  %v3009_v12 = vmax.f32 %v2143_v1, 0.0 }
 0x1e1   : > { %v2145_v3 = vpop.f32.mrf.mxu0  ;;  %v2657_v4 = vpop.f32.mrf.mxu1  ;;  %v3137_v14 = vmax.f32 %v2655_v2, 0.0 }
 0x1e2   : > { %v2146_v7 = vadd.f32 %v7069_v13, %v2145_v3  ;;  %v2658_v8 = vadd.f32 %v7069_v13, %v2657_v4 }
 0x1e3   : > { %v2147_v10 = vpop.f32.mrf.mxu0  ;;  %v2659_v11 = vpop.f32.mrf.mxu1 }
 0x1e4   : > { %v3010_v15 = vmax.f32 %v2146_v7, 0.0  ;;  %v3138_v16 = vmax.f32 %v2658_v8, 0.0  ;;  %v6559_v8 = vld [vmem:[%s6714_s30 + $0x360] ss:$8 sps:$4 sm:$0xff]  }
 0x1e5   : > { %v2150_v17 = vpop.f32.mrf.mxu0  ;;  %2341 = vmatmul.mubr.bf16.gmra.mxu0 %v6541_v5  ;;  %v2662_v18 = vpop.f32.mrf.mxu1  ;;  %2853 = vmatmul.mubr.bf16.gmra.mxu1 %v6544_v6 }
 0x1e6   : > { %v5528_v19 = vpack.c.bf16 %v3010_v15, %v3009_v12  ;;  %v5848_v20 = vpack.c.bf16 %v3138_v16, %v3137_v14  ;;  %2348 = vmatprep.mubr.bf16.mxu0 %v6549_v9  ;;  %2860 = vmatprep.mubr.bf16.mxu1 %v6552_v55  ;;  %v2151_v23 = vadd.f32 %v7069_v13, %v2150_v17  ;;  %v6562_v9 = vld [vmem:[%s6714_s30 + $0x760] ss:$8 sps:$4 sm:$0xff]   ;;  %v6567_v55 = vld [vmem:[%s6714_s30 + $0x374] ss:$8 sps:$4 sm:$0xff]  }
 0x1e7   : > { %v2152_v21 = vpop.f32.mrf.mxu0  ;;  %v2664_v22 = vpop.f32.mrf.mxu1  ;;  %v2663_v24 = vadd.f32 %v7069_v13, %v2662_v18  ;;  %v6570_v15 = vld [vmem:[%s6714_s30 + $0x774] ss:$8 sps:$4 sm:$0xff]  }
 0x1e8   : > { %6060 = vst [vmem:[%s6892_s9 + $0xd0] sm:$0xff] %v5528_v19   ;;  %6124 = vst [vmem:[%s6892_s9 + $0x2d0] sm:$0xff] %v5848_v20   ;;  %v3011_v35 = vmax.f32 %v2151_v23, 0.0 }
 0x1e9   : > { %v2153_v25 = vpop.f32.mrf.mxu0  ;;  %v2665_v26 = vpop.f32.mrf.mxu1  ;;  %v3139_v36 = vmax.f32 %v2663_v24, 0.0 }
 0x1ea   : > { %v2154_v29 = vadd.f32 %v7069_v13, %v2153_v25  ;;  %v2666_v30 = vadd.f32 %v7069_v13, %v2665_v26 }
 0x1eb   : > { %v2155_v32 = vpop.f32.mrf.mxu0  ;;  %v2667_v33 = vpop.f32.mrf.mxu1 }
 0x1ec   : > { %v3012_v37 = vmax.f32 %v2154_v29, 0.0  ;;  %v3140_v38 = vmax.f32 %v2666_v30, 0.0  ;;  %v6565_v30 = vld [vmem:[%s6714_s30 + $0x370] ss:$8 sps:$4 sm:$0xff]  }
 0x1ed   : > { %v2158_v39 = vpop.f32.mrf.mxu0  ;;  %2349 = vmatmul.mubr.bf16.gmra.mxu0 %v6547_v27  ;;  %v2670_v40 = vpop.f32.mrf.mxu1  ;;  %2861 = vmatmul.mubr.bf16.gmra.mxu1 %v6550_v28 }
 0x1ee   : > { %v5533_v41 = vpack.c.bf16 %v3012_v37, %v3011_v35  ;;  %v5853_v42 = vpack.c.bf16 %v3140_v38, %v3139_v36  ;;  %2356 = vmatprep.mubr.bf16.mxu0 %v6555_v31  ;;  %2868 = vmatprep.mubr.bf16.mxu1 %v6558_v34  ;;  %v2159_v45 = vadd.f32 %v7069_v13, %v2158_v39  ;;  %v6568_v31 = vld [vmem:[%s6714_s30 + $0x770] ss:$8 sps:$4 sm:$0xff]   ;;  %v6573_v34 = vld [vmem:[%s6714_s30 + $0x384] ss:$8 sps:$4 sm:$0xff]  }
 0x1ef   : > { %v2160_v43 = vpop.f32.mrf.mxu0  ;;  %v2672_v44 = vpop.f32.mrf.mxu1  ;;  %v2671_v46 = vadd.f32 %v7069_v13, %v2670_v40  ;;  %v6576_v37 = vld [vmem:[%s6714_s30 + $0x784] ss:$8 sps:$4 sm:$0xff]  }
 0x1f0   : > { %6061 = vst [vmem:[%s6892_s9 + $0xd8] sm:$0xff] %v5533_v41   ;;  %6125 = vst [vmem:[%s6892_s9 + $0x2d8] sm:$0xff] %v5853_v42   ;;  %v3013_v58 = vmax.f32 %v2159_v45, 0.0 }
 0x1f1   : > { %v2161_v47 = vpop.f32.mrf.mxu0  ;;  %v2673_v48 = vpop.f32.mrf.mxu1  ;;  %v3141_v59 = vmax.f32 %v2671_v46, 0.0 }
 0x1f2   : > { %v2162_v51 = vadd.f32 %v7069_v13, %v2161_v47  ;;  %v2674_v52 = vadd.f32 %v7069_v13, %v2673_v48 }
 0x1f3   : > { %v2163_v54 = vpop.f32.mrf.mxu0  ;;  %v2675_v56 = vpop.f32.mrf.mxu1 }
 0x1f4   : > { %v3014_v60 = vmax.f32 %v2162_v51, 0.0  ;;  %v3142_v61 = vmax.f32 %v2674_v52, 0.0  ;;  %v6571_v52 = vld [vmem:[%s6714_s30 + $0x380] ss:$8 sps:$4 sm:$0xff]  }
 0x1f5   : > { %v2166_v62 = vpop.f32.mrf.mxu0  ;;  %2357 = vmatmul.mubr.bf16.gmra.mxu0 %v6553_v49  ;;  %v2678_v63 = vpop.f32.mrf.mxu1  ;;  %2869 = vmatmul.mubr.bf16.gmra.mxu1 %v6556_v50 }
 0x1f6   : > { %v5538_v0 = vpack.c.bf16 %v3014_v60, %v3013_v58  ;;  %v5858_v1 = vpack.c.bf16 %v3142_v61, %v3141_v59  ;;  %2364 = vmatprep.mubr.bf16.mxu0 %v6561_v53  ;;  %2876 = vmatprep.mubr.bf16.mxu1 %v6564_v57  ;;  %v2167_v4 = vadd.f32 %v7069_v13, %v2166_v62  ;;  %v6574_v53 = vld [vmem:[%s6714_s30 + $0x780] ss:$8 sps:$4 sm:$0xff]   ;;  %v6579_v57 = vld [vmem:[%s6714_s30 + $0x394] ss:$8 sps:$4 sm:$0xff]  }
 0x1f7   : > { %v2168_v2 = vpop.f32.mrf.mxu0  ;;  %v2680_v3 = vpop.f32.mrf.mxu1  ;;  %v2679_v5 = vadd.f32 %v7069_v13, %v2678_v63  ;;  %v6582_v60 = vld [vmem:[%s6714_s30 + $0x794] ss:$8 sps:$4 sm:$0xff]  }
 0x1f8   : > { %6062 = vst [vmem:[%s6892_s9 + $0xe0] sm:$0xff] %v5538_v0   ;;  %6126 = vst [vmem:[%s6892_s9 + $0x2e0] sm:$0xff] %v5858_v1   ;;  %v3015_v16 = vmax.f32 %v2167_v4, 0.0 }
 0x1f9   : > { %v2169_v6 = vpop.f32.mrf.mxu0  ;;  %v2681_v7 = vpop.f32.mrf.mxu1  ;;  %v3143_v17 = vmax.f32 %v2679_v5, 0.0 }
 0x1fa   : > { %v2170_v10 = vadd.f32 %v7069_v13, %v2169_v6  ;;  %v2682_v11 = vadd.f32 %v7069_v13, %v2681_v7 }
 0x1fb   : > { %v2171_v12 = vpop.f32.mrf.mxu0  ;;  %v2683_v14 = vpop.f32.mrf.mxu1 }
 0x1fc   : > { %v3016_v18 = vmax.f32 %v2170_v10, 0.0  ;;  %v3144_v19 = vmax.f32 %v2682_v11, 0.0  ;;  %v6577_v11 = vld [vmem:[%s6714_s30 + $0x390] ss:$8 sps:$4 sm:$0xff]  }
 0x1fd   : > { %v2174_v20 = vpop.f32.mrf.mxu0  ;;  %2365 = vmatmul.mubr.bf16.gmra.mxu0 %v6559_v8  ;;  %v2686_v21 = vpop.f32.mrf.mxu1  ;;  %2877 = vmatmul.mubr.bf16.gmra.mxu1 %v6562_v9 }
 0x1fe   : > { %v5543_v22 = vpack.c.bf16 %v3016_v18, %v3015_v16  ;;  %v5863_v23 = vpack.c.bf16 %v3144_v19, %v3143_v17  ;;  %2372 = vmatprep.mubr.bf16.mxu0 %v6567_v55  ;;  %2884 = vmatprep.mubr.bf16.mxu1 %v6570_v15  ;;  %v2175_v26 = vadd.f32 %v7069_v13, %v2174_v20  ;;  %v6580_v55 = vld [vmem:[%s6714_s30 + $0x790] ss:$8 sps:$4 sm:$0xff]   ;;  %v6585_v15 = vld [vmem:[%s6714_s30 + $0x3a4] ss:$8 sps:$4 sm:$0xff]  }
 0x1ff   : > { %v2176_v24 = vpop.f32.mrf.mxu0  ;;  %v2688_v25 = vpop.f32.mrf.mxu1  ;;  %v2687_v27 = vadd.f32 %v7069_v13, %v2686_v21  ;;  %v6588_v18 = vld [vmem:[%s6714_s30 + $0x7a4] ss:$8 sps:$4 sm:$0xff]  }
 0x200   : > { %6063 = vst [vmem:[%s6892_s9 + $0xe8] sm:$0xff] %v5543_v22   ;;  %6127 = vst [vmem:[%s6892_s9 + $0x2e8] sm:$0xff] %v5863_v23   ;;  %v3017_v38 = vmax.f32 %v2175_v26, 0.0 }
 0x201   : > { %v2177_v28 = vpop.f32.mrf.mxu0  ;;  %v2689_v29 = vpop.f32.mrf.mxu1  ;;  %v3145_v39 = vmax.f32 %v2687_v27, 0.0 }
 0x202   : > { %v2178_v32 = vadd.f32 %v7069_v13, %v2177_v28  ;;  %v2690_v33 = vadd.f32 %v7069_v13, %v2689_v29 }
 0x203   : > { %v2179_v35 = vpop.f32.mrf.mxu0  ;;  %v2691_v36 = vpop.f32.mrf.mxu1 }
 0x204   : > { %v3018_v40 = vmax.f32 %v2178_v32, 0.0  ;;  %v3146_v41 = vmax.f32 %v2690_v33, 0.0  ;;  %v6583_v33 = vld [vmem:[%s6714_s30 + $0x3a0] ss:$8 sps:$4 sm:$0xff]  }
 0x205   : > { %v2182_v42 = vpop.f32.mrf.mxu0  ;;  %2373 = vmatmul.mubr.bf16.gmra.mxu0 %v6565_v30  ;;  %v2694_v43 = vpop.f32.mrf.mxu1  ;;  %2885 = vmatmul.mubr.bf16.gmra.mxu1 %v6568_v31 }
 0x206   : > { %v5548_v44 = vpack.c.bf16 %v3018_v40, %v3017_v38  ;;  %v5868_v45 = vpack.c.bf16 %v3146_v41, %v3145_v39  ;;  %2380 = vmatprep.mubr.bf16.mxu0 %v6573_v34  ;;  %2892 = vmatprep.mubr.bf16.mxu1 %v6576_v37  ;;  %v2183_v48 = vadd.f32 %v7069_v13, %v2182_v42  ;;  %v6586_v34 = vld [vmem:[%s6714_s30 + $0x7a0] ss:$8 sps:$4 sm:$0xff]   ;;  %v6591_v37 = vld [vmem:[%s6714_s30 + $0x3b4] ss:$8 sps:$4 sm:$0xff]  }
 0x207   : > { %v2184_v46 = vpop.f32.mrf.mxu0  ;;  %v2696_v47 = vpop.f32.mrf.mxu1  ;;  %v2695_v49 = vadd.f32 %v7069_v13, %v2694_v43  ;;  %v6594_v40 = vld [vmem:[%s6714_s30 + $0x7b4] ss:$8 sps:$4 sm:$0xff]  }
 0x208   : > { %6064 = vst [vmem:[%s6892_s9 + $0xf0] sm:$0xff] %v5548_v44   ;;  %6128 = vst [vmem:[%s6892_s9 + $0x2f0] sm:$0xff] %v5868_v45   ;;  %v3019_v61 = vmax.f32 %v2183_v48, 0.0 }
 0x209   : > { %v2185_v50 = vpop.f32.mrf.mxu0  ;;  %v2697_v51 = vpop.f32.mrf.mxu1  ;;  %v3147_v62 = vmax.f32 %v2695_v49, 0.0 }
 0x20a   : > { %v2186_v54 = vadd.f32 %v7069_v13, %v2185_v50  ;;  %v2698_v56 = vadd.f32 %v7069_v13, %v2697_v51 }
 0x20b   : > { %v2187_v58 = vpop.f32.mrf.mxu0  ;;  %v2699_v59 = vpop.f32.mrf.mxu1 }
 0x20c   : > { %v3020_v63 = vmax.f32 %v2186_v54, 0.0  ;;  %v3148_v0 = vmax.f32 %v2698_v56, 0.0  ;;  %v6589_v56 = vld [vmem:[%s6714_s30 + $0x3b0] ss:$8 sps:$4 sm:$0xff]  }
 0x20d   : > { %v2190_v1 = vpop.f32.mrf.mxu0  ;;  %2381 = vmatmul.mubr.bf16.gmra.mxu0 %v6571_v52  ;;  %v2702_v2 = vpop.f32.mrf.mxu1  ;;  %2893 = vmatmul.mubr.bf16.gmra.mxu1 %v6574_v53 }
 0x20e   : > { %v5553_v3 = vpack.c.bf16 %v3020_v63, %v3019_v61  ;;  %v5873_v4 = vpack.c.bf16 %v3148_v0, %v3147_v62  ;;  %2388 = vmatprep.mubr.bf16.mxu0 %v6579_v57  ;;  %2900 = vmatprep.mubr.bf16.mxu1 %v6582_v60  ;;  %v2191_v7 = vadd.f32 %v7069_v13, %v2190_v1  ;;  %v6592_v57 = vld [vmem:[%s6714_s30 + $0x7b0] ss:$8 sps:$4 sm:$0xff]   ;;  %v6597_v60 = vld [vmem:[%s6714_s30 + $0x3c4] ss:$8 sps:$4 sm:$0xff]  }
 0x20f   : > { %v2192_v5 = vpop.f32.mrf.mxu0  ;;  %v2704_v6 = vpop.f32.mrf.mxu1  ;;  %v2703_v8 = vadd.f32 %v7069_v13, %v2702_v2  ;;  %v6600_v63 = vld [vmem:[%s6714_s30 + $0x7c4] ss:$8 sps:$4 sm:$0xff]  }
 0x210   : > { %6065 = vst [vmem:[%s6892_s9 + $0xf8] sm:$0xff] %v5553_v3   ;;  %6129 = vst [vmem:[%s6892_s9 + $0x2f8] sm:$0xff] %v5873_v4   ;;  %v3021_v19 = vmax.f32 %v2191_v7, 0.0 }
 0x211   : > { %v2193_v9 = vpop.f32.mrf.mxu0  ;;  %v2705_v10 = vpop.f32.mrf.mxu1  ;;  %v3149_v20 = vmax.f32 %v2703_v8, 0.0 }
 0x212   : > { %v2194_v12 = vadd.f32 %v7069_v13, %v2193_v9  ;;  %v2706_v14 = vadd.f32 %v7069_v13, %v2705_v10 }
 0x213   : > { %v2195_v16 = vpop.f32.mrf.mxu0  ;;  %v2707_v17 = vpop.f32.mrf.mxu1 }
 0x214   : > { %v3022_v21 = vmax.f32 %v2194_v12, 0.0  ;;  %v3150_v22 = vmax.f32 %v2706_v14, 0.0  ;;  %v6595_v14 = vld [vmem:[%s6714_s30 + $0x3c0] ss:$8 sps:$4 sm:$0xff]  }
 0x215   : > { %v2198_v23 = vpop.f32.mrf.mxu0  ;;  %2389 = vmatmul.mubr.bf16.gmra.mxu0 %v6577_v11  ;;  %v2710_v24 = vpop.f32.mrf.mxu1  ;;  %2901 = vmatmul.mubr.bf16.gmra.mxu1 %v6580_v55 }
 0x216   : > { %v5558_v25 = vpack.c.bf16 %v3022_v21, %v3021_v19  ;;  %v5878_v26 = vpack.c.bf16 %v3150_v22, %v3149_v20  ;;  %2396 = vmatprep.mubr.bf16.mxu0 %v6585_v15  ;;  %2908 = vmatprep.mubr.bf16.mxu1 %v6588_v18  ;;  %v2199_v29 = vadd.f32 %v7069_v13, %v2198_v23  ;;  %v6598_v15 = vld [vmem:[%s6714_s30 + $0x7c0] ss:$8 sps:$4 sm:$0xff]   ;;  %v6603_v18 = vld [vmem:[%s6714_s30 + $0x3d4] ss:$8 sps:$4 sm:$0xff]  }
 0x217   : > { %v2200_v27 = vpop.f32.mrf.mxu0  ;;  %v2712_v28 = vpop.f32.mrf.mxu1  ;;  %v2711_v30 = vadd.f32 %v7069_v13, %v2710_v24  ;;  %v6606_v21 = vld [vmem:[%s6714_s30 + $0x7d4] ss:$8 sps:$4 sm:$0xff]  }
 0x218   : > { %6066 = vst [vmem:[%s6892_s9 + $0x100] sm:$0xff] %v5558_v25   ;;  %6130 = vst [vmem:[%s6892_s9 + $0x300] sm:$0xff] %v5878_v26   ;;  %v3023_v41 = vmax.f32 %v2199_v29, 0.0 }
 0x219   : > { %v2201_v31 = vpop.f32.mrf.mxu0  ;;  %v2713_v32 = vpop.f32.mrf.mxu1  ;;  %v3151_v42 = vmax.f32 %v2711_v30, 0.0 }
 0x21a   : > { %v2202_v35 = vadd.f32 %v7069_v13, %v2201_v31  ;;  %v2714_v36 = vadd.f32 %v7069_v13, %v2713_v32 }
 0x21b   : > { %v2203_v38 = vpop.f32.mrf.mxu0  ;;  %v2715_v39 = vpop.f32.mrf.mxu1 }
 0x21c   : > { %v3024_v43 = vmax.f32 %v2202_v35, 0.0  ;;  %v3152_v44 = vmax.f32 %v2714_v36, 0.0  ;;  %v6601_v36 = vld [vmem:[%s6714_s30 + $0x3d0] ss:$8 sps:$4 sm:$0xff]  }
 0x21d   : > { %v2206_v45 = vpop.f32.mrf.mxu0  ;;  %2397 = vmatmul.mubr.bf16.gmra.mxu0 %v6583_v33  ;;  %v2718_v46 = vpop.f32.mrf.mxu1  ;;  %2909 = vmatmul.mubr.bf16.gmra.mxu1 %v6586_v34 }
 0x21e   : > { %v5563_v47 = vpack.c.bf16 %v3024_v43, %v3023_v41  ;;  %v5883_v48 = vpack.c.bf16 %v3152_v44, %v3151_v42  ;;  %2404 = vmatprep.mubr.bf16.mxu0 %v6591_v37  ;;  %2916 = vmatprep.mubr.bf16.mxu1 %v6594_v40  ;;  %v2207_v51 = vadd.f32 %v7069_v13, %v2206_v45  ;;  %v6604_v37 = vld [vmem:[%s6714_s30 + $0x7d0] ss:$8 sps:$4 sm:$0xff]   ;;  %v6609_v40 = vld [vmem:[%s6714_s30 + $0x3e4] ss:$8 sps:$4 sm:$0xff]  }
 0x21f   : > { %v2208_v49 = vpop.f32.mrf.mxu0  ;;  %v2720_v50 = vpop.f32.mrf.mxu1  ;;  %v2719_v52 = vadd.f32 %v7069_v13, %v2718_v46  ;;  %v6612_v43 = vld [vmem:[%s6714_s30 + $0x7e4] ss:$8 sps:$4 sm:$0xff]  }
 0x220   : > { %6067 = vst [vmem:[%s6892_s9 + $0x108] sm:$0xff] %v5563_v47   ;;  %6131 = vst [vmem:[%s6892_s9 + $0x308] sm:$0xff] %v5883_v48   ;;  %v3025_v0 = vmax.f32 %v2207_v51, 0.0 }
 0x221   : > { %v2209_v53 = vpop.f32.mrf.mxu0  ;;  %v2721_v54 = vpop.f32.mrf.mxu1  ;;  %v3153_v1 = vmax.f32 %v2719_v52, 0.0 }
 0x222   : > { %v2210_v58 = vadd.f32 %v7069_v13, %v2209_v53  ;;  %v2722_v59 = vadd.f32 %v7069_v13, %v2721_v54  ;;  %v7264_v53 = vld [vmem:[%s7440_s2] ss:$0 sm:$0xff] }
 0x223   : > { %v2211_v61 = vpop.f32.mrf.mxu0  ;;  %v2723_v62 = vpop.f32.mrf.mxu1 }
 0x224   : > { %v3026_v2 = vmax.f32 %v2210_v58, 0.0  ;;  %v3154_v3 = vmax.f32 %v2722_v59, 0.0  ;;  %v6607_v59 = vld [vmem:[%s6714_s30 + $0x3e0] ss:$8 sps:$4 sm:$0xff]  }
 0x225   : > { %v2214_v4 = vpop.f32.mrf.mxu0  ;;  %2405 = vmatmul.mubr.bf16.gmra.mxu0 %v6589_v56  ;;  %v2726_v5 = vpop.f32.mrf.mxu1  ;;  %2917 = vmatmul.mubr.bf16.gmra.mxu1 %v6592_v57 }
 0x226   : > { %v5568_v6 = vpack.c.bf16 %v3026_v2, %v3025_v0  ;;  %v5888_v7 = vpack.c.bf16 %v3154_v3, %v3153_v1  ;;  %2412 = vmatprep.mubr.bf16.mxu0 %v6597_v60  ;;  %2924 = vmatprep.mubr.bf16.mxu1 %v6600_v63  ;;  %v2215_v10 = vadd.f32 %v7069_v13, %v2214_v4  ;;  %v6610_v60 = vld [vmem:[%s6714_s30 + $0x7e0] ss:$8 sps:$4 sm:$0xff]   ;;  %v6615_v63 = vld [vmem:[%s6714_s30 + $0x3f4] ss:$8 sps:$4 sm:$0xff]  }
 0x227   : > { %v2216_v8 = vpop.f32.mrf.mxu0  ;;  %v2728_v9 = vpop.f32.mrf.mxu1  ;;  %v2727_v11 = vadd.f32 %v7069_v13, %v2726_v5  ;;  %v6618_v2 = vld [vmem:[%s6714_s30 + $0x7f4] ss:$8 sps:$4 sm:$0xff]  }
 0x228   : > { %6068 = vst [vmem:[%s6892_s9 + $0x110] sm:$0xff] %v5568_v6   ;;  %6132 = vst [vmem:[%s6892_s9 + $0x310] sm:$0xff] %v5888_v7   ;;  %v3027_v22 = vmax.f32 %v2215_v10, 0.0 }
 0x229   : > { %v2217_v55 = vpop.f32.mrf.mxu0  ;;  %v2729_v12 = vpop.f32.mrf.mxu1  ;;  %v3155_v23 = vmax.f32 %v2727_v11, 0.0 }
 0x22a   : > { %v2218_v16 = vadd.f32 %v7069_v13, %v2217_v55  ;;  %v2730_v17 = vadd.f32 %v7069_v13, %v2729_v12 }
 0x22b   : > { %v2219_v19 = vpop.f32.mrf.mxu0  ;;  %v2731_v20 = vpop.f32.mrf.mxu1 }
 0x22c   : > { %v3028_v24 = vmax.f32 %v2218_v16, 0.0  ;;  %v3156_v25 = vmax.f32 %v2730_v17, 0.0  ;;  %v6613_v17 = vld [vmem:[%s6714_s30 + $0x3f0] ss:$8 sps:$4 sm:$0xff]  }
 0x22d   : > { %v2222_v26 = vpop.f32.mrf.mxu0  ;;  %2413 = vmatmul.mubr.bf16.gmra.mxu0 %v6595_v14  ;;  %v2734_v27 = vpop.f32.mrf.mxu1  ;;  %2925 = vmatmul.mubr.bf16.gmra.mxu1 %v6598_v15 }
 0x22e   : > { %v5573_v28 = vpack.c.bf16 %v3028_v24, %v3027_v22  ;;  %v5893_v29 = vpack.c.bf16 %v3156_v25, %v3155_v23  ;;  %2420 = vmatprep.mubr.bf16.mxu0 %v6603_v18  ;;  %2932 = vmatprep.mubr.bf16.mxu1 %v6606_v21  ;;  %v2223_v32 = vadd.f32 %v7069_v13, %v2222_v26  ;;  %v6616_v18 = vld [vmem:[%s6714_s30 + $0x7f0] ss:$8 sps:$4 sm:$0xff]  }
 0x22f   : > { %v2224_v30 = vpop.f32.mrf.mxu0  ;;  %v2736_v31 = vpop.f32.mrf.mxu1  ;;  %v2735_v33 = vadd.f32 %v7069_v13, %v2734_v27 }
 0x230   : > { %6069 = vst [vmem:[%s6892_s9 + $0x118] sm:$0xff] %v5573_v28   ;;  %6133 = vst [vmem:[%s6892_s9 + $0x318] sm:$0xff] %v5893_v29   ;;  %v3029_v44 = vmax.f32 %v2223_v32, 0.0 }
 0x231   : > { %v2225_v34 = vpop.f32.mrf.mxu0  ;;  %v2737_v35 = vpop.f32.mrf.mxu1  ;;  %v3157_v45 = vmax.f32 %v2735_v33, 0.0 }
 0x232   : > { %v2226_v38 = vadd.f32 %v7069_v13, %v2225_v34  ;;  %v2738_v39 = vadd.f32 %v7069_v13, %v2737_v35 }
 0x233   : > { %v2227_v41 = vpop.f32.mrf.mxu0  ;;  %v2739_v42 = vpop.f32.mrf.mxu1 }
 0x234   : > { %v3030_v46 = vmax.f32 %v2226_v38, 0.0  ;;  %v3158_v47 = vmax.f32 %v2738_v39, 0.0 }
 0x235   : > { %v2230_v48 = vpop.f32.mrf.mxu0  ;;  %2421 = vmatmul.mubr.bf16.gmra.mxu0 %v6601_v36  ;;  %v2742_v49 = vpop.f32.mrf.mxu1  ;;  %2933 = vmatmul.mubr.bf16.gmra.mxu1 %v6604_v37 }
 0x236   : > { %v5578_v50 = vpack.c.bf16 %v3030_v46, %v3029_v44  ;;  %v5898_v51 = vpack.c.bf16 %v3158_v47, %v3157_v45  ;;  %2428 = vmatprep.mubr.bf16.mxu0 %v6609_v40  ;;  %2940 = vmatprep.mubr.bf16.mxu1 %v6612_v43  ;;  %v2231_v54 = vadd.f32 %v7264_v53, %v2230_v48 }
 0x237   : > { %v2232_v13 = vpop.f32.mrf.mxu0  ;;  %v2744_v52 = vpop.f32.mrf.mxu1  ;;  %v2743_v56 = vadd.f32 %v7264_v53, %v2742_v49 }
 0x238   : > { %6070 = vst [vmem:[%s6892_s9 + $0x120] sm:$0xff] %v5578_v50   ;;  %6134 = vst [vmem:[%s6892_s9 + $0x320] sm:$0xff] %v5898_v51   ;;  %v3031_v3 = vmax.f32 %v2231_v54, 0.0 }
 0x239   : > { %v2233_v57 = vpop.f32.mrf.mxu0  ;;  %v2745_v58 = vpop.f32.mrf.mxu1  ;;  %v3159_v4 = vmax.f32 %v2743_v56, 0.0 }
 0x23a   : > { %v2234_v61 = vadd.f32 %v7264_v53, %v2233_v57  ;;  %v2746_v62 = vadd.f32 %v7264_v53, %v2745_v58 }
 0x23b   : > { %v2235_v0 = vpop.f32.mrf.mxu0  ;;  %v2747_v1 = vpop.f32.mrf.mxu1 }
 0x23c   : > { %v3032_v5 = vmax.f32 %v2234_v61, 0.0  ;;  %v3160_v6 = vmax.f32 %v2746_v62, 0.0 }
 0x23d   : > { %v2238_v7 = vpop.f32.mrf.mxu0  ;;  %2429 = vmatmul.mubr.bf16.gmra.mxu0 %v6607_v59  ;;  %v2750_v8 = vpop.f32.mrf.mxu1  ;;  %2941 = vmatmul.mubr.bf16.gmra.mxu1 %v6610_v60 }
 0x23e   : > { %v5583_v9 = vpack.c.bf16 %v3032_v5, %v3031_v3  ;;  %v5903_v10 = vpack.c.bf16 %v3160_v6, %v3159_v4  ;;  %2436 = vmatprep.mubr.bf16.mxu0 %v6615_v63  ;;  %2948 = vmatprep.mubr.bf16.mxu1 %v6618_v2  ;;  %v2239_v12 = vadd.f32 %v7264_v53, %v2238_v7 }
 0x23f   : > { %v2240_v11 = vpop.f32.mrf.mxu0  ;;  %v2752_v55 = vpop.f32.mrf.mxu1  ;;  %v2751_v14 = vadd.f32 %v7264_v53, %v2750_v8 }
 0x240   : > { %6071 = vst [vmem:[%s6892_s9 + $0x128] sm:$0xff] %v5583_v9   ;;  %6135 = vst [vmem:[%s6892_s9 + $0x328] sm:$0xff] %v5903_v10   ;;  %v3033_v23 = vmax.f32 %v2239_v12, 0.0 }
 0x241   : > { %v2241_v15 = vpop.f32.mrf.mxu0  ;;  %v2753_v16 = vpop.f32.mrf.mxu1  ;;  %v3161_v24 = vmax.f32 %v2751_v14, 0.0 }
 0x242   : > { %v2242_v19 = vadd.f32 %v7264_v53, %v2241_v15  ;;  %v2754_v20 = vadd.f32 %v7264_v53, %v2753_v16 }
 0x243   : > { %v2243_v21 = vpop.f32.mrf.mxu0  ;;  %v2755_v22 = vpop.f32.mrf.mxu1 }
 0x244   : > { %v3034_v25 = vmax.f32 %v2242_v19, 0.0  ;;  %v3162_v26 = vmax.f32 %v2754_v20, 0.0 }
 0x245   : > { %v2246_v27 = vpop.f32.mrf.mxu0  ;;  %2437 = vmatmul.mubr.bf16.gmra.mxu0 %v6613_v17  ;;  %v2758_v28 = vpop.f32.mrf.mxu1  ;;  %2949 = vmatmul.mubr.bf16.gmra.mxu1 %v6616_v18 }
 0x246   : > { %v5588_v29 = vpack.c.bf16 %v3034_v25, %v3033_v23  ;;  %v5908_v30 = vpack.c.bf16 %v3162_v26, %v3161_v24  ;;  %v2247_v33 = vadd.f32 %v7264_v53, %v2246_v27  ;;  %v2759_v34 = vadd.f32 %v7264_v53, %v2758_v28 }
 0x247   : > { %v2248_v31 = vpop.f32.mrf.mxu0  ;;  %v2760_v32 = vpop.f32.mrf.mxu1 }
 0x248   : > { %6072 = vst [vmem:[%s6892_s9 + $0x130] sm:$0xff] %v5588_v29   ;;  %6136 = vst [vmem:[%s6892_s9 + $0x330] sm:$0xff] %v5908_v30   ;;  %v3035_v41 = vmax.f32 %v2247_v33, 0.0  ;;  %v3163_v42 = vmax.f32 %v2759_v34, 0.0 }
 0x249   : > { %v2249_v35 = vpop.f32.mrf.mxu0  ;;  %v2761_v36 = vpop.f32.mrf.mxu1 }
 0x24a   : > { %v2250_v37 = vadd.f32 %v7264_v53, %v2249_v35  ;;  %v2762_v38 = vadd.f32 %v7264_v53, %v2761_v36 }
 0x24b   : > { %v2251_v39 = vpop.f32.mrf.mxu0  ;;  %v2763_v40 = vpop.f32.mrf.mxu1 }
 0x24c   : > { %v3036_v43 = vmax.f32 %v2250_v37, 0.0  ;;  %v3164_v44 = vmax.f32 %v2762_v38, 0.0 }
 0x24d   : > { %v2254_v45 = vpop.f32.mrf.mxu0  ;;  %v2766_v46 = vpop.f32.mrf.mxu1 }
 0x24e   : > { %v5593_v47 = vpack.c.bf16 %v3036_v43, %v3035_v41  ;;  %v5913_v48 = vpack.c.bf16 %v3164_v44, %v3163_v42  ;;  %v2255_v51 = vadd.f32 %v7264_v53, %v2254_v45  ;;  %v2767_v13 = vadd.f32 %v7264_v53, %v2766_v46 }
 0x24f   : > { %v2256_v49 = vpop.f32.mrf.mxu0  ;;  %v2768_v50 = vpop.f32.mrf.mxu1 }
 0x250   : > { %6073 = vst [vmem:[%s6892_s9 + $0x138] sm:$0xff] %v5593_v47   ;;  %6137 = vst [vmem:[%s6892_s9 + $0x338] sm:$0xff] %v5913_v48   ;;  %v3037_v60 = vmax.f32 %v2255_v51, 0.0  ;;  %v3165_v61 = vmax.f32 %v2767_v13, 0.0 }
 0x251   : > { %v2257_v52 = vpop.f32.mrf.mxu0  ;;  %v2769_v54 = vpop.f32.mrf.mxu1 }
 0x252   : > { %v2258_v56 = vadd.f32 %v7264_v53, %v2257_v52  ;;  %v2770_v57 = vadd.f32 %v7264_v53, %v2769_v54 }
 0x253   : > { %v2259_v58 = vpop.f32.mrf.mxu0  ;;  %v2771_v59 = vpop.f32.mrf.mxu1 }
 0x254   : > { %v3038_v62 = vmax.f32 %v2258_v56, 0.0  ;;  %v3166_v63 = vmax.f32 %v2770_v57, 0.0 }
 0x255   : > { %v2262_v0 = vpop.f32.mrf.mxu0  ;;  %v2774_v1 = vpop.f32.mrf.mxu1 }
 0x256   : > { %v5598_v2 = vpack.c.bf16 %v3038_v62, %v3037_v60  ;;  %v5918_v3 = vpack.c.bf16 %v3166_v63, %v3165_v61  ;;  %v2263_v6 = vadd.f32 %v7264_v53, %v2262_v0  ;;  %v2775_v7 = vadd.f32 %v7264_v53, %v2774_v1 }
 0x257   : > { %v2264_v4 = vpop.f32.mrf.mxu0  ;;  %v2776_v5 = vpop.f32.mrf.mxu1 }
 0x258   : > { %6074 = vst [vmem:[%s6892_s9 + $0x140] sm:$0xff] %v5598_v2   ;;  %6138 = vst [vmem:[%s6892_s9 + $0x340] sm:$0xff] %v5918_v3   ;;  %v3039_v14 = vmax.f32 %v2263_v6, 0.0  ;;  %v3167_v15 = vmax.f32 %v2775_v7, 0.0 }
 0x259   : > { %v2265_v8 = vpop.f32.mrf.mxu0  ;;  %v2777_v9 = vpop.f32.mrf.mxu1 }
 0x25a   : > { %v2266_v10 = vadd.f32 %v7264_v53, %v2265_v8  ;;  %v2778_v11 = vadd.f32 %v7264_v53, %v2777_v9 }
 0x25b   : > { %v2267_v55 = vpop.f32.mrf.mxu0  ;;  %v2779_v12 = vpop.f32.mrf.mxu1 }
 0x25c   : > { %v3040_v16 = vmax.f32 %v2266_v10, 0.0  ;;  %v3168_v17 = vmax.f32 %v2778_v11, 0.0 }
 0x25d   : > { %v2270_v18 = vpop.f32.mrf.mxu0  ;;  %v2782_v19 = vpop.f32.mrf.mxu1 }
 0x25e   : > { %v5603_v20 = vpack.c.bf16 %v3040_v16, %v3039_v14  ;;  %v5923_v21 = vpack.c.bf16 %v3168_v17, %v3167_v15  ;;  %v2271_v24 = vadd.f32 %v7264_v53, %v2270_v18  ;;  %v2783_v25 = vadd.f32 %v7264_v53, %v2782_v19 }
 0x25f   : > { %v2272_v22 = vpop.f32.mrf.mxu0  ;;  %v2784_v23 = vpop.f32.mrf.mxu1 }
 0x260   : > { %6075 = vst [vmem:[%s6892_s9 + $0x148] sm:$0xff] %v5603_v20   ;;  %6139 = vst [vmem:[%s6892_s9 + $0x348] sm:$0xff] %v5923_v21   ;;  %v3041_v32 = vmax.f32 %v2271_v24, 0.0  ;;  %v3169_v33 = vmax.f32 %v2783_v25, 0.0 }
 0x261   : > { %v2273_v26 = vpop.f32.mrf.mxu0  ;;  %v2785_v27 = vpop.f32.mrf.mxu1 }
 0x262   : > { %v2274_v28 = vadd.f32 %v7264_v53, %v2273_v26  ;;  %v2786_v29 = vadd.f32 %v7264_v53, %v2785_v27 }
 0x263   : > { %v2275_v30 = vpop.f32.mrf.mxu0  ;;  %v2787_v31 = vpop.f32.mrf.mxu1 }
 0x264   : > { %v3042_v34 = vmax.f32 %v2274_v28, 0.0  ;;  %v3170_v35 = vmax.f32 %v2786_v29, 0.0 }
 0x265   : > { %v2278_v36 = vpop.f32.mrf.mxu0  ;;  %v2790_v37 = vpop.f32.mrf.mxu1 }
 0x266   : > { %v5608_v38 = vpack.c.bf16 %v3042_v34, %v3041_v32  ;;  %v5928_v39 = vpack.c.bf16 %v3170_v35, %v3169_v33  ;;  %v2279_v42 = vadd.f32 %v7264_v53, %v2278_v36  ;;  %v2791_v43 = vadd.f32 %v7264_v53, %v2790_v37 }
 0x267   : > { %v2280_v40 = vpop.f32.mrf.mxu0  ;;  %v2792_v41 = vpop.f32.mrf.mxu1 }
 0x268   : > { %6076 = vst [vmem:[%s6892_s9 + $0x150] sm:$0xff] %v5608_v38   ;;  %6140 = vst [vmem:[%s6892_s9 + $0x350] sm:$0xff] %v5928_v39   ;;  %v3043_v50 = vmax.f32 %v2279_v42, 0.0  ;;  %v3171_v51 = vmax.f32 %v2791_v43, 0.0 }
 0x269   : > { %v2281_v44 = vpop.f32.mrf.mxu0  ;;  %v2793_v45 = vpop.f32.mrf.mxu1 }
 0x26a   : > { %v2282_v46 = vadd.f32 %v7264_v53, %v2281_v44  ;;  %v2794_v47 = vadd.f32 %v7264_v53, %v2793_v45 }
 0x26b   : > { %v2283_v48 = vpop.f32.mrf.mxu0  ;;  %v2795_v49 = vpop.f32.mrf.mxu1 }
 0x26c   : > { %v3044_v13 = vmax.f32 %v2282_v46, 0.0  ;;  %v3172_v52 = vmax.f32 %v2794_v47, 0.0 }
 0x26d   : > { %v2286_v54 = vpop.f32.mrf.mxu0  ;;  %v2798_v56 = vpop.f32.mrf.mxu1 }
 0x26e   : > { %v5613_v57 = vpack.c.bf16 %v3044_v13, %v3043_v50  ;;  %v5933_v58 = vpack.c.bf16 %v3172_v52, %v3171_v51  ;;  %v2287_v61 = vadd.f32 %v7264_v53, %v2286_v54  ;;  %v2799_v62 = vadd.f32 %v7264_v53, %v2798_v56 }
 0x26f   : > { %v2288_v59 = vpop.f32.mrf.mxu0  ;;  %v2800_v60 = vpop.f32.mrf.mxu1 }
 0x270   : > { %6077 = vst [vmem:[%s6892_s9 + $0x158] sm:$0xff] %v5613_v57   ;;  %6141 = vst [vmem:[%s6892_s9 + $0x358] sm:$0xff] %v5933_v58   ;;  %v3045_v5 = vmax.f32 %v2287_v61, 0.0  ;;  %v3173_v6 = vmax.f32 %v2799_v62, 0.0 }
 0x271   : > { %v2289_v63 = vpop.f32.mrf.mxu0  ;;  %v2801_v0 = vpop.f32.mrf.mxu1 }
 0x272   : > { %v2290_v1 = vadd.f32 %v7264_v53, %v2289_v63  ;;  %v2802_v2 = vadd.f32 %v7264_v53, %v2801_v0 }
 0x273   : > { %v2291_v3 = vpop.f32.mrf.mxu0  ;;  %v2803_v4 = vpop.f32.mrf.mxu1 }
 0x274   : > { %v3046_v7 = vmax.f32 %v2290_v1, 0.0  ;;  %v3174_v8 = vmax.f32 %v2802_v2, 0.0 }
 0x275   : > { %v2294_v9 = vpop.f32.mrf.mxu0  ;;  %v2806_v10 = vpop.f32.mrf.mxu1 }
 0x276   : > { %v5618_v11 = vpack.c.bf16 %v3046_v7, %v3045_v5  ;;  %v5938_v55 = vpack.c.bf16 %v3174_v8, %v3173_v6  ;;  %v2295_v15 = vadd.f32 %v7264_v53, %v2294_v9  ;;  %v2807_v16 = vadd.f32 %v7264_v53, %v2806_v10 }
 0x277   : > { %v2296_v12 = vpop.f32.mrf.mxu0  ;;  %v2808_v14 = vpop.f32.mrf.mxu1 }
 0x278   : > { %6078 = vst [vmem:[%s6892_s9 + $0x160] sm:$0xff] %v5618_v11   ;;  %6142 = vst [vmem:[%s6892_s9 + $0x360] sm:$0xff] %v5938_v55   ;;  %v3047_v23 = vmax.f32 %v2295_v15, 0.0  ;;  %v3175_v24 = vmax.f32 %v2807_v16, 0.0 }
 0x279   : > { %v2297_v17 = vpop.f32.mrf.mxu0  ;;  %v2809_v18 = vpop.f32.mrf.mxu1 }
 0x27a   : > { %v2298_v19 = vadd.f32 %v7264_v53, %v2297_v17  ;;  %v2810_v20 = vadd.f32 %v7264_v53, %v2809_v18 }
 0x27b   : > { %v2299_v21 = vpop.f32.mrf.mxu0  ;;  %v2811_v22 = vpop.f32.mrf.mxu1 }
 0x27c   : > { %v3048_v25 = vmax.f32 %v2298_v19, 0.0  ;;  %v3176_v26 = vmax.f32 %v2810_v20, 0.0 }
 0x27d   : > { %v2302_v27 = vpop.f32.mrf.mxu0  ;;  %v2814_v28 = vpop.f32.mrf.mxu1 }
 0x27e   : > { %v5623_v29 = vpack.c.bf16 %v3048_v25, %v3047_v23  ;;  %v5943_v30 = vpack.c.bf16 %v3176_v26, %v3175_v24  ;;  %v2303_v33 = vadd.f32 %v7264_v53, %v2302_v27  ;;  %v2815_v34 = vadd.f32 %v7264_v53, %v2814_v28 }
 0x27f   : > { %v2304_v31 = vpop.f32.mrf.mxu0  ;;  %v2816_v32 = vpop.f32.mrf.mxu1 }
 0x280   : > { %6079 = vst [vmem:[%s6892_s9 + $0x168] sm:$0xff] %v5623_v29   ;;  %6143 = vst [vmem:[%s6892_s9 + $0x368] sm:$0xff] %v5943_v30   ;;  %v3049_v41 = vmax.f32 %v2303_v33, 0.0  ;;  %v3177_v42 = vmax.f32 %v2815_v34, 0.0 }
 0x281   : > { %v2305_v35 = vpop.f32.mrf.mxu0  ;;  %v2817_v36 = vpop.f32.mrf.mxu1 }
 0x282   : > { %v2306_v37 = vadd.f32 %v7264_v53, %v2305_v35  ;;  %v2818_v38 = vadd.f32 %v7264_v53, %v2817_v36 }
 0x283   : > { %v2307_v39 = vpop.f32.mrf.mxu0  ;;  %v2819_v40 = vpop.f32.mrf.mxu1 }
 0x284   : > { %v3050_v43 = vmax.f32 %v2306_v37, 0.0  ;;  %v3178_v44 = vmax.f32 %v2818_v38, 0.0 }
 0x285   : > { %v2310_v45 = vpop.f32.mrf.mxu0  ;;  %v2822_v46 = vpop.f32.mrf.mxu1 }
 0x286   : > { %v5628_v47 = vpack.c.bf16 %v3050_v43, %v3049_v41  ;;  %v5948_v48 = vpack.c.bf16 %v3178_v44, %v3177_v42  ;;  %v2311_v51 = vadd.f32 %v7264_v53, %v2310_v45  ;;  %v2823_v13 = vadd.f32 %v7264_v53, %v2822_v46 }
 0x287   : > { %v2312_v49 = vpop.f32.mrf.mxu0  ;;  %v2824_v50 = vpop.f32.mrf.mxu1 }
 0x288   : > { %6080 = vst [vmem:[%s6892_s9 + $0x170] sm:$0xff] %v5628_v47   ;;  %6144 = vst [vmem:[%s6892_s9 + $0x370] sm:$0xff] %v5948_v48   ;;  %v3051_v60 = vmax.f32 %v2311_v51, 0.0  ;;  %v3179_v61 = vmax.f32 %v2823_v13, 0.0 }
 0x289   : > { %v2313_v52 = vpop.f32.mrf.mxu0  ;;  %v2825_v54 = vpop.f32.mrf.mxu1 }
 0x28a   : > { %v2314_v56 = vadd.f32 %v7264_v53, %v2313_v52  ;;  %v2826_v57 = vadd.f32 %v7264_v53, %v2825_v54 }
 0x28b   : > { %v2315_v58 = vpop.f32.mrf.mxu0  ;;  %v2827_v59 = vpop.f32.mrf.mxu1 }
 0x28c   : > { %v3052_v62 = vmax.f32 %v2314_v56, 0.0  ;;  %v3180_v63 = vmax.f32 %v2826_v57, 0.0 }
 0x28d   : > { %v2318_v0 = vpop.f32.mrf.mxu0  ;;  %v2830_v1 = vpop.f32.mrf.mxu1 }
 0x28e   : > { %v5633_v2 = vpack.c.bf16 %v3052_v62, %v3051_v60  ;;  %v5953_v3 = vpack.c.bf16 %v3180_v63, %v3179_v61  ;;  %v2319_v6 = vadd.f32 %v7264_v53, %v2318_v0  ;;  %v2831_v7 = vadd.f32 %v7264_v53, %v2830_v1 }
 0x28f   : > { %v2320_v4 = vpop.f32.mrf.mxu0  ;;  %v2832_v5 = vpop.f32.mrf.mxu1 }
 0x290   : > { %6081 = vst [vmem:[%s6892_s9 + $0x178] sm:$0xff] %v5633_v2   ;;  %6145 = vst [vmem:[%s6892_s9 + $0x378] sm:$0xff] %v5953_v3   ;;  %v3053_v14 = vmax.f32 %v2319_v6, 0.0  ;;  %v3181_v15 = vmax.f32 %v2831_v7, 0.0 }
 0x291   : > { %v2321_v8 = vpop.f32.mrf.mxu0  ;;  %v2833_v9 = vpop.f32.mrf.mxu1 }
 0x292   : > { %v2322_v10 = vadd.f32 %v7264_v53, %v2321_v8  ;;  %v2834_v11 = vadd.f32 %v7264_v53, %v2833_v9 }
 0x293   : > { %v2323_v55 = vpop.f32.mrf.mxu0  ;;  %v2835_v12 = vpop.f32.mrf.mxu1 }
 0x294   : > { %v3054_v16 = vmax.f32 %v2322_v10, 0.0  ;;  %v3182_v17 = vmax.f32 %v2834_v11, 0.0 }
 0x295   : > { %v2326_v18 = vpop.f32.mrf.mxu0  ;;  %v2838_v19 = vpop.f32.mrf.mxu1 }
 0x296   : > { %v5638_v20 = vpack.c.bf16 %v3054_v16, %v3053_v14  ;;  %v5958_v21 = vpack.c.bf16 %v3182_v17, %v3181_v15  ;;  %v2327_v24 = vadd.f32 %v7264_v53, %v2326_v18  ;;  %v2839_v25 = vadd.f32 %v7264_v53, %v2838_v19 }
 0x297   : > { %v2328_v22 = vpop.f32.mrf.mxu0  ;;  %v2840_v23 = vpop.f32.mrf.mxu1 }
 0x298   : > { %6082 = vst [vmem:[%s6892_s9 + $0x180] sm:$0xff] %v5638_v20   ;;  %6146 = vst [vmem:[%s6892_s9 + $0x380] sm:$0xff] %v5958_v21   ;;  %v3055_v32 = vmax.f32 %v2327_v24, 0.0  ;;  %v3183_v33 = vmax.f32 %v2839_v25, 0.0 }
 0x299   : > { %v2329_v26 = vpop.f32.mrf.mxu0  ;;  %v2841_v27 = vpop.f32.mrf.mxu1 }
 0x29a   : > { %v2330_v28 = vadd.f32 %v7264_v53, %v2329_v26  ;;  %v2842_v29 = vadd.f32 %v7264_v53, %v2841_v27 }
 0x29b   : > { %v2331_v30 = vpop.f32.mrf.mxu0  ;;  %v2843_v31 = vpop.f32.mrf.mxu1 }
 0x29c   : > { %v3056_v34 = vmax.f32 %v2330_v28, 0.0  ;;  %v3184_v35 = vmax.f32 %v2842_v29, 0.0 }
 0x29d   : > { %v2334_v36 = vpop.f32.mrf.mxu0  ;;  %v2846_v37 = vpop.f32.mrf.mxu1 }
 0x29e   : > { %v5643_v38 = vpack.c.bf16 %v3056_v34, %v3055_v32  ;;  %v5963_v39 = vpack.c.bf16 %v3184_v35, %v3183_v33  ;;  %v2335_v42 = vadd.f32 %v7264_v53, %v2334_v36  ;;  %v2847_v43 = vadd.f32 %v7264_v53, %v2846_v37 }
 0x29f   : > { %v2336_v40 = vpop.f32.mrf.mxu0  ;;  %v2848_v41 = vpop.f32.mrf.mxu1 }
 0x2a0   : > { %6083 = vst [vmem:[%s6892_s9 + $0x188] sm:$0xff] %v5643_v38   ;;  %6147 = vst [vmem:[%s6892_s9 + $0x388] sm:$0xff] %v5963_v39   ;;  %v3057_v50 = vmax.f32 %v2335_v42, 0.0  ;;  %v3185_v51 = vmax.f32 %v2847_v43, 0.0 }
 0x2a1   : > { %v2337_v44 = vpop.f32.mrf.mxu0  ;;  %v2849_v45 = vpop.f32.mrf.mxu1 }
 0x2a2   : > { %v2338_v46 = vadd.f32 %v7264_v53, %v2337_v44  ;;  %v2850_v47 = vadd.f32 %v7264_v53, %v2849_v45 }
 0x2a3   : > { %v2339_v48 = vpop.f32.mrf.mxu0  ;;  %v2851_v49 = vpop.f32.mrf.mxu1 }
 0x2a4   : > { %v3058_v13 = vmax.f32 %v2338_v46, 0.0  ;;  %v3186_v52 = vmax.f32 %v2850_v47, 0.0 }
 0x2a5   : > { %v2342_v54 = vpop.f32.mrf.mxu0  ;;  %v2854_v56 = vpop.f32.mrf.mxu1 }
 0x2a6   : > { %v5648_v57 = vpack.c.bf16 %v3058_v13, %v3057_v50  ;;  %v5968_v58 = vpack.c.bf16 %v3186_v52, %v3185_v51  ;;  %v2343_v61 = vadd.f32 %v7264_v53, %v2342_v54  ;;  %v2855_v62 = vadd.f32 %v7264_v53, %v2854_v56 }
 0x2a7   : > { %v2344_v59 = vpop.f32.mrf.mxu0  ;;  %v2856_v60 = vpop.f32.mrf.mxu1 }
 0x2a8   : > { %6084 = vst [vmem:[%s6892_s9 + $0x190] sm:$0xff] %v5648_v57   ;;  %6148 = vst [vmem:[%s6892_s9 + $0x390] sm:$0xff] %v5968_v58   ;;  %v3059_v5 = vmax.f32 %v2343_v61, 0.0  ;;  %v3187_v6 = vmax.f32 %v2855_v62, 0.0 }
 0x2a9   : > { %v2345_v63 = vpop.f32.mrf.mxu0  ;;  %v2857_v0 = vpop.f32.mrf.mxu1 }
 0x2aa   : > { %v2346_v1 = vadd.f32 %v7264_v53, %v2345_v63  ;;  %v2858_v2 = vadd.f32 %v7264_v53, %v2857_v0 }
 0x2ab   : > { %v2347_v3 = vpop.f32.mrf.mxu0  ;;  %v2859_v4 = vpop.f32.mrf.mxu1 }
 0x2ac   : > { %v3060_v7 = vmax.f32 %v2346_v1, 0.0  ;;  %v3188_v8 = vmax.f32 %v2858_v2, 0.0 }
 0x2ad   : > { %v2350_v9 = vpop.f32.mrf.mxu0  ;;  %v2862_v10 = vpop.f32.mrf.mxu1 }
 0x2ae   : > { %v5653_v11 = vpack.c.bf16 %v3060_v7, %v3059_v5  ;;  %v5973_v55 = vpack.c.bf16 %v3188_v8, %v3187_v6  ;;  %v2351_v15 = vadd.f32 %v7264_v53, %v2350_v9  ;;  %v2863_v16 = vadd.f32 %v7264_v53, %v2862_v10 }
 0x2af   : > { %v2352_v12 = vpop.f32.mrf.mxu0  ;;  %v2864_v14 = vpop.f32.mrf.mxu1 }
 0x2b0   : > { %6085 = vst [vmem:[%s6892_s9 + $0x198] sm:$0xff] %v5653_v11   ;;  %6149 = vst [vmem:[%s6892_s9 + $0x398] sm:$0xff] %v5973_v55   ;;  %v3061_v23 = vmax.f32 %v2351_v15, 0.0  ;;  %v3189_v24 = vmax.f32 %v2863_v16, 0.0 }
 0x2b1   : > { %v2353_v17 = vpop.f32.mrf.mxu0  ;;  %v2865_v18 = vpop.f32.mrf.mxu1 }
 0x2b2   : > { %v2354_v19 = vadd.f32 %v7264_v53, %v2353_v17  ;;  %v2866_v20 = vadd.f32 %v7264_v53, %v2865_v18 }
 0x2b3   : > { %v2355_v21 = vpop.f32.mrf.mxu0  ;;  %v2867_v22 = vpop.f32.mrf.mxu1 }
 0x2b4   : > { %v3062_v25 = vmax.f32 %v2354_v19, 0.0  ;;  %v3190_v26 = vmax.f32 %v2866_v20, 0.0 }
 0x2b5   : > { %v2358_v27 = vpop.f32.mrf.mxu0  ;;  %v2870_v28 = vpop.f32.mrf.mxu1 }
 0x2b6   : > { %v5658_v29 = vpack.c.bf16 %v3062_v25, %v3061_v23  ;;  %v5978_v30 = vpack.c.bf16 %v3190_v26, %v3189_v24  ;;  %v2359_v33 = vadd.f32 %v7264_v53, %v2358_v27  ;;  %v2871_v34 = vadd.f32 %v7264_v53, %v2870_v28 }
 0x2b7   : > { %v2360_v31 = vpop.f32.mrf.mxu0  ;;  %v2872_v32 = vpop.f32.mrf.mxu1 }
 0x2b8   : > { %6086 = vst [vmem:[%s6892_s9 + $0x1a0] sm:$0xff] %v5658_v29   ;;  %6150 = vst [vmem:[%s6892_s9 + $0x3a0] sm:$0xff] %v5978_v30   ;;  %v3063_v41 = vmax.f32 %v2359_v33, 0.0  ;;  %v3191_v42 = vmax.f32 %v2871_v34, 0.0 }
 0x2b9   : > { %v2361_v35 = vpop.f32.mrf.mxu0  ;;  %v2873_v36 = vpop.f32.mrf.mxu1 }
 0x2ba   : > { %v2362_v37 = vadd.f32 %v7264_v53, %v2361_v35  ;;  %v2874_v38 = vadd.f32 %v7264_v53, %v2873_v36 }
 0x2bb   : > { %v2363_v39 = vpop.f32.mrf.mxu0  ;;  %v2875_v40 = vpop.f32.mrf.mxu1 }
 0x2bc   : > { %v3064_v43 = vmax.f32 %v2362_v37, 0.0  ;;  %v3192_v44 = vmax.f32 %v2874_v38, 0.0 }
 0x2bd   : > { %v2366_v45 = vpop.f32.mrf.mxu0  ;;  %v2878_v46 = vpop.f32.mrf.mxu1 }
 0x2be   : > { %v5663_v47 = vpack.c.bf16 %v3064_v43, %v3063_v41  ;;  %v5983_v48 = vpack.c.bf16 %v3192_v44, %v3191_v42  ;;  %v2367_v51 = vadd.f32 %v7264_v53, %v2366_v45  ;;  %v2879_v13 = vadd.f32 %v7264_v53, %v2878_v46 }
 0x2bf   : > { %v2368_v49 = vpop.f32.mrf.mxu0  ;;  %v2880_v50 = vpop.f32.mrf.mxu1 }
 0x2c0   : > { %6087 = vst [vmem:[%s6892_s9 + $0x1a8] sm:$0xff] %v5663_v47   ;;  %6151 = vst [vmem:[%s6892_s9 + $0x3a8] sm:$0xff] %v5983_v48   ;;  %v3065_v60 = vmax.f32 %v2367_v51, 0.0  ;;  %v3193_v61 = vmax.f32 %v2879_v13, 0.0 }
 0x2c1   : > { %v2369_v52 = vpop.f32.mrf.mxu0  ;;  %v2881_v54 = vpop.f32.mrf.mxu1 }
 0x2c2   : > { %v2370_v56 = vadd.f32 %v7264_v53, %v2369_v52  ;;  %v2882_v57 = vadd.f32 %v7264_v53, %v2881_v54 }
 0x2c3   : > { %v2371_v58 = vpop.f32.mrf.mxu0  ;;  %v2883_v59 = vpop.f32.mrf.mxu1 }
 0x2c4   : > { %v3066_v62 = vmax.f32 %v2370_v56, 0.0  ;;  %v3194_v63 = vmax.f32 %v2882_v57, 0.0 }
 0x2c5   : > { %v2374_v0 = vpop.f32.mrf.mxu0  ;;  %v2886_v1 = vpop.f32.mrf.mxu1 }
 0x2c6   : > { %v5668_v2 = vpack.c.bf16 %v3066_v62, %v3065_v60  ;;  %v5988_v3 = vpack.c.bf16 %v3194_v63, %v3193_v61  ;;  %v2375_v6 = vadd.f32 %v7264_v53, %v2374_v0  ;;  %v2887_v7 = vadd.f32 %v7264_v53, %v2886_v1 }
 0x2c7   : > { %v2376_v4 = vpop.f32.mrf.mxu0  ;;  %v2888_v5 = vpop.f32.mrf.mxu1 }
 0x2c8   : > { %6088 = vst [vmem:[%s6892_s9 + $0x1b0] sm:$0xff] %v5668_v2   ;;  %6152 = vst [vmem:[%s6892_s9 + $0x3b0] sm:$0xff] %v5988_v3   ;;  %v3067_v14 = vmax.f32 %v2375_v6, 0.0  ;;  %v3195_v15 = vmax.f32 %v2887_v7, 0.0 }
 0x2c9   : > { %v2377_v8 = vpop.f32.mrf.mxu0  ;;  %v2889_v9 = vpop.f32.mrf.mxu1 }
 0x2ca   : > { %v2378_v10 = vadd.f32 %v7264_v53, %v2377_v8  ;;  %v2890_v11 = vadd.f32 %v7264_v53, %v2889_v9 }
 0x2cb   : > { %v2379_v55 = vpop.f32.mrf.mxu0  ;;  %v2891_v12 = vpop.f32.mrf.mxu1 }
 0x2cc   : > { %v3068_v16 = vmax.f32 %v2378_v10, 0.0  ;;  %v3196_v17 = vmax.f32 %v2890_v11, 0.0 }
 0x2cd   : > { %v2382_v18 = vpop.f32.mrf.mxu0  ;;  %v2894_v19 = vpop.f32.mrf.mxu1 }
 0x2ce   : > { %v5673_v20 = vpack.c.bf16 %v3068_v16, %v3067_v14  ;;  %v5993_v21 = vpack.c.bf16 %v3196_v17, %v3195_v15  ;;  %v2383_v24 = vadd.f32 %v7264_v53, %v2382_v18  ;;  %v2895_v25 = vadd.f32 %v7264_v53, %v2894_v19 }
 0x2cf   : > { %v2384_v22 = vpop.f32.mrf.mxu0  ;;  %v2896_v23 = vpop.f32.mrf.mxu1 }
 0x2d0   : > { %6089 = vst [vmem:[%s6892_s9 + $0x1b8] sm:$0xff] %v5673_v20   ;;  %6153 = vst [vmem:[%s6892_s9 + $0x3b8] sm:$0xff] %v5993_v21   ;;  %v3069_v32 = vmax.f32 %v2383_v24, 0.0  ;;  %v3197_v33 = vmax.f32 %v2895_v25, 0.0 }
 0x2d1   : > { %v2385_v26 = vpop.f32.mrf.mxu0  ;;  %v2897_v27 = vpop.f32.mrf.mxu1 }
 0x2d2   : > { %v2386_v28 = vadd.f32 %v7264_v53, %v2385_v26  ;;  %v2898_v29 = vadd.f32 %v7264_v53, %v2897_v27 }
 0x2d3   : > { %v2387_v30 = vpop.f32.mrf.mxu0  ;;  %v2899_v31 = vpop.f32.mrf.mxu1 }
 0x2d4   : > { %v3070_v34 = vmax.f32 %v2386_v28, 0.0  ;;  %v3198_v35 = vmax.f32 %v2898_v29, 0.0 }
 0x2d5   : > { %v2390_v36 = vpop.f32.mrf.mxu0  ;;  %v2902_v37 = vpop.f32.mrf.mxu1 }
 0x2d6   : > { %v5678_v38 = vpack.c.bf16 %v3070_v34, %v3069_v32  ;;  %v5998_v39 = vpack.c.bf16 %v3198_v35, %v3197_v33  ;;  %v2391_v42 = vadd.f32 %v7264_v53, %v2390_v36  ;;  %v2903_v43 = vadd.f32 %v7264_v53, %v2902_v37 }
 0x2d7   : > { %v2392_v40 = vpop.f32.mrf.mxu0  ;;  %v2904_v41 = vpop.f32.mrf.mxu1 }
 0x2d8   : > { %6090 = vst [vmem:[%s6892_s9 + $0x1c0] sm:$0xff] %v5678_v38   ;;  %6154 = vst [vmem:[%s6892_s9 + $0x3c0] sm:$0xff] %v5998_v39   ;;  %v3071_v50 = vmax.f32 %v2391_v42, 0.0  ;;  %v3199_v51 = vmax.f32 %v2903_v43, 0.0 }
 0x2d9   : > { %v2393_v44 = vpop.f32.mrf.mxu0  ;;  %v2905_v45 = vpop.f32.mrf.mxu1 }
 0x2da   : > { %v2394_v46 = vadd.f32 %v7264_v53, %v2393_v44  ;;  %v2906_v47 = vadd.f32 %v7264_v53, %v2905_v45 }
 0x2db   : > { %v2395_v48 = vpop.f32.mrf.mxu0  ;;  %v2907_v49 = vpop.f32.mrf.mxu1 }
 0x2dc   : > { %v3072_v13 = vmax.f32 %v2394_v46, 0.0  ;;  %v3200_v52 = vmax.f32 %v2906_v47, 0.0 }
 0x2dd   : > { %v2398_v54 = vpop.f32.mrf.mxu0  ;;  %v2910_v56 = vpop.f32.mrf.mxu1 }
 0x2de   : > { %v5683_v57 = vpack.c.bf16 %v3072_v13, %v3071_v50  ;;  %v6003_v58 = vpack.c.bf16 %v3200_v52, %v3199_v51  ;;  %v2399_v61 = vadd.f32 %v7264_v53, %v2398_v54  ;;  %v2911_v62 = vadd.f32 %v7264_v53, %v2910_v56 }
 0x2df   : > { %v2400_v59 = vpop.f32.mrf.mxu0  ;;  %v2912_v60 = vpop.f32.mrf.mxu1 }
 0x2e0   : > { %6091 = vst [vmem:[%s6892_s9 + $0x1c8] sm:$0xff] %v5683_v57   ;;  %6155 = vst [vmem:[%s6892_s9 + $0x3c8] sm:$0xff] %v6003_v58   ;;  %v3073_v5 = vmax.f32 %v2399_v61, 0.0  ;;  %v3201_v6 = vmax.f32 %v2911_v62, 0.0 }
 0x2e1   : > { %v2401_v63 = vpop.f32.mrf.mxu0  ;;  %v2913_v0 = vpop.f32.mrf.mxu1 }
 0x2e2   : > { %v2402_v1 = vadd.f32 %v7264_v53, %v2401_v63  ;;  %v2914_v2 = vadd.f32 %v7264_v53, %v2913_v0 }
 0x2e3   : > { %v2403_v3 = vpop.f32.mrf.mxu0  ;;  %v2915_v4 = vpop.f32.mrf.mxu1 }
 0x2e4   : > { %v3074_v7 = vmax.f32 %v2402_v1, 0.0  ;;  %v3202_v8 = vmax.f32 %v2914_v2, 0.0 }
 0x2e5   : > { %v2406_v9 = vpop.f32.mrf.mxu0  ;;  %v2918_v10 = vpop.f32.mrf.mxu1 }
 0x2e6   : > { %v5688_v11 = vpack.c.bf16 %v3074_v7, %v3073_v5  ;;  %v6008_v55 = vpack.c.bf16 %v3202_v8, %v3201_v6  ;;  %v2407_v15 = vadd.f32 %v7264_v53, %v2406_v9  ;;  %v2919_v16 = vadd.f32 %v7264_v53, %v2918_v10  ;;  %v6621_v6 = vld [vmem:[%s7440_s2] ss:$0 sm:$0xff] }
 0x2e7   : > { %v2408_v12 = vpop.f32.mrf.mxu0  ;;  %v2920_v14 = vpop.f32.mrf.mxu1 }
 0x2e8   : > { %6092 = vst [vmem:[%s6892_s9 + $0x1d0] sm:$0xff] %v5688_v11   ;;  %6156 = vst [vmem:[%s6892_s9 + $0x3d0] sm:$0xff] %v6008_v55   ;;  %v3075_v23 = vmax.f32 %v2407_v15, 0.0  ;;  %v3203_v24 = vmax.f32 %v2919_v16, 0.0 }
 0x2e9   : > { %v2409_v17 = vpop.f32.mrf.mxu0  ;;  %v2921_v18 = vpop.f32.mrf.mxu1 }
 0x2ea   : > { %v2410_v19 = vadd.f32 %v7264_v53, %v2409_v17  ;;  %v2922_v20 = vadd.f32 %v7264_v53, %v2921_v18 }
 0x2eb   : > { %v2411_v21 = vpop.f32.mrf.mxu0  ;;  %v2923_v22 = vpop.f32.mrf.mxu1 }
 0x2ec   : > { %v3076_v25 = vmax.f32 %v2410_v19, 0.0  ;;  %v3204_v26 = vmax.f32 %v2922_v20, 0.0 }
 0x2ed   : > { %v2414_v27 = vpop.f32.mrf.mxu0  ;;  %v2926_v28 = vpop.f32.mrf.mxu1 }
 0x2ee   : > { %v5693_v29 = vpack.c.bf16 %v3076_v25, %v3075_v23  ;;  %v6013_v30 = vpack.c.bf16 %v3204_v26, %v3203_v24  ;;  %v2415_v33 = vadd.f32 %v7264_v53, %v2414_v27  ;;  %v2927_v34 = vadd.f32 %v7264_v53, %v2926_v28 }
 0x2ef   : > { %v2416_v31 = vpop.f32.mrf.mxu0  ;;  %v2928_v32 = vpop.f32.mrf.mxu1 }
 0x2f0   : > { %6093 = vst [vmem:[%s6892_s9 + $0x1d8] sm:$0xff] %v5693_v29   ;;  %6157 = vst [vmem:[%s6892_s9 + $0x3d8] sm:$0xff] %v6013_v30   ;;  %v3077_v41 = vmax.f32 %v2415_v33, 0.0  ;;  %v3205_v42 = vmax.f32 %v2927_v34, 0.0 }
 0x2f1   : > { %v2417_v35 = vpop.f32.mrf.mxu0  ;;  %v2929_v36 = vpop.f32.mrf.mxu1 }
 0x2f2   : > { %v2418_v37 = vadd.f32 %v7264_v53, %v2417_v35  ;;  %v2930_v38 = vadd.f32 %v7264_v53, %v2929_v36 }
 0x2f3   : > { %v2419_v39 = vpop.f32.mrf.mxu0  ;;  %v2931_v40 = vpop.f32.mrf.mxu1 }
 0x2f4   : > { %v3078_v43 = vmax.f32 %v2418_v37, 0.0  ;;  %v3206_v44 = vmax.f32 %v2930_v38, 0.0 }
 0x2f5   : > { %v2422_v45 = vpop.f32.mrf.mxu0  ;;  %v2934_v46 = vpop.f32.mrf.mxu1 }
 0x2f6   : > { %v5698_v47 = vpack.c.bf16 %v3078_v43, %v3077_v41  ;;  %v6018_v48 = vpack.c.bf16 %v3206_v44, %v3205_v42  ;;  %v2423_v51 = vadd.f32 %v7264_v53, %v2422_v45  ;;  %v2935_v13 = vadd.f32 %v7264_v53, %v2934_v46 }
 0x2f7   : > { %v2424_v49 = vpop.f32.mrf.mxu0  ;;  %v2936_v50 = vpop.f32.mrf.mxu1 }
 0x2f8   : > { %6094 = vst [vmem:[%s6892_s9 + $0x1e0] sm:$0xff] %v5698_v47   ;;  %6158 = vst [vmem:[%s6892_s9 + $0x3e0] sm:$0xff] %v6018_v48   ;;  %v3079_v60 = vmax.f32 %v2423_v51, 0.0  ;;  %v3207_v61 = vmax.f32 %v2935_v13, 0.0 }
 0x2f9   : > { %v2425_v52 = vpop.f32.mrf.mxu0  ;;  %v2937_v54 = vpop.f32.mrf.mxu1 }
 0x2fa   : > { %v2426_v56 = vadd.f32 %v7264_v53, %v2425_v52  ;;  %v2938_v57 = vadd.f32 %v7264_v53, %v2937_v54 }
 0x2fb   : > { %v2427_v58 = vpop.f32.mrf.mxu0  ;;  %v2939_v59 = vpop.f32.mrf.mxu1 }
 0x2fc   : > { %v3080_v62 = vmax.f32 %v2426_v56, 0.0  ;;  %v3208_v63 = vmax.f32 %v2938_v57, 0.0 }
 0x2fd   : > { %v2430_v0 = vpop.f32.mrf.mxu0  ;;  %v2942_v1 = vpop.f32.mrf.mxu1 }
 0x2fe   : > { %v5703_v2 = vpack.c.bf16 %v3080_v62, %v3079_v60  ;;  %v6023_v3 = vpack.c.bf16 %v3208_v63, %v3207_v61  ;;  %v2431_v7 = vadd.f32 %v6621_v6, %v2430_v0  ;;  %v2943_v53 = vadd.f32 %v6621_v6, %v2942_v1 }
 0x2ff   : > { %v2432_v4 = vpop.f32.mrf.mxu0  ;;  %v2944_v5 = vpop.f32.mrf.mxu1 }
 0x300   : > { %6095 = vst [vmem:[%s6892_s9 + $0x1e8] sm:$0xff] %v5703_v2   ;;  %6159 = vst [vmem:[%s6892_s9 + $0x3e8] sm:$0xff] %v6023_v3   ;;  %v3081_v14 = vmax.f32 %v2431_v7, 0.0  ;;  %v3209_v15 = vmax.f32 %v2943_v53, 0.0 }
 0x301   : > { %v2433_v8 = vpop.f32.mrf.mxu0  ;;  %v2945_v9 = vpop.f32.mrf.mxu1 }
 0x302   : > { %v2434_v10 = vadd.f32 %v6621_v6, %v2433_v8  ;;  %v2946_v11 = vadd.f32 %v6621_v6, %v2945_v9 }
 0x303   : > { %v2435_v55 = vpop.f32.mrf.mxu0  ;;  %v2947_v12 = vpop.f32.mrf.mxu1 }
 0x304   : > { %v3082_v16 = vmax.f32 %v2434_v10, 0.0  ;;  %v3210_v17 = vmax.f32 %v2946_v11, 0.0 }
 0x305   : > { %v2438_v18 = vpop.f32.mrf.mxu0  ;;  %v2950_v19 = vpop.f32.mrf.mxu1 }
 0x306   : > { %v5708_v20 = vpack.c.bf16 %v3082_v16, %v3081_v14  ;;  %v6028_v21 = vpack.c.bf16 %v3210_v17, %v3209_v15  ;;  %v2439_v24 = vadd.f32 %v6621_v6, %v2438_v18  ;;  %v2951_v25 = vadd.f32 %v6621_v6, %v2950_v19 }
 0x307   : > { %v2440_v22 = vpop.f32.mrf.mxu0  ;;  %v2952_v23 = vpop.f32.mrf.mxu1 }
 0x308   : > { %6096 = vst [vmem:[%s6892_s9 + $0x1f0] sm:$0xff] %v5708_v20   ;;  %6160 = vst [vmem:[%s6892_s9 + $0x3f0] sm:$0xff] %v6028_v21   ;;  %v3083_v32 = vmax.f32 %v2439_v24, 0.0  ;;  %v3211_v33 = vmax.f32 %v2951_v25, 0.0 }
 0x309   : > { %v2441_v26 = vpop.f32.mrf.mxu0  ;;  %v2953_v27 = vpop.f32.mrf.mxu1 }
 0x30a   : > { %v2442_v28 = vadd.f32 %v6621_v6, %v2441_v26  ;;  %v2954_v29 = vadd.f32 %v6621_v6, %v2953_v27 }
 0x30b   : > { %v2443_v30 = vpop.f32.mrf.mxu0  ;;  %v2955_v31 = vpop.f32.mrf.mxu1 }
 0x30c   : > { %v3084_v34 = vmax.f32 %v2442_v28, 0.0  ;;  %v3212_v35 = vmax.f32 %v2954_v29, 0.0 }
 0x30e   : > { %v5713_v36 = vpack.c.bf16 %v3084_v34, %v3083_v32  ;;  %v6033_v37 = vpack.c.bf16 %v3212_v35, %v3211_v33 }
 0x310   : > { %6097 = vst [vmem:[%s6892_s9 + $0x1f8] sm:$0xff] %v5713_v36   ;;  %6161 = vst [vmem:[%s6892_s9 + $0x3f8] sm:$0xff] %v6033_v37  }
 0x311 PF: > { %s13_s14 = sadd.s32 1, %s6644_s14   ;;  %s7442_s12 = smov %s6640_s13 }
 0x312   : > { %p10_p5 = scmp.ge.s32.totalorder %s13_s14, 4   ;;  %s7443_s13 = smov %s7445_s15 }
 0x314   :  { %12 = sbr.rel (!%p10_p5) target bundleno = 2 (0x2), region = 68 }

// kernel: forward.7
= control target key start
LH: loop header
LB: loop body
LE: loop exit
PB: predicated region body
PF: predicated region fallthrough
CT: control target
= control target key end

     0   :  { %s10030_s12 = smov 0   ;;  %s10032_s13 = smov 0   ;;  %s11128_s0 = inlined_call_operand.vmem [shape: bf16[4096,512], index: 0, kind: input, shape index: {}]   ;;  %s11129_s1 = inlined_call_operand.vmem [shape: bf16[512,128], index: 1, kind: input, shape index: {}]   ;;  %s11130_s2 = inlined_call_operand.vmem [shape: f32[1,128], index: 2, kind: input, shape index: {}]   ;;  %s11131_s3 = inlined_call_operand.vmem [shape: bf16[4096,128], index: 3, kind: output, shape index: {}]  }
   0x1   :  { %s10034_s14 = smov 0  }
   0x2 LB: > { %s25_s15 = sadd.s32 1, %s10003_s13  ;;  %p7322_p0 = scmp.ge.s32.totalorder %s10007_s14, 1  ;;  %s10007_s14 = sphi %s10034_s14, %s13_s14   ;;  %s10003_s13 = sphi %s10032_s13, %s11133_s13   ;;  %s9999_s12 = sphi %s10030_s12, %s11132_s12  }
   0x3   : > { %p27_p1 = scmp.ge.s32.totalorder %s25_s15, 2  ;;  %p170_p2 = scmp.lt.s32.totalorder %s10007_s14, 3 }
   0x5   : > { %s11135_s15 = smov (%p27_p1, %s25_s15), 0  ;;  %p171_p3 = pnand %p7322_p0, %p170_p2 }
   0x6   : > { %s7323_s9 = sshll.u32 (!%p171_p3), %s9999_s12, 8 }
   0x7   : > { %174 = sbr.rel (%p171_p3) target bundleno = 1299 (0x513), region = 32  ;;  %p206_p4 = scmp.lt.s32.totalorder (!%p171_p3), %s7323_s9, 511 }
   0xc   : > { %v9180_v0 = vld [vmem:[%s11129_s1 + $0x38] sm:$0xff]   ;;  %v10009_v1 = vmov 0   ;;  %v9182_v3 = vld [vmem:[%s11129_s1 + $0x30] sm:$0xff]   ;;  %v9184_v5 = vld [vmem:[%s11129_s1 + $0x28] sm:$0xff]   ;;  %s11137_s9 = smov (!%p206_p4, %s7323_s9), 511 }
   0xd   : > { %3564 = vmatprep.subr.bf16.mxu0 %v10009_v1  ;;  %4621 = vmatprep.subr.bf16.mxu1 %v10009_v1  ;;  %v9181_v2 = vld [vmem:[%s11129_s1 + $0xb8] sm:$0xff]   ;;  %v9183_v4 = vld [vmem:[%s11129_s1 + $0xb0] sm:$0xff]   ;;  %v9185_v6 = vld [vmem:[%s11129_s1 + $0xa8] sm:$0xff]   ;;  %s8131_s25 = sshll.u32 %s11137_s9, 4  ;;  %s7327_s19 = sshll.u32 %s11137_s9, 2 }
   0xe   : > { %3565 = vmatpush1.bf16.msra.mxu0 %v9180_v0  ;;  %4622 = vmatpush1.bf16.msra.mxu1 %v9181_v2  ;;  %v9186_v7 = vld [vmem:[%s11129_s1 + $0x20] sm:$0xff]   ;;  %v9188_v9 = vld [vmem:[%s11129_s1 + $0x18] sm:$0xff]   ;;  %v9190_v11 = vld [vmem:[%s11129_s1 + $0x10] sm:$0xff]   ;;  %s10124_s30 = scalar_lea.vmem %s11128_s0, %s8131_s25  ;;  %s10305_s21 = scalar_lea.vmem %s11131_s3, %s7327_s19 }
   0xf   : > { %3566 = vmatprep.subr.bf16.mxu0 %v10009_v1  ;;  %4623 = vmatprep.subr.bf16.mxu1 %v10009_v1  ;;  %v9187_v8 = vld [vmem:[%s11129_s1 + $0xa0] sm:$0xff]   ;;  %v9189_v10 = vld [vmem:[%s11129_s1 + $0x98] sm:$0xff]   ;;  %v9191_v12 = vld [vmem:[%s11129_s1 + $0x90] sm:$0xff]  }
  0x10   : > { %v9192_v13 = vld [vmem:[%s11129_s1 + $0x8] sm:$0xff]   ;;  %v9194_v15 = vld [vmem:[%s11129_s1] sm:$0xff]   ;;  %v9196_v17 = vld [vmem:[%s11129_s1 + $0x78] sm:$0xff]  }
  0x11   : > { %v9193_v14 = vld [vmem:[%s11129_s1 + $0x88] sm:$0xff]   ;;  %v9195_v16 = vld [vmem:[%s11129_s1 + $0x80] sm:$0xff]   ;;  %v9197_v18 = vld [vmem:[%s11129_s1 + $0xf8] sm:$0xff]  }
  0x12   : > { %3567 = vmatpush1.bf16.msra.mxu0 %v9182_v3  ;;  %4624 = vmatpush1.bf16.msra.mxu1 %v9183_v4  ;;  %v9214_v19 = vld [vmem:[%s10124_s30 + $0x4] ss:$16 sps:$4 sm:$0xff]   ;;  %v9217_v21 = vld [vmem:[%s10124_s30 + $0xc] ss:$16 sps:$4 sm:$0xff]   ;;  %v9212_v35 = vld [vmem:[%s10124_s30] ss:$16 sps:$4 sm:$0xff]  }
  0x13   : > { %3568 = vmatprep.subr.bf16.mxu0 %v10009_v1  ;;  %4625 = vmatprep.subr.bf16.mxu1 %v10009_v1  ;;  %v9198_v20 = vld [vmem:[%s11129_s1 + $0x70] sm:$0xff]   ;;  %v9200_v23 = vld [vmem:[%s11129_s1 + $0x68] sm:$0xff]   ;;  %v9202_v25 = vld [vmem:[%s11129_s1 + $0x60] sm:$0xff]  }
  0x14   : > { %v9199_v22 = vld [vmem:[%s11129_s1 + $0xf0] sm:$0xff]   ;;  %3596 = vmatprep.mubr.bf16.mxu0 %v9214_v19  ;;  %4653 = vmatprep.mubr.bf16.mxu1 %v9217_v21  ;;  %v9201_v24 = vld [vmem:[%s11129_s1 + $0xe8] sm:$0xff]   ;;  %v9203_v26 = vld [vmem:[%s11129_s1 + $0xe0] sm:$0xff]  }
  0x15   : > { %v9204_v27 = vld [vmem:[%s11129_s1 + $0x58] sm:$0xff]   ;;  %v9206_v29 = vld [vmem:[%s11129_s1 + $0x50] sm:$0xff]   ;;  %v9208_v31 = vld [vmem:[%s11129_s1 + $0x48] sm:$0xff]  }
  0x16   : > { %3569 = vmatpush1.bf16.msra.mxu0 %v9184_v5  ;;  %4626 = vmatpush1.bf16.msra.mxu1 %v9185_v6  ;;  %v9205_v28 = vld [vmem:[%s11129_s1 + $0xd8] sm:$0xff]   ;;  %v9207_v30 = vld [vmem:[%s11129_s1 + $0xd0] sm:$0xff]   ;;  %v9209_v32 = vld [vmem:[%s11129_s1 + $0xc8] sm:$0xff]  }
  0x17   : > { %3570 = vmatprep.subr.bf16.mxu0 %v10009_v1  ;;  %4627 = vmatprep.subr.bf16.mxu1 %v10009_v1  ;;  %v9210_v33 = vld [vmem:[%s11129_s1 + $0x40] sm:$0xff]   ;;  %v9215_v36 = vld [vmem:[%s10124_s30 + $0x8] ss:$16 sps:$4 sm:$0xff]   ;;  %v9220_v38 = vld [vmem:[%s10124_s30 + $0x2c] ss:$16 sps:$4 sm:$0xff]  }
  0x18   : > { %v9211_v34 = vld [vmem:[%s11129_s1 + $0xc0] sm:$0xff]   ;;  %v9223_v40 = vld [vmem:[%s10124_s30 + $0x28] ss:$16 sps:$4 sm:$0xff]   ;;  %v9226_v42 = vld [vmem:[%s10124_s30 + $0x4c] ss:$16 sps:$4 sm:$0xff]  }
  0x19   : > { %v9218_v37 = vld [vmem:[%s10124_s30 + $0x24] ss:$16 sps:$4 sm:$0xff]   ;;  %v9222_v39 = vld [vmem:[%s10124_s30 + $0x20] ss:$16 sps:$4 sm:$0xff]   ;;  %v9229_v44 = vld [vmem:[%s10124_s30 + $0x48] ss:$16 sps:$4 sm:$0xff]  }
  0x1a   : > { %3571 = vmatpush1.bf16.msra.mxu0 %v9186_v7  ;;  %4628 = vmatpush1.bf16.msra.mxu1 %v9187_v8  ;;  %v9224_v41 = vld [vmem:[%s10124_s30 + $0x44] ss:$16 sps:$4 sm:$0xff]   ;;  %v9228_v43 = vld [vmem:[%s10124_s30 + $0x40] ss:$16 sps:$4 sm:$0xff]   ;;  %v9232_v46 = vld [vmem:[%s10124_s30 + $0x6c] ss:$16 sps:$4 sm:$0xff]  }
  0x1b   : > { %3572 = vmatprep.subr.bf16.mxu0 %v10009_v1  ;;  %4629 = vmatprep.subr.bf16.mxu1 %v10009_v1  ;;  %v9230_v45 = vld [vmem:[%s10124_s30 + $0x64] ss:$16 sps:$4 sm:$0xff]   ;;  %v9234_v47 = vld [vmem:[%s10124_s30 + $0x60] ss:$16 sps:$4 sm:$0xff]   ;;  %v9235_v48 = vld [vmem:[%s10124_s30 + $0x68] ss:$16 sps:$4 sm:$0xff]  }
  0x1c   : > { %v9236_v49 = vld [vmem:[%s10124_s30 + $0x84] ss:$16 sps:$4 sm:$0xff]   ;;  %v9238_v50 = vld [vmem:[%s10124_s30 + $0x8c] ss:$16 sps:$4 sm:$0xff]   ;;  %v9240_v51 = vld [vmem:[%s10124_s30 + $0x80] ss:$16 sps:$4 sm:$0xff]  }
  0x1d   : > { %v9241_v52 = vld [vmem:[%s10124_s30 + $0x88] ss:$16 sps:$4 sm:$0xff]   ;;  %v9242_v53 = vld [vmem:[%s10124_s30 + $0xa4] ss:$16 sps:$4 sm:$0xff]   ;;  %v9244_v54 = vld [vmem:[%s10124_s30 + $0xac] ss:$16 sps:$4 sm:$0xff]  }
  0x1e   : > { %3573 = vmatpush1.bf16.msra.mxu0 %v9188_v9  ;;  %4630 = vmatpush1.bf16.msra.mxu1 %v9189_v10  ;;  %v9246_v55 = vld [vmem:[%s10124_s30 + $0xa0] ss:$16 sps:$4 sm:$0xff]   ;;  %v9247_v56 = vld [vmem:[%s10124_s30 + $0xa8] ss:$16 sps:$4 sm:$0xff]   ;;  %v9248_v57 = vld [vmem:[%s10124_s30 + $0xc4] ss:$16 sps:$4 sm:$0xff]  }
  0x1f   : > { %3574 = vmatprep.subr.bf16.mxu0 %v10009_v1  ;;  %4631 = vmatprep.subr.bf16.mxu1 %v10009_v1  ;;  %v9250_v58 = vld [vmem:[%s10124_s30 + $0xcc] ss:$16 sps:$4 sm:$0xff]   ;;  %v9252_v59 = vld [vmem:[%s10124_s30 + $0xc0] ss:$16 sps:$4 sm:$0xff]   ;;  %v9253_v60 = vld [vmem:[%s10124_s30 + $0xc8] ss:$16 sps:$4 sm:$0xff]  }
  0x20   : > { %v9254_v61 = vld [vmem:[%s10124_s30 + $0xe4] ss:$16 sps:$4 sm:$0xff]   ;;  %v9256_v62 = vld [vmem:[%s10124_s30 + $0xec] ss:$16 sps:$4 sm:$0xff]   ;;  %v9258_v63 = vld [vmem:[%s10124_s30 + $0xe0] ss:$16 sps:$4 sm:$0xff]  }
  0x21   : > { %v9259_v0 = vld [vmem:[%s10124_s30 + $0xe8] ss:$16 sps:$4 sm:$0xff]   ;;  %v9262_v2 = vld [vmem:[%s10124_s30 + $0x10c] ss:$16 sps:$4 sm:$0xff]   ;;  %v9264_v3 = vld [vmem:[%s10124_s30 + $0x100] ss:$16 sps:$4 sm:$0xff]  }
  0x22   : > { %3575 = vmatpush1.bf16.msra.mxu0 %v9190_v11  ;;  %4632 = vmatpush1.bf16.msra.mxu1 %v9191_v12  ;;  %v9265_v4 = vld [vmem:[%s10124_s30 + $0x108] ss:$16 sps:$4 sm:$0xff]   ;;  %v9266_v5 = vld [vmem:[%s10124_s30 + $0x124] ss:$16 sps:$4 sm:$0xff]   ;;  %v9268_v6 = vld [vmem:[%s10124_s30 + $0x12c] ss:$16 sps:$4 sm:$0xff]  }
  0x23   : > { %3576 = vmatprep.subr.bf16.mxu0 %v10009_v1  ;;  %4633 = vmatprep.subr.bf16.mxu1 %v10009_v1  ;;  %v9270_v7 = vld [vmem:[%s10124_s30 + $0x120] ss:$16 sps:$4 sm:$0xff]   ;;  %v9271_v8 = vld [vmem:[%s10124_s30 + $0x128] ss:$16 sps:$4 sm:$0xff]   ;;  %v9272_v9 = vld [vmem:[%s10124_s30 + $0x144] ss:$16 sps:$4 sm:$0xff]  }
  0x24   : > { %v9274_v10 = vld [vmem:[%s10124_s30 + $0x14c] ss:$16 sps:$4 sm:$0xff]   ;;  %v9276_v11 = vld [vmem:[%s10124_s30 + $0x140] ss:$16 sps:$4 sm:$0xff]   ;;  %v9277_v12 = vld [vmem:[%s10124_s30 + $0x148] ss:$16 sps:$4 sm:$0xff]  }
  0x25   : > { %v9288_v19 = vld [vmem:[%s10124_s30 + $0x180] ss:$16 sps:$4 sm:$0xff]   ;;  %v9290_v21 = vld [vmem:[%s10124_s30 + $0x1a4] ss:$16 sps:$4 sm:$0xff]  }
  0x26   : > { %3577 = vmatpush1.bf16.msra.mxu0 %v9192_v13  ;;  %4634 = vmatpush1.bf16.msra.mxu1 %v9193_v14  ;;  %v9278_v13 = vld [vmem:[%s10124_s30 + $0x164] ss:$16 sps:$4 sm:$0xff]   ;;  %v9280_v14 = vld [vmem:[%s10124_s30 + $0x16c] ss:$16 sps:$4 sm:$0xff]  }
  0x27   : > { %3578 = vmatprep.subr.bf16.mxu0 %v10009_v1  ;;  %4635 = vmatprep.subr.bf16.mxu1 %v10009_v1 }
  0x2a   : > { %3579 = vmatpush1.bf16.msra.mxu0 %v9194_v15  ;;  %4636 = vmatpush1.bf16.msra.mxu1 %v9195_v16  ;;  %v9282_v15 = vld [vmem:[%s10124_s30 + $0x160] ss:$16 sps:$4 sm:$0xff]   ;;  %v9283_v16 = vld [vmem:[%s10124_s30 + $0x168] ss:$16 sps:$4 sm:$0xff]  }
  0x2b   : > { %3580 = vmatprep.subr.bf16.mxu0 %v10009_v1  ;;  %4637 = vmatprep.subr.bf16.mxu1 %v10009_v1 }
  0x2e   : > { %3581 = vmatpush2.bf16.msra.mxu0 %v9196_v17  ;;  %4638 = vmatpush2.bf16.msra.mxu1 %v9197_v18  ;;  %v9284_v17 = vld [vmem:[%s10124_s30 + $0x184] ss:$16 sps:$4 sm:$0xff]   ;;  %v9286_v18 = vld [vmem:[%s10124_s30 + $0x18c] ss:$16 sps:$4 sm:$0xff]  }
  0x2f   : > { %3582 = vmatprep.subr.bf16.mxu0 %v10009_v1  ;;  %4639 = vmatprep.subr.bf16.mxu1 %v10009_v1 }
  0x32   : > { %3583 = vmatpush2.bf16.msra.mxu0 %v9198_v20  ;;  %4640 = vmatpush2.bf16.msra.mxu1 %v9199_v22  ;;  %v9289_v20 = vld [vmem:[%s10124_s30 + $0x188] ss:$16 sps:$4 sm:$0xff]   ;;  %v9292_v22 = vld [vmem:[%s10124_s30 + $0x1ac] ss:$16 sps:$4 sm:$0xff]  }
  0x33   : > { %3584 = vmatprep.subr.bf16.mxu0 %v10009_v1  ;;  %4641 = vmatprep.subr.bf16.mxu1 %v10009_v1 }
  0x36   : > { %3585 = vmatpush2.bf16.msra.mxu0 %v9200_v23  ;;  %4642 = vmatpush2.bf16.msra.mxu1 %v9201_v24  ;;  %v9294_v23 = vld [vmem:[%s10124_s30 + $0x1a0] ss:$16 sps:$4 sm:$0xff]   ;;  %v9295_v24 = vld [vmem:[%s10124_s30 + $0x1a8] ss:$16 sps:$4 sm:$0xff]  }
  0x37   : > { %3586 = vmatprep.subr.bf16.mxu0 %v10009_v1  ;;  %4643 = vmatprep.subr.bf16.mxu1 %v10009_v1 }
  0x3a   : > { %3587 = vmatpush2.bf16.msra.mxu0 %v9202_v25  ;;  %4644 = vmatpush2.bf16.msra.mxu1 %v9203_v26  ;;  %v9296_v25 = vld [vmem:[%s10124_s30 + $0x1c4] ss:$16 sps:$4 sm:$0xff]   ;;  %v9298_v26 = vld [vmem:[%s10124_s30 + $0x1cc] ss:$16 sps:$4 sm:$0xff]  }
  0x3b   : > { %3588 = vmatprep.subr.bf16.mxu0 %v10009_v1  ;;  %4645 = vmatprep.subr.bf16.mxu1 %v10009_v1 }
  0x3e   : > { %3589 = vmatpush2.bf16.msra.mxu0 %v9204_v27  ;;  %4646 = vmatpush2.bf16.msra.mxu1 %v9205_v28  ;;  %v9300_v27 = vld [vmem:[%s10124_s30 + $0x1c0] ss:$16 sps:$4 sm:$0xff]   ;;  %v9301_v28 = vld [vmem:[%s10124_s30 + $0x1c8] ss:$16 sps:$4 sm:$0xff]  }
  0x3f   : > { %3590 = vmatprep.subr.bf16.mxu0 %v10009_v1  ;;  %4647 = vmatprep.subr.bf16.mxu1 %v10009_v1 }
  0x42   : > { %3591 = vmatpush2.bf16.msra.mxu0 %v9206_v29  ;;  %4648 = vmatpush2.bf16.msra.mxu1 %v9207_v30  ;;  %v9302_v29 = vld [vmem:[%s10124_s30 + $0x1e4] ss:$16 sps:$4 sm:$0xff]   ;;  %v9304_v30 = vld [vmem:[%s10124_s30 + $0x1ec] ss:$16 sps:$4 sm:$0xff]  }
  0x43   : > { %3592 = vmatprep.subr.bf16.mxu0 %v10009_v1  ;;  %4649 = vmatprep.subr.bf16.mxu1 %v10009_v1 }
  0x46   : > { %3593 = vmatpush2.bf16.msra.mxu0 %v9208_v31  ;;  %4650 = vmatpush2.bf16.msra.mxu1 %v9209_v32  ;;  %v9306_v31 = vld [vmem:[%s10124_s30 + $0x1e0] ss:$16 sps:$4 sm:$0xff]   ;;  %v9307_v32 = vld [vmem:[%s10124_s30 + $0x1e8] ss:$16 sps:$4 sm:$0xff]  }
  0x47   : > { %3594 = vmatprep.subr.bf16.mxu0 %v10009_v1  ;;  %4651 = vmatprep.subr.bf16.mxu1 %v10009_v1  ;;  %v9260_v1 = vld [vmem:[%s10124_s30 + $0x104] ss:$16 sps:$4 sm:$0xff]  }
  0x4a   : > { %3595 = vmatpush2.bf16.msra.mxu0 %v9210_v33  ;;  %4652 = vmatpush2.bf16.msra.mxu1 %v9211_v34  ;;  %v9308_v33 = vld [vmem:[%s10124_s30 + $0x204] ss:$16 sps:$4 sm:$0xff]   ;;  %v9310_v34 = vld [vmem:[%s10124_s30 + $0x20c] ss:$16 sps:$4 sm:$0xff]  }
  0x4d   : > { %3597 = vmatmul.mubr.bf16.vlgmr.msra.gmra.mxu0 %v9212_v35  ;;  %4654 = vmatmul.mubr.bf16.vlgmr.msra.gmra.mxu1 %v9215_v36  ;;  %v9312_v35 = vld [vmem:[%s10124_s30 + $0x200] ss:$16 sps:$4 sm:$0xff]   ;;  %v9313_v36 = vld [vmem:[%s10124_s30 + $0x208] ss:$16 sps:$4 sm:$0xff]  }
  0x4e   : > { %3604 = vmatprep.mubr.bf16.mxu0 %v9218_v37  ;;  %4661 = vmatprep.mubr.bf16.mxu1 %v9220_v38  ;;  %v9314_v37 = vld [vmem:[%s10124_s30 + $0x224] ss:$16 sps:$4 sm:$0xff]   ;;  %v9316_v38 = vld [vmem:[%s10124_s30 + $0x22c] ss:$16 sps:$4 sm:$0xff]  }
  0x55   : > { %3605 = vmatmul.mubr.bf16.gmra.mxu0 %v9222_v39  ;;  %4662 = vmatmul.mubr.bf16.gmra.mxu1 %v9223_v40  ;;  %v9318_v39 = vld [vmem:[%s10124_s30 + $0x220] ss:$16 sps:$4 sm:$0xff]   ;;  %v9319_v40 = vld [vmem:[%s10124_s30 + $0x228] ss:$16 sps:$4 sm:$0xff]  }
  0x56   : > { %3612 = vmatprep.mubr.bf16.mxu0 %v9224_v41  ;;  %4669 = vmatprep.mubr.bf16.mxu1 %v9226_v42  ;;  %v9320_v41 = vld [vmem:[%s10124_s30 + $0x244] ss:$16 sps:$4 sm:$0xff]   ;;  %v9322_v42 = vld [vmem:[%s10124_s30 + $0x24c] ss:$16 sps:$4 sm:$0xff]  }
  0x5d   : > { %3613 = vmatmul.mubr.bf16.gmra.mxu0 %v9228_v43  ;;  %4670 = vmatmul.mubr.bf16.gmra.mxu1 %v9229_v44  ;;  %v9324_v43 = vld [vmem:[%s10124_s30 + $0x240] ss:$16 sps:$4 sm:$0xff]   ;;  %v9325_v44 = vld [vmem:[%s10124_s30 + $0x248] ss:$16 sps:$4 sm:$0xff]  }
  0x5e   : > { %3620 = vmatprep.mubr.bf16.mxu0 %v9230_v45  ;;  %4677 = vmatprep.mubr.bf16.mxu1 %v9232_v46  ;;  %v9326_v45 = vld [vmem:[%s10124_s30 + $0x264] ss:$16 sps:$4 sm:$0xff]   ;;  %v9328_v46 = vld [vmem:[%s10124_s30 + $0x26c] ss:$16 sps:$4 sm:$0xff]  }
  0x65   : > { %3621 = vmatmul.mubr.bf16.gmra.mxu0 %v9234_v47  ;;  %4678 = vmatmul.mubr.bf16.gmra.mxu1 %v9235_v48  ;;  %v9330_v47 = vld [vmem:[%s10124_s30 + $0x260] ss:$16 sps:$4 sm:$0xff]   ;;  %v9331_v48 = vld [vmem:[%s10124_s30 + $0x268] ss:$16 sps:$4 sm:$0xff]  }
  0x66   : > { %3628 = vmatprep.mubr.bf16.mxu0 %v9236_v49  ;;  %4685 = vmatprep.mubr.bf16.mxu1 %v9238_v50  ;;  %v9332_v49 = vld [vmem:[%s10124_s30 + $0x284] ss:$16 sps:$4 sm:$0xff]   ;;  %v9334_v50 = vld [vmem:[%s10124_s30 + $0x28c] ss:$16 sps:$4 sm:$0xff]  }
  0x6d   : > { %3629 = vmatmul.mubr.bf16.gmra.mxu0 %v9240_v51  ;;  %4686 = vmatmul.mubr.bf16.gmra.mxu1 %v9241_v52  ;;  %v9336_v51 = vld [vmem:[%s10124_s30 + $0x280] ss:$16 sps:$4 sm:$0xff]   ;;  %v9337_v52 = vld [vmem:[%s10124_s30 + $0x288] ss:$16 sps:$4 sm:$0xff]  }
  0x6e   : > { %3636 = vmatprep.mubr.bf16.mxu0 %v9242_v53  ;;  %4693 = vmatprep.mubr.bf16.mxu1 %v9244_v54  ;;  %v9338_v53 = vld [vmem:[%s10124_s30 + $0x2a4] ss:$16 sps:$4 sm:$0xff]   ;;  %v9340_v54 = vld [vmem:[%s10124_s30 + $0x2ac] ss:$16 sps:$4 sm:$0xff]  }
  0x75   : > { %3637 = vmatmul.mubr.bf16.gmra.mxu0 %v9246_v55  ;;  %4694 = vmatmul.mubr.bf16.gmra.mxu1 %v9247_v56  ;;  %v9342_v55 = vld [vmem:[%s10124_s30 + $0x2a0] ss:$16 sps:$4 sm:$0xff]   ;;  %v9343_v56 = vld [vmem:[%s10124_s30 + $0x2a8] ss:$16 sps:$4 sm:$0xff]  }
  0x76   : > { %3644 = vmatprep.mubr.bf16.mxu0 %v9248_v57  ;;  %4701 = vmatprep.mubr.bf16.mxu1 %v9250_v58  ;;  %v9344_v57 = vld [vmem:[%s10124_s30 + $0x2c4] ss:$16 sps:$4 sm:$0xff]   ;;  %v9346_v58 = vld [vmem:[%s10124_s30 + $0x2cc] ss:$16 sps:$4 sm:$0xff]  }
  0x7d   : > { %3645 = vmatmul.mubr.bf16.gmra.mxu0 %v9252_v59  ;;  %4702 = vmatmul.mubr.bf16.gmra.mxu1 %v9253_v60  ;;  %v9348_v59 = vld [vmem:[%s10124_s30 + $0x2c0] ss:$16 sps:$4 sm:$0xff]   ;;  %v9349_v60 = vld [vmem:[%s10124_s30 + $0x2c8] ss:$16 sps:$4 sm:$0xff]  }
  0x7e   : > { %3652 = vmatprep.mubr.bf16.mxu0 %v9254_v61  ;;  %4709 = vmatprep.mubr.bf16.mxu1 %v9256_v62  ;;  %v9350_v61 = vld [vmem:[%s10124_s30 + $0x2e4] ss:$16 sps:$4 sm:$0xff]   ;;  %v9352_v62 = vld [vmem:[%s10124_s30 + $0x2ec] ss:$16 sps:$4 sm:$0xff]  }
  0x85   : > { %3653 = vmatmul.mubr.bf16.gmra.mxu0 %v9258_v63  ;;  %4710 = vmatmul.mubr.bf16.gmra.mxu1 %v9259_v0  ;;  %v9354_v63 = vld [vmem:[%s10124_s30 + $0x2e0] ss:$16 sps:$4 sm:$0xff]   ;;  %v9355_v0 = vld [vmem:[%s10124_s30 + $0x2e8] ss:$16 sps:$4 sm:$0xff]  }
  0x86   : > { %3660 = vmatprep.mubr.bf16.mxu0 %v9260_v1  ;;  %4717 = vmatprep.mubr.bf16.mxu1 %v9262_v2  ;;  %v9356_v1 = vld [vmem:[%s10124_s30 + $0x304] ss:$16 sps:$4 sm:$0xff]   ;;  %v9358_v2 = vld [vmem:[%s10124_s30 + $0x30c] ss:$16 sps:$4 sm:$0xff]  }
  0x8d   : > { %3661 = vmatmul.mubr.bf16.gmra.mxu0 %v9264_v3  ;;  %4718 = vmatmul.mubr.bf16.gmra.mxu1 %v9265_v4  ;;  %v9360_v3 = vld [vmem:[%s10124_s30 + $0x300] ss:$16 sps:$4 sm:$0xff]   ;;  %v9361_v4 = vld [vmem:[%s10124_s30 + $0x308] ss:$16 sps:$4 sm:$0xff]  }
  0x8e   : > { %3668 = vmatprep.mubr.bf16.mxu0 %v9266_v5  ;;  %4725 = vmatprep.mubr.bf16.mxu1 %v9268_v6  ;;  %v9362_v5 = vld [vmem:[%s10124_s30 + $0x324] ss:$16 sps:$4 sm:$0xff]   ;;  %v10291_v6 = vld [vmem:[%s11130_s2] ss:$0 sm:$0xff] }
  0x95   : > { %3669 = vmatmul.mubr.bf16.gmra.mxu0 %v9270_v7  ;;  %4726 = vmatmul.mubr.bf16.gmra.mxu1 %v9271_v8  ;;  %v9364_v7 = vld [vmem:[%s10124_s30 + $0x32c] ss:$16 sps:$4 sm:$0xff]  }
  0x96   : > { %3676 = vmatprep.mubr.bf16.mxu0 %v9272_v9  ;;  %4733 = vmatprep.mubr.bf16.mxu1 %v9274_v10 }
  0x9d   : > { %3677 = vmatmul.mubr.bf16.gmra.mxu0 %v9276_v11  ;;  %4734 = vmatmul.mubr.bf16.gmra.mxu1 %v9277_v12 }
  0x9e   : > { %3684 = vmatprep.mubr.bf16.mxu0 %v9278_v13  ;;  %4741 = vmatprep.mubr.bf16.mxu1 %v9280_v14  ;;  %v9366_v14 = vld [vmem:[%s10124_s30 + $0x320] ss:$16 sps:$4 sm:$0xff]  }
  0xa5   : > { %3685 = vmatmul.mubr.bf16.gmra.mxu0 %v9282_v15  ;;  %4742 = vmatmul.mubr.bf16.gmra.mxu1 %v9283_v16 }
  0xa6   : > { %3692 = vmatprep.mubr.bf16.mxu0 %v9284_v17  ;;  %4749 = vmatprep.mubr.bf16.mxu1 %v9286_v18  ;;  %v9367_v18 = vld [vmem:[%s10124_s30 + $0x328] ss:$16 sps:$4 sm:$0xff]  }
  0xad   : > { %3693 = vmatmul.mubr.bf16.gmra.mxu0 %v9288_v19  ;;  %4750 = vmatmul.mubr.bf16.gmra.mxu1 %v9289_v20  ;;  %v9368_v19 = vld [vmem:[%s10124_s30 + $0x344] ss:$16 sps:$4 sm:$0xff]  }
  0xae   : > { %3700 = vmatprep.mubr.bf16.mxu0 %v9290_v21  ;;  %4757 = vmatprep.mubr.bf16.mxu1 %v9292_v22  ;;  %v9370_v21 = vld [vmem:[%s10124_s30 + $0x34c] ss:$16 sps:$4 sm:$0xff]  }
  0xb5   : > { %3701 = vmatmul.mubr.bf16.gmra.mxu0 %v9294_v23  ;;  %4758 = vmatmul.mubr.bf16.gmra.mxu1 %v9295_v24 }
  0xb6   : > { %3708 = vmatprep.mubr.bf16.mxu0 %v9296_v25  ;;  %4765 = vmatprep.mubr.bf16.mxu1 %v9298_v26 }
  0xbd   : > { %3709 = vmatmul.mubr.bf16.gmra.mxu0 %v9300_v27  ;;  %4766 = vmatmul.mubr.bf16.gmra.mxu1 %v9301_v28 }
  0xbe   : > { %3716 = vmatprep.mubr.bf16.mxu0 %v9302_v29  ;;  %4773 = vmatprep.mubr.bf16.mxu1 %v9304_v30 }
  0xc5   : > { %3717 = vmatmul.mubr.bf16.gmra.mxu0 %v9306_v31  ;;  %4774 = vmatmul.mubr.bf16.gmra.mxu1 %v9307_v32 }
  0xc6   : > { %3724 = vmatprep.mubr.bf16.mxu0 %v9308_v33  ;;  %4781 = vmatprep.mubr.bf16.mxu1 %v9310_v34  ;;  %v9372_v33 = vld [vmem:[%s10124_s30 + $0x340] ss:$16 sps:$4 sm:$0xff]  }
  0xcd   : > { %3725 = vmatmul.mubr.bf16.gmra.mxu0 %v9312_v35  ;;  %4782 = vmatmul.mubr.bf16.gmra.mxu1 %v9313_v36 }
  0xce   : > { %3732 = vmatprep.mubr.bf16.mxu0 %v9314_v37  ;;  %4789 = vmatprep.mubr.bf16.mxu1 %v9316_v38  ;;  %v9373_v37 = vld [vmem:[%s10124_s30 + $0x348] ss:$16 sps:$4 sm:$0xff]   ;;  %v9374_v38 = vld [vmem:[%s10124_s30 + $0x364] ss:$16 sps:$4 sm:$0xff]  }
  0xd5   : > { %3733 = vmatmul.mubr.bf16.gmra.mxu0 %v9318_v39  ;;  %4790 = vmatmul.mubr.bf16.gmra.mxu1 %v9319_v40  ;;  %v9376_v40 = vld [vmem:[%s10124_s30 + $0x36c] ss:$16 sps:$4 sm:$0xff]  }
  0xd6   : > { %3740 = vmatprep.mubr.bf16.mxu0 %v9320_v41  ;;  %4797 = vmatprep.mubr.bf16.mxu1 %v9322_v42 }
  0xdd   : > { %3741 = vmatmul.mubr.bf16.gmra.mxu0 %v9324_v43  ;;  %4798 = vmatmul.mubr.bf16.gmra.mxu1 %v9325_v44 }
  0xde   : > { %3748 = vmatprep.mubr.bf16.mxu0 %v9326_v45  ;;  %4805 = vmatprep.mubr.bf16.mxu1 %v9328_v46 }
  0xe5   : > { %3749 = vmatmul.mubr.bf16.gmra.mxu0 %v9330_v47  ;;  %4806 = vmatmul.mubr.bf16.gmra.mxu1 %v9331_v48 }
  0xe6   : > { %3756 = vmatprep.mubr.bf16.mxu0 %v9332_v49  ;;  %4813 = vmatprep.mubr.bf16.mxu1 %v9334_v50 }
  0xed   : > { %3757 = vmatmul.mubr.bf16.gmra.mxu0 %v9336_v51  ;;  %4814 = vmatmul.mubr.bf16.gmra.mxu1 %v9337_v52  ;;  %v9378_v52 = vld [vmem:[%s10124_s30 + $0x360] ss:$16 sps:$4 sm:$0xff]  }
  0xee   : > { %3764 = vmatprep.mubr.bf16.mxu0 %v9338_v53  ;;  %4821 = vmatprep.mubr.bf16.mxu1 %v9340_v54 }
  0xf5   : > { %3765 = vmatmul.mubr.bf16.gmra.mxu0 %v9342_v55  ;;  %4822 = vmatmul.mubr.bf16.gmra.mxu1 %v9343_v56  ;;  %v9379_v56 = vld [vmem:[%s10124_s30 + $0x368] ss:$16 sps:$4 sm:$0xff]  }
  0xf6   : > { %3772 = vmatprep.mubr.bf16.mxu0 %v9344_v57  ;;  %4829 = vmatprep.mubr.bf16.mxu1 %v9346_v58  ;;  %v9382_v57 = vld [vmem:[%s10124_s30 + $0x384] ss:$16 sps:$4 sm:$0xff]  }
  0xfd   : > { %3773 = vmatmul.mubr.bf16.gmra.mxu0 %v9348_v59  ;;  %4830 = vmatmul.mubr.bf16.gmra.mxu1 %v9349_v60  ;;  %v9385_v59 = vld [vmem:[%s10124_s30 + $0x38c] ss:$16 sps:$4 sm:$0xff]  }
  0xfe   : > { %3780 = vmatprep.mubr.bf16.mxu0 %v9350_v61  ;;  %4837 = vmatprep.mubr.bf16.mxu1 %v9352_v62 }
 0x105   : > { %3781 = vmatmul.mubr.bf16.gmra.mxu0 %v9354_v63  ;;  %4838 = vmatmul.mubr.bf16.gmra.mxu1 %v9355_v0 }
 0x106   : > { %3788 = vmatprep.mubr.bf16.mxu0 %v9356_v1  ;;  %4845 = vmatprep.mubr.bf16.mxu1 %v9358_v2 }
 0x10d   : > { %v3598_v8 = vpop.f32.mrf.mxu0  ;;  %3789 = vmatmul.mubr.bf16.gmra.mxu0 %v9360_v3  ;;  %v4655_v10 = vpop.f32.mrf.mxu1  ;;  %4846 = vmatmul.mubr.bf16.gmra.mxu1 %v9361_v4 }
 0x10e   : > { %v3599_v9 = vadd.f32 %v10291_v6, %v3598_v8  ;;  %3796 = vmatprep.mubr.bf16.mxu0 %v9362_v5  ;;  %4853 = vmatprep.mubr.bf16.mxu1 %v9364_v7  ;;  %v9380_v8 = vld [vmem:[%s10124_s30 + $0x380] ss:$16 sps:$4 sm:$0xff]  }
 0x10f   : > { %v3600_v11 = vpop.f32.mrf.mxu0  ;;  %v4657_v12 = vpop.f32.mrf.mxu1 }
 0x110   : > { %v4656_v15 = vadd.f32 %v4655_v10, %v3599_v9  ;;  %v9383_v12 = vld [vmem:[%s10124_s30 + $0x388] ss:$16 sps:$4 sm:$0xff]  }
 0x111   : > { %v3601_v13 = vpop.f32.mrf.mxu0  ;;  %v4658_v17 = vpop.f32.mrf.mxu1 }
 0x112   : > { %v3602_v16 = vadd.f32 %v10291_v6, %v3601_v13  ;;  %v5678_v25 = vmax.f32 %v4656_v15, 0.0  ;;  %v9388_v13 = vld [vmem:[%s10124_s30 + $0x3a4] ss:$16 sps:$4 sm:$0xff]   ;;  %v9391_v15 = vld [vmem:[%s10124_s30 + $0x3ac] ss:$16 sps:$4 sm:$0xff]  }
 0x113   : > { %v3603_v20 = vpop.f32.mrf.mxu0  ;;  %v4660_v23 = vpop.f32.mrf.mxu1 }
 0x114   : > { %v4659_v22 = vadd.f32 %v4658_v17, %v3602_v16 }
 0x115   : > { %v3606_v24 = vpop.f32.mrf.mxu0  ;;  %3797 = vmatmul.mubr.bf16.gmra.mxu0 %v9366_v14  ;;  %v4663_v28 = vpop.f32.mrf.mxu1  ;;  %4854 = vmatmul.mubr.bf16.gmra.mxu1 %v9367_v18 }
 0x116   : > { %v5679_v26 = vmax.f32 %v4659_v22, 0.0  ;;  %v3607_v27 = vadd.f32 %v10291_v6, %v3606_v24  ;;  %3804 = vmatprep.mubr.bf16.mxu0 %v9368_v19  ;;  %4861 = vmatprep.mubr.bf16.mxu1 %v9370_v21 }
 0x117   : > { %v3608_v29 = vpop.f32.mrf.mxu0  ;;  %v4665_v31 = vpop.f32.mrf.mxu1 }
 0x118   : > { %v8391_v30 = vpack.c.bf16 %v5679_v26, %v5678_v25  ;;  %v4664_v34 = vadd.f32 %v4663_v28, %v3607_v27  ;;  %v9386_v27 = vld [vmem:[%s10124_s30 + $0x3a0] ss:$16 sps:$4 sm:$0xff]   ;;  %v9389_v31 = vld [vmem:[%s10124_s30 + $0x3a8] ss:$16 sps:$4 sm:$0xff]  }
 0x119   : > { %v3609_v32 = vpop.f32.mrf.mxu0  ;;  %v4666_v36 = vpop.f32.mrf.mxu1 }
 0x11a   : > { %8392 = vst [vmem:[%s10305_s21] sm:$0xff] %v8391_v30   ;;  %v3610_v35 = vadd.f32 %v10291_v6, %v3609_v32  ;;  %v5680_v44 = vmax.f32 %v4664_v34, 0.0  ;;  %v9394_v32 = vld [vmem:[%s10124_s30 + $0x3c4] ss:$16 sps:$4 sm:$0xff]   ;;  %v9397_v34 = vld [vmem:[%s10124_s30 + $0x3cc] ss:$16 sps:$4 sm:$0xff]  }
 0x11b   : > { %v3611_v39 = vpop.f32.mrf.mxu0  ;;  %v4668_v42 = vpop.f32.mrf.mxu1 }
 0x11c   : > { %v4667_v41 = vadd.f32 %v4666_v36, %v3610_v35 }
 0x11d   : > { %v3614_v43 = vpop.f32.mrf.mxu0  ;;  %3805 = vmatmul.mubr.bf16.gmra.mxu0 %v9372_v33  ;;  %v4671_v47 = vpop.f32.mrf.mxu1  ;;  %4862 = vmatmul.mubr.bf16.gmra.mxu1 %v9373_v37 }
 0x11e   : > { %v5681_v45 = vmax.f32 %v4667_v41, 0.0  ;;  %v3615_v46 = vadd.f32 %v10291_v6, %v3614_v43  ;;  %3812 = vmatprep.mubr.bf16.mxu0 %v9374_v38  ;;  %4869 = vmatprep.mubr.bf16.mxu1 %v9376_v40 }
 0x11f   : > { %v3616_v48 = vpop.f32.mrf.mxu0  ;;  %v4673_v50 = vpop.f32.mrf.mxu1 }
 0x120   : > { %v8396_v49 = vpack.c.bf16 %v5681_v45, %v5680_v44  ;;  %v4672_v53 = vadd.f32 %v4671_v47, %v3615_v46  ;;  %v9392_v46 = vld [vmem:[%s10124_s30 + $0x3c0] ss:$16 sps:$4 sm:$0xff]   ;;  %v9395_v50 = vld [vmem:[%s10124_s30 + $0x3c8] ss:$16 sps:$4 sm:$0xff]  }
 0x121   : > { %v3617_v51 = vpop.f32.mrf.mxu0  ;;  %v4674_v55 = vpop.f32.mrf.mxu1 }
 0x122   : > { %9028 = vst [vmem:[%s10305_s21 + $0x8] sm:$0xff] %v8396_v49   ;;  %v3618_v54 = vadd.f32 %v10291_v6, %v3617_v51  ;;  %v5682_v63 = vmax.f32 %v4672_v53, 0.0  ;;  %v9400_v51 = vld [vmem:[%s10124_s30 + $0x3e4] ss:$16 sps:$4 sm:$0xff]   ;;  %v9403_v53 = vld [vmem:[%s10124_s30 + $0x3ec] ss:$16 sps:$4 sm:$0xff]  }
 0x123   : > { %v3619_v58 = vpop.f32.mrf.mxu0  ;;  %v4676_v61 = vpop.f32.mrf.mxu1 }
 0x124   : > { %v4675_v60 = vadd.f32 %v4674_v55, %v3618_v54 }
 0x125   : > { %v3622_v62 = vpop.f32.mrf.mxu0  ;;  %3813 = vmatmul.mubr.bf16.gmra.mxu0 %v9378_v52  ;;  %v4679_v2 = vpop.f32.mrf.mxu1  ;;  %4870 = vmatmul.mubr.bf16.gmra.mxu1 %v9379_v56 }
 0x126   : > { %v5683_v0 = vmax.f32 %v4675_v60, 0.0  ;;  %v3623_v1 = vadd.f32 %v10291_v6, %v3622_v62  ;;  %3820 = vmatprep.mubr.bf16.mxu0 %v9382_v57  ;;  %4877 = vmatprep.mubr.bf16.mxu1 %v9385_v59 }
 0x127   : > { %v3624_v3 = vpop.f32.mrf.mxu0  ;;  %v4681_v5 = vpop.f32.mrf.mxu1 }
 0x128   : > { %v8401_v4 = vpack.c.bf16 %v5683_v0, %v5682_v63  ;;  %v4680_v9 = vadd.f32 %v4679_v2, %v3623_v1  ;;  %v9398_v1 = vld [vmem:[%s10124_s30 + $0x3e0] ss:$16 sps:$4 sm:$0xff]   ;;  %v9401_v5 = vld [vmem:[%s10124_s30 + $0x3e8] ss:$16 sps:$4 sm:$0xff]  }
 0x129   : > { %v3625_v7 = vpop.f32.mrf.mxu0  ;;  %v4682_v11 = vpop.f32.mrf.mxu1 }
 0x12a   : > { %9029 = vst [vmem:[%s10305_s21 + $0x10] sm:$0xff] %v8401_v4   ;;  %v3626_v10 = vadd.f32 %v10291_v6, %v3625_v7  ;;  %v5684_v19 = vmax.f32 %v4680_v9, 0.0  ;;  %v9406_v7 = vld [vmem:[%s10124_s30 + $0x404] ss:$16 sps:$4 sm:$0xff]   ;;  %v9409_v9 = vld [vmem:[%s10124_s30 + $0x40c] ss:$16 sps:$4 sm:$0xff]  }
 0x12b   : > { %v3627_v14 = vpop.f32.mrf.mxu0  ;;  %v4684_v17 = vpop.f32.mrf.mxu1 }
 0x12c   : > { %v4683_v16 = vadd.f32 %v4682_v11, %v3626_v10 }
 0x12d   : > { %v3630_v18 = vpop.f32.mrf.mxu0  ;;  %3821 = vmatmul.mubr.bf16.gmra.mxu0 %v9380_v8  ;;  %v4687_v22 = vpop.f32.mrf.mxu1  ;;  %4878 = vmatmul.mubr.bf16.gmra.mxu1 %v9383_v12 }
 0x12e   : > { %v5685_v20 = vmax.f32 %v4683_v16, 0.0  ;;  %v3631_v21 = vadd.f32 %v10291_v6, %v3630_v18  ;;  %3828 = vmatprep.mubr.bf16.mxu0 %v9388_v13  ;;  %4885 = vmatprep.mubr.bf16.mxu1 %v9391_v15 }
 0x12f   : > { %v3632_v23 = vpop.f32.mrf.mxu0  ;;  %v4689_v25 = vpop.f32.mrf.mxu1 }
 0x130   : > { %v8406_v24 = vpack.c.bf16 %v5685_v20, %v5684_v19  ;;  %v4688_v28 = vadd.f32 %v4687_v22, %v3631_v21  ;;  %v9404_v21 = vld [vmem:[%s10124_s30 + $0x400] ss:$16 sps:$4 sm:$0xff]   ;;  %v9407_v25 = vld [vmem:[%s10124_s30 + $0x408] ss:$16 sps:$4 sm:$0xff]  }
 0x131   : > { %v3633_v26 = vpop.f32.mrf.mxu0  ;;  %v4690_v30 = vpop.f32.mrf.mxu1 }
 0x132   : > { %9030 = vst [vmem:[%s10305_s21 + $0x18] sm:$0xff] %v8406_v24   ;;  %v3634_v29 = vadd.f32 %v10291_v6, %v3633_v26  ;;  %v5686_v38 = vmax.f32 %v4688_v28, 0.0  ;;  %v9412_v26 = vld [vmem:[%s10124_s30 + $0x424] ss:$16 sps:$4 sm:$0xff]   ;;  %v9415_v28 = vld [vmem:[%s10124_s30 + $0x42c] ss:$16 sps:$4 sm:$0xff]  }
 0x133   : > { %v3635_v33 = vpop.f32.mrf.mxu0  ;;  %v4692_v36 = vpop.f32.mrf.mxu1 }
 0x134   : > { %v4691_v35 = vadd.f32 %v4690_v30, %v3634_v29 }
 0x135   : > { %v3638_v37 = vpop.f32.mrf.mxu0  ;;  %3829 = vmatmul.mubr.bf16.gmra.mxu0 %v9386_v27  ;;  %v4695_v41 = vpop.f32.mrf.mxu1  ;;  %4886 = vmatmul.mubr.bf16.gmra.mxu1 %v9389_v31 }
 0x136   : > { %v5687_v39 = vmax.f32 %v4691_v35, 0.0  ;;  %v3639_v40 = vadd.f32 %v10291_v6, %v3638_v37  ;;  %3836 = vmatprep.mubr.bf16.mxu0 %v9394_v32  ;;  %4893 = vmatprep.mubr.bf16.mxu1 %v9397_v34 }
 0x137   : > { %v3640_v42 = vpop.f32.mrf.mxu0  ;;  %v4697_v44 = vpop.f32.mrf.mxu1 }
 0x138   : > { %v8411_v43 = vpack.c.bf16 %v5687_v39, %v5686_v38  ;;  %v4696_v47 = vadd.f32 %v4695_v41, %v3639_v40  ;;  %v9410_v40 = vld [vmem:[%s10124_s30 + $0x420] ss:$16 sps:$4 sm:$0xff]   ;;  %v9413_v44 = vld [vmem:[%s10124_s30 + $0x428] ss:$16 sps:$4 sm:$0xff]  }
 0x139   : > { %v3641_v45 = vpop.f32.mrf.mxu0  ;;  %v4698_v49 = vpop.f32.mrf.mxu1 }
 0x13a   : > { %9031 = vst [vmem:[%s10305_s21 + $0x20] sm:$0xff] %v8411_v43   ;;  %v3642_v48 = vadd.f32 %v10291_v6, %v3641_v45  ;;  %v5688_v57 = vmax.f32 %v4696_v47, 0.0  ;;  %v9418_v45 = vld [vmem:[%s10124_s30 + $0x444] ss:$16 sps:$4 sm:$0xff]   ;;  %v9421_v47 = vld [vmem:[%s10124_s30 + $0x44c] ss:$16 sps:$4 sm:$0xff]  }
 0x13b   : > { %v3643_v52 = vpop.f32.mrf.mxu0  ;;  %v4700_v55 = vpop.f32.mrf.mxu1 }
 0x13c   : > { %v4699_v54 = vadd.f32 %v4698_v49, %v3642_v48 }
 0x13d   : > { %v3646_v56 = vpop.f32.mrf.mxu0  ;;  %3837 = vmatmul.mubr.bf16.gmra.mxu0 %v9392_v46  ;;  %v4703_v60 = vpop.f32.mrf.mxu1  ;;  %4894 = vmatmul.mubr.bf16.gmra.mxu1 %v9395_v50 }
 0x13e   : > { %v5689_v58 = vmax.f32 %v4699_v54, 0.0  ;;  %v3647_v59 = vadd.f32 %v10291_v6, %v3646_v56  ;;  %3844 = vmatprep.mubr.bf16.mxu0 %v9400_v51  ;;  %4901 = vmatprep.mubr.bf16.mxu1 %v9403_v53 }
 0x13f   : > { %v3648_v61 = vpop.f32.mrf.mxu0  ;;  %v4705_v63 = vpop.f32.mrf.mxu1 }
 0x140   : > { %v8416_v62 = vpack.c.bf16 %v5689_v58, %v5688_v57  ;;  %v4704_v2 = vadd.f32 %v4703_v60, %v3647_v59  ;;  %v9416_v59 = vld [vmem:[%s10124_s30 + $0x440] ss:$16 sps:$4 sm:$0xff]   ;;  %v9419_v63 = vld [vmem:[%s10124_s30 + $0x448] ss:$16 sps:$4 sm:$0xff]  }
 0x141   : > { %v3649_v0 = vpop.f32.mrf.mxu0  ;;  %v4706_v4 = vpop.f32.mrf.mxu1 }
 0x142   : > { %9032 = vst [vmem:[%s10305_s21 + $0x28] sm:$0xff] %v8416_v62   ;;  %v3650_v3 = vadd.f32 %v10291_v6, %v3649_v0  ;;  %v5690_v13 = vmax.f32 %v4704_v2, 0.0  ;;  %v9424_v0 = vld [vmem:[%s10124_s30 + $0x464] ss:$16 sps:$4 sm:$0xff]   ;;  %v9427_v2 = vld [vmem:[%s10124_s30 + $0x46c] ss:$16 sps:$4 sm:$0xff]  }
 0x143   : > { %v3651_v8 = vpop.f32.mrf.mxu0  ;;  %v4708_v11 = vpop.f32.mrf.mxu1 }
 0x144   : > { %v4707_v10 = vadd.f32 %v4706_v4, %v3650_v3 }
 0x145   : > { %v3654_v12 = vpop.f32.mrf.mxu0  ;;  %3845 = vmatmul.mubr.bf16.gmra.mxu0 %v9398_v1  ;;  %v4711_v16 = vpop.f32.mrf.mxu1  ;;  %4902 = vmatmul.mubr.bf16.gmra.mxu1 %v9401_v5 }
 0x146   : > { %v5691_v14 = vmax.f32 %v4707_v10, 0.0  ;;  %v3655_v15 = vadd.f32 %v10291_v6, %v3654_v12  ;;  %3852 = vmatprep.mubr.bf16.mxu0 %v9406_v7  ;;  %4909 = vmatprep.mubr.bf16.mxu1 %v9409_v9 }
 0x147   : > { %v3656_v17 = vpop.f32.mrf.mxu0  ;;  %v4713_v19 = vpop.f32.mrf.mxu1 }
 0x148   : > { %v8421_v18 = vpack.c.bf16 %v5691_v14, %v5690_v13  ;;  %v4712_v22 = vadd.f32 %v4711_v16, %v3655_v15  ;;  %v9422_v15 = vld [vmem:[%s10124_s30 + $0x460] ss:$16 sps:$4 sm:$0xff]   ;;  %v9425_v19 = vld [vmem:[%s10124_s30 + $0x468] ss:$16 sps:$4 sm:$0xff]  }
 0x149   : > { %v3657_v20 = vpop.f32.mrf.mxu0  ;;  %v4714_v24 = vpop.f32.mrf.mxu1 }
 0x14a   : > { %9033 = vst [vmem:[%s10305_s21 + $0x30] sm:$0xff] %v8421_v18   ;;  %v3658_v23 = vadd.f32 %v10291_v6, %v3657_v20  ;;  %v5692_v32 = vmax.f32 %v4712_v22, 0.0  ;;  %v9430_v20 = vld [vmem:[%s10124_s30 + $0x484] ss:$16 sps:$4 sm:$0xff]   ;;  %v9433_v22 = vld [vmem:[%s10124_s30 + $0x48c] ss:$16 sps:$4 sm:$0xff]  }
 0x14b   : > { %v3659_v27 = vpop.f32.mrf.mxu0  ;;  %v4716_v30 = vpop.f32.mrf.mxu1 }
 0x14c   : > { %v4715_v29 = vadd.f32 %v4714_v24, %v3658_v23 }
 0x14d   : > { %v3662_v31 = vpop.f32.mrf.mxu0  ;;  %3853 = vmatmul.mubr.bf16.gmra.mxu0 %v9404_v21  ;;  %v4719_v35 = vpop.f32.mrf.mxu1  ;;  %4910 = vmatmul.mubr.bf16.gmra.mxu1 %v9407_v25 }
 0x14e   : > { %v5693_v33 = vmax.f32 %v4715_v29, 0.0  ;;  %v3663_v34 = vadd.f32 %v10291_v6, %v3662_v31  ;;  %3860 = vmatprep.mubr.bf16.mxu0 %v9412_v26  ;;  %4917 = vmatprep.mubr.bf16.mxu1 %v9415_v28 }
 0x14f   : > { %v3664_v36 = vpop.f32.mrf.mxu0  ;;  %v4721_v38 = vpop.f32.mrf.mxu1 }
 0x150   : > { %v8426_v37 = vpack.c.bf16 %v5693_v33, %v5692_v32  ;;  %v4720_v41 = vadd.f32 %v4719_v35, %v3663_v34  ;;  %v9428_v34 = vld [vmem:[%s10124_s30 + $0x480] ss:$16 sps:$4 sm:$0xff]   ;;  %v9431_v38 = vld [vmem:[%s10124_s30 + $0x488] ss:$16 sps:$4 sm:$0xff]  }
 0x151   : > { %v3665_v39 = vpop.f32.mrf.mxu0  ;;  %v4722_v43 = vpop.f32.mrf.mxu1 }
 0x152   : > { %9034 = vst [vmem:[%s10305_s21 + $0x38] sm:$0xff] %v8426_v37   ;;  %v3666_v42 = vadd.f32 %v10291_v6, %v3665_v39  ;;  %v5694_v51 = vmax.f32 %v4720_v41, 0.0  ;;  %v9436_v39 = vld [vmem:[%s10124_s30 + $0x4a4] ss:$16 sps:$4 sm:$0xff]   ;;  %v9439_v41 = vld [vmem:[%s10124_s30 + $0x4ac] ss:$16 sps:$4 sm:$0xff]  }
 0x153   : > { %v3667_v46 = vpop.f32.mrf.mxu0  ;;  %v4724_v49 = vpop.f32.mrf.mxu1 }
 0x154   : > { %v4723_v48 = vadd.f32 %v4722_v43, %v3666_v42 }
 0x155   : > { %v3670_v50 = vpop.f32.mrf.mxu0  ;;  %3861 = vmatmul.mubr.bf16.gmra.mxu0 %v9410_v40  ;;  %v4727_v54 = vpop.f32.mrf.mxu1  ;;  %4918 = vmatmul.mubr.bf16.gmra.mxu1 %v9413_v44 }
 0x156   : > { %v5695_v52 = vmax.f32 %v4723_v48, 0.0  ;;  %v3671_v53 = vadd.f32 %v10291_v6, %v3670_v50  ;;  %3868 = vmatprep.mubr.bf16.mxu0 %v9418_v45  ;;  %4925 = vmatprep.mubr.bf16.mxu1 %v9421_v47 }
 0x157   : > { %v3672_v55 = vpop.f32.mrf.mxu0  ;;  %v4729_v57 = vpop.f32.mrf.mxu1 }
 0x158   : > { %v8431_v56 = vpack.c.bf16 %v5695_v52, %v5694_v51  ;;  %v4728_v60 = vadd.f32 %v4727_v54, %v3671_v53  ;;  %v9434_v53 = vld [vmem:[%s10124_s30 + $0x4a0] ss:$16 sps:$4 sm:$0xff]   ;;  %v9437_v57 = vld [vmem:[%s10124_s30 + $0x4a8] ss:$16 sps:$4 sm:$0xff]  }
 0x159   : > { %v3673_v58 = vpop.f32.mrf.mxu0  ;;  %v4730_v62 = vpop.f32.mrf.mxu1 }
 0x15a   : > { %9035 = vst [vmem:[%s10305_s21 + $0x40] sm:$0xff] %v8431_v56   ;;  %v3674_v61 = vadd.f32 %v10291_v6, %v3673_v58  ;;  %v5696_v7 = vmax.f32 %v4728_v60, 0.0  ;;  %v9442_v58 = vld [vmem:[%s10124_s30 + $0x4c4] ss:$16 sps:$4 sm:$0xff]   ;;  %v9445_v60 = vld [vmem:[%s10124_s30 + $0x4cc] ss:$16 sps:$4 sm:$0xff]  }
 0x15b   : > { %v3675_v1 = vpop.f32.mrf.mxu0  ;;  %v4732_v4 = vpop.f32.mrf.mxu1 }
 0x15c   : > { %v4731_v3 = vadd.f32 %v4730_v62, %v3674_v61 }
 0x15d   : > { %v3678_v5 = vpop.f32.mrf.mxu0  ;;  %3869 = vmatmul.mubr.bf16.gmra.mxu0 %v9416_v59  ;;  %v4735_v10 = vpop.f32.mrf.mxu1  ;;  %4926 = vmatmul.mubr.bf16.gmra.mxu1 %v9419_v63 }
 0x15e   : > { %v5697_v8 = vmax.f32 %v4731_v3, 0.0  ;;  %v3679_v9 = vadd.f32 %v10291_v6, %v3678_v5  ;;  %3876 = vmatprep.mubr.bf16.mxu0 %v9424_v0  ;;  %4933 = vmatprep.mubr.bf16.mxu1 %v9427_v2 }
 0x15f   : > { %v3680_v11 = vpop.f32.mrf.mxu0  ;;  %v4737_v13 = vpop.f32.mrf.mxu1 }
 0x160   : > { %v8436_v12 = vpack.c.bf16 %v5697_v8, %v5696_v7  ;;  %v4736_v16 = vadd.f32 %v4735_v10, %v3679_v9  ;;  %v9440_v9 = vld [vmem:[%s10124_s30 + $0x4c0] ss:$16 sps:$4 sm:$0xff]   ;;  %v9443_v13 = vld [vmem:[%s10124_s30 + $0x4c8] ss:$16 sps:$4 sm:$0xff]  }
 0x161   : > { %v3681_v14 = vpop.f32.mrf.mxu0  ;;  %v4738_v18 = vpop.f32.mrf.mxu1 }
 0x162   : > { %9036 = vst [vmem:[%s10305_s21 + $0x48] sm:$0xff] %v8436_v12   ;;  %v3682_v17 = vadd.f32 %v10291_v6, %v3681_v14  ;;  %v5698_v26 = vmax.f32 %v4736_v16, 0.0  ;;  %v9448_v14 = vld [vmem:[%s10124_s30 + $0x4e4] ss:$16 sps:$4 sm:$0xff]   ;;  %v9451_v16 = vld [vmem:[%s10124_s30 + $0x4ec] ss:$16 sps:$4 sm:$0xff]  }
 0x163   : > { %v3683_v21 = vpop.f32.mrf.mxu0  ;;  %v4740_v24 = vpop.f32.mrf.mxu1 }
 0x164   : > { %v4739_v23 = vadd.f32 %v4738_v18, %v3682_v17 }
 0x165   : > { %v3686_v25 = vpop.f32.mrf.mxu0  ;;  %3877 = vmatmul.mubr.bf16.gmra.mxu0 %v9422_v15  ;;  %v4743_v29 = vpop.f32.mrf.mxu1  ;;  %4934 = vmatmul.mubr.bf16.gmra.mxu1 %v9425_v19 }
 0x166   : > { %v5699_v27 = vmax.f32 %v4739_v23, 0.0  ;;  %v3687_v28 = vadd.f32 %v10291_v6, %v3686_v25  ;;  %3884 = vmatprep.mubr.bf16.mxu0 %v9430_v20  ;;  %4941 = vmatprep.mubr.bf16.mxu1 %v9433_v22 }
 0x167   : > { %v3688_v30 = vpop.f32.mrf.mxu0  ;;  %v4745_v32 = vpop.f32.mrf.mxu1 }
 0x168   : > { %v8441_v31 = vpack.c.bf16 %v5699_v27, %v5698_v26  ;;  %v4744_v35 = vadd.f32 %v4743_v29, %v3687_v28  ;;  %v9446_v28 = vld [vmem:[%s10124_s30 + $0x4e0] ss:$16 sps:$4 sm:$0xff]   ;;  %v9449_v32 = vld [vmem:[%s10124_s30 + $0x4e8] ss:$16 sps:$4 sm:$0xff]  }
 0x169   : > { %v3689_v33 = vpop.f32.mrf.mxu0  ;;  %v4746_v37 = vpop.f32.mrf.mxu1 }
 0x16a   : > { %9037 = vst [vmem:[%s10305_s21 + $0x50] sm:$0xff] %v8441_v31   ;;  %v3690_v36 = vadd.f32 %v10291_v6, %v3689_v33  ;;  %v5700_v45 = vmax.f32 %v4744_v35, 0.0  ;;  %v9454_v33 = vld [vmem:[%s10124_s30 + $0x504] ss:$16 sps:$4 sm:$0xff]   ;;  %v9457_v35 = vld [vmem:[%s10124_s30 + $0x50c] ss:$16 sps:$4 sm:$0xff]  }
 0x16b   : > { %v3691_v40 = vpop.f32.mrf.mxu0  ;;  %v4748_v43 = vpop.f32.mrf.mxu1 }
 0x16c   : > { %v4747_v42 = vadd.f32 %v4746_v37, %v3690_v36 }
 0x16d   : > { %v3694_v44 = vpop.f32.mrf.mxu0  ;;  %3885 = vmatmul.mubr.bf16.gmra.mxu0 %v9428_v34  ;;  %v4751_v48 = vpop.f32.mrf.mxu1  ;;  %4942 = vmatmul.mubr.bf16.gmra.mxu1 %v9431_v38 }
 0x16e   : > { %v5701_v46 = vmax.f32 %v4747_v42, 0.0  ;;  %v3695_v47 = vadd.f32 %v10291_v6, %v3694_v44  ;;  %3892 = vmatprep.mubr.bf16.mxu0 %v9436_v39  ;;  %4949 = vmatprep.mubr.bf16.mxu1 %v9439_v41 }
 0x16f   : > { %v3696_v49 = vpop.f32.mrf.mxu0  ;;  %v4753_v51 = vpop.f32.mrf.mxu1 }
 0x170   : > { %v8446_v50 = vpack.c.bf16 %v5701_v46, %v5700_v45  ;;  %v4752_v54 = vadd.f32 %v4751_v48, %v3695_v47  ;;  %v9452_v47 = vld [vmem:[%s10124_s30 + $0x500] ss:$16 sps:$4 sm:$0xff]   ;;  %v9455_v51 = vld [vmem:[%s10124_s30 + $0x508] ss:$16 sps:$4 sm:$0xff]  }
 0x171   : > { %v3697_v52 = vpop.f32.mrf.mxu0  ;;  %v4754_v56 = vpop.f32.mrf.mxu1 }
 0x172   : > { %9038 = vst [vmem:[%s10305_s21 + $0x58] sm:$0xff] %v8446_v50   ;;  %v3698_v55 = vadd.f32 %v10291_v6, %v3697_v52  ;;  %v5702_v0 = vmax.f32 %v4752_v54, 0.0  ;;  %v9460_v52 = vld [vmem:[%s10124_s30 + $0x524] ss:$16 sps:$4 sm:$0xff]   ;;  %v9463_v54 = vld [vmem:[%s10124_s30 + $0x52c] ss:$16 sps:$4 sm:$0xff]  }
 0x173   : > { %v3699_v59 = vpop.f32.mrf.mxu0  ;;  %v4756_v62 = vpop.f32.mrf.mxu1 }
 0x174   : > { %v4755_v61 = vadd.f32 %v4754_v56, %v3698_v55 }
 0x175   : > { %v3702_v63 = vpop.f32.mrf.mxu0  ;;  %3893 = vmatmul.mubr.bf16.gmra.mxu0 %v9434_v53  ;;  %v4759_v3 = vpop.f32.mrf.mxu1  ;;  %4950 = vmatmul.mubr.bf16.gmra.mxu1 %v9437_v57 }
 0x176   : > { %v5703_v1 = vmax.f32 %v4755_v61, 0.0  ;;  %v3703_v2 = vadd.f32 %v10291_v6, %v3702_v63  ;;  %3900 = vmatprep.mubr.bf16.mxu0 %v9442_v58  ;;  %4957 = vmatprep.mubr.bf16.mxu1 %v9445_v60 }
 0x177   : > { %v3704_v4 = vpop.f32.mrf.mxu0  ;;  %v4761_v7 = vpop.f32.mrf.mxu1 }
 0x178   : > { %v8451_v5 = vpack.c.bf16 %v5703_v1, %v5702_v0  ;;  %v4760_v10 = vadd.f32 %v4759_v3, %v3703_v2  ;;  %v9458_v2 = vld [vmem:[%s10124_s30 + $0x520] ss:$16 sps:$4 sm:$0xff]   ;;  %v9461_v7 = vld [vmem:[%s10124_s30 + $0x528] ss:$16 sps:$4 sm:$0xff]  }
 0x179   : > { %v3705_v8 = vpop.f32.mrf.mxu0  ;;  %v4762_v12 = vpop.f32.mrf.mxu1 }
 0x17a   : > { %9039 = vst [vmem:[%s10305_s21 + $0x60] sm:$0xff] %v8451_v5   ;;  %v3706_v11 = vadd.f32 %v10291_v6, %v3705_v8  ;;  %v5704_v20 = vmax.f32 %v4760_v10, 0.0  ;;  %v9466_v8 = vld [vmem:[%s10124_s30 + $0x544] ss:$16 sps:$4 sm:$0xff]   ;;  %v9469_v10 = vld [vmem:[%s10124_s30 + $0x54c] ss:$16 sps:$4 sm:$0xff]  }
 0x17b   : > { %v3707_v15 = vpop.f32.mrf.mxu0  ;;  %v4764_v18 = vpop.f32.mrf.mxu1 }
 0x17c   : > { %v4763_v17 = vadd.f32 %v4762_v12, %v3706_v11 }
 0x17d   : > { %v3710_v19 = vpop.f32.mrf.mxu0  ;;  %3901 = vmatmul.mubr.bf16.gmra.mxu0 %v9440_v9  ;;  %v4767_v23 = vpop.f32.mrf.mxu1  ;;  %4958 = vmatmul.mubr.bf16.gmra.mxu1 %v9443_v13 }
 0x17e   : > { %v5705_v21 = vmax.f32 %v4763_v17, 0.0  ;;  %v3711_v22 = vadd.f32 %v10291_v6, %v3710_v19  ;;  %3908 = vmatprep.mubr.bf16.mxu0 %v9448_v14  ;;  %4965 = vmatprep.mubr.bf16.mxu1 %v9451_v16 }
 0x17f   : > { %v3712_v24 = vpop.f32.mrf.mxu0  ;;  %v4769_v26 = vpop.f32.mrf.mxu1 }
 0x180   : > { %v8456_v25 = vpack.c.bf16 %v5705_v21, %v5704_v20  ;;  %v4768_v29 = vadd.f32 %v4767_v23, %v3711_v22  ;;  %v9464_v22 = vld [vmem:[%s10124_s30 + $0x540] ss:$16 sps:$4 sm:$0xff]   ;;  %v9467_v26 = vld [vmem:[%s10124_s30 + $0x548] ss:$16 sps:$4 sm:$0xff]  }
 0x181   : > { %v3713_v27 = vpop.f32.mrf.mxu0  ;;  %v4770_v31 = vpop.f32.mrf.mxu1 }
 0x182   : > { %9040 = vst [vmem:[%s10305_s21 + $0x68] sm:$0xff] %v8456_v25   ;;  %v3714_v30 = vadd.f32 %v10291_v6, %v3713_v27  ;;  %v5706_v39 = vmax.f32 %v4768_v29, 0.0  ;;  %v9472_v27 = vld [vmem:[%s10124_s30 + $0x564] ss:$16 sps:$4 sm:$0xff]   ;;  %v9475_v29 = vld [vmem:[%s10124_s30 + $0x56c] ss:$16 sps:$4 sm:$0xff]  }
 0x183   : > { %v3715_v34 = vpop.f32.mrf.mxu0  ;;  %v4772_v37 = vpop.f32.mrf.mxu1 }
 0x184   : > { %v4771_v36 = vadd.f32 %v4770_v31, %v3714_v30 }
 0x185   : > { %v3718_v38 = vpop.f32.mrf.mxu0  ;;  %3909 = vmatmul.mubr.bf16.gmra.mxu0 %v9446_v28  ;;  %v4775_v42 = vpop.f32.mrf.mxu1  ;;  %4966 = vmatmul.mubr.bf16.gmra.mxu1 %v9449_v32 }
 0x186   : > { %v5707_v40 = vmax.f32 %v4771_v36, 0.0  ;;  %v3719_v41 = vadd.f32 %v10291_v6, %v3718_v38  ;;  %3916 = vmatprep.mubr.bf16.mxu0 %v9454_v33  ;;  %4973 = vmatprep.mubr.bf16.mxu1 %v9457_v35 }
 0x187   : > { %v3720_v43 = vpop.f32.mrf.mxu0  ;;  %v4777_v45 = vpop.f32.mrf.mxu1 }
 0x188   : > { %v8461_v44 = vpack.c.bf16 %v5707_v40, %v5706_v39  ;;  %v4776_v48 = vadd.f32 %v4775_v42, %v3719_v41  ;;  %v9470_v41 = vld [vmem:[%s10124_s30 + $0x560] ss:$16 sps:$4 sm:$0xff]   ;;  %v9473_v45 = vld [vmem:[%s10124_s30 + $0x568] ss:$16 sps:$4 sm:$0xff]  }
 0x189   : > { %v3721_v46 = vpop.f32.mrf.mxu0  ;;  %v4778_v50 = vpop.f32.mrf.mxu1 }
 0x18a   : > { %9041 = vst [vmem:[%s10305_s21 + $0x70] sm:$0xff] %v8461_v44   ;;  %v3722_v49 = vadd.f32 %v10291_v6, %v3721_v46  ;;  %v5708_v58 = vmax.f32 %v4776_v48, 0.0  ;;  %v9478_v46 = vld [vmem:[%s10124_s30 + $0x584] ss:$16 sps:$4 sm:$0xff]   ;;  %v9481_v48 = vld [vmem:[%s10124_s30 + $0x58c] ss:$16 sps:$4 sm:$0xff]  }
 0x18b   : > { %v3723_v53 = vpop.f32.mrf.mxu0  ;;  %v4780_v56 = vpop.f32.mrf.mxu1 }
 0x18c   : > { %v4779_v55 = vadd.f32 %v4778_v50, %v3722_v49 }
 0x18d   : > { %v3726_v57 = vpop.f32.mrf.mxu0  ;;  %3917 = vmatmul.mubr.bf16.gmra.mxu0 %v9452_v47  ;;  %v4783_v61 = vpop.f32.mrf.mxu1  ;;  %4974 = vmatmul.mubr.bf16.gmra.mxu1 %v9455_v51 }
 0x18e   : > { %v5709_v59 = vmax.f32 %v4779_v55, 0.0  ;;  %v3727_v60 = vadd.f32 %v10291_v6, %v3726_v57  ;;  %3924 = vmatprep.mubr.bf16.mxu0 %v9460_v52  ;;  %4981 = vmatprep.mubr.bf16.mxu1 %v9463_v54 }
 0x18f   : > { %v3728_v62 = vpop.f32.mrf.mxu0  ;;  %v4785_v0 = vpop.f32.mrf.mxu1 }
 0x190   : > { %v8466_v63 = vpack.c.bf16 %v5709_v59, %v5708_v58  ;;  %v4784_v3 = vadd.f32 %v4783_v61, %v3727_v60  ;;  %v9476_v60 = vld [vmem:[%s10124_s30 + $0x580] ss:$16 sps:$4 sm:$0xff]   ;;  %v9479_v0 = vld [vmem:[%s10124_s30 + $0x588] ss:$16 sps:$4 sm:$0xff]  }
 0x191   : > { %v3729_v1 = vpop.f32.mrf.mxu0  ;;  %v4786_v5 = vpop.f32.mrf.mxu1 }
 0x192   : > { %9042 = vst [vmem:[%s10305_s21 + $0x78] sm:$0xff] %v8466_v63   ;;  %v3730_v4 = vadd.f32 %v10291_v6, %v3729_v1  ;;  %v5710_v14 = vmax.f32 %v4784_v3, 0.0  ;;  %v9484_v1 = vld [vmem:[%s10124_s30 + $0x5a4] ss:$16 sps:$4 sm:$0xff]   ;;  %v9487_v3 = vld [vmem:[%s10124_s30 + $0x5ac] ss:$16 sps:$4 sm:$0xff]  }
 0x193   : > { %v3731_v9 = vpop.f32.mrf.mxu0  ;;  %v4788_v12 = vpop.f32.mrf.mxu1 }
 0x194   : > { %v4787_v11 = vadd.f32 %v4786_v5, %v3730_v4 }
 0x195   : > { %v3734_v13 = vpop.f32.mrf.mxu0  ;;  %3925 = vmatmul.mubr.bf16.gmra.mxu0 %v9458_v2  ;;  %v4791_v17 = vpop.f32.mrf.mxu1  ;;  %4982 = vmatmul.mubr.bf16.gmra.mxu1 %v9461_v7 }
 0x196   : > { %v5711_v15 = vmax.f32 %v4787_v11, 0.0  ;;  %v3735_v16 = vadd.f32 %v10291_v6, %v3734_v13  ;;  %3932 = vmatprep.mubr.bf16.mxu0 %v9466_v8  ;;  %4989 = vmatprep.mubr.bf16.mxu1 %v9469_v10 }
 0x197   : > { %v3736_v18 = vpop.f32.mrf.mxu0  ;;  %v4793_v20 = vpop.f32.mrf.mxu1 }
 0x198   : > { %v8471_v19 = vpack.c.bf16 %v5711_v15, %v5710_v14  ;;  %v4792_v23 = vadd.f32 %v4791_v17, %v3735_v16  ;;  %v9482_v16 = vld [vmem:[%s10124_s30 + $0x5a0] ss:$16 sps:$4 sm:$0xff]   ;;  %v9485_v20 = vld [vmem:[%s10124_s30 + $0x5a8] ss:$16 sps:$4 sm:$0xff]  }
 0x199   : > { %v3737_v21 = vpop.f32.mrf.mxu0  ;;  %v4794_v25 = vpop.f32.mrf.mxu1 }
 0x19a   : > { %9043 = vst [vmem:[%s10305_s21 + $0x80] sm:$0xff] %v8471_v19   ;;  %v3738_v24 = vadd.f32 %v10291_v6, %v3737_v21  ;;  %v5712_v33 = vmax.f32 %v4792_v23, 0.0  ;;  %v9490_v21 = vld [vmem:[%s10124_s30 + $0x5c4] ss:$16 sps:$4 sm:$0xff]   ;;  %v9493_v23 = vld [vmem:[%s10124_s30 + $0x5cc] ss:$16 sps:$4 sm:$0xff]  }
 0x19b   : > { %v3739_v28 = vpop.f32.mrf.mxu0  ;;  %v4796_v31 = vpop.f32.mrf.mxu1 }
 0x19c   : > { %v4795_v30 = vadd.f32 %v4794_v25, %v3738_v24 }
 0x19d   : > { %v3742_v32 = vpop.f32.mrf.mxu0  ;;  %3933 = vmatmul.mubr.bf16.gmra.mxu0 %v9464_v22  ;;  %v4799_v36 = vpop.f32.mrf.mxu1  ;;  %4990 = vmatmul.mubr.bf16.gmra.mxu1 %v9467_v26 }
 0x19e   : > { %v5713_v34 = vmax.f32 %v4795_v30, 0.0  ;;  %v3743_v35 = vadd.f32 %v10291_v6, %v3742_v32  ;;  %3940 = vmatprep.mubr.bf16.mxu0 %v9472_v27  ;;  %4997 = vmatprep.mubr.bf16.mxu1 %v9475_v29  ;;  %v10449_v29 = vld [vmem:[%s11130_s2] ss:$0 sm:$0xff] }
 0x19f   : > { %v3744_v37 = vpop.f32.mrf.mxu0  ;;  %v4801_v39 = vpop.f32.mrf.mxu1 }
 0x1a0   : > { %v8476_v38 = vpack.c.bf16 %v5713_v34, %v5712_v33  ;;  %v4800_v42 = vadd.f32 %v4799_v36, %v3743_v35  ;;  %v9488_v35 = vld [vmem:[%s10124_s30 + $0x5c0] ss:$16 sps:$4 sm:$0xff]   ;;  %v9491_v39 = vld [vmem:[%s10124_s30 + $0x5c8] ss:$16 sps:$4 sm:$0xff]  }
 0x1a1   : > { %v3745_v40 = vpop.f32.mrf.mxu0  ;;  %v4802_v44 = vpop.f32.mrf.mxu1 }
 0x1a2   : > { %9044 = vst [vmem:[%s10305_s21 + $0x88] sm:$0xff] %v8476_v38   ;;  %v3746_v43 = vadd.f32 %v10291_v6, %v3745_v40  ;;  %v5714_v52 = vmax.f32 %v4800_v42, 0.0  ;;  %v9496_v40 = vld [vmem:[%s10124_s30 + $0x5e4] ss:$16 sps:$4 sm:$0xff]   ;;  %v9499_v42 = vld [vmem:[%s10124_s30 + $0x5ec] ss:$16 sps:$4 sm:$0xff]  }
 0x1a3   : > { %v3747_v47 = vpop.f32.mrf.mxu0  ;;  %v4804_v50 = vpop.f32.mrf.mxu1 }
 0x1a4   : > { %v4803_v49 = vadd.f32 %v4802_v44, %v3746_v43 }
 0x1a5   : > { %v3750_v51 = vpop.f32.mrf.mxu0  ;;  %3941 = vmatmul.mubr.bf16.gmra.mxu0 %v9470_v41  ;;  %v4807_v55 = vpop.f32.mrf.mxu1  ;;  %4998 = vmatmul.mubr.bf16.gmra.mxu1 %v9473_v45 }
 0x1a6   : > { %v5715_v53 = vmax.f32 %v4803_v49, 0.0  ;;  %v3751_v54 = vadd.f32 %v10291_v6, %v3750_v51  ;;  %3948 = vmatprep.mubr.bf16.mxu0 %v9478_v46  ;;  %5005 = vmatprep.mubr.bf16.mxu1 %v9481_v48 }
 0x1a7   : > { %v3752_v56 = vpop.f32.mrf.mxu0  ;;  %v4809_v58 = vpop.f32.mrf.mxu1 }
 0x1a8   : > { %v8481_v57 = vpack.c.bf16 %v5715_v53, %v5714_v52  ;;  %v4808_v61 = vadd.f32 %v4807_v55, %v3751_v54  ;;  %v9494_v54 = vld [vmem:[%s10124_s30 + $0x5e0] ss:$16 sps:$4 sm:$0xff]   ;;  %v9497_v58 = vld [vmem:[%s10124_s30 + $0x5e8] ss:$16 sps:$4 sm:$0xff]  }
 0x1a9   : > { %v3753_v59 = vpop.f32.mrf.mxu0  ;;  %v4810_v63 = vpop.f32.mrf.mxu1 }
 0x1aa   : > { %9045 = vst [vmem:[%s10305_s21 + $0x90] sm:$0xff] %v8481_v57   ;;  %v3754_v62 = vadd.f32 %v10291_v6, %v3753_v59  ;;  %v5716_v8 = vmax.f32 %v4808_v61, 0.0  ;;  %v9502_v59 = vld [vmem:[%s10124_s30 + $0x604] ss:$16 sps:$4 sm:$0xff]   ;;  %v9505_v61 = vld [vmem:[%s10124_s30 + $0x60c] ss:$16 sps:$4 sm:$0xff]  }
 0x1ab   : > { %v3755_v2 = vpop.f32.mrf.mxu0  ;;  %v4812_v5 = vpop.f32.mrf.mxu1 }
 0x1ac   : > { %v4811_v4 = vadd.f32 %v4810_v63, %v3754_v62 }
 0x1ad   : > { %v3758_v7 = vpop.f32.mrf.mxu0  ;;  %3949 = vmatmul.mubr.bf16.gmra.mxu0 %v9476_v60  ;;  %v4815_v11 = vpop.f32.mrf.mxu1  ;;  %5006 = vmatmul.mubr.bf16.gmra.mxu1 %v9479_v0 }
 0x1ae   : > { %v5717_v9 = vmax.f32 %v4811_v4, 0.0  ;;  %v3759_v10 = vadd.f32 %v10291_v6, %v3758_v7  ;;  %3956 = vmatprep.mubr.bf16.mxu0 %v9484_v1  ;;  %5013 = vmatprep.mubr.bf16.mxu1 %v9487_v3 }
 0x1af   : > { %v3760_v12 = vpop.f32.mrf.mxu0  ;;  %v4817_v14 = vpop.f32.mrf.mxu1 }
 0x1b0   : > { %v8486_v13 = vpack.c.bf16 %v5717_v9, %v5716_v8  ;;  %v4816_v17 = vadd.f32 %v4815_v11, %v3759_v10  ;;  %v9500_v10 = vld [vmem:[%s10124_s30 + $0x600] ss:$16 sps:$4 sm:$0xff]   ;;  %v9503_v14 = vld [vmem:[%s10124_s30 + $0x608] ss:$16 sps:$4 sm:$0xff]  }
 0x1b1   : > { %v3761_v15 = vpop.f32.mrf.mxu0  ;;  %v4818_v19 = vpop.f32.mrf.mxu1 }
 0x1b2   : > { %9046 = vst [vmem:[%s10305_s21 + $0x98] sm:$0xff] %v8486_v13   ;;  %v3762_v18 = vadd.f32 %v10291_v6, %v3761_v15  ;;  %v5718_v27 = vmax.f32 %v4816_v17, 0.0  ;;  %v9508_v15 = vld [vmem:[%s10124_s30 + $0x624] ss:$16 sps:$4 sm:$0xff]   ;;  %v9511_v17 = vld [vmem:[%s10124_s30 + $0x62c] ss:$16 sps:$4 sm:$0xff]  }
 0x1b3   : > { %v3763_v22 = vpop.f32.mrf.mxu0  ;;  %v4820_v25 = vpop.f32.mrf.mxu1 }
 0x1b4   : > { %v4819_v24 = vadd.f32 %v4818_v19, %v3762_v18 }
 0x1b5   : > { %v3766_v26 = vpop.f32.mrf.mxu0  ;;  %3957 = vmatmul.mubr.bf16.gmra.mxu0 %v9482_v16  ;;  %v4823_v30 = vpop.f32.mrf.mxu1  ;;  %5014 = vmatmul.mubr.bf16.gmra.mxu1 %v9485_v20 }
 0x1b6   : > { %v5719_v28 = vmax.f32 %v4819_v24, 0.0  ;;  %v3767_v6 = vadd.f32 %v10449_v29, %v3766_v26  ;;  %3964 = vmatprep.mubr.bf16.mxu0 %v9490_v21  ;;  %5021 = vmatprep.mubr.bf16.mxu1 %v9493_v23 }
 0x1b7   : > { %v3768_v31 = vpop.f32.mrf.mxu0  ;;  %v4825_v33 = vpop.f32.mrf.mxu1 }
 0x1b8   : > { %v8491_v32 = vpack.c.bf16 %v5719_v28, %v5718_v27  ;;  %v4824_v36 = vadd.f32 %v4823_v30, %v3767_v6  ;;  %v9506_v6 = vld [vmem:[%s10124_s30 + $0x620] ss:$16 sps:$4 sm:$0xff]   ;;  %v9509_v33 = vld [vmem:[%s10124_s30 + $0x628] ss:$16 sps:$4 sm:$0xff]  }
 0x1b9   : > { %v3769_v34 = vpop.f32.mrf.mxu0  ;;  %v4826_v38 = vpop.f32.mrf.mxu1 }
 0x1ba   : > { %9047 = vst [vmem:[%s10305_s21 + $0xa0] sm:$0xff] %v8491_v32   ;;  %v3770_v37 = vadd.f32 %v10449_v29, %v3769_v34  ;;  %v5720_v46 = vmax.f32 %v4824_v36, 0.0  ;;  %v9514_v34 = vld [vmem:[%s10124_s30 + $0x644] ss:$16 sps:$4 sm:$0xff]   ;;  %v9517_v36 = vld [vmem:[%s10124_s30 + $0x64c] ss:$16 sps:$4 sm:$0xff]  }
 0x1bb   : > { %v3771_v41 = vpop.f32.mrf.mxu0  ;;  %v4828_v44 = vpop.f32.mrf.mxu1 }
 0x1bc   : > { %v4827_v43 = vadd.f32 %v4826_v38, %v3770_v37 }
 0x1bd   : > { %v3774_v45 = vpop.f32.mrf.mxu0  ;;  %3965 = vmatmul.mubr.bf16.gmra.mxu0 %v9488_v35  ;;  %v4831_v49 = vpop.f32.mrf.mxu1  ;;  %5022 = vmatmul.mubr.bf16.gmra.mxu1 %v9491_v39 }
 0x1be   : > { %v5721_v47 = vmax.f32 %v4827_v43, 0.0  ;;  %v3775_v48 = vadd.f32 %v10449_v29, %v3774_v45  ;;  %3972 = vmatprep.mubr.bf16.mxu0 %v9496_v40  ;;  %5029 = vmatprep.mubr.bf16.mxu1 %v9499_v42 }
 0x1bf   : > { %v3776_v50 = vpop.f32.mrf.mxu0  ;;  %v4833_v52 = vpop.f32.mrf.mxu1 }
 0x1c0   : > { %v8496_v51 = vpack.c.bf16 %v5721_v47, %v5720_v46  ;;  %v4832_v55 = vadd.f32 %v4831_v49, %v3775_v48  ;;  %v9512_v48 = vld [vmem:[%s10124_s30 + $0x640] ss:$16 sps:$4 sm:$0xff]   ;;  %v9515_v52 = vld [vmem:[%s10124_s30 + $0x648] ss:$16 sps:$4 sm:$0xff]  }
 0x1c1   : > { %v3777_v53 = vpop.f32.mrf.mxu0  ;;  %v4834_v57 = vpop.f32.mrf.mxu1 }
 0x1c2   : > { %9048 = vst [vmem:[%s10305_s21 + $0xa8] sm:$0xff] %v8496_v51   ;;  %v3778_v56 = vadd.f32 %v10449_v29, %v3777_v53  ;;  %v5722_v1 = vmax.f32 %v4832_v55, 0.0  ;;  %v9520_v53 = vld [vmem:[%s10124_s30 + $0x664] ss:$16 sps:$4 sm:$0xff]   ;;  %v9523_v55 = vld [vmem:[%s10124_s30 + $0x66c] ss:$16 sps:$4 sm:$0xff]  }
 0x1c3   : > { %v3779_v60 = vpop.f32.mrf.mxu0  ;;  %v4836_v63 = vpop.f32.mrf.mxu1 }
 0x1c4   : > { %v4835_v62 = vadd.f32 %v4834_v57, %v3778_v56 }
 0x1c5   : > { %v3782_v0 = vpop.f32.mrf.mxu0  ;;  %3973 = vmatmul.mubr.bf16.gmra.mxu0 %v9494_v54  ;;  %v4839_v4 = vpop.f32.mrf.mxu1  ;;  %5030 = vmatmul.mubr.bf16.gmra.mxu1 %v9497_v58 }
 0x1c6   : > { %v5723_v2 = vmax.f32 %v4835_v62, 0.0  ;;  %v3783_v3 = vadd.f32 %v10449_v29, %v3782_v0  ;;  %3980 = vmatprep.mubr.bf16.mxu0 %v9502_v59  ;;  %5037 = vmatprep.mubr.bf16.mxu1 %v9505_v61 }
 0x1c7   : > { %v3784_v5 = vpop.f32.mrf.mxu0  ;;  %v4841_v8 = vpop.f32.mrf.mxu1 }
 0x1c8   : > { %v8501_v7 = vpack.c.bf16 %v5723_v2, %v5722_v1  ;;  %v4840_v11 = vadd.f32 %v4839_v4, %v3783_v3  ;;  %v9518_v3 = vld [vmem:[%s10124_s30 + $0x660] ss:$16 sps:$4 sm:$0xff]   ;;  %v9521_v8 = vld [vmem:[%s10124_s30 + $0x668] ss:$16 sps:$4 sm:$0xff]  }
 0x1c9   : > { %v3785_v9 = vpop.f32.mrf.mxu0  ;;  %v4842_v13 = vpop.f32.mrf.mxu1 }
 0x1ca   : > { %9049 = vst [vmem:[%s10305_s21 + $0xb0] sm:$0xff] %v8501_v7   ;;  %v3786_v12 = vadd.f32 %v10449_v29, %v3785_v9  ;;  %v5724_v21 = vmax.f32 %v4840_v11, 0.0  ;;  %v9526_v9 = vld [vmem:[%s10124_s30 + $0x684] ss:$16 sps:$4 sm:$0xff]   ;;  %v9529_v11 = vld [vmem:[%s10124_s30 + $0x68c] ss:$16 sps:$4 sm:$0xff]  }
 0x1cb   : > { %v3787_v16 = vpop.f32.mrf.mxu0  ;;  %v4844_v19 = vpop.f32.mrf.mxu1 }
 0x1cc   : > { %v4843_v18 = vadd.f32 %v4842_v13, %v3786_v12 }
 0x1cd   : > { %v3790_v20 = vpop.f32.mrf.mxu0  ;;  %3981 = vmatmul.mubr.bf16.gmra.mxu0 %v9500_v10  ;;  %v4847_v24 = vpop.f32.mrf.mxu1  ;;  %5038 = vmatmul.mubr.bf16.gmra.mxu1 %v9503_v14 }
 0x1ce   : > { %v5725_v22 = vmax.f32 %v4843_v18, 0.0  ;;  %v3791_v23 = vadd.f32 %v10449_v29, %v3790_v20  ;;  %3988 = vmatprep.mubr.bf16.mxu0 %v9508_v15  ;;  %5045 = vmatprep.mubr.bf16.mxu1 %v9511_v17 }
 0x1cf   : > { %v3792_v25 = vpop.f32.mrf.mxu0  ;;  %v4849_v27 = vpop.f32.mrf.mxu1 }
 0x1d0   : > { %v8506_v26 = vpack.c.bf16 %v5725_v22, %v5724_v21  ;;  %v4848_v30 = vadd.f32 %v4847_v24, %v3791_v23  ;;  %v9524_v23 = vld [vmem:[%s10124_s30 + $0x680] ss:$16 sps:$4 sm:$0xff]   ;;  %v9527_v27 = vld [vmem:[%s10124_s30 + $0x688] ss:$16 sps:$4 sm:$0xff]  }
 0x1d1   : > { %v3793_v28 = vpop.f32.mrf.mxu0  ;;  %v4850_v32 = vpop.f32.mrf.mxu1 }
 0x1d2   : > { %9050 = vst [vmem:[%s10305_s21 + $0xb8] sm:$0xff] %v8506_v26   ;;  %v3794_v31 = vadd.f32 %v10449_v29, %v3793_v28  ;;  %v5726_v40 = vmax.f32 %v4848_v30, 0.0  ;;  %v9532_v28 = vld [vmem:[%s10124_s30 + $0x6a4] ss:$16 sps:$4 sm:$0xff]   ;;  %v9535_v30 = vld [vmem:[%s10124_s30 + $0x6ac] ss:$16 sps:$4 sm:$0xff]  }
 0x1d3   : > { %v3795_v35 = vpop.f32.mrf.mxu0  ;;  %v4852_v38 = vpop.f32.mrf.mxu1 }
 0x1d4   : > { %v4851_v37 = vadd.f32 %v4850_v32, %v3794_v31 }
 0x1d5   : > { %v3798_v39 = vpop.f32.mrf.mxu0  ;;  %3989 = vmatmul.mubr.bf16.gmra.mxu0 %v9506_v6  ;;  %v4855_v43 = vpop.f32.mrf.mxu1  ;;  %5046 = vmatmul.mubr.bf16.gmra.mxu1 %v9509_v33 }
 0x1d6   : > { %v5727_v41 = vmax.f32 %v4851_v37, 0.0  ;;  %v3799_v42 = vadd.f32 %v10449_v29, %v3798_v39  ;;  %3996 = vmatprep.mubr.bf16.mxu0 %v9514_v34  ;;  %5053 = vmatprep.mubr.bf16.mxu1 %v9517_v36 }
 0x1d7   : > { %v3800_v44 = vpop.f32.mrf.mxu0  ;;  %v4857_v46 = vpop.f32.mrf.mxu1 }
 0x1d8   : > { %v8511_v45 = vpack.c.bf16 %v5727_v41, %v5726_v40  ;;  %v4856_v49 = vadd.f32 %v4855_v43, %v3799_v42  ;;  %v9530_v42 = vld [vmem:[%s10124_s30 + $0x6a0] ss:$16 sps:$4 sm:$0xff]   ;;  %v9533_v46 = vld [vmem:[%s10124_s30 + $0x6a8] ss:$16 sps:$4 sm:$0xff]  }
 0x1d9   : > { %v3801_v47 = vpop.f32.mrf.mxu0  ;;  %v4858_v51 = vpop.f32.mrf.mxu1 }
 0x1da   : > { %9051 = vst [vmem:[%s10305_s21 + $0xc0] sm:$0xff] %v8511_v45   ;;  %v3802_v50 = vadd.f32 %v10449_v29, %v3801_v47  ;;  %v5728_v59 = vmax.f32 %v4856_v49, 0.0  ;;  %v9538_v47 = vld [vmem:[%s10124_s30 + $0x6c4] ss:$16 sps:$4 sm:$0xff]   ;;  %v9541_v49 = vld [vmem:[%s10124_s30 + $0x6cc] ss:$16 sps:$4 sm:$0xff]  }
 0x1db   : > { %v3803_v54 = vpop.f32.mrf.mxu0  ;;  %v4860_v57 = vpop.f32.mrf.mxu1 }
 0x1dc   : > { %v4859_v56 = vadd.f32 %v4858_v51, %v3802_v50 }
 0x1dd   : > { %v3806_v58 = vpop.f32.mrf.mxu0  ;;  %3997 = vmatmul.mubr.bf16.gmra.mxu0 %v9512_v48  ;;  %v4863_v62 = vpop.f32.mrf.mxu1  ;;  %5054 = vmatmul.mubr.bf16.gmra.mxu1 %v9515_v52 }
 0x1de   : > { %v5729_v60 = vmax.f32 %v4859_v56, 0.0  ;;  %v3807_v61 = vadd.f32 %v10449_v29, %v3806_v58  ;;  %4004 = vmatprep.mubr.bf16.mxu0 %v9520_v53  ;;  %5061 = vmatprep.mubr.bf16.mxu1 %v9523_v55 }
 0x1df   : > { %v3808_v63 = vpop.f32.mrf.mxu0  ;;  %v4865_v1 = vpop.f32.mrf.mxu1 }
 0x1e0   : > { %v8516_v0 = vpack.c.bf16 %v5729_v60, %v5728_v59  ;;  %v4864_v4 = vadd.f32 %v4863_v62, %v3807_v61  ;;  %v9536_v61 = vld [vmem:[%s10124_s30 + $0x6c0] ss:$16 sps:$4 sm:$0xff]   ;;  %v9539_v1 = vld [vmem:[%s10124_s30 + $0x6c8] ss:$16 sps:$4 sm:$0xff]  }
 0x1e1   : > { %v3809_v2 = vpop.f32.mrf.mxu0  ;;  %v4866_v7 = vpop.f32.mrf.mxu1 }
 0x1e2   : > { %9052 = vst [vmem:[%s10305_s21 + $0xc8] sm:$0xff] %v8516_v0   ;;  %v3810_v5 = vadd.f32 %v10449_v29, %v3809_v2  ;;  %v5730_v15 = vmax.f32 %v4864_v4, 0.0  ;;  %v9544_v2 = vld [vmem:[%s10124_s30 + $0x6e4] ss:$16 sps:$4 sm:$0xff]   ;;  %v9547_v4 = vld [vmem:[%s10124_s30 + $0x6ec] ss:$16 sps:$4 sm:$0xff]  }
 0x1e3   : > { %v3811_v10 = vpop.f32.mrf.mxu0  ;;  %v4868_v13 = vpop.f32.mrf.mxu1 }
 0x1e4   : > { %v4867_v12 = vadd.f32 %v4866_v7, %v3810_v5 }
 0x1e5   : > { %v3814_v14 = vpop.f32.mrf.mxu0  ;;  %4005 = vmatmul.mubr.bf16.gmra.mxu0 %v9518_v3  ;;  %v4871_v18 = vpop.f32.mrf.mxu1  ;;  %5062 = vmatmul.mubr.bf16.gmra.mxu1 %v9521_v8 }
 0x1e6   : > { %v5731_v16 = vmax.f32 %v4867_v12, 0.0  ;;  %v3815_v17 = vadd.f32 %v10449_v29, %v3814_v14  ;;  %4012 = vmatprep.mubr.bf16.mxu0 %v9526_v9  ;;  %5069 = vmatprep.mubr.bf16.mxu1 %v9529_v11 }
 0x1e7   : > { %v3816_v19 = vpop.f32.mrf.mxu0  ;;  %v4873_v21 = vpop.f32.mrf.mxu1 }
 0x1e8   : > { %v8521_v20 = vpack.c.bf16 %v5731_v16, %v5730_v15  ;;  %v4872_v24 = vadd.f32 %v4871_v18, %v3815_v17  ;;  %v9542_v17 = vld [vmem:[%s10124_s30 + $0x6e0] ss:$16 sps:$4 sm:$0xff]   ;;  %v9545_v21 = vld [vmem:[%s10124_s30 + $0x6e8] ss:$16 sps:$4 sm:$0xff]  }
 0x1e9   : > { %v3817_v22 = vpop.f32.mrf.mxu0  ;;  %v4874_v26 = vpop.f32.mrf.mxu1 }
 0x1ea   : > { %9053 = vst [vmem:[%s10305_s21 + $0xd0] sm:$0xff] %v8521_v20   ;;  %v3818_v25 = vadd.f32 %v10449_v29, %v3817_v22  ;;  %v5732_v34 = vmax.f32 %v4872_v24, 0.0  ;;  %v9550_v22 = vld [vmem:[%s10124_s30 + $0x704] ss:$16 sps:$4 sm:$0xff]   ;;  %v9553_v24 = vld [vmem:[%s10124_s30 + $0x70c] ss:$16 sps:$4 sm:$0xff]  }
 0x1eb   : > { %v3819_v6 = vpop.f32.mrf.mxu0  ;;  %v4876_v32 = vpop.f32.mrf.mxu1 }
 0x1ec   : > { %v4875_v31 = vadd.f32 %v4874_v26, %v3818_v25 }
 0x1ed   : > { %v3822_v33 = vpop.f32.mrf.mxu0  ;;  %4013 = vmatmul.mubr.bf16.gmra.mxu0 %v9524_v23  ;;  %v4879_v37 = vpop.f32.mrf.mxu1  ;;  %5070 = vmatmul.mubr.bf16.gmra.mxu1 %v9527_v27 }
 0x1ee   : > { %v5733_v35 = vmax.f32 %v4875_v31, 0.0  ;;  %v3823_v36 = vadd.f32 %v10449_v29, %v3822_v33  ;;  %4020 = vmatprep.mubr.bf16.mxu0 %v9532_v28  ;;  %5077 = vmatprep.mubr.bf16.mxu1 %v9535_v30 }
 0x1ef   : > { %v3824_v38 = vpop.f32.mrf.mxu0  ;;  %v4881_v40 = vpop.f32.mrf.mxu1 }
 0x1f0   : > { %v8526_v39 = vpack.c.bf16 %v5733_v35, %v5732_v34  ;;  %v4880_v43 = vadd.f32 %v4879_v37, %v3823_v36  ;;  %v9548_v36 = vld [vmem:[%s10124_s30 + $0x700] ss:$16 sps:$4 sm:$0xff]   ;;  %v9551_v40 = vld [vmem:[%s10124_s30 + $0x708] ss:$16 sps:$4 sm:$0xff]  }
 0x1f1   : > { %v3825_v41 = vpop.f32.mrf.mxu0  ;;  %v4882_v45 = vpop.f32.mrf.mxu1 }
 0x1f2   : > { %9054 = vst [vmem:[%s10305_s21 + $0xd8] sm:$0xff] %v8526_v39   ;;  %v3826_v44 = vadd.f32 %v10449_v29, %v3825_v41  ;;  %v5734_v53 = vmax.f32 %v4880_v43, 0.0  ;;  %v9556_v41 = vld [vmem:[%s10124_s30 + $0x724] ss:$16 sps:$4 sm:$0xff]   ;;  %v9559_v43 = vld [vmem:[%s10124_s30 + $0x72c] ss:$16 sps:$4 sm:$0xff]  }
 0x1f3   : > { %v3827_v48 = vpop.f32.mrf.mxu0  ;;  %v4884_v51 = vpop.f32.mrf.mxu1 }
 0x1f4   : > { %v4883_v50 = vadd.f32 %v4882_v45, %v3826_v44 }
 0x1f5   : > { %v3830_v52 = vpop.f32.mrf.mxu0  ;;  %4021 = vmatmul.mubr.bf16.gmra.mxu0 %v9530_v42  ;;  %v4887_v56 = vpop.f32.mrf.mxu1  ;;  %5078 = vmatmul.mubr.bf16.gmra.mxu1 %v9533_v46 }
 0x1f6   : > { %v5735_v54 = vmax.f32 %v4883_v50, 0.0  ;;  %v3831_v55 = vadd.f32 %v10449_v29, %v3830_v52  ;;  %4028 = vmatprep.mubr.bf16.mxu0 %v9538_v47  ;;  %5085 = vmatprep.mubr.bf16.mxu1 %v9541_v49 }
 0x1f7   : > { %v3832_v57 = vpop.f32.mrf.mxu0  ;;  %v4889_v59 = vpop.f32.mrf.mxu1 }
 0x1f8   : > { %v8531_v58 = vpack.c.bf16 %v5735_v54, %v5734_v53  ;;  %v4888_v62 = vadd.f32 %v4887_v56, %v3831_v55  ;;  %v9554_v55 = vld [vmem:[%s10124_s30 + $0x720] ss:$16 sps:$4 sm:$0xff]   ;;  %v9557_v59 = vld [vmem:[%s10124_s30 + $0x728] ss:$16 sps:$4 sm:$0xff]  }
 0x1f9   : > { %v3833_v60 = vpop.f32.mrf.mxu0  ;;  %v4890_v0 = vpop.f32.mrf.mxu1 }
 0x1fa   : > { %9055 = vst [vmem:[%s10305_s21 + $0xe0] sm:$0xff] %v8531_v58   ;;  %v3834_v63 = vadd.f32 %v10449_v29, %v3833_v60  ;;  %v5736_v9 = vmax.f32 %v4888_v62, 0.0  ;;  %v9562_v60 = vld [vmem:[%s10124_s30 + $0x744] ss:$16 sps:$4 sm:$0xff]   ;;  %v9565_v62 = vld [vmem:[%s10124_s30 + $0x74c] ss:$16 sps:$4 sm:$0xff]  }
 0x1fb   : > { %v3835_v3 = vpop.f32.mrf.mxu0  ;;  %v4892_v7 = vpop.f32.mrf.mxu1 }
 0x1fc   : > { %v4891_v5 = vadd.f32 %v4890_v0, %v3834_v63 }
 0x1fd   : > { %v3838_v8 = vpop.f32.mrf.mxu0  ;;  %4029 = vmatmul.mubr.bf16.gmra.mxu0 %v9536_v61  ;;  %v4895_v12 = vpop.f32.mrf.mxu1  ;;  %5086 = vmatmul.mubr.bf16.gmra.mxu1 %v9539_v1 }
 0x1fe   : > { %v5737_v10 = vmax.f32 %v4891_v5, 0.0  ;;  %v3839_v11 = vadd.f32 %v10449_v29, %v3838_v8  ;;  %4036 = vmatprep.mubr.bf16.mxu0 %v9544_v2  ;;  %5093 = vmatprep.mubr.bf16.mxu1 %v9547_v4 }
 0x1ff   : > { %v3840_v13 = vpop.f32.mrf.mxu0  ;;  %v4897_v15 = vpop.f32.mrf.mxu1 }
 0x200   : > { %v8536_v14 = vpack.c.bf16 %v5737_v10, %v5736_v9  ;;  %v4896_v18 = vadd.f32 %v4895_v12, %v3839_v11  ;;  %v9560_v11 = vld [vmem:[%s10124_s30 + $0x740] ss:$16 sps:$4 sm:$0xff]   ;;  %v9563_v15 = vld [vmem:[%s10124_s30 + $0x748] ss:$16 sps:$4 sm:$0xff]  }
 0x201   : > { %v3841_v16 = vpop.f32.mrf.mxu0  ;;  %v4898_v20 = vpop.f32.mrf.mxu1 }
 0x202   : > { %9056 = vst [vmem:[%s10305_s21 + $0xe8] sm:$0xff] %v8536_v14   ;;  %v3842_v19 = vadd.f32 %v10449_v29, %v3841_v16  ;;  %v5738_v28 = vmax.f32 %v4896_v18, 0.0  ;;  %v9568_v16 = vld [vmem:[%s10124_s30 + $0x764] ss:$16 sps:$4 sm:$0xff]   ;;  %v9571_v18 = vld [vmem:[%s10124_s30 + $0x76c] ss:$16 sps:$4 sm:$0xff]  }
 0x203   : > { %v3843_v23 = vpop.f32.mrf.mxu0  ;;  %v4900_v26 = vpop.f32.mrf.mxu1 }
 0x204   : > { %v4899_v25 = vadd.f32 %v4898_v20, %v3842_v19 }
 0x205   : > { %v3846_v27 = vpop.f32.mrf.mxu0  ;;  %4037 = vmatmul.mubr.bf16.gmra.mxu0 %v9542_v17  ;;  %v4903_v31 = vpop.f32.mrf.mxu1  ;;  %5094 = vmatmul.mubr.bf16.gmra.mxu1 %v9545_v21 }
 0x206   : > { %v5739_v6 = vmax.f32 %v4899_v25, 0.0  ;;  %v3847_v30 = vadd.f32 %v10449_v29, %v3846_v27  ;;  %4044 = vmatprep.mubr.bf16.mxu0 %v9550_v22  ;;  %5101 = vmatprep.mubr.bf16.mxu1 %v9553_v24 }
 0x207   : > { %v3848_v32 = vpop.f32.mrf.mxu0  ;;  %v4905_v34 = vpop.f32.mrf.mxu1 }
 0x208   : > { %v8541_v33 = vpack.c.bf16 %v5739_v6, %v5738_v28  ;;  %v4904_v37 = vadd.f32 %v4903_v31, %v3847_v30  ;;  %v9566_v30 = vld [vmem:[%s10124_s30 + $0x760] ss:$16 sps:$4 sm:$0xff]   ;;  %v9569_v34 = vld [vmem:[%s10124_s30 + $0x768] ss:$16 sps:$4 sm:$0xff]  }
 0x209   : > { %v3849_v35 = vpop.f32.mrf.mxu0  ;;  %v4906_v39 = vpop.f32.mrf.mxu1 }
 0x20a   : > { %9057 = vst [vmem:[%s10305_s21 + $0xf0] sm:$0xff] %v8541_v33   ;;  %v3850_v38 = vadd.f32 %v10449_v29, %v3849_v35  ;;  %v5740_v47 = vmax.f32 %v4904_v37, 0.0  ;;  %v9574_v35 = vld [vmem:[%s10124_s30 + $0x784] ss:$16 sps:$4 sm:$0xff]   ;;  %v9577_v37 = vld [vmem:[%s10124_s30 + $0x78c] ss:$16 sps:$4 sm:$0xff]  }
 0x20b   : > { %v3851_v42 = vpop.f32.mrf.mxu0  ;;  %v4908_v45 = vpop.f32.mrf.mxu1 }
 0x20c   : > { %v4907_v44 = vadd.f32 %v4906_v39, %v3850_v38 }
 0x20d   : > { %v3854_v46 = vpop.f32.mrf.mxu0  ;;  %4045 = vmatmul.mubr.bf16.gmra.mxu0 %v9548_v36  ;;  %v4911_v50 = vpop.f32.mrf.mxu1  ;;  %5102 = vmatmul.mubr.bf16.gmra.mxu1 %v9551_v40 }
 0x20e   : > { %v5741_v48 = vmax.f32 %v4907_v44, 0.0  ;;  %v3855_v49 = vadd.f32 %v10449_v29, %v3854_v46  ;;  %4052 = vmatprep.mubr.bf16.mxu0 %v9556_v41  ;;  %5109 = vmatprep.mubr.bf16.mxu1 %v9559_v43 }
 0x20f   : > { %v3856_v51 = vpop.f32.mrf.mxu0  ;;  %v4913_v53 = vpop.f32.mrf.mxu1 }
 0x210   : > { %v8546_v52 = vpack.c.bf16 %v5741_v48, %v5740_v47  ;;  %v4912_v56 = vadd.f32 %v4911_v50, %v3855_v49  ;;  %v9572_v49 = vld [vmem:[%s10124_s30 + $0x780] ss:$16 sps:$4 sm:$0xff]   ;;  %v9575_v53 = vld [vmem:[%s10124_s30 + $0x788] ss:$16 sps:$4 sm:$0xff]  }
 0x211   : > { %v3857_v54 = vpop.f32.mrf.mxu0  ;;  %v4914_v58 = vpop.f32.mrf.mxu1 }
 0x212   : > { %9058 = vst [vmem:[%s10305_s21 + $0xf8] sm:$0xff] %v8546_v52   ;;  %v3858_v57 = vadd.f32 %v10449_v29, %v3857_v54  ;;  %v5742_v2 = vmax.f32 %v4912_v56, 0.0  ;;  %v9580_v54 = vld [vmem:[%s10124_s30 + $0x7a4] ss:$16 sps:$4 sm:$0xff]   ;;  %v9583_v56 = vld [vmem:[%s10124_s30 + $0x7ac] ss:$16 sps:$4 sm:$0xff]  }
 0x213   : > { %v3859_v61 = vpop.f32.mrf.mxu0  ;;  %v4916_v0 = vpop.f32.mrf.mxu1 }
 0x214   : > { %v4915_v63 = vadd.f32 %v4914_v58, %v3858_v57 }
 0x215   : > { %v3862_v1 = vpop.f32.mrf.mxu0  ;;  %4053 = vmatmul.mubr.bf16.gmra.mxu0 %v9554_v55  ;;  %v4919_v5 = vpop.f32.mrf.mxu1  ;;  %5110 = vmatmul.mubr.bf16.gmra.mxu1 %v9557_v59 }
 0x216   : > { %v5743_v3 = vmax.f32 %v4915_v63, 0.0  ;;  %v3863_v4 = vadd.f32 %v10449_v29, %v3862_v1  ;;  %4060 = vmatprep.mubr.bf16.mxu0 %v9562_v60  ;;  %5117 = vmatprep.mubr.bf16.mxu1 %v9565_v62 }
 0x217   : > { %v3864_v7 = vpop.f32.mrf.mxu0  ;;  %v4921_v9 = vpop.f32.mrf.mxu1 }
 0x218   : > { %v8551_v8 = vpack.c.bf16 %v5743_v3, %v5742_v2  ;;  %v4920_v12 = vadd.f32 %v4919_v5, %v3863_v4  ;;  %v9578_v4 = vld [vmem:[%s10124_s30 + $0x7a0] ss:$16 sps:$4 sm:$0xff]   ;;  %v9581_v9 = vld [vmem:[%s10124_s30 + $0x7a8] ss:$16 sps:$4 sm:$0xff]  }
 0x219   : > { %v3865_v10 = vpop.f32.mrf.mxu0  ;;  %v4922_v14 = vpop.f32.mrf.mxu1 }
 0x21a   : > { %9059 = vst [vmem:[%s10305_s21 + $0x100] sm:$0xff] %v8551_v8   ;;  %v3866_v13 = vadd.f32 %v10449_v29, %v3865_v10  ;;  %v5744_v22 = vmax.f32 %v4920_v12, 0.0  ;;  %v9586_v10 = vld [vmem:[%s10124_s30 + $0x7c4] ss:$16 sps:$4 sm:$0xff]   ;;  %v9589_v12 = vld [vmem:[%s10124_s30 + $0x7cc] ss:$16 sps:$4 sm:$0xff]  }
 0x21b   : > { %v3867_v17 = vpop.f32.mrf.mxu0  ;;  %v4924_v20 = vpop.f32.mrf.mxu1 }
 0x21c   : > { %v4923_v19 = vadd.f32 %v4922_v14, %v3866_v13 }
 0x21d   : > { %v3870_v21 = vpop.f32.mrf.mxu0  ;;  %4061 = vmatmul.mubr.bf16.gmra.mxu0 %v9560_v11  ;;  %v4927_v25 = vpop.f32.mrf.mxu1  ;;  %5118 = vmatmul.mubr.bf16.gmra.mxu1 %v9563_v15 }
 0x21e   : > { %v5745_v23 = vmax.f32 %v4923_v19, 0.0  ;;  %v3871_v24 = vadd.f32 %v10449_v29, %v3870_v21  ;;  %4068 = vmatprep.mubr.bf16.mxu0 %v9568_v16  ;;  %5125 = vmatprep.mubr.bf16.mxu1 %v9571_v18 }
 0x21f   : > { %v3872_v26 = vpop.f32.mrf.mxu0  ;;  %v4929_v28 = vpop.f32.mrf.mxu1 }
 0x220   : > { %v8556_v27 = vpack.c.bf16 %v5745_v23, %v5744_v22  ;;  %v4928_v31 = vadd.f32 %v4927_v25, %v3871_v24  ;;  %v9584_v24 = vld [vmem:[%s10124_s30 + $0x7c0] ss:$16 sps:$4 sm:$0xff]   ;;  %v9587_v28 = vld [vmem:[%s10124_s30 + $0x7c8] ss:$16 sps:$4 sm:$0xff]  }
 0x221   : > { %v3873_v6 = vpop.f32.mrf.mxu0  ;;  %v4930_v33 = vpop.f32.mrf.mxu1 }
 0x222   : > { %9060 = vst [vmem:[%s10305_s21 + $0x108] sm:$0xff] %v8556_v27   ;;  %v3874_v32 = vadd.f32 %v10449_v29, %v3873_v6  ;;  %v5746_v41 = vmax.f32 %v4928_v31, 0.0  ;;  %v9592_v6 = vld [vmem:[%s10124_s30 + $0x7e4] ss:$16 sps:$4 sm:$0xff]   ;;  %v9595_v31 = vld [vmem:[%s10124_s30 + $0x7ec] ss:$16 sps:$4 sm:$0xff]  }
 0x223   : > { %v3875_v36 = vpop.f32.mrf.mxu0  ;;  %v4932_v39 = vpop.f32.mrf.mxu1 }
 0x224   : > { %v4931_v38 = vadd.f32 %v4930_v33, %v3874_v32 }
 0x225   : > { %v3878_v40 = vpop.f32.mrf.mxu0  ;;  %4069 = vmatmul.mubr.bf16.gmra.mxu0 %v9566_v30  ;;  %v4935_v44 = vpop.f32.mrf.mxu1  ;;  %5126 = vmatmul.mubr.bf16.gmra.mxu1 %v9569_v34 }
 0x226   : > { %v5747_v42 = vmax.f32 %v4931_v38, 0.0  ;;  %v3879_v43 = vadd.f32 %v10449_v29, %v3878_v40  ;;  %4076 = vmatprep.mubr.bf16.mxu0 %v9574_v35  ;;  %5133 = vmatprep.mubr.bf16.mxu1 %v9577_v37 }
 0x227   : > { %v3880_v45 = vpop.f32.mrf.mxu0  ;;  %v4937_v47 = vpop.f32.mrf.mxu1 }
 0x228   : > { %v8561_v46 = vpack.c.bf16 %v5747_v42, %v5746_v41  ;;  %v4936_v50 = vadd.f32 %v4935_v44, %v3879_v43  ;;  %v9590_v43 = vld [vmem:[%s10124_s30 + $0x7e0] ss:$16 sps:$4 sm:$0xff]   ;;  %v9593_v47 = vld [vmem:[%s10124_s30 + $0x7e8] ss:$16 sps:$4 sm:$0xff]  }
 0x229   : > { %v3881_v48 = vpop.f32.mrf.mxu0  ;;  %v4938_v52 = vpop.f32.mrf.mxu1 }
 0x22a   : > { %9061 = vst [vmem:[%s10305_s21 + $0x110] sm:$0xff] %v8561_v46   ;;  %v3882_v51 = vadd.f32 %v10449_v29, %v3881_v48  ;;  %v5748_v60 = vmax.f32 %v4936_v50, 0.0  ;;  %v9598_v48 = vld [vmem:[%s10124_s30 + $0x804] ss:$16 sps:$4 sm:$0xff]   ;;  %v9601_v50 = vld [vmem:[%s10124_s30 + $0x80c] ss:$16 sps:$4 sm:$0xff]  }
 0x22b   : > { %v3883_v55 = vpop.f32.mrf.mxu0  ;;  %v4940_v58 = vpop.f32.mrf.mxu1 }
 0x22c   : > { %v4939_v57 = vadd.f32 %v4938_v52, %v3882_v51 }
 0x22d   : > { %v3886_v59 = vpop.f32.mrf.mxu0  ;;  %4077 = vmatmul.mubr.bf16.gmra.mxu0 %v9572_v49  ;;  %v4943_v63 = vpop.f32.mrf.mxu1  ;;  %5134 = vmatmul.mubr.bf16.gmra.mxu1 %v9575_v53 }
 0x22e   : > { %v5749_v61 = vmax.f32 %v4939_v57, 0.0  ;;  %v3887_v62 = vadd.f32 %v10449_v29, %v3886_v59  ;;  %4084 = vmatprep.mubr.bf16.mxu0 %v9580_v54  ;;  %5141 = vmatprep.mubr.bf16.mxu1 %v9583_v56 }
 0x22f   : > { %v3888_v0 = vpop.f32.mrf.mxu0  ;;  %v4945_v2 = vpop.f32.mrf.mxu1 }
 0x230   : > { %v8566_v1 = vpack.c.bf16 %v5749_v61, %v5748_v60  ;;  %v4944_v5 = vadd.f32 %v4943_v63, %v3887_v62  ;;  %v9596_v62 = vld [vmem:[%s10124_s30 + $0x800] ss:$16 sps:$4 sm:$0xff]   ;;  %v9599_v2 = vld [vmem:[%s10124_s30 + $0x808] ss:$16 sps:$4 sm:$0xff]  }
 0x231   : > { %v3889_v3 = vpop.f32.mrf.mxu0  ;;  %v4946_v8 = vpop.f32.mrf.mxu1 }
 0x232   : > { %9062 = vst [vmem:[%s10305_s21 + $0x118] sm:$0xff] %v8566_v1   ;;  %v3890_v7 = vadd.f32 %v10449_v29, %v3889_v3  ;;  %v5750_v16 = vmax.f32 %v4944_v5, 0.0  ;;  %v9604_v3 = vld [vmem:[%s10124_s30 + $0x824] ss:$16 sps:$4 sm:$0xff]   ;;  %v9607_v5 = vld [vmem:[%s10124_s30 + $0x82c] ss:$16 sps:$4 sm:$0xff]  }
 0x233   : > { %v3891_v11 = vpop.f32.mrf.mxu0  ;;  %v4948_v14 = vpop.f32.mrf.mxu1 }
 0x234   : > { %v4947_v13 = vadd.f32 %v4946_v8, %v3890_v7 }
 0x235   : > { %v3894_v15 = vpop.f32.mrf.mxu0  ;;  %4085 = vmatmul.mubr.bf16.gmra.mxu0 %v9578_v4  ;;  %v4951_v19 = vpop.f32.mrf.mxu1  ;;  %5142 = vmatmul.mubr.bf16.gmra.mxu1 %v9581_v9 }
 0x236   : > { %v5751_v17 = vmax.f32 %v4947_v13, 0.0  ;;  %v3895_v18 = vadd.f32 %v10449_v29, %v3894_v15  ;;  %4092 = vmatprep.mubr.bf16.mxu0 %v9586_v10  ;;  %5149 = vmatprep.mubr.bf16.mxu1 %v9589_v12 }
 0x237   : > { %v3896_v20 = vpop.f32.mrf.mxu0  ;;  %v4953_v22 = vpop.f32.mrf.mxu1 }
 0x238   : > { %v8571_v21 = vpack.c.bf16 %v5751_v17, %v5750_v16  ;;  %v4952_v25 = vadd.f32 %v4951_v19, %v3895_v18  ;;  %v9602_v18 = vld [vmem:[%s10124_s30 + $0x820] ss:$16 sps:$4 sm:$0xff]   ;;  %v9605_v22 = vld [vmem:[%s10124_s30 + $0x828] ss:$16 sps:$4 sm:$0xff]  }
 0x239   : > { %v3897_v23 = vpop.f32.mrf.mxu0  ;;  %v4954_v27 = vpop.f32.mrf.mxu1 }
 0x23a   : > { %9063 = vst [vmem:[%s10305_s21 + $0x120] sm:$0xff] %v8571_v21   ;;  %v3898_v26 = vadd.f32 %v10449_v29, %v3897_v23  ;;  %v5752_v35 = vmax.f32 %v4952_v25, 0.0  ;;  %v9610_v23 = vld [vmem:[%s10124_s30 + $0x844] ss:$16 sps:$4 sm:$0xff]   ;;  %v9613_v25 = vld [vmem:[%s10124_s30 + $0x84c] ss:$16 sps:$4 sm:$0xff]  }
 0x23b   : > { %v3899_v30 = vpop.f32.mrf.mxu0  ;;  %v4956_v33 = vpop.f32.mrf.mxu1 }
 0x23c   : > { %v4955_v32 = vadd.f32 %v4954_v27, %v3898_v26 }
 0x23d   : > { %v3902_v34 = vpop.f32.mrf.mxu0  ;;  %4093 = vmatmul.mubr.bf16.gmra.mxu0 %v9584_v24  ;;  %v4959_v38 = vpop.f32.mrf.mxu1  ;;  %5150 = vmatmul.mubr.bf16.gmra.mxu1 %v9587_v28 }
 0x23e   : > { %v5753_v36 = vmax.f32 %v4955_v32, 0.0  ;;  %v3903_v37 = vadd.f32 %v10449_v29, %v3902_v34  ;;  %4100 = vmatprep.mubr.bf16.mxu0 %v9592_v6  ;;  %5157 = vmatprep.mubr.bf16.mxu1 %v9595_v31 }
 0x23f   : > { %v3904_v39 = vpop.f32.mrf.mxu0  ;;  %v4961_v41 = vpop.f32.mrf.mxu1 }
 0x240   : > { %v8576_v40 = vpack.c.bf16 %v5753_v36, %v5752_v35  ;;  %v4960_v44 = vadd.f32 %v4959_v38, %v3903_v37  ;;  %v9608_v37 = vld [vmem:[%s10124_s30 + $0x840] ss:$16 sps:$4 sm:$0xff]   ;;  %v9611_v41 = vld [vmem:[%s10124_s30 + $0x848] ss:$16 sps:$4 sm:$0xff]  }
 0x241   : > { %v3905_v42 = vpop.f32.mrf.mxu0  ;;  %v4962_v46 = vpop.f32.mrf.mxu1 }
 0x242   : > { %9064 = vst [vmem:[%s10305_s21 + $0x128] sm:$0xff] %v8576_v40   ;;  %v3906_v45 = vadd.f32 %v10449_v29, %v3905_v42  ;;  %v5754_v54 = vmax.f32 %v4960_v44, 0.0  ;;  %v9616_v42 = vld [vmem:[%s10124_s30 + $0x864] ss:$16 sps:$4 sm:$0xff]   ;;  %v9619_v44 = vld [vmem:[%s10124_s30 + $0x86c] ss:$16 sps:$4 sm:$0xff]  }
 0x243   : > { %v3907_v49 = vpop.f32.mrf.mxu0  ;;  %v4964_v52 = vpop.f32.mrf.mxu1 }
 0x244   : > { %v4963_v51 = vadd.f32 %v4962_v46, %v3906_v45 }
 0x245   : > { %v3910_v53 = vpop.f32.mrf.mxu0  ;;  %4101 = vmatmul.mubr.bf16.gmra.mxu0 %v9590_v43  ;;  %v4967_v57 = vpop.f32.mrf.mxu1  ;;  %5158 = vmatmul.mubr.bf16.gmra.mxu1 %v9593_v47 }
 0x246   : > { %v5755_v55 = vmax.f32 %v4963_v51, 0.0  ;;  %v3911_v56 = vadd.f32 %v10449_v29, %v3910_v53  ;;  %4108 = vmatprep.mubr.bf16.mxu0 %v9598_v48  ;;  %5165 = vmatprep.mubr.bf16.mxu1 %v9601_v50 }
 0x247   : > { %v3912_v58 = vpop.f32.mrf.mxu0  ;;  %v4969_v60 = vpop.f32.mrf.mxu1 }
 0x248   : > { %v8581_v59 = vpack.c.bf16 %v5755_v55, %v5754_v54  ;;  %v4968_v63 = vadd.f32 %v4967_v57, %v3911_v56  ;;  %v9614_v56 = vld [vmem:[%s10124_s30 + $0x860] ss:$16 sps:$4 sm:$0xff]   ;;  %v9617_v60 = vld [vmem:[%s10124_s30 + $0x868] ss:$16 sps:$4 sm:$0xff]  }
 0x249   : > { %v3913_v61 = vpop.f32.mrf.mxu0  ;;  %v4970_v1 = vpop.f32.mrf.mxu1  ;;  %v10604_v58 = vld [vmem:[%s11130_s2] ss:$0 sm:$0xff] }
 0x24a   : > { %9065 = vst [vmem:[%s10305_s21 + $0x130] sm:$0xff] %v8581_v59   ;;  %v3914_v0 = vadd.f32 %v10449_v29, %v3913_v61  ;;  %v5756_v10 = vmax.f32 %v4968_v63, 0.0  ;;  %v9622_v61 = vld [vmem:[%s10124_s30 + $0x884] ss:$16 sps:$4 sm:$0xff]   ;;  %v9625_v63 = vld [vmem:[%s10124_s30 + $0x88c] ss:$16 sps:$4 sm:$0xff]  }
 0x24b   : > { %v3915_v4 = vpop.f32.mrf.mxu0  ;;  %v4972_v8 = vpop.f32.mrf.mxu1 }
 0x24c   : > { %v4971_v7 = vadd.f32 %v4970_v1, %v3914_v0 }
 0x24d   : > { %v3918_v9 = vpop.f32.mrf.mxu0  ;;  %4109 = vmatmul.mubr.bf16.gmra.mxu0 %v9596_v62  ;;  %v4975_v13 = vpop.f32.mrf.mxu1  ;;  %5166 = vmatmul.mubr.bf16.gmra.mxu1 %v9599_v2 }
 0x24e   : > { %v5757_v11 = vmax.f32 %v4971_v7, 0.0  ;;  %v3919_v12 = vadd.f32 %v10449_v29, %v3918_v9  ;;  %4116 = vmatprep.mubr.bf16.mxu0 %v9604_v3  ;;  %5173 = vmatprep.mubr.bf16.mxu1 %v9607_v5 }
 0x24f   : > { %v3920_v14 = vpop.f32.mrf.mxu0  ;;  %v4977_v16 = vpop.f32.mrf.mxu1 }
 0x250   : > { %v8586_v15 = vpack.c.bf16 %v5757_v11, %v5756_v10  ;;  %v4976_v19 = vadd.f32 %v4975_v13, %v3919_v12  ;;  %v9620_v12 = vld [vmem:[%s10124_s30 + $0x880] ss:$16 sps:$4 sm:$0xff]   ;;  %v9623_v16 = vld [vmem:[%s10124_s30 + $0x888] ss:$16 sps:$4 sm:$0xff]  }
 0x251   : > { %v3921_v17 = vpop.f32.mrf.mxu0  ;;  %v4978_v21 = vpop.f32.mrf.mxu1 }
 0x252   : > { %9066 = vst [vmem:[%s10305_s21 + $0x138] sm:$0xff] %v8586_v15   ;;  %v3922_v20 = vadd.f32 %v10449_v29, %v3921_v17  ;;  %v5758_v6 = vmax.f32 %v4976_v19, 0.0  ;;  %v9628_v17 = vld [vmem:[%s10124_s30 + $0x8a4] ss:$16 sps:$4 sm:$0xff]   ;;  %v9631_v19 = vld [vmem:[%s10124_s30 + $0x8ac] ss:$16 sps:$4 sm:$0xff]  }
 0x253   : > { %v3923_v24 = vpop.f32.mrf.mxu0  ;;  %v4980_v27 = vpop.f32.mrf.mxu1 }
 0x254   : > { %v4979_v26 = vadd.f32 %v4978_v21, %v3922_v20 }
 0x255   : > { %v3926_v28 = vpop.f32.mrf.mxu0  ;;  %4117 = vmatmul.mubr.bf16.gmra.mxu0 %v9602_v18  ;;  %v4983_v32 = vpop.f32.mrf.mxu1  ;;  %5174 = vmatmul.mubr.bf16.gmra.mxu1 %v9605_v22 }
 0x256   : > { %v5759_v30 = vmax.f32 %v4979_v26, 0.0  ;;  %v3927_v31 = vadd.f32 %v10449_v29, %v3926_v28  ;;  %4124 = vmatprep.mubr.bf16.mxu0 %v9610_v23  ;;  %5181 = vmatprep.mubr.bf16.mxu1 %v9613_v25 }
 0x257   : > { %v3928_v33 = vpop.f32.mrf.mxu0  ;;  %v4985_v35 = vpop.f32.mrf.mxu1 }
 0x258   : > { %v8591_v34 = vpack.c.bf16 %v5759_v30, %v5758_v6  ;;  %v4984_v38 = vadd.f32 %v4983_v32, %v3927_v31  ;;  %v9626_v31 = vld [vmem:[%s10124_s30 + $0x8a0] ss:$16 sps:$4 sm:$0xff]   ;;  %v9629_v35 = vld [vmem:[%s10124_s30 + $0x8a8] ss:$16 sps:$4 sm:$0xff]  }
 0x259   : > { %v3929_v36 = vpop.f32.mrf.mxu0  ;;  %v4986_v40 = vpop.f32.mrf.mxu1 }
 0x25a   : > { %9067 = vst [vmem:[%s10305_s21 + $0x140] sm:$0xff] %v8591_v34   ;;  %v3930_v39 = vadd.f32 %v10449_v29, %v3929_v36  ;;  %v5760_v48 = vmax.f32 %v4984_v38, 0.0  ;;  %v9634_v36 = vld [vmem:[%s10124_s30 + $0x8c4] ss:$16 sps:$4 sm:$0xff]   ;;  %v9637_v38 = vld [vmem:[%s10124_s30 + $0x8cc] ss:$16 sps:$4 sm:$0xff]  }
 0x25b   : > { %v3931_v43 = vpop.f32.mrf.mxu0  ;;  %v4988_v46 = vpop.f32.mrf.mxu1 }
 0x25c   : > { %v4987_v45 = vadd.f32 %v4986_v40, %v3930_v39 }
 0x25d   : > { %v3934_v47 = vpop.f32.mrf.mxu0  ;;  %4125 = vmatmul.mubr.bf16.gmra.mxu0 %v9608_v37  ;;  %v4991_v51 = vpop.f32.mrf.mxu1  ;;  %5182 = vmatmul.mubr.bf16.gmra.mxu1 %v9611_v41 }
 0x25e   : > { %v5761_v49 = vmax.f32 %v4987_v45, 0.0  ;;  %v3935_v50 = vadd.f32 %v10449_v29, %v3934_v47  ;;  %4132 = vmatprep.mubr.bf16.mxu0 %v9616_v42  ;;  %5189 = vmatprep.mubr.bf16.mxu1 %v9619_v44 }
 0x25f   : > { %v3936_v52 = vpop.f32.mrf.mxu0  ;;  %v4993_v54 = vpop.f32.mrf.mxu1 }
 0x260   : > { %v8596_v53 = vpack.c.bf16 %v5761_v49, %v5760_v48  ;;  %v4992_v57 = vadd.f32 %v4991_v51, %v3935_v50  ;;  %v9632_v50 = vld [vmem:[%s10124_s30 + $0x8c0] ss:$16 sps:$4 sm:$0xff]   ;;  %v9635_v54 = vld [vmem:[%s10124_s30 + $0x8c8] ss:$16 sps:$4 sm:$0xff]  }
 0x261   : > { %v3937_v55 = vpop.f32.mrf.mxu0  ;;  %v4994_v59 = vpop.f32.mrf.mxu1 }
 0x262   : > { %9068 = vst [vmem:[%s10305_s21 + $0x148] sm:$0xff] %v8596_v53   ;;  %v3938_v29 = vadd.f32 %v10604_v58, %v3937_v55  ;;  %v5762_v3 = vmax.f32 %v4992_v57, 0.0  ;;  %v9640_v55 = vld [vmem:[%s10124_s30 + $0x8e4] ss:$16 sps:$4 sm:$0xff]   ;;  %v9643_v57 = vld [vmem:[%s10124_s30 + $0x8ec] ss:$16 sps:$4 sm:$0xff]  }
 0x263   : > { %v3939_v62 = vpop.f32.mrf.mxu0  ;;  %v4996_v1 = vpop.f32.mrf.mxu1 }
 0x264   : > { %v4995_v0 = vadd.f32 %v4994_v59, %v3938_v29 }
 0x265   : > { %v3942_v2 = vpop.f32.mrf.mxu0  ;;  %4133 = vmatmul.mubr.bf16.gmra.mxu0 %v9614_v56  ;;  %v4999_v7 = vpop.f32.mrf.mxu1  ;;  %5190 = vmatmul.mubr.bf16.gmra.mxu1 %v9617_v60 }
 0x266   : > { %v5763_v4 = vmax.f32 %v4995_v0, 0.0  ;;  %v3943_v5 = vadd.f32 %v10604_v58, %v3942_v2  ;;  %4140 = vmatprep.mubr.bf16.mxu0 %v9622_v61  ;;  %5197 = vmatprep.mubr.bf16.mxu1 %v9625_v63 }
 0x267   : > { %v3944_v8 = vpop.f32.mrf.mxu0  ;;  %v5001_v10 = vpop.f32.mrf.mxu1 }
 0x268   : > { %v8601_v9 = vpack.c.bf16 %v5763_v4, %v5762_v3  ;;  %v5000_v13 = vadd.f32 %v4999_v7, %v3943_v5  ;;  %v9638_v5 = vld [vmem:[%s10124_s30 + $0x8e0] ss:$16 sps:$4 sm:$0xff]   ;;  %v9641_v10 = vld [vmem:[%s10124_s30 + $0x8e8] ss:$16 sps:$4 sm:$0xff]  }
 0x269   : > { %v3945_v11 = vpop.f32.mrf.mxu0  ;;  %v5002_v15 = vpop.f32.mrf.mxu1 }
 0x26a   : > { %9069 = vst [vmem:[%s10305_s21 + $0x150] sm:$0xff] %v8601_v9   ;;  %v3946_v14 = vadd.f32 %v10604_v58, %v3945_v11  ;;  %v5764_v23 = vmax.f32 %v5000_v13, 0.0  ;;  %v9646_v11 = vld [vmem:[%s10124_s30 + $0x904] ss:$16 sps:$4 sm:$0xff]   ;;  %v9649_v13 = vld [vmem:[%s10124_s30 + $0x90c] ss:$16 sps:$4 sm:$0xff]  }
 0x26b   : > { %v3947_v18 = vpop.f32.mrf.mxu0  ;;  %v5004_v21 = vpop.f32.mrf.mxu1 }
 0x26c   : > { %v5003_v20 = vadd.f32 %v5002_v15, %v3946_v14 }
 0x26d   : > { %v3950_v22 = vpop.f32.mrf.mxu0  ;;  %4141 = vmatmul.mubr.bf16.gmra.mxu0 %v9620_v12  ;;  %v5007_v26 = vpop.f32.mrf.mxu1  ;;  %5198 = vmatmul.mubr.bf16.gmra.mxu1 %v9623_v16 }
 0x26e   : > { %v5765_v24 = vmax.f32 %v5003_v20, 0.0  ;;  %v3951_v25 = vadd.f32 %v10604_v58, %v3950_v22  ;;  %4148 = vmatprep.mubr.bf16.mxu0 %v9628_v17  ;;  %5205 = vmatprep.mubr.bf16.mxu1 %v9631_v19 }
 0x26f   : > { %v3952_v27 = vpop.f32.mrf.mxu0  ;;  %v5009_v6 = vpop.f32.mrf.mxu1 }
 0x270   : > { %v8606_v28 = vpack.c.bf16 %v5765_v24, %v5764_v23  ;;  %v5008_v32 = vadd.f32 %v5007_v26, %v3951_v25  ;;  %v9644_v25 = vld [vmem:[%s10124_s30 + $0x900] ss:$16 sps:$4 sm:$0xff]   ;;  %v9647_v6 = vld [vmem:[%s10124_s30 + $0x908] ss:$16 sps:$4 sm:$0xff]  }
 0x271   : > { %v3953_v30 = vpop.f32.mrf.mxu0  ;;  %v5010_v34 = vpop.f32.mrf.mxu1 }
 0x272   : > { %9070 = vst [vmem:[%s10305_s21 + $0x158] sm:$0xff] %v8606_v28   ;;  %v3954_v33 = vadd.f32 %v10604_v58, %v3953_v30  ;;  %v5766_v42 = vmax.f32 %v5008_v32, 0.0  ;;  %v9652_v30 = vld [vmem:[%s10124_s30 + $0x924] ss:$16 sps:$4 sm:$0xff]   ;;  %v9655_v32 = vld [vmem:[%s10124_s30 + $0x92c] ss:$16 sps:$4 sm:$0xff]  }
 0x273   : > { %v3955_v37 = vpop.f32.mrf.mxu0  ;;  %v5012_v40 = vpop.f32.mrf.mxu1 }
 0x274   : > { %v5011_v39 = vadd.f32 %v5010_v34, %v3954_v33 }
 0x275   : > { %v3958_v41 = vpop.f32.mrf.mxu0  ;;  %4149 = vmatmul.mubr.bf16.gmra.mxu0 %v9626_v31  ;;  %v5015_v45 = vpop.f32.mrf.mxu1  ;;  %5206 = vmatmul.mubr.bf16.gmra.mxu1 %v9629_v35 }
 0x276   : > { %v5767_v43 = vmax.f32 %v5011_v39, 0.0  ;;  %v3959_v44 = vadd.f32 %v10604_v58, %v3958_v41  ;;  %4156 = vmatprep.mubr.bf16.mxu0 %v9634_v36  ;;  %5213 = vmatprep.mubr.bf16.mxu1 %v9637_v38 }
 0x277   : > { %v3960_v46 = vpop.f32.mrf.mxu0  ;;  %v5017_v48 = vpop.f32.mrf.mxu1 }
 0x278   : > { %v8611_v47 = vpack.c.bf16 %v5767_v43, %v5766_v42  ;;  %v5016_v51 = vadd.f32 %v5015_v45, %v3959_v44  ;;  %v9650_v44 = vld [vmem:[%s10124_s30 + $0x920] ss:$16 sps:$4 sm:$0xff]   ;;  %v9653_v48 = vld [vmem:[%s10124_s30 + $0x928] ss:$16 sps:$4 sm:$0xff]  }
 0x279   : > { %v3961_v49 = vpop.f32.mrf.mxu0  ;;  %v5018_v53 = vpop.f32.mrf.mxu1 }
 0x27a   : > { %9071 = vst [vmem:[%s10305_s21 + $0x160] sm:$0xff] %v8611_v47   ;;  %v3962_v52 = vadd.f32 %v10604_v58, %v3961_v49  ;;  %v5768_v61 = vmax.f32 %v5016_v51, 0.0  ;;  %v9658_v49 = vld [vmem:[%s10124_s30 + $0x944] ss:$16 sps:$4 sm:$0xff]   ;;  %v9661_v51 = vld [vmem:[%s10124_s30 + $0x94c] ss:$16 sps:$4 sm:$0xff]  }
 0x27b   : > { %v3963_v56 = vpop.f32.mrf.mxu0  ;;  %v5020_v59 = vpop.f32.mrf.mxu1 }
 0x27c   : > { %v5019_v29 = vadd.f32 %v5018_v53, %v3962_v52 }
 0x27d   : > { %v3966_v60 = vpop.f32.mrf.mxu0  ;;  %4157 = vmatmul.mubr.bf16.gmra.mxu0 %v9632_v50  ;;  %v5023_v0 = vpop.f32.mrf.mxu1  ;;  %5214 = vmatmul.mubr.bf16.gmra.mxu1 %v9635_v54 }
 0x27e   : > { %v5769_v62 = vmax.f32 %v5019_v29, 0.0  ;;  %v3967_v63 = vadd.f32 %v10604_v58, %v3966_v60  ;;  %4164 = vmatprep.mubr.bf16.mxu0 %v9640_v55  ;;  %5221 = vmatprep.mubr.bf16.mxu1 %v9643_v57 }
 0x27f   : > { %v3968_v1 = vpop.f32.mrf.mxu0  ;;  %v5025_v3 = vpop.f32.mrf.mxu1 }
 0x280   : > { %v8616_v2 = vpack.c.bf16 %v5769_v62, %v5768_v61  ;;  %v5024_v7 = vadd.f32 %v5023_v0, %v3967_v63  ;;  %v9656_v63 = vld [vmem:[%s10124_s30 + $0x940] ss:$16 sps:$4 sm:$0xff]   ;;  %v9659_v3 = vld [vmem:[%s10124_s30 + $0x948] ss:$16 sps:$4 sm:$0xff]  }
 0x281   : > { %v3969_v4 = vpop.f32.mrf.mxu0  ;;  %v5026_v9 = vpop.f32.mrf.mxu1 }
 0x282   : > { %9072 = vst [vmem:[%s10305_s21 + $0x168] sm:$0xff] %v8616_v2   ;;  %v3970_v8 = vadd.f32 %v10604_v58, %v3969_v4  ;;  %v5770_v17 = vmax.f32 %v5024_v7, 0.0  ;;  %v9664_v4 = vld [vmem:[%s10124_s30 + $0x964] ss:$16 sps:$4 sm:$0xff]   ;;  %v9667_v7 = vld [vmem:[%s10124_s30 + $0x96c] ss:$16 sps:$4 sm:$0xff]  }
 0x283   : > { %v3971_v12 = vpop.f32.mrf.mxu0  ;;  %v5028_v15 = vpop.f32.mrf.mxu1 }
 0x284   : > { %v5027_v14 = vadd.f32 %v5026_v9, %v3970_v8 }
 0x285   : > { %v3974_v16 = vpop.f32.mrf.mxu0  ;;  %4165 = vmatmul.mubr.bf16.gmra.mxu0 %v9638_v5  ;;  %v5031_v20 = vpop.f32.mrf.mxu1  ;;  %5222 = vmatmul.mubr.bf16.gmra.mxu1 %v9641_v10 }
 0x286   : > { %v5771_v18 = vmax.f32 %v5027_v14, 0.0  ;;  %v3975_v19 = vadd.f32 %v10604_v58, %v3974_v16  ;;  %4172 = vmatprep.mubr.bf16.mxu0 %v9646_v11  ;;  %5229 = vmatprep.mubr.bf16.mxu1 %v9649_v13 }
 0x287   : > { %v3976_v21 = vpop.f32.mrf.mxu0  ;;  %v5033_v23 = vpop.f32.mrf.mxu1 }
 0x288   : > { %v8621_v22 = vpack.c.bf16 %v5771_v18, %v5770_v17  ;;  %v5032_v26 = vadd.f32 %v5031_v20, %v3975_v19  ;;  %v9662_v19 = vld [vmem:[%s10124_s30 + $0x960] ss:$16 sps:$4 sm:$0xff]   ;;  %v9665_v23 = vld [vmem:[%s10124_s30 + $0x968] ss:$16 sps:$4 sm:$0xff]  }
 0x289   : > { %v3977_v24 = vpop.f32.mrf.mxu0  ;;  %v5034_v28 = vpop.f32.mrf.mxu1 }
 0x28a   : > { %9073 = vst [vmem:[%s10305_s21 + $0x170] sm:$0xff] %v8621_v22   ;;  %v3978_v27 = vadd.f32 %v10604_v58, %v3977_v24  ;;  %v5772_v36 = vmax.f32 %v5032_v26, 0.0  ;;  %v9670_v24 = vld [vmem:[%s10124_s30 + $0x984] ss:$16 sps:$4 sm:$0xff]   ;;  %v9673_v26 = vld [vmem:[%s10124_s30 + $0x98c] ss:$16 sps:$4 sm:$0xff]  }
 0x28b   : > { %v3979_v31 = vpop.f32.mrf.mxu0  ;;  %v5036_v34 = vpop.f32.mrf.mxu1 }
 0x28c   : > { %v5035_v33 = vadd.f32 %v5034_v28, %v3978_v27 }
 0x28d   : > { %v3982_v35 = vpop.f32.mrf.mxu0  ;;  %4173 = vmatmul.mubr.bf16.gmra.mxu0 %v9644_v25  ;;  %v5039_v39 = vpop.f32.mrf.mxu1  ;;  %5230 = vmatmul.mubr.bf16.gmra.mxu1 %v9647_v6 }
 0x28e   : > { %v5773_v37 = vmax.f32 %v5035_v33, 0.0  ;;  %v3983_v38 = vadd.f32 %v10604_v58, %v3982_v35  ;;  %4180 = vmatprep.mubr.bf16.mxu0 %v9652_v30  ;;  %5237 = vmatprep.mubr.bf16.mxu1 %v9655_v32 }
 0x28f   : > { %v3984_v40 = vpop.f32.mrf.mxu0  ;;  %v5041_v42 = vpop.f32.mrf.mxu1 }
 0x290   : > { %v8626_v41 = vpack.c.bf16 %v5773_v37, %v5772_v36  ;;  %v5040_v45 = vadd.f32 %v5039_v39, %v3983_v38  ;;  %v9668_v38 = vld [vmem:[%s10124_s30 + $0x980] ss:$16 sps:$4 sm:$0xff]   ;;  %v9671_v42 = vld [vmem:[%s10124_s30 + $0x988] ss:$16 sps:$4 sm:$0xff]  }
 0x291   : > { %v3985_v43 = vpop.f32.mrf.mxu0  ;;  %v5042_v47 = vpop.f32.mrf.mxu1 }
 0x292   : > { %9074 = vst [vmem:[%s10305_s21 + $0x178] sm:$0xff] %v8626_v41   ;;  %v3986_v46 = vadd.f32 %v10604_v58, %v3985_v43  ;;  %v5774_v55 = vmax.f32 %v5040_v45, 0.0  ;;  %v9676_v43 = vld [vmem:[%s10124_s30 + $0x9a4] ss:$16 sps:$4 sm:$0xff]   ;;  %v9679_v45 = vld [vmem:[%s10124_s30 + $0x9ac] ss:$16 sps:$4 sm:$0xff]  }
 0x293   : > { %v3987_v50 = vpop.f32.mrf.mxu0  ;;  %v5044_v53 = vpop.f32.mrf.mxu1 }
 0x294   : > { %v5043_v52 = vadd.f32 %v5042_v47, %v3986_v46 }
 0x295   : > { %v3990_v54 = vpop.f32.mrf.mxu0  ;;  %4181 = vmatmul.mubr.bf16.gmra.mxu0 %v9650_v44  ;;  %v5047_v29 = vpop.f32.mrf.mxu1  ;;  %5238 = vmatmul.mubr.bf16.gmra.mxu1 %v9653_v48 }
 0x296   : > { %v5775_v56 = vmax.f32 %v5043_v52, 0.0  ;;  %v3991_v57 = vadd.f32 %v10604_v58, %v3990_v54  ;;  %4188 = vmatprep.mubr.bf16.mxu0 %v9658_v49  ;;  %5245 = vmatprep.mubr.bf16.mxu1 %v9661_v51 }
 0x297   : > { %v3992_v59 = vpop.f32.mrf.mxu0  ;;  %v5049_v61 = vpop.f32.mrf.mxu1 }
 0x298   : > { %v8631_v60 = vpack.c.bf16 %v5775_v56, %v5774_v55  ;;  %v5048_v0 = vadd.f32 %v5047_v29, %v3991_v57  ;;  %v9674_v57 = vld [vmem:[%s10124_s30 + $0x9a0] ss:$16 sps:$4 sm:$0xff]   ;;  %v9677_v61 = vld [vmem:[%s10124_s30 + $0x9a8] ss:$16 sps:$4 sm:$0xff]  }
 0x299   : > { %v3993_v62 = vpop.f32.mrf.mxu0  ;;  %v5050_v2 = vpop.f32.mrf.mxu1 }
 0x29a   : > { %9075 = vst [vmem:[%s10305_s21 + $0x180] sm:$0xff] %v8631_v60   ;;  %v3994_v1 = vadd.f32 %v10604_v58, %v3993_v62  ;;  %v5776_v11 = vmax.f32 %v5048_v0, 0.0  ;;  %v9682_v62 = vld [vmem:[%s10124_s30 + $0x9c4] ss:$16 sps:$4 sm:$0xff]   ;;  %v9685_v0 = vld [vmem:[%s10124_s30 + $0x9cc] ss:$16 sps:$4 sm:$0xff]  }
 0x29b   : > { %v3995_v5 = vpop.f32.mrf.mxu0  ;;  %v5052_v9 = vpop.f32.mrf.mxu1 }
 0x29c   : > { %v5051_v8 = vadd.f32 %v5050_v2, %v3994_v1 }
 0x29d   : > { %v3998_v10 = vpop.f32.mrf.mxu0  ;;  %4189 = vmatmul.mubr.bf16.gmra.mxu0 %v9656_v63  ;;  %v5055_v14 = vpop.f32.mrf.mxu1  ;;  %5246 = vmatmul.mubr.bf16.gmra.mxu1 %v9659_v3 }
 0x29e   : > { %v5777_v12 = vmax.f32 %v5051_v8, 0.0  ;;  %v3999_v13 = vadd.f32 %v10604_v58, %v3998_v10  ;;  %4196 = vmatprep.mubr.bf16.mxu0 %v9664_v4  ;;  %5253 = vmatprep.mubr.bf16.mxu1 %v9667_v7 }
 0x29f   : > { %v4000_v15 = vpop.f32.mrf.mxu0  ;;  %v5057_v17 = vpop.f32.mrf.mxu1 }
 0x2a0   : > { %v8636_v16 = vpack.c.bf16 %v5777_v12, %v5776_v11  ;;  %v5056_v20 = vadd.f32 %v5055_v14, %v3999_v13  ;;  %v9680_v13 = vld [vmem:[%s10124_s30 + $0x9c0] ss:$16 sps:$4 sm:$0xff]   ;;  %v9683_v17 = vld [vmem:[%s10124_s30 + $0x9c8] ss:$16 sps:$4 sm:$0xff]  }
 0x2a1   : > { %v4001_v18 = vpop.f32.mrf.mxu0  ;;  %v5058_v22 = vpop.f32.mrf.mxu1 }
 0x2a2   : > { %9076 = vst [vmem:[%s10305_s21 + $0x188] sm:$0xff] %v8636_v16   ;;  %v4002_v21 = vadd.f32 %v10604_v58, %v4001_v18  ;;  %v5778_v30 = vmax.f32 %v5056_v20, 0.0  ;;  %v9688_v18 = vld [vmem:[%s10124_s30 + $0x9e4] ss:$16 sps:$4 sm:$0xff]   ;;  %v9691_v20 = vld [vmem:[%s10124_s30 + $0x9ec] ss:$16 sps:$4 sm:$0xff]  }
 0x2a3   : > { %v4003_v25 = vpop.f32.mrf.mxu0  ;;  %v5060_v28 = vpop.f32.mrf.mxu1 }
 0x2a4   : > { %v5059_v27 = vadd.f32 %v5058_v22, %v4002_v21 }
 0x2a5   : > { %v4006_v6 = vpop.f32.mrf.mxu0  ;;  %4197 = vmatmul.mubr.bf16.gmra.mxu0 %v9662_v19  ;;  %v5063_v33 = vpop.f32.mrf.mxu1  ;;  %5254 = vmatmul.mubr.bf16.gmra.mxu1 %v9665_v23 }
 0x2a6   : > { %v5779_v31 = vmax.f32 %v5059_v27, 0.0  ;;  %v4007_v32 = vadd.f32 %v10604_v58, %v4006_v6  ;;  %4204 = vmatprep.mubr.bf16.mxu0 %v9670_v24  ;;  %5261 = vmatprep.mubr.bf16.mxu1 %v9673_v26 }
 0x2a7   : > { %v4008_v34 = vpop.f32.mrf.mxu0  ;;  %v5065_v36 = vpop.f32.mrf.mxu1 }
 0x2a8   : > { %v8641_v35 = vpack.c.bf16 %v5779_v31, %v5778_v30  ;;  %v5064_v39 = vadd.f32 %v5063_v33, %v4007_v32  ;;  %v9686_v32 = vld [vmem:[%s10124_s30 + $0x9e0] ss:$16 sps:$4 sm:$0xff]   ;;  %v9689_v36 = vld [vmem:[%s10124_s30 + $0x9e8] ss:$16 sps:$4 sm:$0xff]  }
 0x2a9   : > { %v4009_v37 = vpop.f32.mrf.mxu0  ;;  %v5066_v41 = vpop.f32.mrf.mxu1 }
 0x2aa   : > { %9077 = vst [vmem:[%s10305_s21 + $0x190] sm:$0xff] %v8641_v35   ;;  %v4010_v40 = vadd.f32 %v10604_v58, %v4009_v37  ;;  %v5780_v49 = vmax.f32 %v5064_v39, 0.0  ;;  %v9694_v37 = vld [vmem:[%s10124_s30 + $0xa04] ss:$16 sps:$4 sm:$0xff]   ;;  %v9697_v39 = vld [vmem:[%s10124_s30 + $0xa0c] ss:$16 sps:$4 sm:$0xff]  }
 0x2ab   : > { %v4011_v44 = vpop.f32.mrf.mxu0  ;;  %v5068_v47 = vpop.f32.mrf.mxu1 }
 0x2ac   : > { %v5067_v46 = vadd.f32 %v5066_v41, %v4010_v40 }
 0x2ad   : > { %v4014_v48 = vpop.f32.mrf.mxu0  ;;  %4205 = vmatmul.mubr.bf16.gmra.mxu0 %v9668_v38  ;;  %v5071_v52 = vpop.f32.mrf.mxu1  ;;  %5262 = vmatmul.mubr.bf16.gmra.mxu1 %v9671_v42 }
 0x2ae   : > { %v5781_v50 = vmax.f32 %v5067_v46, 0.0  ;;  %v4015_v51 = vadd.f32 %v10604_v58, %v4014_v48  ;;  %4212 = vmatprep.mubr.bf16.mxu0 %v9676_v43  ;;  %5269 = vmatprep.mubr.bf16.mxu1 %v9679_v45 }
 0x2af   : > { %v4016_v53 = vpop.f32.mrf.mxu0  ;;  %v5073_v55 = vpop.f32.mrf.mxu1 }
 0x2b0   : > { %v8646_v54 = vpack.c.bf16 %v5781_v50, %v5780_v49  ;;  %v5072_v29 = vadd.f32 %v5071_v52, %v4015_v51  ;;  %v9692_v51 = vld [vmem:[%s10124_s30 + $0xa00] ss:$16 sps:$4 sm:$0xff]   ;;  %v9695_v55 = vld [vmem:[%s10124_s30 + $0xa08] ss:$16 sps:$4 sm:$0xff]  }
 0x2b1   : > { %v4017_v56 = vpop.f32.mrf.mxu0  ;;  %v5074_v60 = vpop.f32.mrf.mxu1 }
 0x2b2   : > { %9078 = vst [vmem:[%s10305_s21 + $0x198] sm:$0xff] %v8646_v54   ;;  %v4018_v59 = vadd.f32 %v10604_v58, %v4017_v56  ;;  %v5782_v4 = vmax.f32 %v5072_v29, 0.0  ;;  %v9700_v56 = vld [vmem:[%s10124_s30 + $0xa24] ss:$16 sps:$4 sm:$0xff]   ;;  %v9703_v29 = vld [vmem:[%s10124_s30 + $0xa2c] ss:$16 sps:$4 sm:$0xff]  }
 0x2b3   : > { %v4019_v63 = vpop.f32.mrf.mxu0  ;;  %v5076_v2 = vpop.f32.mrf.mxu1 }
 0x2b4   : > { %v5075_v1 = vadd.f32 %v5074_v60, %v4018_v59 }
 0x2b5   : > { %v4022_v3 = vpop.f32.mrf.mxu0  ;;  %4213 = vmatmul.mubr.bf16.gmra.mxu0 %v9674_v57  ;;  %v5079_v8 = vpop.f32.mrf.mxu1  ;;  %5270 = vmatmul.mubr.bf16.gmra.mxu1 %v9677_v61 }
 0x2b6   : > { %v5783_v5 = vmax.f32 %v5075_v1, 0.0  ;;  %v4023_v7 = vadd.f32 %v10604_v58, %v4022_v3  ;;  %4220 = vmatprep.mubr.bf16.mxu0 %v9682_v62  ;;  %5277 = vmatprep.mubr.bf16.mxu1 %v9685_v0 }
 0x2b7   : > { %v4024_v9 = vpop.f32.mrf.mxu0  ;;  %v5081_v11 = vpop.f32.mrf.mxu1 }
 0x2b8   : > { %v8651_v10 = vpack.c.bf16 %v5783_v5, %v5782_v4  ;;  %v5080_v14 = vadd.f32 %v5079_v8, %v4023_v7  ;;  %v9698_v7 = vld [vmem:[%s10124_s30 + $0xa20] ss:$16 sps:$4 sm:$0xff]   ;;  %v9701_v11 = vld [vmem:[%s10124_s30 + $0xa28] ss:$16 sps:$4 sm:$0xff]  }
 0x2b9   : > { %v4025_v12 = vpop.f32.mrf.mxu0  ;;  %v5082_v16 = vpop.f32.mrf.mxu1 }
 0x2ba   : > { %9079 = vst [vmem:[%s10305_s21 + $0x1a0] sm:$0xff] %v8651_v10   ;;  %v4026_v15 = vadd.f32 %v10604_v58, %v4025_v12  ;;  %v5784_v24 = vmax.f32 %v5080_v14, 0.0  ;;  %v9706_v12 = vld [vmem:[%s10124_s30 + $0xa44] ss:$16 sps:$4 sm:$0xff]   ;;  %v9709_v14 = vld [vmem:[%s10124_s30 + $0xa4c] ss:$16 sps:$4 sm:$0xff]  }
 0x2bb   : > { %v4027_v19 = vpop.f32.mrf.mxu0  ;;  %v5084_v22 = vpop.f32.mrf.mxu1 }
 0x2bc   : > { %v5083_v21 = vadd.f32 %v5082_v16, %v4026_v15 }
 0x2bd   : > { %v4030_v23 = vpop.f32.mrf.mxu0  ;;  %4221 = vmatmul.mubr.bf16.gmra.mxu0 %v9680_v13  ;;  %v5087_v27 = vpop.f32.mrf.mxu1  ;;  %5278 = vmatmul.mubr.bf16.gmra.mxu1 %v9683_v17 }
 0x2be   : > { %v5785_v25 = vmax.f32 %v5083_v21, 0.0  ;;  %v4031_v26 = vadd.f32 %v10604_v58, %v4030_v23  ;;  %4228 = vmatprep.mubr.bf16.mxu0 %v9688_v18  ;;  %5285 = vmatprep.mubr.bf16.mxu1 %v9691_v20 }
 0x2bf   : > { %v4032_v28 = vpop.f32.mrf.mxu0  ;;  %v5089_v30 = vpop.f32.mrf.mxu1 }
 0x2c0   : > { %v8656_v6 = vpack.c.bf16 %v5785_v25, %v5784_v24  ;;  %v5088_v33 = vadd.f32 %v5087_v27, %v4031_v26  ;;  %v9704_v26 = vld [vmem:[%s10124_s30 + $0xa40] ss:$16 sps:$4 sm:$0xff]   ;;  %v9707_v30 = vld [vmem:[%s10124_s30 + $0xa48] ss:$16 sps:$4 sm:$0xff]  }
 0x2c1   : > { %v4033_v31 = vpop.f32.mrf.mxu0  ;;  %v5090_v35 = vpop.f32.mrf.mxu1 }
 0x2c2   : > { %9080 = vst [vmem:[%s10305_s21 + $0x1a8] sm:$0xff] %v8656_v6   ;;  %v4034_v34 = vadd.f32 %v10604_v58, %v4033_v31  ;;  %v5786_v43 = vmax.f32 %v5088_v33, 0.0  ;;  %v9712_v31 = vld [vmem:[%s10124_s30 + $0xa64] ss:$16 sps:$4 sm:$0xff]   ;;  %v9715_v33 = vld [vmem:[%s10124_s30 + $0xa6c] ss:$16 sps:$4 sm:$0xff]  }
 0x2c3   : > { %v4035_v38 = vpop.f32.mrf.mxu0  ;;  %v5092_v41 = vpop.f32.mrf.mxu1 }
 0x2c4   : > { %v5091_v40 = vadd.f32 %v5090_v35, %v4034_v34 }
 0x2c5   : > { %v4038_v42 = vpop.f32.mrf.mxu0  ;;  %4229 = vmatmul.mubr.bf16.gmra.mxu0 %v9686_v32  ;;  %v5095_v46 = vpop.f32.mrf.mxu1  ;;  %5286 = vmatmul.mubr.bf16.gmra.mxu1 %v9689_v36 }
 0x2c6   : > { %v5787_v44 = vmax.f32 %v5091_v40, 0.0  ;;  %v4039_v45 = vadd.f32 %v10604_v58, %v4038_v42  ;;  %4236 = vmatprep.mubr.bf16.mxu0 %v9694_v37  ;;  %5293 = vmatprep.mubr.bf16.mxu1 %v9697_v39 }
 0x2c7   : > { %v4040_v47 = vpop.f32.mrf.mxu0  ;;  %v5097_v49 = vpop.f32.mrf.mxu1 }
 0x2c8   : > { %v8661_v48 = vpack.c.bf16 %v5787_v44, %v5786_v43  ;;  %v5096_v52 = vadd.f32 %v5095_v46, %v4039_v45  ;;  %v9710_v45 = vld [vmem:[%s10124_s30 + $0xa60] ss:$16 sps:$4 sm:$0xff]   ;;  %v9713_v49 = vld [vmem:[%s10124_s30 + $0xa68] ss:$16 sps:$4 sm:$0xff]  }
 0x2c9   : > { %v4041_v50 = vpop.f32.mrf.mxu0  ;;  %v5098_v54 = vpop.f32.mrf.mxu1 }
 0x2ca   : > { %9081 = vst [vmem:[%s10305_s21 + $0x1b0] sm:$0xff] %v8661_v48   ;;  %v4042_v53 = vadd.f32 %v10604_v58, %v4041_v50  ;;  %v5788_v62 = vmax.f32 %v5096_v52, 0.0  ;;  %v9718_v50 = vld [vmem:[%s10124_s30 + $0xa84] ss:$16 sps:$4 sm:$0xff]   ;;  %v9721_v52 = vld [vmem:[%s10124_s30 + $0xa8c] ss:$16 sps:$4 sm:$0xff]  }
 0x2cb   : > { %v4043_v57 = vpop.f32.mrf.mxu0  ;;  %v5100_v60 = vpop.f32.mrf.mxu1 }
 0x2cc   : > { %v5099_v59 = vadd.f32 %v5098_v54, %v4042_v53 }
 0x2cd   : > { %v4046_v61 = vpop.f32.mrf.mxu0  ;;  %4237 = vmatmul.mubr.bf16.gmra.mxu0 %v9692_v51  ;;  %v5103_v1 = vpop.f32.mrf.mxu1  ;;  %5294 = vmatmul.mubr.bf16.gmra.mxu1 %v9695_v55 }
 0x2ce   : > { %v5789_v63 = vmax.f32 %v5099_v59, 0.0  ;;  %v4047_v0 = vadd.f32 %v10604_v58, %v4046_v61  ;;  %4244 = vmatprep.mubr.bf16.mxu0 %v9700_v56  ;;  %5301 = vmatprep.mubr.bf16.mxu1 %v9703_v29 }
 0x2cf   : > { %v4048_v2 = vpop.f32.mrf.mxu0  ;;  %v5105_v4 = vpop.f32.mrf.mxu1 }
 0x2d0   : > { %v8666_v3 = vpack.c.bf16 %v5789_v63, %v5788_v62  ;;  %v5104_v8 = vadd.f32 %v5103_v1, %v4047_v0  ;;  %v9716_v0 = vld [vmem:[%s10124_s30 + $0xa80] ss:$16 sps:$4 sm:$0xff]   ;;  %v9719_v4 = vld [vmem:[%s10124_s30 + $0xa88] ss:$16 sps:$4 sm:$0xff]  }
 0x2d1   : > { %v4049_v5 = vpop.f32.mrf.mxu0  ;;  %v5106_v10 = vpop.f32.mrf.mxu1 }
 0x2d2   : > { %9082 = vst [vmem:[%s10305_s21 + $0x1b8] sm:$0xff] %v8666_v3   ;;  %v4050_v9 = vadd.f32 %v10604_v58, %v4049_v5  ;;  %v5790_v18 = vmax.f32 %v5104_v8, 0.0  ;;  %v9724_v5 = vld [vmem:[%s10124_s30 + $0xaa4] ss:$16 sps:$4 sm:$0xff]   ;;  %v9727_v8 = vld [vmem:[%s10124_s30 + $0xaac] ss:$16 sps:$4 sm:$0xff]  }
 0x2d3   : > { %v4051_v13 = vpop.f32.mrf.mxu0  ;;  %v5108_v16 = vpop.f32.mrf.mxu1 }
 0x2d4   : > { %v5107_v15 = vadd.f32 %v5106_v10, %v4050_v9 }
 0x2d5   : > { %v4054_v17 = vpop.f32.mrf.mxu0  ;;  %4245 = vmatmul.mubr.bf16.gmra.mxu0 %v9698_v7  ;;  %v5111_v21 = vpop.f32.mrf.mxu1  ;;  %5302 = vmatmul.mubr.bf16.gmra.mxu1 %v9701_v11 }
 0x2d6   : > { %v5791_v19 = vmax.f32 %v5107_v15, 0.0  ;;  %v4055_v20 = vadd.f32 %v10604_v58, %v4054_v17  ;;  %4252 = vmatprep.mubr.bf16.mxu0 %v9706_v12  ;;  %5309 = vmatprep.mubr.bf16.mxu1 %v9709_v14 }
 0x2d7   : > { %v4056_v22 = vpop.f32.mrf.mxu0  ;;  %v5113_v24 = vpop.f32.mrf.mxu1 }
 0x2d8   : > { %v8671_v23 = vpack.c.bf16 %v5791_v19, %v5790_v18  ;;  %v5112_v27 = vadd.f32 %v5111_v21, %v4055_v20  ;;  %v9722_v20 = vld [vmem:[%s10124_s30 + $0xaa0] ss:$16 sps:$4 sm:$0xff]   ;;  %v9725_v24 = vld [vmem:[%s10124_s30 + $0xaa8] ss:$16 sps:$4 sm:$0xff]  }
 0x2d9   : > { %v4057_v25 = vpop.f32.mrf.mxu0  ;;  %v5114_v6 = vpop.f32.mrf.mxu1 }
 0x2da   : > { %9083 = vst [vmem:[%s10305_s21 + $0x1c0] sm:$0xff] %v8671_v23   ;;  %v4058_v28 = vadd.f32 %v10604_v58, %v4057_v25  ;;  %v5792_v37 = vmax.f32 %v5112_v27, 0.0  ;;  %v9730_v25 = vld [vmem:[%s10124_s30 + $0xac4] ss:$16 sps:$4 sm:$0xff]   ;;  %v9733_v27 = vld [vmem:[%s10124_s30 + $0xacc] ss:$16 sps:$4 sm:$0xff]  }
 0x2db   : > { %v4059_v32 = vpop.f32.mrf.mxu0  ;;  %v5116_v35 = vpop.f32.mrf.mxu1 }
 0x2dc   : > { %v5115_v34 = vadd.f32 %v5114_v6, %v4058_v28 }
 0x2dd   : > { %v4062_v36 = vpop.f32.mrf.mxu0  ;;  %4253 = vmatmul.mubr.bf16.gmra.mxu0 %v9704_v26  ;;  %v5119_v40 = vpop.f32.mrf.mxu1  ;;  %5310 = vmatmul.mubr.bf16.gmra.mxu1 %v9707_v30 }
 0x2de   : > { %v5793_v38 = vmax.f32 %v5115_v34, 0.0  ;;  %v4063_v39 = vadd.f32 %v10604_v58, %v4062_v36  ;;  %4260 = vmatprep.mubr.bf16.mxu0 %v9712_v31  ;;  %5317 = vmatprep.mubr.bf16.mxu1 %v9715_v33 }
 0x2df   : > { %v4064_v41 = vpop.f32.mrf.mxu0  ;;  %v5121_v43 = vpop.f32.mrf.mxu1 }
 0x2e0   : > { %v8676_v42 = vpack.c.bf16 %v5793_v38, %v5792_v37  ;;  %v5120_v46 = vadd.f32 %v5119_v40, %v4063_v39  ;;  %v9728_v39 = vld [vmem:[%s10124_s30 + $0xac0] ss:$16 sps:$4 sm:$0xff]   ;;  %v9731_v43 = vld [vmem:[%s10124_s30 + $0xac8] ss:$16 sps:$4 sm:$0xff]  }
 0x2e1   : > { %v4065_v44 = vpop.f32.mrf.mxu0  ;;  %v5122_v48 = vpop.f32.mrf.mxu1 }
 0x2e2   : > { %9084 = vst [vmem:[%s10305_s21 + $0x1c8] sm:$0xff] %v8676_v42   ;;  %v4066_v47 = vadd.f32 %v10604_v58, %v4065_v44  ;;  %v5794_v56 = vmax.f32 %v5120_v46, 0.0  ;;  %v9736_v44 = vld [vmem:[%s10124_s30 + $0xae4] ss:$16 sps:$4 sm:$0xff]   ;;  %v9739_v46 = vld [vmem:[%s10124_s30 + $0xaec] ss:$16 sps:$4 sm:$0xff]  }
 0x2e3   : > { %v4067_v51 = vpop.f32.mrf.mxu0  ;;  %v5124_v54 = vpop.f32.mrf.mxu1 }
 0x2e4   : > { %v5123_v53 = vadd.f32 %v5122_v48, %v4066_v47 }
 0x2e5   : > { %v4070_v55 = vpop.f32.mrf.mxu0  ;;  %4261 = vmatmul.mubr.bf16.gmra.mxu0 %v9710_v45  ;;  %v5127_v59 = vpop.f32.mrf.mxu1  ;;  %5318 = vmatmul.mubr.bf16.gmra.mxu1 %v9713_v49 }
 0x2e6   : > { %v5795_v57 = vmax.f32 %v5123_v53, 0.0  ;;  %v4071_v29 = vadd.f32 %v10604_v58, %v4070_v55  ;;  %4268 = vmatprep.mubr.bf16.mxu0 %v9718_v50  ;;  %5325 = vmatprep.mubr.bf16.mxu1 %v9721_v52 }
 0x2e7   : > { %v4072_v60 = vpop.f32.mrf.mxu0  ;;  %v5129_v62 = vpop.f32.mrf.mxu1 }
 0x2e8   : > { %v8681_v61 = vpack.c.bf16 %v5795_v57, %v5794_v56  ;;  %v5128_v1 = vadd.f32 %v5127_v59, %v4071_v29  ;;  %v9734_v29 = vld [vmem:[%s10124_s30 + $0xae0] ss:$16 sps:$4 sm:$0xff]   ;;  %v9737_v62 = vld [vmem:[%s10124_s30 + $0xae8] ss:$16 sps:$4 sm:$0xff]  }
 0x2e9   : > { %v4073_v63 = vpop.f32.mrf.mxu0  ;;  %v5130_v3 = vpop.f32.mrf.mxu1 }
 0x2ea   : > { %9085 = vst [vmem:[%s10305_s21 + $0x1d0] sm:$0xff] %v8681_v61   ;;  %v4074_v2 = vadd.f32 %v10604_v58, %v4073_v63  ;;  %v5796_v12 = vmax.f32 %v5128_v1, 0.0  ;;  %v9742_v63 = vld [vmem:[%s10124_s30 + $0xb04] ss:$16 sps:$4 sm:$0xff]   ;;  %v9745_v1 = vld [vmem:[%s10124_s30 + $0xb0c] ss:$16 sps:$4 sm:$0xff]  }
 0x2eb   : > { %v4075_v7 = vpop.f32.mrf.mxu0  ;;  %v5132_v10 = vpop.f32.mrf.mxu1 }
 0x2ec   : > { %v5131_v9 = vadd.f32 %v5130_v3, %v4074_v2 }
 0x2ed   : > { %v4078_v11 = vpop.f32.mrf.mxu0  ;;  %4269 = vmatmul.mubr.bf16.gmra.mxu0 %v9716_v0  ;;  %v5135_v15 = vpop.f32.mrf.mxu1  ;;  %5326 = vmatmul.mubr.bf16.gmra.mxu1 %v9719_v4 }
 0x2ee   : > { %v5797_v13 = vmax.f32 %v5131_v9, 0.0  ;;  %v4079_v14 = vadd.f32 %v10604_v58, %v4078_v11  ;;  %4276 = vmatprep.mubr.bf16.mxu0 %v9724_v5  ;;  %5333 = vmatprep.mubr.bf16.mxu1 %v9727_v8 }
 0x2ef   : > { %v4080_v16 = vpop.f32.mrf.mxu0  ;;  %v5137_v18 = vpop.f32.mrf.mxu1 }
 0x2f0   : > { %v8686_v17 = vpack.c.bf16 %v5797_v13, %v5796_v12  ;;  %v5136_v21 = vadd.f32 %v5135_v15, %v4079_v14  ;;  %v9740_v14 = vld [vmem:[%s10124_s30 + $0xb00] ss:$16 sps:$4 sm:$0xff]   ;;  %v9743_v18 = vld [vmem:[%s10124_s30 + $0xb08] ss:$16 sps:$4 sm:$0xff]  }
 0x2f1   : > { %v4081_v19 = vpop.f32.mrf.mxu0  ;;  %v5138_v23 = vpop.f32.mrf.mxu1 }
 0x2f2   : > { %9086 = vst [vmem:[%s10305_s21 + $0x1d8] sm:$0xff] %v8686_v17   ;;  %v4082_v22 = vadd.f32 %v10604_v58, %v4081_v19  ;;  %v5798_v31 = vmax.f32 %v5136_v21, 0.0  ;;  %v9748_v19 = vld [vmem:[%s10124_s30 + $0xb24] ss:$16 sps:$4 sm:$0xff]   ;;  %v9751_v21 = vld [vmem:[%s10124_s30 + $0xb2c] ss:$16 sps:$4 sm:$0xff]  }
 0x2f3   : > { %v4083_v26 = vpop.f32.mrf.mxu0  ;;  %v5140_v6 = vpop.f32.mrf.mxu1 }
 0x2f4   : > { %v5139_v28 = vadd.f32 %v5138_v23, %v4082_v22 }
 0x2f5   : > { %v4086_v30 = vpop.f32.mrf.mxu0  ;;  %4277 = vmatmul.mubr.bf16.gmra.mxu0 %v9722_v20  ;;  %v5143_v34 = vpop.f32.mrf.mxu1  ;;  %5334 = vmatmul.mubr.bf16.gmra.mxu1 %v9725_v24 }
 0x2f6   : > { %v5799_v32 = vmax.f32 %v5139_v28, 0.0  ;;  %v4087_v33 = vadd.f32 %v10604_v58, %v4086_v30  ;;  %4284 = vmatprep.mubr.bf16.mxu0 %v9730_v25  ;;  %5341 = vmatprep.mubr.bf16.mxu1 %v9733_v27  ;;  %v10760_v27 = vld [vmem:[%s11130_s2] ss:$0 sm:$0xff] }
 0x2f7   : > { %v4088_v35 = vpop.f32.mrf.mxu0  ;;  %v5145_v37 = vpop.f32.mrf.mxu1 }
 0x2f8   : > { %v8691_v36 = vpack.c.bf16 %v5799_v32, %v5798_v31  ;;  %v5144_v40 = vadd.f32 %v5143_v34, %v4087_v33  ;;  %v9746_v33 = vld [vmem:[%s10124_s30 + $0xb20] ss:$16 sps:$4 sm:$0xff]   ;;  %v9749_v37 = vld [vmem:[%s10124_s30 + $0xb28] ss:$16 sps:$4 sm:$0xff]  }
 0x2f9   : > { %v4089_v38 = vpop.f32.mrf.mxu0  ;;  %v5146_v42 = vpop.f32.mrf.mxu1 }
 0x2fa   : > { %9087 = vst [vmem:[%s10305_s21 + $0x1e0] sm:$0xff] %v8691_v36   ;;  %v4090_v41 = vadd.f32 %v10604_v58, %v4089_v38  ;;  %v5800_v50 = vmax.f32 %v5144_v40, 0.0  ;;  %v9754_v38 = vld [vmem:[%s10124_s30 + $0xb44] ss:$16 sps:$4 sm:$0xff]   ;;  %v9757_v40 = vld [vmem:[%s10124_s30 + $0xb4c] ss:$16 sps:$4 sm:$0xff]  }
 0x2fb   : > { %v4091_v45 = vpop.f32.mrf.mxu0  ;;  %v5148_v48 = vpop.f32.mrf.mxu1 }
 0x2fc   : > { %v5147_v47 = vadd.f32 %v5146_v42, %v4090_v41 }
 0x2fd   : > { %v4094_v49 = vpop.f32.mrf.mxu0  ;;  %4285 = vmatmul.mubr.bf16.gmra.mxu0 %v9728_v39  ;;  %v5151_v53 = vpop.f32.mrf.mxu1  ;;  %5342 = vmatmul.mubr.bf16.gmra.mxu1 %v9731_v43 }
 0x2fe   : > { %v5801_v51 = vmax.f32 %v5147_v47, 0.0  ;;  %v4095_v52 = vadd.f32 %v10604_v58, %v4094_v49  ;;  %4292 = vmatprep.mubr.bf16.mxu0 %v9736_v44  ;;  %5349 = vmatprep.mubr.bf16.mxu1 %v9739_v46 }
 0x2ff   : > { %v4096_v54 = vpop.f32.mrf.mxu0  ;;  %v5153_v56 = vpop.f32.mrf.mxu1 }
 0x300   : > { %v8696_v55 = vpack.c.bf16 %v5801_v51, %v5800_v50  ;;  %v5152_v59 = vadd.f32 %v5151_v53, %v4095_v52  ;;  %v9752_v52 = vld [vmem:[%s10124_s30 + $0xb40] ss:$16 sps:$4 sm:$0xff]   ;;  %v9755_v56 = vld [vmem:[%s10124_s30 + $0xb48] ss:$16 sps:$4 sm:$0xff]  }
 0x301   : > { %v4097_v57 = vpop.f32.mrf.mxu0  ;;  %v5154_v61 = vpop.f32.mrf.mxu1 }
 0x302   : > { %9088 = vst [vmem:[%s10305_s21 + $0x1e8] sm:$0xff] %v8696_v55   ;;  %v4098_v60 = vadd.f32 %v10604_v58, %v4097_v57  ;;  %v5802_v5 = vmax.f32 %v5152_v59, 0.0  ;;  %v9760_v57 = vld [vmem:[%s10124_s30 + $0xb64] ss:$16 sps:$4 sm:$0xff]   ;;  %v9763_v59 = vld [vmem:[%s10124_s30 + $0xb6c] ss:$16 sps:$4 sm:$0xff]  }
 0x303   : > { %v4099_v0 = vpop.f32.mrf.mxu0  ;;  %v5156_v3 = vpop.f32.mrf.mxu1 }
 0x304   : > { %v5155_v2 = vadd.f32 %v5154_v61, %v4098_v60 }
 0x305   : > { %v4102_v4 = vpop.f32.mrf.mxu0  ;;  %4293 = vmatmul.mubr.bf16.gmra.mxu0 %v9734_v29  ;;  %v5159_v9 = vpop.f32.mrf.mxu1  ;;  %5350 = vmatmul.mubr.bf16.gmra.mxu1 %v9737_v62 }
 0x306   : > { %v5803_v7 = vmax.f32 %v5155_v2, 0.0  ;;  %v4103_v8 = vadd.f32 %v10604_v58, %v4102_v4  ;;  %4300 = vmatprep.mubr.bf16.mxu0 %v9742_v63  ;;  %5357 = vmatprep.mubr.bf16.mxu1 %v9745_v1 }
 0x307   : > { %v4104_v10 = vpop.f32.mrf.mxu0  ;;  %v5161_v12 = vpop.f32.mrf.mxu1 }
 0x308   : > { %v8701_v11 = vpack.c.bf16 %v5803_v7, %v5802_v5  ;;  %v5160_v15 = vadd.f32 %v5159_v9, %v4103_v8  ;;  %v9758_v8 = vld [vmem:[%s10124_s30 + $0xb60] ss:$16 sps:$4 sm:$0xff]   ;;  %v9761_v12 = vld [vmem:[%s10124_s30 + $0xb68] ss:$16 sps:$4 sm:$0xff]  }
 0x309   : > { %v4105_v13 = vpop.f32.mrf.mxu0  ;;  %v5162_v17 = vpop.f32.mrf.mxu1 }
 0x30a   : > { %9089 = vst [vmem:[%s10305_s21 + $0x1f0] sm:$0xff] %v8701_v11   ;;  %v4106_v16 = vadd.f32 %v10604_v58, %v4105_v13  ;;  %v5804_v25 = vmax.f32 %v5160_v15, 0.0  ;;  %v9766_v13 = vld [vmem:[%s10124_s30 + $0xb84] ss:$16 sps:$4 sm:$0xff]   ;;  %v9769_v15 = vld [vmem:[%s10124_s30 + $0xb8c] ss:$16 sps:$4 sm:$0xff]  }
 0x30b   : > { %v4107_v20 = vpop.f32.mrf.mxu0  ;;  %v5164_v23 = vpop.f32.mrf.mxu1 }
 0x30c   : > { %v5163_v22 = vadd.f32 %v5162_v17, %v4106_v16 }
 0x30d   : > { %v4110_v24 = vpop.f32.mrf.mxu0  ;;  %4301 = vmatmul.mubr.bf16.gmra.mxu0 %v9740_v14  ;;  %v5167_v28 = vpop.f32.mrf.mxu1  ;;  %5358 = vmatmul.mubr.bf16.gmra.mxu1 %v9743_v18 }
 0x30e   : > { %v5805_v26 = vmax.f32 %v5163_v22, 0.0  ;;  %v4111_v58 = vadd.f32 %v10760_v27, %v4110_v24  ;;  %4308 = vmatprep.mubr.bf16.mxu0 %v9748_v19  ;;  %5365 = vmatprep.mubr.bf16.mxu1 %v9751_v21 }
 0x30f   : > { %v4112_v6 = vpop.f32.mrf.mxu0  ;;  %v5169_v31 = vpop.f32.mrf.mxu1 }
 0x310   : > { %v8706_v30 = vpack.c.bf16 %v5805_v26, %v5804_v25  ;;  %v5168_v34 = vadd.f32 %v5167_v28, %v4111_v58  ;;  %v9764_v58 = vld [vmem:[%s10124_s30 + $0xb80] ss:$16 sps:$4 sm:$0xff]   ;;  %v9767_v31 = vld [vmem:[%s10124_s30 + $0xb88] ss:$16 sps:$4 sm:$0xff]  }
 0x311   : > { %v4113_v32 = vpop.f32.mrf.mxu0  ;;  %v5170_v36 = vpop.f32.mrf.mxu1 }
 0x312   : > { %9090 = vst [vmem:[%s10305_s21 + $0x1f8] sm:$0xff] %v8706_v30   ;;  %v4114_v35 = vadd.f32 %v10760_v27, %v4113_v32  ;;  %v5806_v44 = vmax.f32 %v5168_v34, 0.0  ;;  %v9772_v32 = vld [vmem:[%s10124_s30 + $0xba4] ss:$16 sps:$4 sm:$0xff]   ;;  %v9775_v34 = vld [vmem:[%s10124_s30 + $0xbac] ss:$16 sps:$4 sm:$0xff]  }
 0x313   : > { %v4115_v39 = vpop.f32.mrf.mxu0  ;;  %v5172_v42 = vpop.f32.mrf.mxu1 }
 0x314   : > { %v5171_v41 = vadd.f32 %v5170_v36, %v4114_v35 }
 0x315   : > { %v4118_v43 = vpop.f32.mrf.mxu0  ;;  %4309 = vmatmul.mubr.bf16.gmra.mxu0 %v9746_v33  ;;  %v5175_v47 = vpop.f32.mrf.mxu1  ;;  %5366 = vmatmul.mubr.bf16.gmra.mxu1 %v9749_v37 }
 0x316   : > { %v5807_v45 = vmax.f32 %v5171_v41, 0.0  ;;  %v4119_v46 = vadd.f32 %v10760_v27, %v4118_v43  ;;  %4316 = vmatprep.mubr.bf16.mxu0 %v9754_v38  ;;  %5373 = vmatprep.mubr.bf16.mxu1 %v9757_v40 }
 0x317   : > { %v4120_v48 = vpop.f32.mrf.mxu0  ;;  %v5177_v50 = vpop.f32.mrf.mxu1 }
 0x318   : > { %v8711_v49 = vpack.c.bf16 %v5807_v45, %v5806_v44  ;;  %v5176_v53 = vadd.f32 %v5175_v47, %v4119_v46  ;;  %v9770_v46 = vld [vmem:[%s10124_s30 + $0xba0] ss:$16 sps:$4 sm:$0xff]   ;;  %v9773_v50 = vld [vmem:[%s10124_s30 + $0xba8] ss:$16 sps:$4 sm:$0xff]  }
 0x319   : > { %v4121_v51 = vpop.f32.mrf.mxu0  ;;  %v5178_v55 = vpop.f32.mrf.mxu1 }
 0x31a   : > { %9091 = vst [vmem:[%s10305_s21 + $0x200] sm:$0xff] %v8711_v49   ;;  %v4122_v54 = vadd.f32 %v10760_v27, %v4121_v51  ;;  %v5808_v63 = vmax.f32 %v5176_v53, 0.0  ;;  %v9778_v51 = vld [vmem:[%s10124_s30 + $0xbc4] ss:$16 sps:$4 sm:$0xff]   ;;  %v9781_v53 = vld [vmem:[%s10124_s30 + $0xbcc] ss:$16 sps:$4 sm:$0xff]  }
 0x31b   : > { %v4123_v29 = vpop.f32.mrf.mxu0  ;;  %v5180_v61 = vpop.f32.mrf.mxu1 }
 0x31c   : > { %v5179_v60 = vadd.f32 %v5178_v55, %v4122_v54 }
 0x31d   : > { %v4126_v62 = vpop.f32.mrf.mxu0  ;;  %4317 = vmatmul.mubr.bf16.gmra.mxu0 %v9752_v52  ;;  %v5183_v2 = vpop.f32.mrf.mxu1  ;;  %5374 = vmatmul.mubr.bf16.gmra.mxu1 %v9755_v56 }
 0x31e   : > { %v5809_v0 = vmax.f32 %v5179_v60, 0.0  ;;  %v4127_v1 = vadd.f32 %v10760_v27, %v4126_v62  ;;  %4324 = vmatprep.mubr.bf16.mxu0 %v9760_v57  ;;  %5381 = vmatprep.mubr.bf16.mxu1 %v9763_v59 }
 0x31f   : > { %v4128_v3 = vpop.f32.mrf.mxu0  ;;  %v5185_v5 = vpop.f32.mrf.mxu1 }
 0x320   : > { %v8716_v4 = vpack.c.bf16 %v5809_v0, %v5808_v63  ;;  %v5184_v9 = vadd.f32 %v5183_v2, %v4127_v1  ;;  %v9776_v1 = vld [vmem:[%s10124_s30 + $0xbc0] ss:$16 sps:$4 sm:$0xff]   ;;  %v9779_v5 = vld [vmem:[%s10124_s30 + $0xbc8] ss:$16 sps:$4 sm:$0xff]  }
 0x321   : > { %v4129_v7 = vpop.f32.mrf.mxu0  ;;  %v5186_v11 = vpop.f32.mrf.mxu1 }
 0x322   : > { %9092 = vst [vmem:[%s10305_s21 + $0x208] sm:$0xff] %v8716_v4   ;;  %v4130_v10 = vadd.f32 %v10760_v27, %v4129_v7  ;;  %v5810_v19 = vmax.f32 %v5184_v9, 0.0  ;;  %v9784_v7 = vld [vmem:[%s10124_s30 + $0xbe4] ss:$16 sps:$4 sm:$0xff]   ;;  %v9787_v9 = vld [vmem:[%s10124_s30 + $0xbec] ss:$16 sps:$4 sm:$0xff]  }
 0x323   : > { %v4131_v14 = vpop.f32.mrf.mxu0  ;;  %v5188_v17 = vpop.f32.mrf.mxu1 }
 0x324   : > { %v5187_v16 = vadd.f32 %v5186_v11, %v4130_v10 }
 0x325   : > { %v4134_v18 = vpop.f32.mrf.mxu0  ;;  %4325 = vmatmul.mubr.bf16.gmra.mxu0 %v9758_v8  ;;  %v5191_v22 = vpop.f32.mrf.mxu1  ;;  %5382 = vmatmul.mubr.bf16.gmra.mxu1 %v9761_v12 }
 0x326   : > { %v5811_v20 = vmax.f32 %v5187_v16, 0.0  ;;  %v4135_v21 = vadd.f32 %v10760_v27, %v4134_v18  ;;  %4332 = vmatprep.mubr.bf16.mxu0 %v9766_v13  ;;  %5389 = vmatprep.mubr.bf16.mxu1 %v9769_v15 }
 0x327   : > { %v4136_v23 = vpop.f32.mrf.mxu0  ;;  %v5193_v25 = vpop.f32.mrf.mxu1 }
 0x328   : > { %v8721_v24 = vpack.c.bf16 %v5811_v20, %v5810_v19  ;;  %v5192_v28 = vadd.f32 %v5191_v22, %v4135_v21  ;;  %v9782_v21 = vld [vmem:[%s10124_s30 + $0xbe0] ss:$16 sps:$4 sm:$0xff]   ;;  %v9785_v25 = vld [vmem:[%s10124_s30 + $0xbe8] ss:$16 sps:$4 sm:$0xff]  }
 0x329   : > { %v4137_v26 = vpop.f32.mrf.mxu0  ;;  %v5194_v30 = vpop.f32.mrf.mxu1 }
 0x32a   : > { %9093 = vst [vmem:[%s10305_s21 + $0x210] sm:$0xff] %v8721_v24   ;;  %v4138_v6 = vadd.f32 %v10760_v27, %v4137_v26  ;;  %v5812_v38 = vmax.f32 %v5192_v28, 0.0  ;;  %v9790_v26 = vld [vmem:[%s10124_s30 + $0xc04] ss:$16 sps:$4 sm:$0xff]   ;;  %v9793_v28 = vld [vmem:[%s10124_s30 + $0xc0c] ss:$16 sps:$4 sm:$0xff]  }
 0x32b   : > { %v4139_v33 = vpop.f32.mrf.mxu0  ;;  %v5196_v36 = vpop.f32.mrf.mxu1 }
 0x32c   : > { %v5195_v35 = vadd.f32 %v5194_v30, %v4138_v6 }
 0x32d   : > { %v4142_v37 = vpop.f32.mrf.mxu0  ;;  %4333 = vmatmul.mubr.bf16.gmra.mxu0 %v9764_v58  ;;  %v5199_v41 = vpop.f32.mrf.mxu1  ;;  %5390 = vmatmul.mubr.bf16.gmra.mxu1 %v9767_v31 }
 0x32e   : > { %v5813_v39 = vmax.f32 %v5195_v35, 0.0  ;;  %v4143_v40 = vadd.f32 %v10760_v27, %v4142_v37  ;;  %4340 = vmatprep.mubr.bf16.mxu0 %v9772_v32  ;;  %5397 = vmatprep.mubr.bf16.mxu1 %v9775_v34 }
 0x32f   : > { %v4144_v42 = vpop.f32.mrf.mxu0  ;;  %v5201_v44 = vpop.f32.mrf.mxu1 }
 0x330   : > { %v8726_v43 = vpack.c.bf16 %v5813_v39, %v5812_v38  ;;  %v5200_v47 = vadd.f32 %v5199_v41, %v4143_v40  ;;  %v9788_v40 = vld [vmem:[%s10124_s30 + $0xc00] ss:$16 sps:$4 sm:$0xff]   ;;  %v9791_v44 = vld [vmem:[%s10124_s30 + $0xc08] ss:$16 sps:$4 sm:$0xff]  }
 0x331   : > { %v4145_v45 = vpop.f32.mrf.mxu0  ;;  %v5202_v49 = vpop.f32.mrf.mxu1 }
 0x332   : > { %9094 = vst [vmem:[%s10305_s21 + $0x218] sm:$0xff] %v8726_v43   ;;  %v4146_v48 = vadd.f32 %v10760_v27, %v4145_v45  ;;  %v5814_v57 = vmax.f32 %v5200_v47, 0.0  ;;  %v9796_v45 = vld [vmem:[%s10124_s30 + $0xc24] ss:$16 sps:$4 sm:$0xff]   ;;  %v9799_v47 = vld [vmem:[%s10124_s30 + $0xc2c] ss:$16 sps:$4 sm:$0xff]  }
 0x333   : > { %v4147_v52 = vpop.f32.mrf.mxu0  ;;  %v5204_v55 = vpop.f32.mrf.mxu1 }
 0x334   : > { %v5203_v54 = vadd.f32 %v5202_v49, %v4146_v48 }
 0x335   : > { %v4150_v56 = vpop.f32.mrf.mxu0  ;;  %4341 = vmatmul.mubr.bf16.gmra.mxu0 %v9770_v46  ;;  %v5207_v60 = vpop.f32.mrf.mxu1  ;;  %5398 = vmatmul.mubr.bf16.gmra.mxu1 %v9773_v50 }
 0x336   : > { %v5815_v29 = vmax.f32 %v5203_v54, 0.0  ;;  %v4151_v59 = vadd.f32 %v10760_v27, %v4150_v56  ;;  %4348 = vmatprep.mubr.bf16.mxu0 %v9778_v51  ;;  %5405 = vmatprep.mubr.bf16.mxu1 %v9781_v53 }
 0x337   : > { %v4152_v61 = vpop.f32.mrf.mxu0  ;;  %v5209_v63 = vpop.f32.mrf.mxu1 }
 0x338   : > { %v8731_v62 = vpack.c.bf16 %v5815_v29, %v5814_v57  ;;  %v5208_v2 = vadd.f32 %v5207_v60, %v4151_v59  ;;  %v9794_v59 = vld [vmem:[%s10124_s30 + $0xc20] ss:$16 sps:$4 sm:$0xff]   ;;  %v9797_v63 = vld [vmem:[%s10124_s30 + $0xc28] ss:$16 sps:$4 sm:$0xff]  }
 0x339   : > { %v4153_v0 = vpop.f32.mrf.mxu0  ;;  %v5210_v4 = vpop.f32.mrf.mxu1 }
 0x33a   : > { %9095 = vst [vmem:[%s10305_s21 + $0x220] sm:$0xff] %v8731_v62   ;;  %v4154_v3 = vadd.f32 %v10760_v27, %v4153_v0  ;;  %v5816_v13 = vmax.f32 %v5208_v2, 0.0  ;;  %v9802_v0 = vld [vmem:[%s10124_s30 + $0xc44] ss:$16 sps:$4 sm:$0xff]   ;;  %v9805_v2 = vld [vmem:[%s10124_s30 + $0xc4c] ss:$16 sps:$4 sm:$0xff]  }
 0x33b   : > { %v4155_v8 = vpop.f32.mrf.mxu0  ;;  %v5212_v11 = vpop.f32.mrf.mxu1 }
 0x33c   : > { %v5211_v10 = vadd.f32 %v5210_v4, %v4154_v3 }
 0x33d   : > { %v4158_v12 = vpop.f32.mrf.mxu0  ;;  %4349 = vmatmul.mubr.bf16.gmra.mxu0 %v9776_v1  ;;  %v5215_v16 = vpop.f32.mrf.mxu1  ;;  %5406 = vmatmul.mubr.bf16.gmra.mxu1 %v9779_v5 }
 0x33e   : > { %v5817_v14 = vmax.f32 %v5211_v10, 0.0  ;;  %v4159_v15 = vadd.f32 %v10760_v27, %v4158_v12  ;;  %4356 = vmatprep.mubr.bf16.mxu0 %v9784_v7  ;;  %5413 = vmatprep.mubr.bf16.mxu1 %v9787_v9 }
 0x33f   : > { %v4160_v17 = vpop.f32.mrf.mxu0  ;;  %v5217_v19 = vpop.f32.mrf.mxu1 }
 0x340   : > { %v8736_v18 = vpack.c.bf16 %v5817_v14, %v5816_v13  ;;  %v5216_v22 = vadd.f32 %v5215_v16, %v4159_v15  ;;  %v9800_v15 = vld [vmem:[%s10124_s30 + $0xc40] ss:$16 sps:$4 sm:$0xff]   ;;  %v9803_v19 = vld [vmem:[%s10124_s30 + $0xc48] ss:$16 sps:$4 sm:$0xff]  }
 0x341   : > { %v4161_v20 = vpop.f32.mrf.mxu0  ;;  %v5218_v24 = vpop.f32.mrf.mxu1 }
 0x342   : > { %9096 = vst [vmem:[%s10305_s21 + $0x228] sm:$0xff] %v8736_v18   ;;  %v4162_v23 = vadd.f32 %v10760_v27, %v4161_v20  ;;  %v5818_v32 = vmax.f32 %v5216_v22, 0.0  ;;  %v9808_v20 = vld [vmem:[%s10124_s30 + $0xc64] ss:$16 sps:$4 sm:$0xff]   ;;  %v9811_v22 = vld [vmem:[%s10124_s30 + $0xc6c] ss:$16 sps:$4 sm:$0xff]  }
 0x343   : > { %v4163_v58 = vpop.f32.mrf.mxu0  ;;  %v5220_v30 = vpop.f32.mrf.mxu1 }
 0x344   : > { %v5219_v6 = vadd.f32 %v5218_v24, %v4162_v23 }
 0x345   : > { %v4166_v31 = vpop.f32.mrf.mxu0  ;;  %4357 = vmatmul.mubr.bf16.gmra.mxu0 %v9782_v21  ;;  %v5223_v35 = vpop.f32.mrf.mxu1  ;;  %5414 = vmatmul.mubr.bf16.gmra.mxu1 %v9785_v25 }
 0x346   : > { %v5819_v33 = vmax.f32 %v5219_v6, 0.0  ;;  %v4167_v34 = vadd.f32 %v10760_v27, %v4166_v31  ;;  %4364 = vmatprep.mubr.bf16.mxu0 %v9790_v26  ;;  %5421 = vmatprep.mubr.bf16.mxu1 %v9793_v28 }
 0x347   : > { %v4168_v36 = vpop.f32.mrf.mxu0  ;;  %v5225_v38 = vpop.f32.mrf.mxu1 }
 0x348   : > { %v8741_v37 = vpack.c.bf16 %v5819_v33, %v5818_v32  ;;  %v5224_v41 = vadd.f32 %v5223_v35, %v4167_v34  ;;  %v9806_v34 = vld [vmem:[%s10124_s30 + $0xc60] ss:$16 sps:$4 sm:$0xff]   ;;  %v9809_v38 = vld [vmem:[%s10124_s30 + $0xc68] ss:$16 sps:$4 sm:$0xff]  }
 0x349   : > { %v4169_v39 = vpop.f32.mrf.mxu0  ;;  %v5226_v43 = vpop.f32.mrf.mxu1 }
 0x34a   : > { %9097 = vst [vmem:[%s10305_s21 + $0x230] sm:$0xff] %v8741_v37   ;;  %v4170_v42 = vadd.f32 %v10760_v27, %v4169_v39  ;;  %v5820_v51 = vmax.f32 %v5224_v41, 0.0  ;;  %v9814_v39 = vld [vmem:[%s10124_s30 + $0xc84] ss:$16 sps:$4 sm:$0xff]   ;;  %v9817_v41 = vld [vmem:[%s10124_s30 + $0xc8c] ss:$16 sps:$4 sm:$0xff]  }
 0x34b   : > { %v4171_v46 = vpop.f32.mrf.mxu0  ;;  %v5228_v49 = vpop.f32.mrf.mxu1 }
 0x34c   : > { %v5227_v48 = vadd.f32 %v5226_v43, %v4170_v42 }
 0x34d   : > { %v4174_v50 = vpop.f32.mrf.mxu0  ;;  %4365 = vmatmul.mubr.bf16.gmra.mxu0 %v9788_v40  ;;  %v5231_v54 = vpop.f32.mrf.mxu1  ;;  %5422 = vmatmul.mubr.bf16.gmra.mxu1 %v9791_v44 }
 0x34e   : > { %v5821_v52 = vmax.f32 %v5227_v48, 0.0  ;;  %v4175_v53 = vadd.f32 %v10760_v27, %v4174_v50  ;;  %4372 = vmatprep.mubr.bf16.mxu0 %v9796_v45  ;;  %5429 = vmatprep.mubr.bf16.mxu1 %v9799_v47 }
 0x34f   : > { %v4176_v55 = vpop.f32.mrf.mxu0  ;;  %v5233_v57 = vpop.f32.mrf.mxu1 }
 0x350   : > { %v8746_v56 = vpack.c.bf16 %v5821_v52, %v5820_v51  ;;  %v5232_v60 = vadd.f32 %v5231_v54, %v4175_v53  ;;  %v9812_v53 = vld [vmem:[%s10124_s30 + $0xc80] ss:$16 sps:$4 sm:$0xff]   ;;  %v9815_v57 = vld [vmem:[%s10124_s30 + $0xc88] ss:$16 sps:$4 sm:$0xff]  }
 0x351   : > { %v4177_v29 = vpop.f32.mrf.mxu0  ;;  %v5234_v62 = vpop.f32.mrf.mxu1 }
 0x352   : > { %9098 = vst [vmem:[%s10305_s21 + $0x238] sm:$0xff] %v8746_v56   ;;  %v4178_v61 = vadd.f32 %v10760_v27, %v4177_v29  ;;  %v5822_v7 = vmax.f32 %v5232_v60, 0.0  ;;  %v9820_v29 = vld [vmem:[%s10124_s30 + $0xca4] ss:$16 sps:$4 sm:$0xff]   ;;  %v9823_v60 = vld [vmem:[%s10124_s30 + $0xcac] ss:$16 sps:$4 sm:$0xff]  }
 0x353   : > { %v4179_v1 = vpop.f32.mrf.mxu0  ;;  %v5236_v4 = vpop.f32.mrf.mxu1 }
 0x354   : > { %v5235_v3 = vadd.f32 %v5234_v62, %v4178_v61 }
 0x355   : > { %v4182_v5 = vpop.f32.mrf.mxu0  ;;  %4373 = vmatmul.mubr.bf16.gmra.mxu0 %v9794_v59  ;;  %v5239_v10 = vpop.f32.mrf.mxu1  ;;  %5430 = vmatmul.mubr.bf16.gmra.mxu1 %v9797_v63 }
 0x356   : > { %v5823_v8 = vmax.f32 %v5235_v3, 0.0  ;;  %v4183_v9 = vadd.f32 %v10760_v27, %v4182_v5  ;;  %4380 = vmatprep.mubr.bf16.mxu0 %v9802_v0  ;;  %5437 = vmatprep.mubr.bf16.mxu1 %v9805_v2 }
 0x357   : > { %v4184_v11 = vpop.f32.mrf.mxu0  ;;  %v5241_v13 = vpop.f32.mrf.mxu1 }
 0x358   : > { %v8751_v12 = vpack.c.bf16 %v5823_v8, %v5822_v7  ;;  %v5240_v16 = vadd.f32 %v5239_v10, %v4183_v9  ;;  %v9818_v9 = vld [vmem:[%s10124_s30 + $0xca0] ss:$16 sps:$4 sm:$0xff]   ;;  %v9821_v13 = vld [vmem:[%s10124_s30 + $0xca8] ss:$16 sps:$4 sm:$0xff]  }
 0x359   : > { %v4185_v14 = vpop.f32.mrf.mxu0  ;;  %v5242_v18 = vpop.f32.mrf.mxu1 }
 0x35a   : > { %9099 = vst [vmem:[%s10305_s21 + $0x240] sm:$0xff] %v8751_v12   ;;  %v4186_v17 = vadd.f32 %v10760_v27, %v4185_v14  ;;  %v5824_v26 = vmax.f32 %v5240_v16, 0.0  ;;  %v9826_v14 = vld [vmem:[%s10124_s30 + $0xcc4] ss:$16 sps:$4 sm:$0xff]   ;;  %v9829_v16 = vld [vmem:[%s10124_s30 + $0xccc] ss:$16 sps:$4 sm:$0xff]  }
 0x35b   : > { %v4187_v21 = vpop.f32.mrf.mxu0  ;;  %v5244_v24 = vpop.f32.mrf.mxu1 }
 0x35c   : > { %v5243_v23 = vadd.f32 %v5242_v18, %v4186_v17 }
 0x35d   : > { %v4190_v25 = vpop.f32.mrf.mxu0  ;;  %4381 = vmatmul.mubr.bf16.gmra.mxu0 %v9800_v15  ;;  %v5247_v6 = vpop.f32.mrf.mxu1  ;;  %5438 = vmatmul.mubr.bf16.gmra.mxu1 %v9803_v19 }
 0x35e   : > { %v5825_v58 = vmax.f32 %v5243_v23, 0.0  ;;  %v4191_v28 = vadd.f32 %v10760_v27, %v4190_v25  ;;  %4388 = vmatprep.mubr.bf16.mxu0 %v9808_v20  ;;  %5445 = vmatprep.mubr.bf16.mxu1 %v9811_v22 }
 0x35f   : > { %v4192_v30 = vpop.f32.mrf.mxu0  ;;  %v5249_v32 = vpop.f32.mrf.mxu1 }
 0x360   : > { %v8756_v31 = vpack.c.bf16 %v5825_v58, %v5824_v26  ;;  %v5248_v35 = vadd.f32 %v5247_v6, %v4191_v28  ;;  %v9824_v28 = vld [vmem:[%s10124_s30 + $0xcc0] ss:$16 sps:$4 sm:$0xff]   ;;  %v9827_v32 = vld [vmem:[%s10124_s30 + $0xcc8] ss:$16 sps:$4 sm:$0xff]  }
 0x361   : > { %v4193_v33 = vpop.f32.mrf.mxu0  ;;  %v5250_v37 = vpop.f32.mrf.mxu1 }
 0x362   : > { %9100 = vst [vmem:[%s10305_s21 + $0x248] sm:$0xff] %v8756_v31   ;;  %v4194_v36 = vadd.f32 %v10760_v27, %v4193_v33  ;;  %v5826_v45 = vmax.f32 %v5248_v35, 0.0  ;;  %v9832_v33 = vld [vmem:[%s10124_s30 + $0xce4] ss:$16 sps:$4 sm:$0xff]   ;;  %v9835_v35 = vld [vmem:[%s10124_s30 + $0xcec] ss:$16 sps:$4 sm:$0xff]  }
 0x363   : > { %v4195_v40 = vpop.f32.mrf.mxu0  ;;  %v5252_v43 = vpop.f32.mrf.mxu1 }
 0x364   : > { %v5251_v42 = vadd.f32 %v5250_v37, %v4194_v36 }
 0x365   : > { %v4198_v44 = vpop.f32.mrf.mxu0  ;;  %4389 = vmatmul.mubr.bf16.gmra.mxu0 %v9806_v34  ;;  %v5255_v48 = vpop.f32.mrf.mxu1  ;;  %5446 = vmatmul.mubr.bf16.gmra.mxu1 %v9809_v38 }
 0x366   : > { %v5827_v46 = vmax.f32 %v5251_v42, 0.0  ;;  %v4199_v47 = vadd.f32 %v10760_v27, %v4198_v44  ;;  %4396 = vmatprep.mubr.bf16.mxu0 %v9814_v39  ;;  %5453 = vmatprep.mubr.bf16.mxu1 %v9817_v41 }
 0x367   : > { %v4200_v49 = vpop.f32.mrf.mxu0  ;;  %v5257_v51 = vpop.f32.mrf.mxu1 }
 0x368   : > { %v8761_v50 = vpack.c.bf16 %v5827_v46, %v5826_v45  ;;  %v5256_v54 = vadd.f32 %v5255_v48, %v4199_v47  ;;  %v9830_v47 = vld [vmem:[%s10124_s30 + $0xce0] ss:$16 sps:$4 sm:$0xff]   ;;  %v9833_v51 = vld [vmem:[%s10124_s30 + $0xce8] ss:$16 sps:$4 sm:$0xff]  }
 0x369   : > { %v4201_v52 = vpop.f32.mrf.mxu0  ;;  %v5258_v56 = vpop.f32.mrf.mxu1 }
 0x36a   : > { %9101 = vst [vmem:[%s10305_s21 + $0x250] sm:$0xff] %v8761_v50   ;;  %v4202_v55 = vadd.f32 %v10760_v27, %v4201_v52  ;;  %v5828_v0 = vmax.f32 %v5256_v54, 0.0  ;;  %v9838_v52 = vld [vmem:[%s10124_s30 + $0xd04] ss:$16 sps:$4 sm:$0xff]   ;;  %v9841_v54 = vld [vmem:[%s10124_s30 + $0xd0c] ss:$16 sps:$4 sm:$0xff]  }
 0x36b   : > { %v4203_v59 = vpop.f32.mrf.mxu0  ;;  %v5260_v62 = vpop.f32.mrf.mxu1 }
 0x36c   : > { %v5259_v61 = vadd.f32 %v5258_v56, %v4202_v55 }
 0x36d   : > { %v4206_v63 = vpop.f32.mrf.mxu0  ;;  %4397 = vmatmul.mubr.bf16.gmra.mxu0 %v9812_v53  ;;  %v5263_v3 = vpop.f32.mrf.mxu1  ;;  %5454 = vmatmul.mubr.bf16.gmra.mxu1 %v9815_v57 }
 0x36e   : > { %v5829_v1 = vmax.f32 %v5259_v61, 0.0  ;;  %v4207_v2 = vadd.f32 %v10760_v27, %v4206_v63  ;;  %4404 = vmatprep.mubr.bf16.mxu0 %v9820_v29  ;;  %5461 = vmatprep.mubr.bf16.mxu1 %v9823_v60 }
 0x36f   : > { %v4208_v4 = vpop.f32.mrf.mxu0  ;;  %v5265_v7 = vpop.f32.mrf.mxu1 }
 0x370   : > { %v8766_v5 = vpack.c.bf16 %v5829_v1, %v5828_v0  ;;  %v5264_v10 = vadd.f32 %v5263_v3, %v4207_v2  ;;  %v9836_v2 = vld [vmem:[%s10124_s30 + $0xd00] ss:$16 sps:$4 sm:$0xff]   ;;  %v9839_v7 = vld [vmem:[%s10124_s30 + $0xd08] ss:$16 sps:$4 sm:$0xff]  }
 0x371   : > { %v4209_v8 = vpop.f32.mrf.mxu0  ;;  %v5266_v12 = vpop.f32.mrf.mxu1 }
 0x372   : > { %9102 = vst [vmem:[%s10305_s21 + $0x258] sm:$0xff] %v8766_v5   ;;  %v4210_v11 = vadd.f32 %v10760_v27, %v4209_v8  ;;  %v5830_v20 = vmax.f32 %v5264_v10, 0.0  ;;  %v9844_v8 = vld [vmem:[%s10124_s30 + $0xd24] ss:$16 sps:$4 sm:$0xff]   ;;  %v9847_v10 = vld [vmem:[%s10124_s30 + $0xd2c] ss:$16 sps:$4 sm:$0xff]  }
 0x373   : > { %v4211_v15 = vpop.f32.mrf.mxu0  ;;  %v5268_v18 = vpop.f32.mrf.mxu1 }
 0x374   : > { %v5267_v17 = vadd.f32 %v5266_v12, %v4210_v11 }
 0x375   : > { %v4214_v19 = vpop.f32.mrf.mxu0  ;;  %4405 = vmatmul.mubr.bf16.gmra.mxu0 %v9818_v9  ;;  %v5271_v23 = vpop.f32.mrf.mxu1  ;;  %5462 = vmatmul.mubr.bf16.gmra.mxu1 %v9821_v13 }
 0x376   : > { %v5831_v21 = vmax.f32 %v5267_v17, 0.0  ;;  %v4215_v22 = vadd.f32 %v10760_v27, %v4214_v19  ;;  %4412 = vmatprep.mubr.bf16.mxu0 %v9826_v14  ;;  %5469 = vmatprep.mubr.bf16.mxu1 %v9829_v16 }
 0x377   : > { %v4216_v24 = vpop.f32.mrf.mxu0  ;;  %v5273_v26 = vpop.f32.mrf.mxu1 }
 0x378   : > { %v8771_v25 = vpack.c.bf16 %v5831_v21, %v5830_v20  ;;  %v5272_v6 = vadd.f32 %v5271_v23, %v4215_v22  ;;  %v9842_v22 = vld [vmem:[%s10124_s30 + $0xd20] ss:$16 sps:$4 sm:$0xff]   ;;  %v9845_v26 = vld [vmem:[%s10124_s30 + $0xd28] ss:$16 sps:$4 sm:$0xff]  }
 0x379   : > { %v4217_v58 = vpop.f32.mrf.mxu0  ;;  %v5274_v31 = vpop.f32.mrf.mxu1 }
 0x37a   : > { %9103 = vst [vmem:[%s10305_s21 + $0x260] sm:$0xff] %v8771_v25   ;;  %v4218_v30 = vadd.f32 %v10760_v27, %v4217_v58  ;;  %v5832_v39 = vmax.f32 %v5272_v6, 0.0  ;;  %v9850_v58 = vld [vmem:[%s10124_s30 + $0xd44] ss:$16 sps:$4 sm:$0xff]   ;;  %v9853_v6 = vld [vmem:[%s10124_s30 + $0xd4c] ss:$16 sps:$4 sm:$0xff]  }
 0x37b   : > { %v4219_v34 = vpop.f32.mrf.mxu0  ;;  %v5276_v37 = vpop.f32.mrf.mxu1 }
 0x37c   : > { %v5275_v36 = vadd.f32 %v5274_v31, %v4218_v30 }
 0x37d   : > { %v4222_v38 = vpop.f32.mrf.mxu0  ;;  %4413 = vmatmul.mubr.bf16.gmra.mxu0 %v9824_v28  ;;  %v5279_v42 = vpop.f32.mrf.mxu1  ;;  %5470 = vmatmul.mubr.bf16.gmra.mxu1 %v9827_v32 }
 0x37e   : > { %v5833_v40 = vmax.f32 %v5275_v36, 0.0  ;;  %v4223_v41 = vadd.f32 %v10760_v27, %v4222_v38  ;;  %4420 = vmatprep.mubr.bf16.mxu0 %v9832_v33  ;;  %5477 = vmatprep.mubr.bf16.mxu1 %v9835_v35 }
 0x37f   : > { %v4224_v43 = vpop.f32.mrf.mxu0  ;;  %v5281_v45 = vpop.f32.mrf.mxu1 }
 0x380   : > { %v8776_v44 = vpack.c.bf16 %v5833_v40, %v5832_v39  ;;  %v5280_v48 = vadd.f32 %v5279_v42, %v4223_v41  ;;  %v9848_v41 = vld [vmem:[%s10124_s30 + $0xd40] ss:$16 sps:$4 sm:$0xff]   ;;  %v9851_v45 = vld [vmem:[%s10124_s30 + $0xd48] ss:$16 sps:$4 sm:$0xff]  }
 0x381   : > { %v4225_v46 = vpop.f32.mrf.mxu0  ;;  %v5282_v50 = vpop.f32.mrf.mxu1 }
 0x382   : > { %9104 = vst [vmem:[%s10305_s21 + $0x268] sm:$0xff] %v8776_v44   ;;  %v4226_v49 = vadd.f32 %v10760_v27, %v4225_v46  ;;  %v5834_v29 = vmax.f32 %v5280_v48, 0.0  ;;  %v9856_v46 = vld [vmem:[%s10124_s30 + $0xd64] ss:$16 sps:$4 sm:$0xff]   ;;  %v9859_v48 = vld [vmem:[%s10124_s30 + $0xd6c] ss:$16 sps:$4 sm:$0xff]  }
 0x383   : > { %v4227_v53 = vpop.f32.mrf.mxu0  ;;  %v5284_v56 = vpop.f32.mrf.mxu1 }
 0x384   : > { %v5283_v55 = vadd.f32 %v5282_v50, %v4226_v49 }
 0x385   : > { %v4230_v57 = vpop.f32.mrf.mxu0  ;;  %4421 = vmatmul.mubr.bf16.gmra.mxu0 %v9830_v47  ;;  %v5287_v61 = vpop.f32.mrf.mxu1  ;;  %5478 = vmatmul.mubr.bf16.gmra.mxu1 %v9833_v51 }
 0x386   : > { %v5835_v59 = vmax.f32 %v5283_v55, 0.0  ;;  %v4231_v60 = vadd.f32 %v10760_v27, %v4230_v57  ;;  %4428 = vmatprep.mubr.bf16.mxu0 %v9838_v52  ;;  %5485 = vmatprep.mubr.bf16.mxu1 %v9841_v54 }
 0x387   : > { %v4232_v62 = vpop.f32.mrf.mxu0  ;;  %v5289_v0 = vpop.f32.mrf.mxu1 }
 0x388   : > { %v8781_v63 = vpack.c.bf16 %v5835_v59, %v5834_v29  ;;  %v5288_v3 = vadd.f32 %v5287_v61, %v4231_v60  ;;  %v9854_v60 = vld [vmem:[%s10124_s30 + $0xd60] ss:$16 sps:$4 sm:$0xff]   ;;  %v9857_v0 = vld [vmem:[%s10124_s30 + $0xd68] ss:$16 sps:$4 sm:$0xff]  }
 0x389   : > { %v4233_v1 = vpop.f32.mrf.mxu0  ;;  %v5290_v5 = vpop.f32.mrf.mxu1 }
 0x38a   : > { %9105 = vst [vmem:[%s10305_s21 + $0x270] sm:$0xff] %v8781_v63   ;;  %v4234_v4 = vadd.f32 %v10760_v27, %v4233_v1  ;;  %v5836_v14 = vmax.f32 %v5288_v3, 0.0  ;;  %v9862_v1 = vld [vmem:[%s10124_s30 + $0xd84] ss:$16 sps:$4 sm:$0xff]   ;;  %v9865_v3 = vld [vmem:[%s10124_s30 + $0xd8c] ss:$16 sps:$4 sm:$0xff]  }
 0x38b   : > { %v4235_v9 = vpop.f32.mrf.mxu0  ;;  %v5292_v12 = vpop.f32.mrf.mxu1 }
 0x38c   : > { %v5291_v11 = vadd.f32 %v5290_v5, %v4234_v4 }
 0x38d   : > { %v4238_v13 = vpop.f32.mrf.mxu0  ;;  %4429 = vmatmul.mubr.bf16.gmra.mxu0 %v9836_v2  ;;  %v5295_v17 = vpop.f32.mrf.mxu1  ;;  %5486 = vmatmul.mubr.bf16.gmra.mxu1 %v9839_v7 }
 0x38e   : > { %v5837_v15 = vmax.f32 %v5291_v11, 0.0  ;;  %v4239_v16 = vadd.f32 %v10760_v27, %v4238_v13  ;;  %4436 = vmatprep.mubr.bf16.mxu0 %v9844_v8  ;;  %5493 = vmatprep.mubr.bf16.mxu1 %v9847_v10 }
 0x38f   : > { %v4240_v18 = vpop.f32.mrf.mxu0  ;;  %v5297_v20 = vpop.f32.mrf.mxu1 }
 0x390   : > { %v8786_v19 = vpack.c.bf16 %v5837_v15, %v5836_v14  ;;  %v5296_v23 = vadd.f32 %v5295_v17, %v4239_v16  ;;  %v9860_v16 = vld [vmem:[%s10124_s30 + $0xd80] ss:$16 sps:$4 sm:$0xff]   ;;  %v9863_v20 = vld [vmem:[%s10124_s30 + $0xd88] ss:$16 sps:$4 sm:$0xff]  }
 0x391   : > { %v4241_v21 = vpop.f32.mrf.mxu0  ;;  %v5298_v25 = vpop.f32.mrf.mxu1 }
 0x392   : > { %9106 = vst [vmem:[%s10305_s21 + $0x278] sm:$0xff] %v8786_v19   ;;  %v4242_v24 = vadd.f32 %v10760_v27, %v4241_v21  ;;  %v5838_v33 = vmax.f32 %v5296_v23, 0.0  ;;  %v9868_v21 = vld [vmem:[%s10124_s30 + $0xda4] ss:$16 sps:$4 sm:$0xff]   ;;  %v9871_v23 = vld [vmem:[%s10124_s30 + $0xdac] ss:$16 sps:$4 sm:$0xff]  }
 0x393   : > { %v4243_v28 = vpop.f32.mrf.mxu0  ;;  %v5300_v31 = vpop.f32.mrf.mxu1 }
 0x394   : > { %v5299_v30 = vadd.f32 %v5298_v25, %v4242_v24 }
 0x395   : > { %v4246_v32 = vpop.f32.mrf.mxu0  ;;  %4437 = vmatmul.mubr.bf16.gmra.mxu0 %v9842_v22  ;;  %v5303_v36 = vpop.f32.mrf.mxu1  ;;  %5494 = vmatmul.mubr.bf16.gmra.mxu1 %v9845_v26 }
 0x396   : > { %v5839_v34 = vmax.f32 %v5299_v30, 0.0  ;;  %v4247_v35 = vadd.f32 %v10760_v27, %v4246_v32  ;;  %4444 = vmatprep.mubr.bf16.mxu0 %v9850_v58  ;;  %5501 = vmatprep.mubr.bf16.mxu1 %v9853_v6 }
 0x397   : > { %v4248_v37 = vpop.f32.mrf.mxu0  ;;  %v5305_v39 = vpop.f32.mrf.mxu1 }
 0x398   : > { %v8791_v38 = vpack.c.bf16 %v5839_v34, %v5838_v33  ;;  %v5304_v42 = vadd.f32 %v5303_v36, %v4247_v35  ;;  %v9866_v35 = vld [vmem:[%s10124_s30 + $0xda0] ss:$16 sps:$4 sm:$0xff]   ;;  %v9869_v39 = vld [vmem:[%s10124_s30 + $0xda8] ss:$16 sps:$4 sm:$0xff]  }
 0x399   : > { %v4249_v40 = vpop.f32.mrf.mxu0  ;;  %v5306_v44 = vpop.f32.mrf.mxu1 }
 0x39a   : > { %9107 = vst [vmem:[%s10305_s21 + $0x280] sm:$0xff] %v8791_v38   ;;  %v4250_v43 = vadd.f32 %v10760_v27, %v4249_v40  ;;  %v5840_v52 = vmax.f32 %v5304_v42, 0.0  ;;  %v9874_v40 = vld [vmem:[%s10124_s30 + $0xdc4] ss:$16 sps:$4 sm:$0xff]   ;;  %v9877_v42 = vld [vmem:[%s10124_s30 + $0xdcc] ss:$16 sps:$4 sm:$0xff]  }
 0x39b   : > { %v4251_v47 = vpop.f32.mrf.mxu0  ;;  %v5308_v50 = vpop.f32.mrf.mxu1 }
 0x39c   : > { %v5307_v49 = vadd.f32 %v5306_v44, %v4250_v43 }
 0x39d   : > { %v4254_v51 = vpop.f32.mrf.mxu0  ;;  %4445 = vmatmul.mubr.bf16.gmra.mxu0 %v9848_v41  ;;  %v5311_v55 = vpop.f32.mrf.mxu1  ;;  %5502 = vmatmul.mubr.bf16.gmra.mxu1 %v9851_v45 }
 0x39e   : > { %v5841_v53 = vmax.f32 %v5307_v49, 0.0  ;;  %v4255_v54 = vadd.f32 %v10760_v27, %v4254_v51  ;;  %4452 = vmatprep.mubr.bf16.mxu0 %v9856_v46  ;;  %5509 = vmatprep.mubr.bf16.mxu1 %v9859_v48 }
 0x39f   : > { %v4256_v56 = vpop.f32.mrf.mxu0  ;;  %v5313_v29 = vpop.f32.mrf.mxu1 }
 0x3a0   : > { %v8796_v57 = vpack.c.bf16 %v5841_v53, %v5840_v52  ;;  %v5312_v61 = vadd.f32 %v5311_v55, %v4255_v54  ;;  %v9872_v54 = vld [vmem:[%s10124_s30 + $0xdc0] ss:$16 sps:$4 sm:$0xff]   ;;  %v9875_v29 = vld [vmem:[%s10124_s30 + $0xdc8] ss:$16 sps:$4 sm:$0xff]  }
 0x3a1   : > { %v4257_v59 = vpop.f32.mrf.mxu0  ;;  %v5314_v63 = vpop.f32.mrf.mxu1  ;;  %v10915_v56 = vld [vmem:[%s11130_s2] ss:$0 sm:$0xff] }
 0x3a2   : > { %9108 = vst [vmem:[%s10305_s21 + $0x288] sm:$0xff] %v8796_v57   ;;  %v4258_v62 = vadd.f32 %v10760_v27, %v4257_v59  ;;  %v5842_v8 = vmax.f32 %v5312_v61, 0.0  ;;  %v9880_v59 = vld [vmem:[%s10124_s30 + $0xde4] ss:$16 sps:$4 sm:$0xff]   ;;  %v9883_v61 = vld [vmem:[%s10124_s30 + $0xdec] ss:$16 sps:$4 sm:$0xff]  }
 0x3a3   : > { %v4259_v2 = vpop.f32.mrf.mxu0  ;;  %v5316_v5 = vpop.f32.mrf.mxu1 }
 0x3a4   : > { %v5315_v4 = vadd.f32 %v5314_v63, %v4258_v62 }
 0x3a5   : > { %v4262_v7 = vpop.f32.mrf.mxu0  ;;  %4453 = vmatmul.mubr.bf16.gmra.mxu0 %v9854_v60  ;;  %v5319_v11 = vpop.f32.mrf.mxu1  ;;  %5510 = vmatmul.mubr.bf16.gmra.mxu1 %v9857_v0 }
 0x3a6   : > { %v5843_v9 = vmax.f32 %v5315_v4, 0.0  ;;  %v4263_v10 = vadd.f32 %v10760_v27, %v4262_v7  ;;  %4460 = vmatprep.mubr.bf16.mxu0 %v9862_v1  ;;  %5517 = vmatprep.mubr.bf16.mxu1 %v9865_v3 }
 0x3a7   : > { %v4264_v12 = vpop.f32.mrf.mxu0  ;;  %v5321_v14 = vpop.f32.mrf.mxu1 }
 0x3a8   : > { %v8801_v13 = vpack.c.bf16 %v5843_v9, %v5842_v8  ;;  %v5320_v17 = vadd.f32 %v5319_v11, %v4263_v10  ;;  %v9878_v10 = vld [vmem:[%s10124_s30 + $0xde0] ss:$16 sps:$4 sm:$0xff]   ;;  %v9881_v14 = vld [vmem:[%s10124_s30 + $0xde8] ss:$16 sps:$4 sm:$0xff]  }
 0x3a9   : > { %v4265_v15 = vpop.f32.mrf.mxu0  ;;  %v5322_v19 = vpop.f32.mrf.mxu1 }
 0x3aa   : > { %9109 = vst [vmem:[%s10305_s21 + $0x290] sm:$0xff] %v8801_v13   ;;  %v4266_v18 = vadd.f32 %v10760_v27, %v4265_v15  ;;  %v5844_v58 = vmax.f32 %v5320_v17, 0.0  ;;  %v9886_v15 = vld [vmem:[%s10124_s30 + $0xe04] ss:$16 sps:$4 sm:$0xff]   ;;  %v9889_v17 = vld [vmem:[%s10124_s30 + $0xe0c] ss:$16 sps:$4 sm:$0xff]  }
 0x3ab   : > { %v4267_v22 = vpop.f32.mrf.mxu0  ;;  %v5324_v25 = vpop.f32.mrf.mxu1 }
 0x3ac   : > { %v5323_v24 = vadd.f32 %v5322_v19, %v4266_v18 }
 0x3ad   : > { %v4270_v26 = vpop.f32.mrf.mxu0  ;;  %4461 = vmatmul.mubr.bf16.gmra.mxu0 %v9860_v16  ;;  %v5327_v30 = vpop.f32.mrf.mxu1  ;;  %5518 = vmatmul.mubr.bf16.gmra.mxu1 %v9863_v20 }
 0x3ae   : > { %v5845_v28 = vmax.f32 %v5323_v24, 0.0  ;;  %v4271_v6 = vadd.f32 %v10760_v27, %v4270_v26  ;;  %4468 = vmatprep.mubr.bf16.mxu0 %v9868_v21  ;;  %5525 = vmatprep.mubr.bf16.mxu1 %v9871_v23 }
 0x3af   : > { %v4272_v31 = vpop.f32.mrf.mxu0  ;;  %v5329_v33 = vpop.f32.mrf.mxu1 }
 0x3b0   : > { %v8806_v32 = vpack.c.bf16 %v5845_v28, %v5844_v58  ;;  %v5328_v36 = vadd.f32 %v5327_v30, %v4271_v6  ;;  %v9884_v6 = vld [vmem:[%s10124_s30 + $0xe00] ss:$16 sps:$4 sm:$0xff]   ;;  %v9887_v33 = vld [vmem:[%s10124_s30 + $0xe08] ss:$16 sps:$4 sm:$0xff]  }
 0x3b1   : > { %v4273_v34 = vpop.f32.mrf.mxu0  ;;  %v5330_v38 = vpop.f32.mrf.mxu1 }
 0x3b2   : > { %9110 = vst [vmem:[%s10305_s21 + $0x298] sm:$0xff] %v8806_v32   ;;  %v4274_v37 = vadd.f32 %v10760_v27, %v4273_v34  ;;  %v5846_v46 = vmax.f32 %v5328_v36, 0.0  ;;  %v9892_v34 = vld [vmem:[%s10124_s30 + $0xe24] ss:$16 sps:$4 sm:$0xff]   ;;  %v9895_v36 = vld [vmem:[%s10124_s30 + $0xe2c] ss:$16 sps:$4 sm:$0xff]  }
 0x3b3   : > { %v4275_v41 = vpop.f32.mrf.mxu0  ;;  %v5332_v44 = vpop.f32.mrf.mxu1 }
 0x3b4   : > { %v5331_v43 = vadd.f32 %v5330_v38, %v4274_v37 }
 0x3b5   : > { %v4278_v45 = vpop.f32.mrf.mxu0  ;;  %4469 = vmatmul.mubr.bf16.gmra.mxu0 %v9866_v35  ;;  %v5335_v49 = vpop.f32.mrf.mxu1  ;;  %5526 = vmatmul.mubr.bf16.gmra.mxu1 %v9869_v39 }
 0x3b6   : > { %v5847_v47 = vmax.f32 %v5331_v43, 0.0  ;;  %v4279_v48 = vadd.f32 %v10760_v27, %v4278_v45  ;;  %4476 = vmatprep.mubr.bf16.mxu0 %v9874_v40  ;;  %5533 = vmatprep.mubr.bf16.mxu1 %v9877_v42 }
 0x3b7   : > { %v4280_v50 = vpop.f32.mrf.mxu0  ;;  %v5337_v52 = vpop.f32.mrf.mxu1 }
 0x3b8   : > { %v8811_v51 = vpack.c.bf16 %v5847_v47, %v5846_v46  ;;  %v5336_v55 = vadd.f32 %v5335_v49, %v4279_v48  ;;  %v9890_v48 = vld [vmem:[%s10124_s30 + $0xe20] ss:$16 sps:$4 sm:$0xff]   ;;  %v9893_v52 = vld [vmem:[%s10124_s30 + $0xe28] ss:$16 sps:$4 sm:$0xff]  }
 0x3b9   : > { %v4281_v53 = vpop.f32.mrf.mxu0  ;;  %v5338_v57 = vpop.f32.mrf.mxu1 }
 0x3ba   : > { %9111 = vst [vmem:[%s10305_s21 + $0x2a0] sm:$0xff] %v8811_v51   ;;  %v4282_v27 = vadd.f32 %v10915_v56, %v4281_v53  ;;  %v5848_v1 = vmax.f32 %v5336_v55, 0.0  ;;  %v9898_v53 = vld [vmem:[%s10124_s30 + $0xe44] ss:$16 sps:$4 sm:$0xff]   ;;  %v9901_v55 = vld [vmem:[%s10124_s30 + $0xe4c] ss:$16 sps:$4 sm:$0xff]  }
 0x3bb   : > { %v4283_v60 = vpop.f32.mrf.mxu0  ;;  %v5340_v63 = vpop.f32.mrf.mxu1 }
 0x3bc   : > { %v5339_v62 = vadd.f32 %v5338_v57, %v4282_v27 }
 0x3bd   : > { %v4286_v0 = vpop.f32.mrf.mxu0  ;;  %4477 = vmatmul.mubr.bf16.gmra.mxu0 %v9872_v54  ;;  %v5343_v4 = vpop.f32.mrf.mxu1  ;;  %5534 = vmatmul.mubr.bf16.gmra.mxu1 %v9875_v29 }
 0x3be   : > { %v5849_v2 = vmax.f32 %v5339_v62, 0.0  ;;  %v4287_v3 = vadd.f32 %v10915_v56, %v4286_v0  ;;  %4484 = vmatprep.mubr.bf16.mxu0 %v9880_v59  ;;  %5541 = vmatprep.mubr.bf16.mxu1 %v9883_v61 }
 0x3bf   : > { %v4288_v5 = vpop.f32.mrf.mxu0  ;;  %v5345_v8 = vpop.f32.mrf.mxu1 }
 0x3c0   : > { %v8816_v7 = vpack.c.bf16 %v5849_v2, %v5848_v1  ;;  %v5344_v11 = vadd.f32 %v5343_v4, %v4287_v3  ;;  %v9896_v3 = vld [vmem:[%s10124_s30 + $0xe40] ss:$16 sps:$4 sm:$0xff]   ;;  %v9899_v8 = vld [vmem:[%s10124_s30 + $0xe48] ss:$16 sps:$4 sm:$0xff]  }
 0x3c1   : > { %v4289_v9 = vpop.f32.mrf.mxu0  ;;  %v5346_v13 = vpop.f32.mrf.mxu1 }
 0x3c2   : > { %9112 = vst [vmem:[%s10305_s21 + $0x2a8] sm:$0xff] %v8816_v7   ;;  %v4290_v12 = vadd.f32 %v10915_v56, %v4289_v9  ;;  %v5850_v21 = vmax.f32 %v5344_v11, 0.0  ;;  %v9904_v9 = vld [vmem:[%s10124_s30 + $0xe64] ss:$16 sps:$4 sm:$0xff]   ;;  %v9907_v11 = vld [vmem:[%s10124_s30 + $0xe6c] ss:$16 sps:$4 sm:$0xff]  }
 0x3c3   : > { %v4291_v16 = vpop.f32.mrf.mxu0  ;;  %v5348_v19 = vpop.f32.mrf.mxu1 }
 0x3c4   : > { %v5347_v18 = vadd.f32 %v5346_v13, %v4290_v12 }
 0x3c5   : > { %v4294_v20 = vpop.f32.mrf.mxu0  ;;  %4485 = vmatmul.mubr.bf16.gmra.mxu0 %v9878_v10  ;;  %v5351_v24 = vpop.f32.mrf.mxu1  ;;  %5542 = vmatmul.mubr.bf16.gmra.mxu1 %v9881_v14 }
 0x3c6   : > { %v5851_v22 = vmax.f32 %v5347_v18, 0.0  ;;  %v4295_v23 = vadd.f32 %v10915_v56, %v4294_v20  ;;  %4492 = vmatprep.mubr.bf16.mxu0 %v9886_v15  ;;  %5549 = vmatprep.mubr.bf16.mxu1 %v9889_v17 }
 0x3c7   : > { %v4296_v25 = vpop.f32.mrf.mxu0  ;;  %v5353_v58 = vpop.f32.mrf.mxu1 }
 0x3c8   : > { %v8821_v26 = vpack.c.bf16 %v5851_v22, %v5850_v21  ;;  %v5352_v30 = vadd.f32 %v5351_v24, %v4295_v23  ;;  %v9902_v23 = vld [vmem:[%s10124_s30 + $0xe60] ss:$16 sps:$4 sm:$0xff]   ;;  %v9905_v58 = vld [vmem:[%s10124_s30 + $0xe68] ss:$16 sps:$4 sm:$0xff]  }
 0x3c9   : > { %v4297_v28 = vpop.f32.mrf.mxu0  ;;  %v5354_v32 = vpop.f32.mrf.mxu1 }
 0x3ca   : > { %9113 = vst [vmem:[%s10305_s21 + $0x2b0] sm:$0xff] %v8821_v26   ;;  %v4298_v31 = vadd.f32 %v10915_v56, %v4297_v28  ;;  %v5852_v40 = vmax.f32 %v5352_v30, 0.0  ;;  %v9910_v28 = vld [vmem:[%s10124_s30 + $0xe84] ss:$16 sps:$4 sm:$0xff]   ;;  %v9913_v30 = vld [vmem:[%s10124_s30 + $0xe8c] ss:$16 sps:$4 sm:$0xff]  }
 0x3cb   : > { %v4299_v35 = vpop.f32.mrf.mxu0  ;;  %v5356_v38 = vpop.f32.mrf.mxu1 }
 0x3cc   : > { %v5355_v37 = vadd.f32 %v5354_v32, %v4298_v31 }
 0x3cd   : > { %v4302_v39 = vpop.f32.mrf.mxu0  ;;  %4493 = vmatmul.mubr.bf16.gmra.mxu0 %v9884_v6  ;;  %v5359_v43 = vpop.f32.mrf.mxu1  ;;  %5550 = vmatmul.mubr.bf16.gmra.mxu1 %v9887_v33 }
 0x3ce   : > { %v5853_v41 = vmax.f32 %v5355_v37, 0.0  ;;  %v4303_v42 = vadd.f32 %v10915_v56, %v4302_v39  ;;  %4500 = vmatprep.mubr.bf16.mxu0 %v9892_v34  ;;  %5557 = vmatprep.mubr.bf16.mxu1 %v9895_v36 }
 0x3cf   : > { %v4304_v44 = vpop.f32.mrf.mxu0  ;;  %v5361_v46 = vpop.f32.mrf.mxu1 }
 0x3d0   : > { %v8826_v45 = vpack.c.bf16 %v5853_v41, %v5852_v40  ;;  %v5360_v49 = vadd.f32 %v5359_v43, %v4303_v42  ;;  %v9908_v42 = vld [vmem:[%s10124_s30 + $0xe80] ss:$16 sps:$4 sm:$0xff]   ;;  %v9911_v46 = vld [vmem:[%s10124_s30 + $0xe88] ss:$16 sps:$4 sm:$0xff]  }
 0x3d1   : > { %v4305_v47 = vpop.f32.mrf.mxu0  ;;  %v5362_v51 = vpop.f32.mrf.mxu1 }
 0x3d2   : > { %9114 = vst [vmem:[%s10305_s21 + $0x2b8] sm:$0xff] %v8826_v45   ;;  %v4306_v50 = vadd.f32 %v10915_v56, %v4305_v47  ;;  %v5854_v59 = vmax.f32 %v5360_v49, 0.0  ;;  %v9916_v47 = vld [vmem:[%s10124_s30 + $0xea4] ss:$16 sps:$4 sm:$0xff]   ;;  %v9919_v49 = vld [vmem:[%s10124_s30 + $0xeac] ss:$16 sps:$4 sm:$0xff]  }
 0x3d3   : > { %v4307_v54 = vpop.f32.mrf.mxu0  ;;  %v5364_v57 = vpop.f32.mrf.mxu1 }
 0x3d4   : > { %v5363_v27 = vadd.f32 %v5362_v51, %v4306_v50 }
 0x3d5   : > { %v4310_v29 = vpop.f32.mrf.mxu0  ;;  %4501 = vmatmul.mubr.bf16.gmra.mxu0 %v9890_v48  ;;  %v5367_v62 = vpop.f32.mrf.mxu1  ;;  %5558 = vmatmul.mubr.bf16.gmra.mxu1 %v9893_v52 }
 0x3d6   : > { %v5855_v60 = vmax.f32 %v5363_v27, 0.0  ;;  %v4311_v61 = vadd.f32 %v10915_v56, %v4310_v29  ;;  %4508 = vmatprep.mubr.bf16.mxu0 %v9898_v53  ;;  %5565 = vmatprep.mubr.bf16.mxu1 %v9901_v55 }
 0x3d7   : > { %v4312_v63 = vpop.f32.mrf.mxu0  ;;  %v5369_v1 = vpop.f32.mrf.mxu1 }
 0x3d8   : > { %v8831_v0 = vpack.c.bf16 %v5855_v60, %v5854_v59  ;;  %v5368_v4 = vadd.f32 %v5367_v62, %v4311_v61  ;;  %v9914_v61 = vld [vmem:[%s10124_s30 + $0xea0] ss:$16 sps:$4 sm:$0xff]   ;;  %v9917_v1 = vld [vmem:[%s10124_s30 + $0xea8] ss:$16 sps:$4 sm:$0xff]  }
 0x3d9   : > { %v4313_v2 = vpop.f32.mrf.mxu0  ;;  %v5370_v7 = vpop.f32.mrf.mxu1 }
 0x3da   : > { %9115 = vst [vmem:[%s10305_s21 + $0x2c0] sm:$0xff] %v8831_v0   ;;  %v4314_v5 = vadd.f32 %v10915_v56, %v4313_v2  ;;  %v5856_v15 = vmax.f32 %v5368_v4, 0.0  ;;  %v9922_v2 = vld [vmem:[%s10124_s30 + $0xec4] ss:$16 sps:$4 sm:$0xff]   ;;  %v9925_v4 = vld [vmem:[%s10124_s30 + $0xecc] ss:$16 sps:$4 sm:$0xff]  }
 0x3db   : > { %v4315_v10 = vpop.f32.mrf.mxu0  ;;  %v5372_v13 = vpop.f32.mrf.mxu1 }
 0x3dc   : > { %v5371_v12 = vadd.f32 %v5370_v7, %v4314_v5 }
 0x3dd   : > { %v4318_v14 = vpop.f32.mrf.mxu0  ;;  %4509 = vmatmul.mubr.bf16.gmra.mxu0 %v9896_v3  ;;  %v5375_v18 = vpop.f32.mrf.mxu1  ;;  %5566 = vmatmul.mubr.bf16.gmra.mxu1 %v9899_v8 }
 0x3de   : > { %v5857_v16 = vmax.f32 %v5371_v12, 0.0  ;;  %v4319_v17 = vadd.f32 %v10915_v56, %v4318_v14  ;;  %4516 = vmatprep.mubr.bf16.mxu0 %v9904_v9  ;;  %5573 = vmatprep.mubr.bf16.mxu1 %v9907_v11 }
 0x3df   : > { %v4320_v19 = vpop.f32.mrf.mxu0  ;;  %v5377_v21 = vpop.f32.mrf.mxu1 }
 0x3e0   : > { %v8836_v20 = vpack.c.bf16 %v5857_v16, %v5856_v15  ;;  %v5376_v24 = vadd.f32 %v5375_v18, %v4319_v17  ;;  %v9920_v17 = vld [vmem:[%s10124_s30 + $0xec0] ss:$16 sps:$4 sm:$0xff]   ;;  %v9923_v21 = vld [vmem:[%s10124_s30 + $0xec8] ss:$16 sps:$4 sm:$0xff]  }
 0x3e1   : > { %v4321_v22 = vpop.f32.mrf.mxu0  ;;  %v5378_v26 = vpop.f32.mrf.mxu1 }
 0x3e2   : > { %9116 = vst [vmem:[%s10305_s21 + $0x2c8] sm:$0xff] %v8836_v20   ;;  %v4322_v25 = vadd.f32 %v10915_v56, %v4321_v22  ;;  %v5858_v34 = vmax.f32 %v5376_v24, 0.0  ;;  %v9928_v22 = vld [vmem:[%s10124_s30 + $0xee4] ss:$16 sps:$4 sm:$0xff]   ;;  %v9931_v24 = vld [vmem:[%s10124_s30 + $0xeec] ss:$16 sps:$4 sm:$0xff]  }
 0x3e3   : > { %v4323_v6 = vpop.f32.mrf.mxu0  ;;  %v5380_v32 = vpop.f32.mrf.mxu1 }
 0x3e4   : > { %v5379_v31 = vadd.f32 %v5378_v26, %v4322_v25 }
 0x3e5   : > { %v4326_v33 = vpop.f32.mrf.mxu0  ;;  %4517 = vmatmul.mubr.bf16.gmra.mxu0 %v9902_v23  ;;  %v5383_v37 = vpop.f32.mrf.mxu1  ;;  %5574 = vmatmul.mubr.bf16.gmra.mxu1 %v9905_v58 }
 0x3e6   : > { %v5859_v35 = vmax.f32 %v5379_v31, 0.0  ;;  %v4327_v36 = vadd.f32 %v10915_v56, %v4326_v33  ;;  %4524 = vmatprep.mubr.bf16.mxu0 %v9910_v28  ;;  %5581 = vmatprep.mubr.bf16.mxu1 %v9913_v30 }
 0x3e7   : > { %v4328_v38 = vpop.f32.mrf.mxu0  ;;  %v5385_v40 = vpop.f32.mrf.mxu1 }
 0x3e8   : > { %v8841_v39 = vpack.c.bf16 %v5859_v35, %v5858_v34  ;;  %v5384_v43 = vadd.f32 %v5383_v37, %v4327_v36  ;;  %v9926_v36 = vld [vmem:[%s10124_s30 + $0xee0] ss:$16 sps:$4 sm:$0xff]   ;;  %v9929_v40 = vld [vmem:[%s10124_s30 + $0xee8] ss:$16 sps:$4 sm:$0xff]  }
 0x3e9   : > { %v4329_v41 = vpop.f32.mrf.mxu0  ;;  %v5386_v45 = vpop.f32.mrf.mxu1 }
 0x3ea   : > { %9117 = vst [vmem:[%s10305_s21 + $0x2d0] sm:$0xff] %v8841_v39   ;;  %v4330_v44 = vadd.f32 %v10915_v56, %v4329_v41  ;;  %v5860_v53 = vmax.f32 %v5384_v43, 0.0  ;;  %v9934_v41 = vld [vmem:[%s10124_s30 + $0xf04] ss:$16 sps:$4 sm:$0xff]   ;;  %v9937_v43 = vld [vmem:[%s10124_s30 + $0xf0c] ss:$16 sps:$4 sm:$0xff]  }
 0x3eb   : > { %v4331_v48 = vpop.f32.mrf.mxu0  ;;  %v5388_v51 = vpop.f32.mrf.mxu1 }
 0x3ec   : > { %v5387_v50 = vadd.f32 %v5386_v45, %v4330_v44 }
 0x3ed   : > { %v4334_v52 = vpop.f32.mrf.mxu0  ;;  %4525 = vmatmul.mubr.bf16.gmra.mxu0 %v9908_v42  ;;  %v5391_v27 = vpop.f32.mrf.mxu1  ;;  %5582 = vmatmul.mubr.bf16.gmra.mxu1 %v9911_v46 }
 0x3ee   : > { %v5861_v54 = vmax.f32 %v5387_v50, 0.0  ;;  %v4335_v55 = vadd.f32 %v10915_v56, %v4334_v52  ;;  %4532 = vmatprep.mubr.bf16.mxu0 %v9916_v47  ;;  %5589 = vmatprep.mubr.bf16.mxu1 %v9919_v49 }
 0x3ef   : > { %v4336_v57 = vpop.f32.mrf.mxu0  ;;  %v5393_v59 = vpop.f32.mrf.mxu1 }
 0x3f0   : > { %v8846_v29 = vpack.c.bf16 %v5861_v54, %v5860_v53  ;;  %v5392_v62 = vadd.f32 %v5391_v27, %v4335_v55  ;;  %v9932_v55 = vld [vmem:[%s10124_s30 + $0xf00] ss:$16 sps:$4 sm:$0xff]   ;;  %v9935_v59 = vld [vmem:[%s10124_s30 + $0xf08] ss:$16 sps:$4 sm:$0xff]  }
 0x3f1   : > { %v4337_v60 = vpop.f32.mrf.mxu0  ;;  %v5394_v0 = vpop.f32.mrf.mxu1 }
 0x3f2   : > { %9118 = vst [vmem:[%s10305_s21 + $0x2d8] sm:$0xff] %v8846_v29   ;;  %v4338_v63 = vadd.f32 %v10915_v56, %v4337_v60  ;;  %v5862_v9 = vmax.f32 %v5392_v62, 0.0  ;;  %v9940_v60 = vld [vmem:[%s10124_s30 + $0xf24] ss:$16 sps:$4 sm:$0xff]   ;;  %v9943_v62 = vld [vmem:[%s10124_s30 + $0xf2c] ss:$16 sps:$4 sm:$0xff]  }
 0x3f3   : > { %v4339_v3 = vpop.f32.mrf.mxu0  ;;  %v5396_v7 = vpop.f32.mrf.mxu1 }
 0x3f4   : > { %v5395_v5 = vadd.f32 %v5394_v0, %v4338_v63 }
 0x3f5   : > { %v4342_v8 = vpop.f32.mrf.mxu0  ;;  %4533 = vmatmul.mubr.bf16.gmra.mxu0 %v9914_v61  ;;  %v5399_v12 = vpop.f32.mrf.mxu1  ;;  %5590 = vmatmul.mubr.bf16.gmra.mxu1 %v9917_v1 }
 0x3f6   : > { %v5863_v10 = vmax.f32 %v5395_v5, 0.0  ;;  %v4343_v11 = vadd.f32 %v10915_v56, %v4342_v8  ;;  %4540 = vmatprep.mubr.bf16.mxu0 %v9922_v2  ;;  %5597 = vmatprep.mubr.bf16.mxu1 %v9925_v4 }
 0x3f7   : > { %v4344_v13 = vpop.f32.mrf.mxu0  ;;  %v5401_v15 = vpop.f32.mrf.mxu1 }
 0x3f8   : > { %v8851_v14 = vpack.c.bf16 %v5863_v10, %v5862_v9  ;;  %v5400_v18 = vadd.f32 %v5399_v12, %v4343_v11  ;;  %v9938_v11 = vld [vmem:[%s10124_s30 + $0xf20] ss:$16 sps:$4 sm:$0xff]   ;;  %v9941_v15 = vld [vmem:[%s10124_s30 + $0xf28] ss:$16 sps:$4 sm:$0xff]  }
 0x3f9   : > { %v4345_v16 = vpop.f32.mrf.mxu0  ;;  %v5402_v20 = vpop.f32.mrf.mxu1 }
 0x3fa   : > { %9119 = vst [vmem:[%s10305_s21 + $0x2e0] sm:$0xff] %v8851_v14   ;;  %v4346_v19 = vadd.f32 %v10915_v56, %v4345_v16  ;;  %v5864_v28 = vmax.f32 %v5400_v18, 0.0  ;;  %v9946_v16 = vld [vmem:[%s10124_s30 + $0xf44] ss:$16 sps:$4 sm:$0xff]   ;;  %v9949_v18 = vld [vmem:[%s10124_s30 + $0xf4c] ss:$16 sps:$4 sm:$0xff]  }
 0x3fb   : > { %v4347_v23 = vpop.f32.mrf.mxu0  ;;  %v5404_v26 = vpop.f32.mrf.mxu1 }
 0x3fc   : > { %v5403_v25 = vadd.f32 %v5402_v20, %v4346_v19 }
 0x3fd   : > { %v4350_v58 = vpop.f32.mrf.mxu0  ;;  %4541 = vmatmul.mubr.bf16.gmra.mxu0 %v9920_v17  ;;  %v5407_v31 = vpop.f32.mrf.mxu1  ;;  %5598 = vmatmul.mubr.bf16.gmra.mxu1 %v9923_v21 }
 0x3fe   : > { %v5865_v6 = vmax.f32 %v5403_v25, 0.0  ;;  %v4351_v30 = vadd.f32 %v10915_v56, %v4350_v58  ;;  %4548 = vmatprep.mubr.bf16.mxu0 %v9928_v22  ;;  %5605 = vmatprep.mubr.bf16.mxu1 %v9931_v24 }
 0x3ff   : > { %v4352_v32 = vpop.f32.mrf.mxu0  ;;  %v5409_v34 = vpop.f32.mrf.mxu1 }
 0x400   : > { %v8856_v33 = vpack.c.bf16 %v5865_v6, %v5864_v28  ;;  %v5408_v37 = vadd.f32 %v5407_v31, %v4351_v30  ;;  %v9944_v30 = vld [vmem:[%s10124_s30 + $0xf40] ss:$16 sps:$4 sm:$0xff]   ;;  %v9947_v34 = vld [vmem:[%s10124_s30 + $0xf48] ss:$16 sps:$4 sm:$0xff]  }
 0x401   : > { %v4353_v35 = vpop.f32.mrf.mxu0  ;;  %v5410_v39 = vpop.f32.mrf.mxu1 }
 0x402   : > { %9120 = vst [vmem:[%s10305_s21 + $0x2e8] sm:$0xff] %v8856_v33   ;;  %v4354_v38 = vadd.f32 %v10915_v56, %v4353_v35  ;;  %v5866_v47 = vmax.f32 %v5408_v37, 0.0  ;;  %v9952_v35 = vld [vmem:[%s10124_s30 + $0xf64] ss:$16 sps:$4 sm:$0xff]   ;;  %v9955_v37 = vld [vmem:[%s10124_s30 + $0xf6c] ss:$16 sps:$4 sm:$0xff]  }
 0x403   : > { %v4355_v42 = vpop.f32.mrf.mxu0  ;;  %v5412_v45 = vpop.f32.mrf.mxu1 }
 0x404   : > { %v5411_v44 = vadd.f32 %v5410_v39, %v4354_v38 }
 0x405   : > { %v4358_v46 = vpop.f32.mrf.mxu0  ;;  %4549 = vmatmul.mubr.bf16.gmra.mxu0 %v9926_v36  ;;  %v5415_v50 = vpop.f32.mrf.mxu1  ;;  %5606 = vmatmul.mubr.bf16.gmra.mxu1 %v9929_v40 }
 0x406   : > { %v5867_v48 = vmax.f32 %v5411_v44, 0.0  ;;  %v4359_v49 = vadd.f32 %v10915_v56, %v4358_v46  ;;  %4556 = vmatprep.mubr.bf16.mxu0 %v9934_v41  ;;  %5613 = vmatprep.mubr.bf16.mxu1 %v9937_v43 }
 0x407   : > { %v4360_v51 = vpop.f32.mrf.mxu0  ;;  %v5417_v53 = vpop.f32.mrf.mxu1 }
 0x408   : > { %v8861_v52 = vpack.c.bf16 %v5867_v48, %v5866_v47  ;;  %v5416_v27 = vadd.f32 %v5415_v50, %v4359_v49  ;;  %v9950_v49 = vld [vmem:[%s10124_s30 + $0xf60] ss:$16 sps:$4 sm:$0xff]   ;;  %v9953_v53 = vld [vmem:[%s10124_s30 + $0xf68] ss:$16 sps:$4 sm:$0xff]  }
 0x409   : > { %v4361_v54 = vpop.f32.mrf.mxu0  ;;  %v5418_v29 = vpop.f32.mrf.mxu1 }
 0x40a   : > { %9121 = vst [vmem:[%s10305_s21 + $0x2f0] sm:$0xff] %v8861_v52   ;;  %v4362_v57 = vadd.f32 %v10915_v56, %v4361_v54  ;;  %v5868_v2 = vmax.f32 %v5416_v27, 0.0  ;;  %v9958_v54 = vld [vmem:[%s10124_s30 + $0xf84] ss:$16 sps:$4 sm:$0xff]   ;;  %v9961_v27 = vld [vmem:[%s10124_s30 + $0xf8c] ss:$16 sps:$4 sm:$0xff]  }
 0x40b   : > { %v4363_v61 = vpop.f32.mrf.mxu0  ;;  %v5420_v0 = vpop.f32.mrf.mxu1 }
 0x40c   : > { %v5419_v63 = vadd.f32 %v5418_v29, %v4362_v57 }
 0x40d   : > { %v4366_v1 = vpop.f32.mrf.mxu0  ;;  %4557 = vmatmul.mubr.bf16.gmra.mxu0 %v9932_v55  ;;  %v5423_v5 = vpop.f32.mrf.mxu1  ;;  %5614 = vmatmul.mubr.bf16.gmra.mxu1 %v9935_v59 }
 0x40e   : > { %v5869_v3 = vmax.f32 %v5419_v63, 0.0  ;;  %v4367_v4 = vadd.f32 %v10915_v56, %v4366_v1  ;;  %4564 = vmatprep.mubr.bf16.mxu0 %v9940_v60  ;;  %5621 = vmatprep.mubr.bf16.mxu1 %v9943_v62 }
 0x40f   : > { %v4368_v7 = vpop.f32.mrf.mxu0  ;;  %v5425_v9 = vpop.f32.mrf.mxu1 }
 0x410   : > { %v8866_v8 = vpack.c.bf16 %v5869_v3, %v5868_v2  ;;  %v5424_v12 = vadd.f32 %v5423_v5, %v4367_v4  ;;  %v9956_v4 = vld [vmem:[%s10124_s30 + $0xf80] ss:$16 sps:$4 sm:$0xff]   ;;  %v9959_v9 = vld [vmem:[%s10124_s30 + $0xf88] ss:$16 sps:$4 sm:$0xff]  }
 0x411   : > { %v4369_v10 = vpop.f32.mrf.mxu0  ;;  %v5426_v14 = vpop.f32.mrf.mxu1 }
 0x412   : > { %9122 = vst [vmem:[%s10305_s21 + $0x2f8] sm:$0xff] %v8866_v8   ;;  %v4370_v13 = vadd.f32 %v10915_v56, %v4369_v10  ;;  %v5870_v22 = vmax.f32 %v5424_v12, 0.0  ;;  %v9964_v10 = vld [vmem:[%s10124_s30 + $0xfa4] ss:$16 sps:$4 sm:$0xff]   ;;  %v9967_v12 = vld [vmem:[%s10124_s30 + $0xfac] ss:$16 sps:$4 sm:$0xff]  }
 0x413   : > { %v4371_v17 = vpop.f32.mrf.mxu0  ;;  %v5428_v20 = vpop.f32.mrf.mxu1 }
 0x414   : > { %v5427_v19 = vadd.f32 %v5426_v14, %v4370_v13 }
 0x415   : > { %v4374_v21 = vpop.f32.mrf.mxu0  ;;  %4565 = vmatmul.mubr.bf16.gmra.mxu0 %v9938_v11  ;;  %v5431_v25 = vpop.f32.mrf.mxu1  ;;  %5622 = vmatmul.mubr.bf16.gmra.mxu1 %v9941_v15 }
 0x416   : > { %v5871_v23 = vmax.f32 %v5427_v19, 0.0  ;;  %v4375_v24 = vadd.f32 %v10915_v56, %v4374_v21  ;;  %4572 = vmatprep.mubr.bf16.mxu0 %v9946_v16  ;;  %5629 = vmatprep.mubr.bf16.mxu1 %v9949_v18 }
 0x417   : > { %v4376_v26 = vpop.f32.mrf.mxu0  ;;  %v5433_v28 = vpop.f32.mrf.mxu1 }
 0x418   : > { %v8871_v58 = vpack.c.bf16 %v5871_v23, %v5870_v22  ;;  %v5432_v31 = vadd.f32 %v5431_v25, %v4375_v24  ;;  %v9962_v24 = vld [vmem:[%s10124_s30 + $0xfa0] ss:$16 sps:$4 sm:$0xff]   ;;  %v9965_v28 = vld [vmem:[%s10124_s30 + $0xfa8] ss:$16 sps:$4 sm:$0xff]  }
 0x419   : > { %v4377_v6 = vpop.f32.mrf.mxu0  ;;  %v5434_v33 = vpop.f32.mrf.mxu1 }
 0x41a   : > { %9123 = vst [vmem:[%s10305_s21 + $0x300] sm:$0xff] %v8871_v58   ;;  %v4378_v32 = vadd.f32 %v10915_v56, %v4377_v6  ;;  %v5872_v41 = vmax.f32 %v5432_v31, 0.0  ;;  %v9970_v6 = vld [vmem:[%s10124_s30 + $0xfc4] ss:$16 sps:$4 sm:$0xff]   ;;  %v9973_v31 = vld [vmem:[%s10124_s30 + $0xfcc] ss:$16 sps:$4 sm:$0xff]  }
 0x41b   : > { %v4379_v36 = vpop.f32.mrf.mxu0  ;;  %v5436_v39 = vpop.f32.mrf.mxu1 }
 0x41c   : > { %v5435_v38 = vadd.f32 %v5434_v33, %v4378_v32 }
 0x41d   : > { %v4382_v40 = vpop.f32.mrf.mxu0  ;;  %4573 = vmatmul.mubr.bf16.gmra.mxu0 %v9944_v30  ;;  %v5439_v44 = vpop.f32.mrf.mxu1  ;;  %5630 = vmatmul.mubr.bf16.gmra.mxu1 %v9947_v34 }
 0x41e   : > { %v5873_v42 = vmax.f32 %v5435_v38, 0.0  ;;  %v4383_v43 = vadd.f32 %v10915_v56, %v4382_v40  ;;  %4580 = vmatprep.mubr.bf16.mxu0 %v9952_v35  ;;  %5637 = vmatprep.mubr.bf16.mxu1 %v9955_v37 }
 0x41f   : > { %v4384_v45 = vpop.f32.mrf.mxu0  ;;  %v5441_v47 = vpop.f32.mrf.mxu1 }
 0x420   : > { %v8876_v46 = vpack.c.bf16 %v5873_v42, %v5872_v41  ;;  %v5440_v50 = vadd.f32 %v5439_v44, %v4383_v43  ;;  %v9968_v43 = vld [vmem:[%s10124_s30 + $0xfc0] ss:$16 sps:$4 sm:$0xff]   ;;  %v9971_v47 = vld [vmem:[%s10124_s30 + $0xfc8] ss:$16 sps:$4 sm:$0xff]  }
 0x421   : > { %v4385_v48 = vpop.f32.mrf.mxu0  ;;  %v5442_v52 = vpop.f32.mrf.mxu1 }
 0x422   : > { %9124 = vst [vmem:[%s10305_s21 + $0x308] sm:$0xff] %v8876_v46   ;;  %v4386_v51 = vadd.f32 %v10915_v56, %v4385_v48  ;;  %v5874_v60 = vmax.f32 %v5440_v50, 0.0  ;;  %v9976_v48 = vld [vmem:[%s10124_s30 + $0xfe4] ss:$16 sps:$4 sm:$0xff]   ;;  %v9979_v50 = vld [vmem:[%s10124_s30 + $0xfec] ss:$16 sps:$4 sm:$0xff]  }
 0x423   : > { %v4387_v55 = vpop.f32.mrf.mxu0  ;;  %v5444_v29 = vpop.f32.mrf.mxu1 }
 0x424   : > { %v5443_v57 = vadd.f32 %v5442_v52, %v4386_v51 }
 0x425   : > { %v4390_v59 = vpop.f32.mrf.mxu0  ;;  %4581 = vmatmul.mubr.bf16.gmra.mxu0 %v9950_v49  ;;  %v5447_v63 = vpop.f32.mrf.mxu1  ;;  %5638 = vmatmul.mubr.bf16.gmra.mxu1 %v9953_v53 }
 0x426   : > { %v5875_v61 = vmax.f32 %v5443_v57, 0.0  ;;  %v4391_v62 = vadd.f32 %v10915_v56, %v4390_v59  ;;  %4588 = vmatprep.mubr.bf16.mxu0 %v9958_v54  ;;  %5645 = vmatprep.mubr.bf16.mxu1 %v9961_v27 }
 0x427   : > { %v4392_v0 = vpop.f32.mrf.mxu0  ;;  %v5449_v2 = vpop.f32.mrf.mxu1 }
 0x428   : > { %v8881_v1 = vpack.c.bf16 %v5875_v61, %v5874_v60  ;;  %v5448_v5 = vadd.f32 %v5447_v63, %v4391_v62  ;;  %v9974_v62 = vld [vmem:[%s10124_s30 + $0xfe0] ss:$16 sps:$4 sm:$0xff]   ;;  %v9977_v2 = vld [vmem:[%s10124_s30 + $0xfe8] ss:$16 sps:$4 sm:$0xff]  }
 0x429   : > { %v4393_v3 = vpop.f32.mrf.mxu0  ;;  %v5450_v8 = vpop.f32.mrf.mxu1 }
 0x42a   : > { %9125 = vst [vmem:[%s10305_s21 + $0x310] sm:$0xff] %v8881_v1   ;;  %v4394_v7 = vadd.f32 %v10915_v56, %v4393_v3  ;;  %v5876_v16 = vmax.f32 %v5448_v5, 0.0 }
 0x42b   : > { %v4395_v11 = vpop.f32.mrf.mxu0  ;;  %v5452_v14 = vpop.f32.mrf.mxu1 }
 0x42c   : > { %v5451_v13 = vadd.f32 %v5450_v8, %v4394_v7 }
 0x42d   : > { %v4398_v15 = vpop.f32.mrf.mxu0  ;;  %4589 = vmatmul.mubr.bf16.gmra.mxu0 %v9956_v4  ;;  %v5455_v19 = vpop.f32.mrf.mxu1  ;;  %5646 = vmatmul.mubr.bf16.gmra.mxu1 %v9959_v9 }
 0x42e   : > { %v5877_v17 = vmax.f32 %v5451_v13, 0.0  ;;  %v4399_v18 = vadd.f32 %v10915_v56, %v4398_v15  ;;  %4596 = vmatprep.mubr.bf16.mxu0 %v9964_v10  ;;  %5653 = vmatprep.mubr.bf16.mxu1 %v9967_v12 }
 0x42f   : > { %v4400_v20 = vpop.f32.mrf.mxu0  ;;  %v5457_v22 = vpop.f32.mrf.mxu1 }
 0x430   : > { %v8886_v21 = vpack.c.bf16 %v5877_v17, %v5876_v16  ;;  %v5456_v25 = vadd.f32 %v5455_v19, %v4399_v18 }
 0x431   : > { %v4401_v23 = vpop.f32.mrf.mxu0  ;;  %v5458_v58 = vpop.f32.mrf.mxu1 }
 0x432   : > { %9126 = vst [vmem:[%s10305_s21 + $0x318] sm:$0xff] %v8886_v21   ;;  %v4402_v26 = vadd.f32 %v10915_v56, %v4401_v23  ;;  %v5878_v35 = vmax.f32 %v5456_v25, 0.0 }
 0x433   : > { %v4403_v30 = vpop.f32.mrf.mxu0  ;;  %v5460_v33 = vpop.f32.mrf.mxu1 }
 0x434   : > { %v5459_v32 = vadd.f32 %v5458_v58, %v4402_v26 }
 0x435   : > { %v4406_v34 = vpop.f32.mrf.mxu0  ;;  %4597 = vmatmul.mubr.bf16.gmra.mxu0 %v9962_v24  ;;  %v5463_v38 = vpop.f32.mrf.mxu1  ;;  %5654 = vmatmul.mubr.bf16.gmra.mxu1 %v9965_v28 }
 0x436   : > { %v5879_v36 = vmax.f32 %v5459_v32, 0.0  ;;  %v4407_v37 = vadd.f32 %v10915_v56, %v4406_v34  ;;  %4604 = vmatprep.mubr.bf16.mxu0 %v9970_v6  ;;  %5661 = vmatprep.mubr.bf16.mxu1 %v9973_v31 }
 0x437   : > { %v4408_v39 = vpop.f32.mrf.mxu0  ;;  %v5465_v41 = vpop.f32.mrf.mxu1 }
 0x438   : > { %v8891_v40 = vpack.c.bf16 %v5879_v36, %v5878_v35  ;;  %v5464_v44 = vadd.f32 %v5463_v38, %v4407_v37 }
 0x439   : > { %v4409_v42 = vpop.f32.mrf.mxu0  ;;  %v5466_v46 = vpop.f32.mrf.mxu1 }
 0x43a   : > { %9127 = vst [vmem:[%s10305_s21 + $0x320] sm:$0xff] %v8891_v40   ;;  %v4410_v45 = vadd.f32 %v10915_v56, %v4409_v42  ;;  %v5880_v54 = vmax.f32 %v5464_v44, 0.0 }
 0x43b   : > { %v4411_v49 = vpop.f32.mrf.mxu0  ;;  %v5468_v52 = vpop.f32.mrf.mxu1 }
 0x43c   : > { %v5467_v51 = vadd.f32 %v5466_v46, %v4410_v45 }
 0x43d   : > { %v4414_v53 = vpop.f32.mrf.mxu0  ;;  %4605 = vmatmul.mubr.bf16.gmra.mxu0 %v9968_v43  ;;  %v5471_v57 = vpop.f32.mrf.mxu1  ;;  %5662 = vmatmul.mubr.bf16.gmra.mxu1 %v9971_v47 }
 0x43e   : > { %v5881_v55 = vmax.f32 %v5467_v51, 0.0  ;;  %v4415_v27 = vadd.f32 %v10915_v56, %v4414_v53  ;;  %4612 = vmatprep.mubr.bf16.mxu0 %v9976_v48  ;;  %5669 = vmatprep.mubr.bf16.mxu1 %v9979_v50 }
 0x43f   : > { %v4416_v29 = vpop.f32.mrf.mxu0  ;;  %v5473_v60 = vpop.f32.mrf.mxu1 }
 0x440   : > { %v8896_v59 = vpack.c.bf16 %v5881_v55, %v5880_v54  ;;  %v5472_v63 = vadd.f32 %v5471_v57, %v4415_v27 }
 0x441   : > { %v4417_v61 = vpop.f32.mrf.mxu0  ;;  %v5474_v1 = vpop.f32.mrf.mxu1 }
 0x442   : > { %9128 = vst [vmem:[%s10305_s21 + $0x328] sm:$0xff] %v8896_v59   ;;  %v4418_v0 = vadd.f32 %v10915_v56, %v4417_v61  ;;  %v5882_v8 = vmax.f32 %v5472_v63, 0.0 }
 0x443   : > { %v4419_v3 = vpop.f32.mrf.mxu0  ;;  %v5476_v5 = vpop.f32.mrf.mxu1 }
 0x444   : > { %v5475_v4 = vadd.f32 %v5474_v1, %v4418_v0 }
 0x445   : > { %v4422_v7 = vpop.f32.mrf.mxu0  ;;  %4613 = vmatmul.mubr.bf16.gmra.mxu0 %v9974_v62  ;;  %v5479_v11 = vpop.f32.mrf.mxu1  ;;  %5670 = vmatmul.mubr.bf16.gmra.mxu1 %v9977_v2 }
 0x446   : > { %v5883_v9 = vmax.f32 %v5475_v4, 0.0  ;;  %v4423_v10 = vadd.f32 %v10915_v56, %v4422_v7 }
 0x447   : > { %v4424_v12 = vpop.f32.mrf.mxu0  ;;  %v5481_v14 = vpop.f32.mrf.mxu1 }
 0x448   : > { %v8901_v13 = vpack.c.bf16 %v5883_v9, %v5882_v8  ;;  %v5480_v16 = vadd.f32 %v5479_v11, %v4423_v10 }
 0x449   : > { %v4425_v15 = vpop.f32.mrf.mxu0  ;;  %v5482_v18 = vpop.f32.mrf.mxu1 }
 0x44a   : > { %9129 = vst [vmem:[%s10305_s21 + $0x330] sm:$0xff] %v8901_v13   ;;  %v4426_v17 = vadd.f32 %v10915_v56, %v4425_v15  ;;  %v5884_v23 = vmax.f32 %v5480_v16, 0.0 }
 0x44b   : > { %v4427_v19 = vpop.f32.mrf.mxu0  ;;  %v5484_v21 = vpop.f32.mrf.mxu1 }
 0x44c   : > { %v5483_v20 = vadd.f32 %v5482_v18, %v4426_v17 }
 0x44d   : > { %v4430_v22 = vpop.f32.mrf.mxu0  ;;  %v5487_v26 = vpop.f32.mrf.mxu1 }
 0x44e   : > { %v5885_v24 = vmax.f32 %v5483_v20, 0.0  ;;  %v4431_v25 = vadd.f32 %v10915_v56, %v4430_v22 }
 0x44f   : > { %v4432_v58 = vpop.f32.mrf.mxu0  ;;  %v5489_v6 = vpop.f32.mrf.mxu1 }
 0x450   : > { %v8906_v28 = vpack.c.bf16 %v5885_v24, %v5884_v23  ;;  %v5488_v31 = vadd.f32 %v5487_v26, %v4431_v25 }
 0x451   : > { %v4433_v30 = vpop.f32.mrf.mxu0  ;;  %v5490_v33 = vpop.f32.mrf.mxu1 }
 0x452   : > { %9130 = vst [vmem:[%s10305_s21 + $0x338] sm:$0xff] %v8906_v28   ;;  %v4434_v32 = vadd.f32 %v10915_v56, %v4433_v30  ;;  %v5886_v38 = vmax.f32 %v5488_v31, 0.0 }
 0x453   : > { %v4435_v34 = vpop.f32.mrf.mxu0  ;;  %v5492_v36 = vpop.f32.mrf.mxu1 }
 0x454   : > { %v5491_v35 = vadd.f32 %v5490_v33, %v4434_v32 }
 0x455   : > { %v4438_v37 = vpop.f32.mrf.mxu0  ;;  %v5495_v41 = vpop.f32.mrf.mxu1 }
 0x456   : > { %v5887_v39 = vmax.f32 %v5491_v35, 0.0  ;;  %v4439_v40 = vadd.f32 %v10915_v56, %v4438_v37  ;;  %v11059_v37 = vld [vmem:[%s11130_s2] ss:$0 sm:$0xff] }
 0x457   : > { %v4440_v42 = vpop.f32.mrf.mxu0  ;;  %v5497_v44 = vpop.f32.mrf.mxu1 }
 0x458   : > { %v8911_v43 = vpack.c.bf16 %v5887_v39, %v5886_v38  ;;  %v5496_v46 = vadd.f32 %v5495_v41, %v4439_v40 }
 0x459   : > { %v4441_v45 = vpop.f32.mrf.mxu0  ;;  %v5498_v48 = vpop.f32.mrf.mxu1 }
 0x45a   : > { %9131 = vst [vmem:[%s10305_s21 + $0x340] sm:$0xff] %v8911_v43   ;;  %v4442_v47 = vadd.f32 %v10915_v56, %v4441_v45  ;;  %v5888_v53 = vmax.f32 %v5496_v46, 0.0 }
 0x45b   : > { %v4443_v49 = vpop.f32.mrf.mxu0  ;;  %v5500_v51 = vpop.f32.mrf.mxu1 }
 0x45c   : > { %v5499_v50 = vadd.f32 %v5498_v48, %v4442_v47 }
 0x45d   : > { %v4446_v52 = vpop.f32.mrf.mxu0  ;;  %v5503_v27 = vpop.f32.mrf.mxu1 }
 0x45e   : > { %v5889_v54 = vmax.f32 %v5499_v50, 0.0  ;;  %v4447_v55 = vadd.f32 %v10915_v56, %v4446_v52 }
 0x45f   : > { %v4448_v57 = vpop.f32.mrf.mxu0  ;;  %v5505_v59 = vpop.f32.mrf.mxu1 }
 0x460   : > { %v8916_v29 = vpack.c.bf16 %v5889_v54, %v5888_v53  ;;  %v5504_v61 = vadd.f32 %v5503_v27, %v4447_v55 }
 0x461   : > { %v4449_v60 = vpop.f32.mrf.mxu0  ;;  %v5506_v63 = vpop.f32.mrf.mxu1 }
 0x462   : > { %9132 = vst [vmem:[%s10305_s21 + $0x348] sm:$0xff] %v8916_v29   ;;  %v4450_v62 = vadd.f32 %v10915_v56, %v4449_v60  ;;  %v5890_v4 = vmax.f32 %v5504_v61, 0.0 }
 0x463   : > { %v4451_v0 = vpop.f32.mrf.mxu0  ;;  %v5508_v2 = vpop.f32.mrf.mxu1 }
 0x464   : > { %v5507_v1 = vadd.f32 %v5506_v63, %v4450_v62 }
 0x465   : > { %v4454_v3 = vpop.f32.mrf.mxu0  ;;  %v5511_v8 = vpop.f32.mrf.mxu1 }
 0x466   : > { %v5891_v5 = vmax.f32 %v5507_v1, 0.0  ;;  %v4455_v7 = vadd.f32 %v10915_v56, %v4454_v3 }
 0x467   : > { %v4456_v9 = vpop.f32.mrf.mxu0  ;;  %v5513_v11 = vpop.f32.mrf.mxu1 }
 0x468   : > { %v8921_v10 = vpack.c.bf16 %v5891_v5, %v5890_v4  ;;  %v5512_v13 = vadd.f32 %v5511_v8, %v4455_v7 }
 0x469   : > { %v4457_v12 = vpop.f32.mrf.mxu0  ;;  %v5514_v15 = vpop.f32.mrf.mxu1 }
 0x46a   : > { %9133 = vst [vmem:[%s10305_s21 + $0x350] sm:$0xff] %v8921_v10   ;;  %v4458_v14 = vadd.f32 %v10915_v56, %v4457_v12  ;;  %v5892_v20 = vmax.f32 %v5512_v13, 0.0 }
 0x46b   : > { %v4459_v16 = vpop.f32.mrf.mxu0  ;;  %v5516_v18 = vpop.f32.mrf.mxu1 }
 0x46c   : > { %v5515_v17 = vadd.f32 %v5514_v15, %v4458_v14 }
 0x46d   : > { %v4462_v19 = vpop.f32.mrf.mxu0  ;;  %v5519_v23 = vpop.f32.mrf.mxu1 }
 0x46e   : > { %v5893_v21 = vmax.f32 %v5515_v17, 0.0  ;;  %v4463_v22 = vadd.f32 %v10915_v56, %v4462_v19 }
 0x46f   : > { %v4464_v24 = vpop.f32.mrf.mxu0  ;;  %v5521_v26 = vpop.f32.mrf.mxu1 }
 0x470   : > { %v8926_v25 = vpack.c.bf16 %v5893_v21, %v5892_v20  ;;  %v5520_v28 = vadd.f32 %v5519_v23, %v4463_v22 }
 0x471   : > { %v4465_v58 = vpop.f32.mrf.mxu0  ;;  %v5522_v30 = vpop.f32.mrf.mxu1 }
 0x472   : > { %9134 = vst [vmem:[%s10305_s21 + $0x358] sm:$0xff] %v8926_v25   ;;  %v4466_v6 = vadd.f32 %v10915_v56, %v4465_v58  ;;  %v5894_v35 = vmax.f32 %v5520_v28, 0.0 }
 0x473   : > { %v4467_v31 = vpop.f32.mrf.mxu0  ;;  %v5524_v33 = vpop.f32.mrf.mxu1 }
 0x474   : > { %v5523_v32 = vadd.f32 %v5522_v30, %v4466_v6 }
 0x475   : > { %v4470_v34 = vpop.f32.mrf.mxu0  ;;  %v5527_v39 = vpop.f32.mrf.mxu1 }
 0x476   : > { %v5895_v36 = vmax.f32 %v5523_v32, 0.0  ;;  %v4471_v38 = vadd.f32 %v11059_v37, %v4470_v34 }
 0x477   : > { %v4472_v40 = vpop.f32.mrf.mxu0  ;;  %v5529_v42 = vpop.f32.mrf.mxu1 }
 0x478   : > { %v8931_v41 = vpack.c.bf16 %v5895_v36, %v5894_v35  ;;  %v5528_v56 = vadd.f32 %v5527_v39, %v4471_v38 }
 0x479   : > { %v4473_v43 = vpop.f32.mrf.mxu0  ;;  %v5530_v45 = vpop.f32.mrf.mxu1 }
 0x47a   : > { %9135 = vst [vmem:[%s10305_s21 + $0x360] sm:$0xff] %v8931_v41   ;;  %v4474_v44 = vadd.f32 %v11059_v37, %v4473_v43  ;;  %v5896_v50 = vmax.f32 %v5528_v56, 0.0 }
 0x47b   : > { %v4475_v46 = vpop.f32.mrf.mxu0  ;;  %v5532_v48 = vpop.f32.mrf.mxu1 }
 0x47c   : > { %v5531_v47 = vadd.f32 %v5530_v45, %v4474_v44 }
 0x47d   : > { %v4478_v49 = vpop.f32.mrf.mxu0  ;;  %v5535_v53 = vpop.f32.mrf.mxu1 }
 0x47e   : > { %v5897_v51 = vmax.f32 %v5531_v47, 0.0  ;;  %v4479_v52 = vadd.f32 %v11059_v37, %v4478_v49 }
 0x47f   : > { %v4480_v54 = vpop.f32.mrf.mxu0  ;;  %v5537_v27 = vpop.f32.mrf.mxu1 }
 0x480   : > { %v8936_v55 = vpack.c.bf16 %v5897_v51, %v5896_v50  ;;  %v5536_v29 = vadd.f32 %v5535_v53, %v4479_v52 }
 0x481   : > { %v4481_v57 = vpop.f32.mrf.mxu0  ;;  %v5538_v60 = vpop.f32.mrf.mxu1 }
 0x482   : > { %9136 = vst [vmem:[%s10305_s21 + $0x368] sm:$0xff] %v8936_v55   ;;  %v4482_v59 = vadd.f32 %v11059_v37, %v4481_v57  ;;  %v5898_v1 = vmax.f32 %v5536_v29, 0.0 }
 0x483   : > { %v4483_v61 = vpop.f32.mrf.mxu0  ;;  %v5540_v63 = vpop.f32.mrf.mxu1 }
 0x484   : > { %v5539_v62 = vadd.f32 %v5538_v60, %v4482_v59 }
 0x485   : > { %v4486_v0 = vpop.f32.mrf.mxu0  ;;  %v5543_v4 = vpop.f32.mrf.mxu1 }
 0x486   : > { %v5899_v2 = vmax.f32 %v5539_v62, 0.0  ;;  %v4487_v3 = vadd.f32 %v11059_v37, %v4486_v0 }
 0x487   : > { %v4488_v5 = vpop.f32.mrf.mxu0  ;;  %v5545_v8 = vpop.f32.mrf.mxu1 }
 0x488   : > { %v8941_v7 = vpack.c.bf16 %v5899_v2, %v5898_v1  ;;  %v5544_v10 = vadd.f32 %v5543_v4, %v4487_v3 }
 0x489   : > { %v4489_v9 = vpop.f32.mrf.mxu0  ;;  %v5546_v12 = vpop.f32.mrf.mxu1 }
 0x48a   : > { %9137 = vst [vmem:[%s10305_s21 + $0x370] sm:$0xff] %v8941_v7   ;;  %v4490_v11 = vadd.f32 %v11059_v37, %v4489_v9  ;;  %v5900_v17 = vmax.f32 %v5544_v10, 0.0 }
 0x48b   : > { %v4491_v13 = vpop.f32.mrf.mxu0  ;;  %v5548_v15 = vpop.f32.mrf.mxu1 }
 0x48c   : > { %v5547_v14 = vadd.f32 %v5546_v12, %v4490_v11 }
 0x48d   : > { %v4494_v16 = vpop.f32.mrf.mxu0  ;;  %v5551_v20 = vpop.f32.mrf.mxu1 }
 0x48e   : > { %v5901_v18 = vmax.f32 %v5547_v14, 0.0  ;;  %v4495_v19 = vadd.f32 %v11059_v37, %v4494_v16 }
 0x48f   : > { %v4496_v21 = vpop.f32.mrf.mxu0  ;;  %v5553_v23 = vpop.f32.mrf.mxu1 }
 0x490   : > { %v8946_v22 = vpack.c.bf16 %v5901_v18, %v5900_v17  ;;  %v5552_v25 = vadd.f32 %v5551_v20, %v4495_v19 }
 0x491   : > { %v4497_v24 = vpop.f32.mrf.mxu0  ;;  %v5554_v58 = vpop.f32.mrf.mxu1 }
 0x492   : > { %9138 = vst [vmem:[%s10305_s21 + $0x378] sm:$0xff] %v8946_v22   ;;  %v4498_v26 = vadd.f32 %v11059_v37, %v4497_v24  ;;  %v5902_v32 = vmax.f32 %v5552_v25, 0.0 }
 0x493   : > { %v4499_v28 = vpop.f32.mrf.mxu0  ;;  %v5556_v30 = vpop.f32.mrf.mxu1 }
 0x494   : > { %v5555_v6 = vadd.f32 %v5554_v58, %v4498_v26 }
 0x495   : > { %v4502_v31 = vpop.f32.mrf.mxu0  ;;  %v5559_v35 = vpop.f32.mrf.mxu1 }
 0x496   : > { %v5903_v33 = vmax.f32 %v5555_v6, 0.0  ;;  %v4503_v34 = vadd.f32 %v11059_v37, %v4502_v31 }
 0x497   : > { %v4504_v36 = vpop.f32.mrf.mxu0  ;;  %v5561_v39 = vpop.f32.mrf.mxu1 }
 0x498   : > { %v8951_v38 = vpack.c.bf16 %v5903_v33, %v5902_v32  ;;  %v5560_v41 = vadd.f32 %v5559_v35, %v4503_v34 }
 0x499   : > { %v4505_v40 = vpop.f32.mrf.mxu0  ;;  %v5562_v43 = vpop.f32.mrf.mxu1 }
 0x49a   : > { %9139 = vst [vmem:[%s10305_s21 + $0x380] sm:$0xff] %v8951_v38   ;;  %v4506_v42 = vadd.f32 %v11059_v37, %v4505_v40  ;;  %v5904_v47 = vmax.f32 %v5560_v41, 0.0 }
 0x49b   : > { %v4507_v56 = vpop.f32.mrf.mxu0  ;;  %v5564_v45 = vpop.f32.mrf.mxu1 }
 0x49c   : > { %v5563_v44 = vadd.f32 %v5562_v43, %v4506_v42 }
 0x49d   : > { %v4510_v46 = vpop.f32.mrf.mxu0  ;;  %v5567_v50 = vpop.f32.mrf.mxu1 }
 0x49e   : > { %v5905_v48 = vmax.f32 %v5563_v44, 0.0  ;;  %v4511_v49 = vadd.f32 %v11059_v37, %v4510_v46 }
 0x49f   : > { %v4512_v51 = vpop.f32.mrf.mxu0  ;;  %v5569_v53 = vpop.f32.mrf.mxu1 }
 0x4a0   : > { %v8956_v52 = vpack.c.bf16 %v5905_v48, %v5904_v47  ;;  %v5568_v55 = vadd.f32 %v5567_v50, %v4511_v49 }
 0x4a1   : > { %v4513_v54 = vpop.f32.mrf.mxu0  ;;  %v5570_v57 = vpop.f32.mrf.mxu1 }
 0x4a2   : > { %9140 = vst [vmem:[%s10305_s21 + $0x388] sm:$0xff] %v8956_v52   ;;  %v4514_v27 = vadd.f32 %v11059_v37, %v4513_v54  ;;  %v5906_v62 = vmax.f32 %v5568_v55, 0.0 }
 0x4a3   : > { %v4515_v29 = vpop.f32.mrf.mxu0  ;;  %v5572_v60 = vpop.f32.mrf.mxu1 }
 0x4a4   : > { %v5571_v59 = vadd.f32 %v5570_v57, %v4514_v27 }
 0x4a5   : > { %v4518_v61 = vpop.f32.mrf.mxu0  ;;  %v5575_v1 = vpop.f32.mrf.mxu1 }
 0x4a6   : > { %v5907_v63 = vmax.f32 %v5571_v59, 0.0  ;;  %v4519_v0 = vadd.f32 %v11059_v37, %v4518_v61 }
 0x4a7   : > { %v4520_v2 = vpop.f32.mrf.mxu0  ;;  %v5577_v4 = vpop.f32.mrf.mxu1 }
 0x4a8   : > { %v8961_v3 = vpack.c.bf16 %v5907_v63, %v5906_v62  ;;  %v5576_v7 = vadd.f32 %v5575_v1, %v4519_v0 }
 0x4a9   : > { %v4521_v5 = vpop.f32.mrf.mxu0  ;;  %v5578_v9 = vpop.f32.mrf.mxu1 }
 0x4aa   : > { %9141 = vst [vmem:[%s10305_s21 + $0x390] sm:$0xff] %v8961_v3   ;;  %v4522_v8 = vadd.f32 %v11059_v37, %v4521_v5  ;;  %v5908_v14 = vmax.f32 %v5576_v7, 0.0 }
 0x4ab   : > { %v4523_v10 = vpop.f32.mrf.mxu0  ;;  %v5580_v12 = vpop.f32.mrf.mxu1 }
 0x4ac   : > { %v5579_v11 = vadd.f32 %v5578_v9, %v4522_v8 }
 0x4ad   : > { %v4526_v13 = vpop.f32.mrf.mxu0  ;;  %v5583_v17 = vpop.f32.mrf.mxu1 }
 0x4ae   : > { %v5909_v15 = vmax.f32 %v5579_v11, 0.0  ;;  %v4527_v16 = vadd.f32 %v11059_v37, %v4526_v13 }
 0x4af   : > { %v4528_v18 = vpop.f32.mrf.mxu0  ;;  %v5585_v20 = vpop.f32.mrf.mxu1 }
 0x4b0   : > { %v8966_v19 = vpack.c.bf16 %v5909_v15, %v5908_v14  ;;  %v5584_v22 = vadd.f32 %v5583_v17, %v4527_v16 }
 0x4b1   : > { %v4529_v21 = vpop.f32.mrf.mxu0  ;;  %v5586_v24 = vpop.f32.mrf.mxu1 }
 0x4b2   : > { %9142 = vst [vmem:[%s10305_s21 + $0x398] sm:$0xff] %v8966_v19   ;;  %v4530_v23 = vadd.f32 %v11059_v37, %v4529_v21  ;;  %v5910_v6 = vmax.f32 %v5584_v22, 0.0 }
 0x4b3   : > { %v4531_v25 = vpop.f32.mrf.mxu0  ;;  %v5588_v58 = vpop.f32.mrf.mxu1 }
 0x4b4   : > { %v5587_v26 = vadd.f32 %v5586_v24, %v4530_v23 }
 0x4b5   : > { %v4534_v28 = vpop.f32.mrf.mxu0  ;;  %v5591_v32 = vpop.f32.mrf.mxu1 }
 0x4b6   : > { %v5911_v30 = vmax.f32 %v5587_v26, 0.0  ;;  %v4535_v31 = vadd.f32 %v11059_v37, %v4534_v28 }
 0x4b7   : > { %v4536_v33 = vpop.f32.mrf.mxu0  ;;  %v5593_v35 = vpop.f32.mrf.mxu1 }
 0x4b8   : > { %v8971_v34 = vpack.c.bf16 %v5911_v30, %v5910_v6  ;;  %v5592_v38 = vadd.f32 %v5591_v32, %v4535_v31 }
 0x4b9   : > { %v4537_v36 = vpop.f32.mrf.mxu0  ;;  %v5594_v40 = vpop.f32.mrf.mxu1 }
 0x4ba   : > { %9143 = vst [vmem:[%s10305_s21 + $0x3a0] sm:$0xff] %v8971_v34   ;;  %v4538_v39 = vadd.f32 %v11059_v37, %v4537_v36  ;;  %v5912_v44 = vmax.f32 %v5592_v38, 0.0 }
 0x4bb   : > { %v4539_v41 = vpop.f32.mrf.mxu0  ;;  %v5596_v43 = vpop.f32.mrf.mxu1 }
 0x4bc   : > { %v5595_v42 = vadd.f32 %v5594_v40, %v4538_v39 }
 0x4bd   : > { %v4542_v56 = vpop.f32.mrf.mxu0  ;;  %v5599_v47 = vpop.f32.mrf.mxu1 }
 0x4be   : > { %v5913_v45 = vmax.f32 %v5595_v42, 0.0  ;;  %v4543_v46 = vadd.f32 %v11059_v37, %v4542_v56 }
 0x4bf   : > { %v4544_v48 = vpop.f32.mrf.mxu0  ;;  %v5601_v50 = vpop.f32.mrf.mxu1 }
 0x4c0   : > { %v8976_v49 = vpack.c.bf16 %v5913_v45, %v5912_v44  ;;  %v5600_v52 = vadd.f32 %v5599_v47, %v4543_v46 }
 0x4c1   : > { %v4545_v51 = vpop.f32.mrf.mxu0  ;;  %v5602_v54 = vpop.f32.mrf.mxu1 }
 0x4c2   : > { %9144 = vst [vmem:[%s10305_s21 + $0x3a8] sm:$0xff] %v8976_v49   ;;  %v4546_v53 = vadd.f32 %v11059_v37, %v4545_v51  ;;  %v5914_v59 = vmax.f32 %v5600_v52, 0.0 }
 0x4c3   : > { %v4547_v55 = vpop.f32.mrf.mxu0  ;;  %v5604_v57 = vpop.f32.mrf.mxu1 }
 0x4c4   : > { %v5603_v27 = vadd.f32 %v5602_v54, %v4546_v53 }
 0x4c5   : > { %v4550_v29 = vpop.f32.mrf.mxu0  ;;  %v5607_v62 = vpop.f32.mrf.mxu1 }
 0x4c6   : > { %v5915_v60 = vmax.f32 %v5603_v27, 0.0  ;;  %v4551_v61 = vadd.f32 %v11059_v37, %v4550_v29 }
 0x4c7   : > { %v4552_v63 = vpop.f32.mrf.mxu0  ;;  %v5609_v1 = vpop.f32.mrf.mxu1 }
 0x4c8   : > { %v8981_v0 = vpack.c.bf16 %v5915_v60, %v5914_v59  ;;  %v5608_v3 = vadd.f32 %v5607_v62, %v4551_v61 }
 0x4c9   : > { %v4553_v2 = vpop.f32.mrf.mxu0  ;;  %v5610_v5 = vpop.f32.mrf.mxu1 }
 0x4ca   : > { %9145 = vst [vmem:[%s10305_s21 + $0x3b0] sm:$0xff] %v8981_v0   ;;  %v4554_v4 = vadd.f32 %v11059_v37, %v4553_v2  ;;  %v5916_v11 = vmax.f32 %v5608_v3, 0.0 }
 0x4cb   : > { %v4555_v7 = vpop.f32.mrf.mxu0  ;;  %v5612_v9 = vpop.f32.mrf.mxu1 }
 0x4cc   : > { %v5611_v8 = vadd.f32 %v5610_v5, %v4554_v4 }
 0x4cd   : > { %v4558_v10 = vpop.f32.mrf.mxu0  ;;  %v5615_v14 = vpop.f32.mrf.mxu1 }
 0x4ce   : > { %v5917_v12 = vmax.f32 %v5611_v8, 0.0  ;;  %v4559_v13 = vadd.f32 %v11059_v37, %v4558_v10 }
 0x4cf   : > { %v4560_v15 = vpop.f32.mrf.mxu0  ;;  %v5617_v17 = vpop.f32.mrf.mxu1 }
 0x4d0   : > { %v8986_v16 = vpack.c.bf16 %v5917_v12, %v5916_v11  ;;  %v5616_v19 = vadd.f32 %v5615_v14, %v4559_v13 }
 0x4d1   : > { %v4561_v18 = vpop.f32.mrf.mxu0  ;;  %v5618_v21 = vpop.f32.mrf.mxu1 }
 0x4d2   : > { %9146 = vst [vmem:[%s10305_s21 + $0x3b8] sm:$0xff] %v8986_v16   ;;  %v4562_v20 = vadd.f32 %v11059_v37, %v4561_v18  ;;  %v5918_v26 = vmax.f32 %v5616_v19, 0.0 }
 0x4d3   : > { %v4563_v22 = vpop.f32.mrf.mxu0  ;;  %v5620_v24 = vpop.f32.mrf.mxu1 }
 0x4d4   : > { %v5619_v23 = vadd.f32 %v5618_v21, %v4562_v20 }
 0x4d5   : > { %v4566_v25 = vpop.f32.mrf.mxu0  ;;  %v5623_v6 = vpop.f32.mrf.mxu1 }
 0x4d6   : > { %v5919_v58 = vmax.f32 %v5619_v23, 0.0  ;;  %v4567_v28 = vadd.f32 %v11059_v37, %v4566_v25 }
 0x4d7   : > { %v4568_v30 = vpop.f32.mrf.mxu0  ;;  %v5625_v32 = vpop.f32.mrf.mxu1 }
 0x4d8   : > { %v8991_v31 = vpack.c.bf16 %v5919_v58, %v5918_v26  ;;  %v5624_v34 = vadd.f32 %v5623_v6, %v4567_v28 }
 0x4d9   : > { %v4569_v33 = vpop.f32.mrf.mxu0  ;;  %v5626_v36 = vpop.f32.mrf.mxu1 }
 0x4da   : > { %9147 = vst [vmem:[%s10305_s21 + $0x3c0] sm:$0xff] %v8991_v31   ;;  %v4570_v35 = vadd.f32 %v11059_v37, %v4569_v33  ;;  %v5920_v42 = vmax.f32 %v5624_v34, 0.0 }
 0x4db   : > { %v4571_v38 = vpop.f32.mrf.mxu0  ;;  %v5628_v40 = vpop.f32.mrf.mxu1 }
 0x4dc   : > { %v5627_v39 = vadd.f32 %v5626_v36, %v4570_v35 }
 0x4dd   : > { %v4574_v41 = vpop.f32.mrf.mxu0  ;;  %v5631_v44 = vpop.f32.mrf.mxu1 }
 0x4de   : > { %v5921_v43 = vmax.f32 %v5627_v39, 0.0  ;;  %v4575_v56 = vadd.f32 %v11059_v37, %v4574_v41 }
 0x4df   : > { %v4576_v45 = vpop.f32.mrf.mxu0  ;;  %v5633_v47 = vpop.f32.mrf.mxu1 }
 0x4e0   : > { %v8996_v46 = vpack.c.bf16 %v5921_v43, %v5920_v42  ;;  %v5632_v49 = vadd.f32 %v5631_v44, %v4575_v56 }
 0x4e1   : > { %v4577_v48 = vpop.f32.mrf.mxu0  ;;  %v5634_v51 = vpop.f32.mrf.mxu1 }
 0x4e2   : > { %9148 = vst [vmem:[%s10305_s21 + $0x3c8] sm:$0xff] %v8996_v46   ;;  %v4578_v50 = vadd.f32 %v11059_v37, %v4577_v48  ;;  %v5922_v27 = vmax.f32 %v5632_v49, 0.0 }
 0x4e3   : > { %v4579_v52 = vpop.f32.mrf.mxu0  ;;  %v5636_v54 = vpop.f32.mrf.mxu1 }
 0x4e4   : > { %v5635_v53 = vadd.f32 %v5634_v51, %v4578_v50 }
 0x4e5   : > { %v4582_v55 = vpop.f32.mrf.mxu0  ;;  %v5639_v59 = vpop.f32.mrf.mxu1 }
 0x4e6   : > { %v5923_v57 = vmax.f32 %v5635_v53, 0.0  ;;  %v4583_v29 = vadd.f32 %v11059_v37, %v4582_v55 }
 0x4e7   : > { %v4584_v60 = vpop.f32.mrf.mxu0  ;;  %v5641_v62 = vpop.f32.mrf.mxu1 }
 0x4e8   : > { %v9001_v61 = vpack.c.bf16 %v5923_v57, %v5922_v27  ;;  %v5640_v0 = vadd.f32 %v5639_v59, %v4583_v29 }
 0x4e9   : > { %v4585_v63 = vpop.f32.mrf.mxu0  ;;  %v5642_v2 = vpop.f32.mrf.mxu1 }
 0x4ea   : > { %9149 = vst [vmem:[%s10305_s21 + $0x3d0] sm:$0xff] %v9001_v61   ;;  %v4586_v1 = vadd.f32 %v11059_v37, %v4585_v63  ;;  %v5924_v8 = vmax.f32 %v5640_v0, 0.0 }
 0x4eb   : > { %v4587_v3 = vpop.f32.mrf.mxu0  ;;  %v5644_v5 = vpop.f32.mrf.mxu1 }
 0x4ec   : > { %v5643_v4 = vadd.f32 %v5642_v2, %v4586_v1 }
 0x4ed   : > { %v4590_v7 = vpop.f32.mrf.mxu0  ;;  %v5647_v11 = vpop.f32.mrf.mxu1 }
 0x4ee   : > { %v5925_v9 = vmax.f32 %v5643_v4, 0.0  ;;  %v4591_v10 = vadd.f32 %v11059_v37, %v4590_v7 }
 0x4ef   : > { %v4592_v12 = vpop.f32.mrf.mxu0  ;;  %v5649_v14 = vpop.f32.mrf.mxu1 }
 0x4f0   : > { %v9006_v13 = vpack.c.bf16 %v5925_v9, %v5924_v8  ;;  %v5648_v16 = vadd.f32 %v5647_v11, %v4591_v10 }
 0x4f1   : > { %v4593_v15 = vpop.f32.mrf.mxu0  ;;  %v5650_v18 = vpop.f32.mrf.mxu1 }
 0x4f2   : > { %9150 = vst [vmem:[%s10305_s21 + $0x3d8] sm:$0xff] %v9006_v13   ;;  %v4594_v17 = vadd.f32 %v11059_v37, %v4593_v15  ;;  %v5926_v23 = vmax.f32 %v5648_v16, 0.0 }
 0x4f3   : > { %v4595_v19 = vpop.f32.mrf.mxu0  ;;  %v5652_v21 = vpop.f32.mrf.mxu1 }
 0x4f4   : > { %v5651_v20 = vadd.f32 %v5650_v18, %v4594_v17 }
 0x4f5   : > { %v4598_v22 = vpop.f32.mrf.mxu0  ;;  %v5655_v26 = vpop.f32.mrf.mxu1 }
 0x4f6   : > { %v5927_v24 = vmax.f32 %v5651_v20, 0.0  ;;  %v4599_v25 = vadd.f32 %v11059_v37, %v4598_v22 }
 0x4f7   : > { %v4600_v58 = vpop.f32.mrf.mxu0  ;;  %v5657_v6 = vpop.f32.mrf.mxu1 }
 0x4f8   : > { %v9011_v28 = vpack.c.bf16 %v5927_v24, %v5926_v23  ;;  %v5656_v31 = vadd.f32 %v5655_v26, %v4599_v25 }
 0x4f9   : > { %v4601_v30 = vpop.f32.mrf.mxu0  ;;  %v5658_v33 = vpop.f32.mrf.mxu1 }
 0x4fa   : > { %9151 = vst [vmem:[%s10305_s21 + $0x3e0] sm:$0xff] %v9011_v28   ;;  %v4602_v32 = vadd.f32 %v11059_v37, %v4601_v30  ;;  %v5928_v39 = vmax.f32 %v5656_v31, 0.0 }
 0x4fb   : > { %v4603_v34 = vpop.f32.mrf.mxu0  ;;  %v5660_v36 = vpop.f32.mrf.mxu1 }
 0x4fc   : > { %v5659_v35 = vadd.f32 %v5658_v33, %v4602_v32 }
 0x4fd   : > { %v4606_v38 = vpop.f32.mrf.mxu0  ;;  %v5663_v42 = vpop.f32.mrf.mxu1 }
 0x4fe   : > { %v5929_v40 = vmax.f32 %v5659_v35, 0.0  ;;  %v4607_v41 = vadd.f32 %v11059_v37, %v4606_v38 }
 0x4ff   : > { %v4608_v43 = vpop.f32.mrf.mxu0  ;;  %v5665_v44 = vpop.f32.mrf.mxu1 }
 0x500   : > { %v9016_v56 = vpack.c.bf16 %v5929_v40, %v5928_v39  ;;  %v5664_v46 = vadd.f32 %v5663_v42, %v4607_v41 }
 0x501   : > { %v4609_v45 = vpop.f32.mrf.mxu0  ;;  %v5666_v48 = vpop.f32.mrf.mxu1 }
 0x502   : > { %9152 = vst [vmem:[%s10305_s21 + $0x3e8] sm:$0xff] %v9016_v56   ;;  %v4610_v47 = vadd.f32 %v11059_v37, %v4609_v45  ;;  %v5930_v53 = vmax.f32 %v5664_v46, 0.0 }
 0x503   : > { %v4611_v49 = vpop.f32.mrf.mxu0  ;;  %v5668_v51 = vpop.f32.mrf.mxu1 }
 0x504   : > { %v5667_v50 = vadd.f32 %v5666_v48, %v4610_v47 }
 0x505   : > { %v4614_v52 = vpop.f32.mrf.mxu0  ;;  %v5671_v27 = vpop.f32.mrf.mxu1 }
 0x506   : > { %v5931_v54 = vmax.f32 %v5667_v50, 0.0  ;;  %v4615_v55 = vadd.f32 %v11059_v37, %v4614_v52 }
 0x507   : > { %v4616_v57 = vpop.f32.mrf.mxu0  ;;  %v5673_v59 = vpop.f32.mrf.mxu1 }
 0x508   : > { %v9021_v29 = vpack.c.bf16 %v5931_v54, %v5930_v53  ;;  %v5672_v61 = vadd.f32 %v5671_v27, %v4615_v55 }
 0x509   : > { %v4617_v60 = vpop.f32.mrf.mxu0  ;;  %v5674_v63 = vpop.f32.mrf.mxu1 }
 0x50a   : > { %9153 = vst [vmem:[%s10305_s21 + $0x3f0] sm:$0xff] %v9021_v29   ;;  %v4618_v62 = vadd.f32 %v11059_v37, %v4617_v60  ;;  %v5932_v3 = vmax.f32 %v5672_v61, 0.0 }
 0x50b   : > { %v4619_v0 = vpop.f32.mrf.mxu0  ;;  %v5676_v2 = vpop.f32.mrf.mxu1 }
 0x50c   : > { %v5675_v1 = vadd.f32 %v5674_v63, %v4618_v62 }
 0x50e   : > { %v5933_v4 = vmax.f32 %v5675_v1, 0.0 }
 0x510   : > { %v9026_v5 = vpack.c.bf16 %v5933_v4, %v5932_v3 }
 0x512   : > { %9154 = vst [vmem:[%s10305_s21 + $0x3f8] sm:$0xff] %v9026_v5  }
 0x513 PF: > { %s13_s14 = sadd.s32 1, %s10007_s14   ;;  %s11132_s12 = smov %s10003_s13 }
 0x514   : > { %p10_p5 = scmp.ge.s32.totalorder %s13_s14, 4   ;;  %s11133_s13 = smov %s11135_s15 }
 0x516   :  { %12 = sbr.rel (!%p10_p5) target bundleno = 2 (0x2), region = 68 }

// kernel: forward.9
= control target key start
LH: loop header
LB: loop body
LE: loop exit
PB: predicated region body
PF: predicated region fallthrough
CT: control target
= control target key end

     0   :  { %s5818_s12 = smov 0   ;;  %s5820_s13 = smov 0   ;;  %s6408_s0 = inlined_call_operand.vmem [shape: bf16[4096,128], index: 0, kind: input, shape index: {}]   ;;  %s6409_s1 = inlined_call_operand.vmem [shape: bf16[128,128], index: 1, kind: input, shape index: {}]   ;;  %s6410_s2 = inlined_call_operand.vmem [shape: f32[1,128], index: 2, kind: input, shape index: {}]   ;;  %s6411_s3 = inlined_call_operand.vmem [shape: bf16[4096,128], index: 3, kind: output, shape index: {}]  }
   0x1   :  { %s5822_s14 = smov 0  }
   0x2 LB: > { %s25_s15 = sadd.s32 1, %s5792_s13  ;;  %p3766_p0 = scmp.ge.s32.totalorder %s5796_s14, 1  ;;  %s5796_s14 = sphi %s5822_s14, %s13_s14   ;;  %s5792_s13 = sphi %s5820_s13, %s6413_s13   ;;  %s5788_s12 = sphi %s5818_s12, %s6412_s12  }
   0x3   : > { %p27_p1 = scmp.ge.s32.totalorder %s25_s15, 2  ;;  %p169_p2 = scmp.lt.s32.totalorder %s5796_s14, 3 }
   0x5   : > { %s6415_s15 = smov (%p27_p1, %s25_s15), 0  ;;  %p170_p3 = pnand %p3766_p0, %p169_p2 }
   0x6   : > { %s3767_s18 = sshll.u32 (!%p170_p3), %s5788_s12, 8 }
   0x7   : > { %173 = sbr.rel (%p170_p3) target bundleno = 497 (0x1f1), region = 32  ;;  %p204_p4 = scmp.lt.s32.totalorder (!%p170_p3), %s3767_s18, 511 }
   0xc   : > { %v5637_v0 = vld [vmem:[%s6409_s1 + $0x38] sm:$0xff]   ;;  %v5638_v1 = vld [vmem:[%s6409_s1 + $0x30] sm:$0xff]   ;;  %s6417_s18 = smov (!%p204_p4, %s3767_s18), 511  ;;  %v5639_v2 = vld [vmem:[%s6409_s1 + $0x28] sm:$0xff]  }
   0xd   : > { %5325 = vmatprep.subr.bf16.mxu0 %v5637_v0  ;;  %5597 = vmatprep.subr.bf16.mxu1 %v5637_v0  ;;  %s3768_s23 = sshll.u32 %s6417_s18, 2  ;;  %v5640_v3 = vld [vmem:[%s6409_s1 + $0x20] sm:$0xff]   ;;  %v5641_v6 = vld [vmem:[%s6409_s1 + $0x18] sm:$0xff]   ;;  %v5642_v7 = vld [vmem:[%s6409_s1 + $0x10] sm:$0xff]  }
   0xe   : > { %5326 = vmatpush3.bf16.msra.mxu0 %v5637_v0  ;;  %5605 = vmatpush3.bf16.msra.mxu1 %v5637_v0  ;;  %s5853_s26 = scalar_lea.vmem %s6408_s0, %s3768_s23  ;;  %v5643_v8 = vld [vmem:[%s6409_s1 + $0x8] sm:$0xff]   ;;  %v5644_v9 = vld [vmem:[%s6409_s1] sm:$0xff]   ;;  %s5991_s17 = scalar_lea.vmem %s6411_s3, %s3768_s23 }
   0xf   : > { %5327 = vmatprep.subr.bf16.mxu0 %v5638_v1  ;;  %5598 = vmatprep.subr.bf16.mxu1 %v5638_v1  ;;  %v5645_v4 = vld [vmem:[%s5853_s26] sm:$0xff]   ;;  %v5647_v10 = vld [vmem:[%s5853_s26 + $0x8] sm:$0xff]   ;;  %v5649_v12 = vld [vmem:[%s5853_s26 + $0x10] sm:$0xff]  }
  0x10   : > { %v5646_v5 = vld [vmem:[%s5853_s26 + $0x200] sm:$0xff]   ;;  %5341 = vmatprep.mubr.bf16.mxu0 %v5645_v4  ;;  %v5648_v11 = vld [vmem:[%s5853_s26 + $0x208] sm:$0xff]   ;;  %v5650_v13 = vld [vmem:[%s5853_s26 + $0x210] sm:$0xff]  }
  0x11   : > { %5469 = vmatprep.mubr.bf16.mxu1 %v5646_v5  ;;  %v5651_v14 = vld [vmem:[%s5853_s26 + $0x18] sm:$0xff]   ;;  %v5653_v16 = vld [vmem:[%s5853_s26 + $0x20] sm:$0xff]   ;;  %v5655_v18 = vld [vmem:[%s5853_s26 + $0x28] sm:$0xff]  }
  0x12   : > { %5328 = vmatpush3.bf16.msra.mxu0 %v5638_v1  ;;  %5606 = vmatpush3.bf16.msra.mxu1 %v5638_v1  ;;  %v5652_v15 = vld [vmem:[%s5853_s26 + $0x218] sm:$0xff]   ;;  %v5654_v17 = vld [vmem:[%s5853_s26 + $0x220] sm:$0xff]   ;;  %v5656_v19 = vld [vmem:[%s5853_s26 + $0x228] sm:$0xff]  }
  0x13   : > { %5329 = vmatprep.subr.bf16.mxu0 %v5639_v2  ;;  %5599 = vmatprep.subr.bf16.mxu1 %v5639_v2  ;;  %v5657_v20 = vld [vmem:[%s5853_s26 + $0x30] sm:$0xff]   ;;  %v5659_v22 = vld [vmem:[%s5853_s26 + $0x38] sm:$0xff]   ;;  %v5661_v24 = vld [vmem:[%s5853_s26 + $0x40] sm:$0xff]  }
  0x14   : > { %v5658_v21 = vld [vmem:[%s5853_s26 + $0x230] sm:$0xff]   ;;  %v5660_v23 = vld [vmem:[%s5853_s26 + $0x238] sm:$0xff]   ;;  %v5662_v25 = vld [vmem:[%s5853_s26 + $0x240] sm:$0xff]  }
  0x15   : > { %v5663_v26 = vld [vmem:[%s5853_s26 + $0x48] sm:$0xff]   ;;  %v5665_v28 = vld [vmem:[%s5853_s26 + $0x50] sm:$0xff]   ;;  %v5667_v30 = vld [vmem:[%s5853_s26 + $0x58] sm:$0xff]  }
  0x16   : > { %5330 = vmatpush3.bf16.msra.mxu0 %v5639_v2  ;;  %5607 = vmatpush3.bf16.msra.mxu1 %v5639_v2  ;;  %v5664_v27 = vld [vmem:[%s5853_s26 + $0x248] sm:$0xff]   ;;  %v5666_v29 = vld [vmem:[%s5853_s26 + $0x250] sm:$0xff]   ;;  %v5668_v31 = vld [vmem:[%s5853_s26 + $0x258] sm:$0xff]  }
  0x17   : > { %5331 = vmatprep.subr.bf16.mxu0 %v5640_v3  ;;  %5600 = vmatprep.subr.bf16.mxu1 %v5640_v3  ;;  %v5669_v32 = vld [vmem:[%s5853_s26 + $0x60] sm:$0xff]   ;;  %v5671_v34 = vld [vmem:[%s5853_s26 + $0x68] sm:$0xff]   ;;  %v5673_v36 = vld [vmem:[%s5853_s26 + $0x70] sm:$0xff]  }
  0x18   : > { %v5670_v33 = vld [vmem:[%s5853_s26 + $0x260] sm:$0xff]   ;;  %v5672_v35 = vld [vmem:[%s5853_s26 + $0x268] sm:$0xff]   ;;  %v5674_v37 = vld [vmem:[%s5853_s26 + $0x270] sm:$0xff]  }
  0x19   : > { %v5675_v38 = vld [vmem:[%s5853_s26 + $0x78] sm:$0xff]   ;;  %v5677_v40 = vld [vmem:[%s5853_s26 + $0x80] sm:$0xff]   ;;  %v5679_v42 = vld [vmem:[%s5853_s26 + $0x88] sm:$0xff]  }
  0x1a   : > { %5332 = vmatpush3.bf16.msra.mxu0 %v5640_v3  ;;  %5608 = vmatpush3.bf16.msra.mxu1 %v5640_v3  ;;  %v5676_v39 = vld [vmem:[%s5853_s26 + $0x278] sm:$0xff]   ;;  %v5678_v41 = vld [vmem:[%s5853_s26 + $0x280] sm:$0xff]   ;;  %v5680_v43 = vld [vmem:[%s5853_s26 + $0x288] sm:$0xff]  }
  0x1b   : > { %5333 = vmatprep.subr.bf16.mxu0 %v5641_v6  ;;  %5601 = vmatprep.subr.bf16.mxu1 %v5641_v6  ;;  %v5681_v44 = vld [vmem:[%s5853_s26 + $0x90] sm:$0xff]   ;;  %v5683_v46 = vld [vmem:[%s5853_s26 + $0x98] sm:$0xff]   ;;  %v5685_v48 = vld [vmem:[%s5853_s26 + $0xa0] sm:$0xff]  }
  0x1c   : > { %v5682_v45 = vld [vmem:[%s5853_s26 + $0x290] sm:$0xff]   ;;  %v5684_v47 = vld [vmem:[%s5853_s26 + $0x298] sm:$0xff]   ;;  %v5686_v49 = vld [vmem:[%s5853_s26 + $0x2a0] sm:$0xff]  }
  0x1d   : > { %v5687_v50 = vld [vmem:[%s5853_s26 + $0xa8] sm:$0xff]   ;;  %v5689_v52 = vld [vmem:[%s5853_s26 + $0xb0] sm:$0xff]   ;;  %v5691_v54 = vld [vmem:[%s5853_s26 + $0xb8] sm:$0xff]  }
  0x1e   : > { %5334 = vmatpush3.bf16.msra.mxu0 %v5641_v6  ;;  %5609 = vmatpush3.bf16.msra.mxu1 %v5641_v6  ;;  %v5688_v51 = vld [vmem:[%s5853_s26 + $0x2a8] sm:$0xff]   ;;  %v5690_v53 = vld [vmem:[%s5853_s26 + $0x2b0] sm:$0xff]   ;;  %v5692_v55 = vld [vmem:[%s5853_s26 + $0x2b8] sm:$0xff]  }
  0x1f   : > { %5335 = vmatprep.subr.bf16.mxu0 %v5642_v7  ;;  %5602 = vmatprep.subr.bf16.mxu1 %v5642_v7  ;;  %v5693_v56 = vld [vmem:[%s5853_s26 + $0xc0] sm:$0xff]   ;;  %v5695_v58 = vld [vmem:[%s5853_s26 + $0xc8] sm:$0xff]   ;;  %v5697_v60 = vld [vmem:[%s5853_s26 + $0xd0] sm:$0xff]  }
  0x20   : > { %v5694_v57 = vld [vmem:[%s5853_s26 + $0x2c0] sm:$0xff]   ;;  %v5696_v59 = vld [vmem:[%s5853_s26 + $0x2c8] sm:$0xff]   ;;  %v5698_v61 = vld [vmem:[%s5853_s26 + $0x2d0] sm:$0xff]  }
  0x21   : > { %v5699_v62 = vld [vmem:[%s5853_s26 + $0xd8] sm:$0xff]   ;;  %v5701_v0 = vld [vmem:[%s5853_s26 + $0xe0] sm:$0xff]   ;;  %v5703_v2 = vld [vmem:[%s5853_s26 + $0xe8] sm:$0xff]  }
  0x22   : > { %5336 = vmatpush3.bf16.msra.mxu0 %v5642_v7  ;;  %5610 = vmatpush3.bf16.msra.mxu1 %v5642_v7  ;;  %v5700_v63 = vld [vmem:[%s5853_s26 + $0x2d8] sm:$0xff]   ;;  %v5702_v1 = vld [vmem:[%s5853_s26 + $0x2e0] sm:$0xff]   ;;  %v5704_v3 = vld [vmem:[%s5853_s26 + $0x2e8] sm:$0xff]  }
  0x23   : > { %5337 = vmatprep.subr.bf16.mxu0 %v5643_v8  ;;  %5603 = vmatprep.subr.bf16.mxu1 %v5643_v8  ;;  %v5705_v4 = vld [vmem:[%s5853_s26 + $0xf0] sm:$0xff]   ;;  %v5707_v6 = vld [vmem:[%s5853_s26 + $0xf8] sm:$0xff]  }
  0x24   : > { %v5706_v5 = vld [vmem:[%s5853_s26 + $0x2f0] sm:$0xff]   ;;  %v5708_v7 = vld [vmem:[%s5853_s26 + $0x2f8] sm:$0xff]  }
  0x26   : > { %5338 = vmatpush3.bf16.msra.mxu0 %v5643_v8  ;;  %5611 = vmatpush3.bf16.msra.mxu1 %v5643_v8  ;;  %v5709_v8 = vld [vmem:[%s5853_s26 + $0x100] sm:$0xff]  }
  0x27   : > { %5339 = vmatprep.subr.bf16.mxu0 %v5644_v9  ;;  %5604 = vmatprep.subr.bf16.mxu1 %v5644_v9 }
  0x2a   : > { %5340 = vmatpush3.bf16.msra.mxu0 %v5644_v9  ;;  %5612 = vmatpush3.bf16.msra.mxu1 %v5644_v9  ;;  %v5710_v9 = vld [vmem:[%s5853_s26 + $0x300] sm:$0xff]  }
  0x2d   : > { %5342 = vmatmul.mubr.bf16.vlgmr.msra.gmra.mxu0 %v5647_v10  ;;  %5470 = vmatmul.mubr.bf16.vlgmr.msra.gmra.mxu1 %v5648_v11  ;;  %v5711_v10 = vld [vmem:[%s5853_s26 + $0x108] sm:$0xff]  }
  0x2e   : > { %5345 = vmatprep.mubr.bf16.mxu0 %v5649_v12  ;;  %5473 = vmatprep.mubr.bf16.mxu1 %v5650_v13  ;;  %v5712_v11 = vld [vmem:[%s5853_s26 + $0x308] sm:$0xff]   ;;  %v5713_v12 = vld [vmem:[%s5853_s26 + $0x110] sm:$0xff]  }
  0x2f   : > { %v5714_v13 = vld [vmem:[%s5853_s26 + $0x310] sm:$0xff]  }
  0x35   : > { %5346 = vmatmul.mubr.bf16.gmra.mxu0 %v5651_v14  ;;  %5474 = vmatmul.mubr.bf16.gmra.mxu1 %v5652_v15  ;;  %v5715_v14 = vld [vmem:[%s5853_s26 + $0x118] sm:$0xff]  }
  0x36   : > { %5349 = vmatprep.mubr.bf16.mxu0 %v5653_v16  ;;  %5477 = vmatprep.mubr.bf16.mxu1 %v5654_v17  ;;  %v5716_v15 = vld [vmem:[%s5853_s26 + $0x318] sm:$0xff]   ;;  %v5717_v16 = vld [vmem:[%s5853_s26 + $0x120] sm:$0xff]  }
  0x37   : > { %v5718_v17 = vld [vmem:[%s5853_s26 + $0x320] sm:$0xff]  }
  0x3d   : > { %5350 = vmatmul.mubr.bf16.gmra.mxu0 %v5655_v18  ;;  %5478 = vmatmul.mubr.bf16.gmra.mxu1 %v5656_v19  ;;  %v5719_v18 = vld [vmem:[%s5853_s26 + $0x128] sm:$0xff]  }
  0x3e   : > { %5353 = vmatprep.mubr.bf16.mxu0 %v5657_v20  ;;  %5481 = vmatprep.mubr.bf16.mxu1 %v5658_v21  ;;  %v5720_v19 = vld [vmem:[%s5853_s26 + $0x328] sm:$0xff]   ;;  %v5721_v20 = vld [vmem:[%s5853_s26 + $0x130] sm:$0xff]  }
  0x3f   : > { %v5722_v21 = vld [vmem:[%s5853_s26 + $0x330] sm:$0xff]  }
  0x45   : > { %5354 = vmatmul.mubr.bf16.gmra.mxu0 %v5659_v22  ;;  %5482 = vmatmul.mubr.bf16.gmra.mxu1 %v5660_v23  ;;  %v5723_v22 = vld [vmem:[%s5853_s26 + $0x138] sm:$0xff]  }
  0x46   : > { %5357 = vmatprep.mubr.bf16.mxu0 %v5661_v24  ;;  %5485 = vmatprep.mubr.bf16.mxu1 %v5662_v25  ;;  %v5724_v23 = vld [vmem:[%s5853_s26 + $0x338] sm:$0xff]   ;;  %v5725_v24 = vld [vmem:[%s5853_s26 + $0x140] sm:$0xff]  }
  0x47   : > { %v5726_v25 = vld [vmem:[%s5853_s26 + $0x340] sm:$0xff]  }
  0x4d   : > { %5358 = vmatmul.mubr.bf16.gmra.mxu0 %v5663_v26  ;;  %5486 = vmatmul.mubr.bf16.gmra.mxu1 %v5664_v27  ;;  %v5727_v26 = vld [vmem:[%s5853_s26 + $0x148] sm:$0xff]  }
  0x4e   : > { %5361 = vmatprep.mubr.bf16.mxu0 %v5665_v28  ;;  %5489 = vmatprep.mubr.bf16.mxu1 %v5666_v29  ;;  %v5728_v27 = vld [vmem:[%s5853_s26 + $0x348] sm:$0xff]   ;;  %v5729_v28 = vld [vmem:[%s5853_s26 + $0x150] sm:$0xff]  }
  0x4f   : > { %v5730_v29 = vld [vmem:[%s5853_s26 + $0x350] sm:$0xff]  }
  0x55   : > { %5362 = vmatmul.mubr.bf16.gmra.mxu0 %v5667_v30  ;;  %5490 = vmatmul.mubr.bf16.gmra.mxu1 %v5668_v31  ;;  %v5731_v30 = vld [vmem:[%s5853_s26 + $0x158] sm:$0xff]  }
  0x56   : > { %5365 = vmatprep.mubr.bf16.mxu0 %v5669_v32  ;;  %5493 = vmatprep.mubr.bf16.mxu1 %v5670_v33  ;;  %v5732_v31 = vld [vmem:[%s5853_s26 + $0x358] sm:$0xff]   ;;  %v5733_v32 = vld [vmem:[%s5853_s26 + $0x160] sm:$0xff]  }
  0x57   : > { %v5734_v33 = vld [vmem:[%s5853_s26 + $0x360] sm:$0xff]  }
  0x5d   : > { %5366 = vmatmul.mubr.bf16.gmra.mxu0 %v5671_v34  ;;  %5494 = vmatmul.mubr.bf16.gmra.mxu1 %v5672_v35  ;;  %v5735_v34 = vld [vmem:[%s5853_s26 + $0x168] sm:$0xff]  }
  0x5e   : > { %5369 = vmatprep.mubr.bf16.mxu0 %v5673_v36  ;;  %5497 = vmatprep.mubr.bf16.mxu1 %v5674_v37  ;;  %v5736_v35 = vld [vmem:[%s5853_s26 + $0x368] sm:$0xff]   ;;  %v5737_v36 = vld [vmem:[%s5853_s26 + $0x170] sm:$0xff]  }
  0x5f   : > { %v5738_v37 = vld [vmem:[%s5853_s26 + $0x370] sm:$0xff]  }
  0x65   : > { %5370 = vmatmul.mubr.bf16.gmra.mxu0 %v5675_v38  ;;  %5498 = vmatmul.mubr.bf16.gmra.mxu1 %v5676_v39  ;;  %v5739_v38 = vld [vmem:[%s5853_s26 + $0x178] sm:$0xff]  }
  0x66   : > { %5373 = vmatprep.mubr.bf16.mxu0 %v5677_v40  ;;  %5501 = vmatprep.mubr.bf16.mxu1 %v5678_v41  ;;  %v5740_v39 = vld [vmem:[%s5853_s26 + $0x378] sm:$0xff]   ;;  %v5741_v40 = vld [vmem:[%s5853_s26 + $0x180] sm:$0xff]  }
  0x67   : > { %v5742_v41 = vld [vmem:[%s5853_s26 + $0x380] sm:$0xff]  }
  0x6d   : > { %5374 = vmatmul.mubr.bf16.gmra.mxu0 %v5679_v42  ;;  %5502 = vmatmul.mubr.bf16.gmra.mxu1 %v5680_v43  ;;  %v5743_v42 = vld [vmem:[%s5853_s26 + $0x188] sm:$0xff]  }
  0x6e   : > { %5377 = vmatprep.mubr.bf16.mxu0 %v5681_v44  ;;  %5505 = vmatprep.mubr.bf16.mxu1 %v5682_v45  ;;  %v5744_v43 = vld [vmem:[%s5853_s26 + $0x388] sm:$0xff]   ;;  %v5745_v44 = vld [vmem:[%s5853_s26 + $0x190] sm:$0xff]  }
  0x6f   : > { %v5746_v45 = vld [vmem:[%s5853_s26 + $0x390] sm:$0xff]  }
  0x75   : > { %5378 = vmatmul.mubr.bf16.gmra.mxu0 %v5683_v46  ;;  %5506 = vmatmul.mubr.bf16.gmra.mxu1 %v5684_v47 }
  0x76   : > { %5381 = vmatprep.mubr.bf16.mxu0 %v5685_v48  ;;  %5509 = vmatprep.mubr.bf16.mxu1 %v5686_v49  ;;  %v5975_v48 = vld [vmem:[%s6410_s2] ss:$0 sm:$0xff] }
  0x7d   : > { %5382 = vmatmul.mubr.bf16.gmra.mxu0 %v5687_v50  ;;  %5510 = vmatmul.mubr.bf16.gmra.mxu1 %v5688_v51 }
  0x7e   : > { %5385 = vmatprep.mubr.bf16.mxu0 %v5689_v52  ;;  %5513 = vmatprep.mubr.bf16.mxu1 %v5690_v53  ;;  %v5747_v53 = vld [vmem:[%s5853_s26 + $0x198] sm:$0xff]  }
  0x85   : > { %5386 = vmatmul.mubr.bf16.gmra.mxu0 %v5691_v54  ;;  %5514 = vmatmul.mubr.bf16.gmra.mxu1 %v5692_v55  ;;  %v5748_v54 = vld [vmem:[%s5853_s26 + $0x398] sm:$0xff]  }
  0x86   : > { %5389 = vmatprep.mubr.bf16.mxu0 %v5693_v56  ;;  %5517 = vmatprep.mubr.bf16.mxu1 %v5694_v57 }
  0x8d   : > { %5390 = vmatmul.mubr.bf16.gmra.mxu0 %v5695_v58  ;;  %5518 = vmatmul.mubr.bf16.gmra.mxu1 %v5696_v59  ;;  %v5749_v59 = vld [vmem:[%s5853_s26 + $0x1a0] sm:$0xff]  }
  0x8e   : > { %5393 = vmatprep.mubr.bf16.mxu0 %v5697_v60  ;;  %5521 = vmatprep.mubr.bf16.mxu1 %v5698_v61 }
  0x95   : > { %5394 = vmatmul.mubr.bf16.gmra.mxu0 %v5699_v62  ;;  %5522 = vmatmul.mubr.bf16.gmra.mxu1 %v5700_v63 }
  0x96   : > { %5397 = vmatprep.mubr.bf16.mxu0 %v5701_v0  ;;  %5525 = vmatprep.mubr.bf16.mxu1 %v5702_v1  ;;  %v5750_v0 = vld [vmem:[%s5853_s26 + $0x3a0] sm:$0xff]  }
  0x9d   : > { %5398 = vmatmul.mubr.bf16.gmra.mxu0 %v5703_v2  ;;  %5526 = vmatmul.mubr.bf16.gmra.mxu1 %v5704_v3 }
  0x9e   : > { %5401 = vmatprep.mubr.bf16.mxu0 %v5705_v4  ;;  %5529 = vmatprep.mubr.bf16.mxu1 %v5706_v5 }
  0xa5   : > { %5402 = vmatmul.mubr.bf16.gmra.mxu0 %v5707_v6  ;;  %5530 = vmatmul.mubr.bf16.gmra.mxu1 %v5708_v7 }
  0xa6   : > { %5405 = vmatprep.mubr.bf16.mxu0 %v5709_v8  ;;  %5533 = vmatprep.mubr.bf16.mxu1 %v5710_v9 }
  0xad   : > { %5406 = vmatmul.mubr.bf16.gmra.mxu0 %v5711_v10  ;;  %5534 = vmatmul.mubr.bf16.gmra.mxu1 %v5712_v11 }
  0xae   : > { %5409 = vmatprep.mubr.bf16.mxu0 %v5713_v12  ;;  %5537 = vmatprep.mubr.bf16.mxu1 %v5714_v13  ;;  %v5751_v13 = vld [vmem:[%s5853_s26 + $0x1a8] sm:$0xff]  }
  0xb5   : > { %5410 = vmatmul.mubr.bf16.gmra.mxu0 %v5715_v14  ;;  %5538 = vmatmul.mubr.bf16.gmra.mxu1 %v5716_v15  ;;  %v5752_v14 = vld [vmem:[%s5853_s26 + $0x3a8] sm:$0xff]  }
  0xb6   : > { %5413 = vmatprep.mubr.bf16.mxu0 %v5717_v16  ;;  %5541 = vmatprep.mubr.bf16.mxu1 %v5718_v17 }
  0xbd   : > { %5414 = vmatmul.mubr.bf16.gmra.mxu0 %v5719_v18  ;;  %5542 = vmatmul.mubr.bf16.gmra.mxu1 %v5720_v19  ;;  %v5753_v19 = vld [vmem:[%s5853_s26 + $0x1b0] sm:$0xff]  }
  0xbe   : > { %5417 = vmatprep.mubr.bf16.mxu0 %v5721_v20  ;;  %5545 = vmatprep.mubr.bf16.mxu1 %v5722_v21 }
  0xc5   : > { %5418 = vmatmul.mubr.bf16.gmra.mxu0 %v5723_v22  ;;  %5546 = vmatmul.mubr.bf16.gmra.mxu1 %v5724_v23 }
  0xc6   : > { %5421 = vmatprep.mubr.bf16.mxu0 %v5725_v24  ;;  %5549 = vmatprep.mubr.bf16.mxu1 %v5726_v25  ;;  %v5754_v24 = vld [vmem:[%s5853_s26 + $0x3b0] sm:$0xff]  }
  0xcd   : > { %5422 = vmatmul.mubr.bf16.gmra.mxu0 %v5727_v26  ;;  %5550 = vmatmul.mubr.bf16.gmra.mxu1 %v5728_v27 }
  0xce   : > { %5425 = vmatprep.mubr.bf16.mxu0 %v5729_v28  ;;  %5553 = vmatprep.mubr.bf16.mxu1 %v5730_v29 }
  0xd5   : > { %5426 = vmatmul.mubr.bf16.gmra.mxu0 %v5731_v30  ;;  %5554 = vmatmul.mubr.bf16.gmra.mxu1 %v5732_v31 }
  0xd6   : > { %5429 = vmatprep.mubr.bf16.mxu0 %v5733_v32  ;;  %5557 = vmatprep.mubr.bf16.mxu1 %v5734_v33 }
  0xdd   : > { %5430 = vmatmul.mubr.bf16.gmra.mxu0 %v5735_v34  ;;  %5558 = vmatmul.mubr.bf16.gmra.mxu1 %v5736_v35 }
  0xde   : > { %5433 = vmatprep.mubr.bf16.mxu0 %v5737_v36  ;;  %5561 = vmatprep.mubr.bf16.mxu1 %v5738_v37  ;;  %v5755_v37 = vld [vmem:[%s5853_s26 + $0x1b8] sm:$0xff]  }
  0xe5   : > { %5434 = vmatmul.mubr.bf16.gmra.mxu0 %v5739_v38  ;;  %5562 = vmatmul.mubr.bf16.gmra.mxu1 %v5740_v39  ;;  %v5756_v38 = vld [vmem:[%s5853_s26 + $0x3b8] sm:$0xff]  }
  0xe6   : > { %5437 = vmatprep.mubr.bf16.mxu0 %v5741_v40  ;;  %5565 = vmatprep.mubr.bf16.mxu1 %v5742_v41 }
  0xed   : > { %v5343_v46 = vpop.f32.mrf.mxu0  ;;  %5438 = vmatmul.mubr.bf16.gmra.mxu0 %v5743_v42  ;;  %v5471_v47 = vpop.f32.mrf.mxu1  ;;  %5566 = vmatmul.mubr.bf16.gmra.mxu1 %v5744_v43  ;;  %v5757_v43 = vld [vmem:[%s5853_s26 + $0x1c0] sm:$0xff]  }
  0xee   : > { %5441 = vmatprep.mubr.bf16.mxu0 %v5745_v44  ;;  %5569 = vmatprep.mubr.bf16.mxu1 %v5746_v45  ;;  %v1364_v55 = vadd.f32 %v5343_v46, %v5975_v48  ;;  %v1876_v56 = vadd.f32 %v5471_v47, %v5975_v48 }
  0xef   : > { %v1355_v49 = vpop.f32.mrf.mxu0  ;;  %v1867_v50 = vpop.f32.mrf.mxu1 }
  0xf0   : > { %v1356_v60 = vadd.f32 %v5975_v48, %v1355_v49  ;;  %v1868_v61 = vadd.f32 %v5975_v48, %v1867_v50  ;;  %v5758_v49 = vld [vmem:[%s5853_s26 + $0x3c0] sm:$0xff]  }
  0xf1   : > { %v5344_v51 = vpop.f32.mrf.mxu0  ;;  %v5472_v52 = vpop.f32.mrf.mxu1 }
  0xf2   : > { %v1367_v57 = vadd.f32 %v5344_v51, %v5975_v48  ;;  %v1879_v58 = vadd.f32 %v5472_v52, %v5975_v48 }
  0xf3   : > { %v1358_v62 = vpop.f32.mrf.mxu0  ;;  %v1870_v63 = vpop.f32.mrf.mxu1 }
  0xf4   : > { %v4430_v1 = vpack.c.bf16 %v1367_v57, %v1364_v55  ;;  %v4750_v2 = vpack.c.bf16 %v1879_v58, %v1876_v56  ;;  %v1359_v3 = vadd.f32 %v5975_v48, %v1358_v62  ;;  %v1871_v4 = vadd.f32 %v5975_v48, %v1870_v63  ;;  %v5759_v62 = vld [vmem:[%s5853_s26 + $0x1c8] sm:$0xff]  }
  0xf5   : > { %v5347_v5 = vpop.f32.mrf.mxu0  ;;  %5442 = vmatmul.mubr.bf16.gmra.mxu0 %v5747_v53  ;;  %v5475_v6 = vpop.f32.mrf.mxu1  ;;  %5570 = vmatmul.mubr.bf16.gmra.mxu1 %v5748_v54  ;;  %v5760_v63 = vld [vmem:[%s5853_s26 + $0x3c8] sm:$0xff]  }
  0xf6   : > { %5062 = vst [vmem:[%s5991_s17 + $0x8] sm:$0xff] %v4430_v1   ;;  %5126 = vst [vmem:[%s5991_s17 + $0x208] sm:$0xff] %v4750_v2   ;;  %v4425_v7 = vpack.c.bf16 %v1359_v3, %v1356_v60  ;;  %v4745_v8 = vpack.c.bf16 %v1871_v4, %v1868_v61  ;;  %5445 = vmatprep.mubr.bf16.mxu0 %v5749_v59  ;;  %5573 = vmatprep.mubr.bf16.mxu1 %v5750_v0  ;;  %v5761_v4 = vld [vmem:[%s5853_s26 + $0x1d0] sm:$0xff]  }
  0xf7   : > { %v1371_v9 = vpop.f32.mrf.mxu0  ;;  %v1883_v10 = vpop.f32.mrf.mxu1  ;;  %v1380_v15 = vadd.f32 %v5347_v5, %v5975_v48  ;;  %v1892_v16 = vadd.f32 %v5475_v6, %v5975_v48 }
  0xf8   : > { %4426 = vst [vmem:[%s5991_s17] sm:$0xff] %v4425_v7   ;;  %5125 = vst [vmem:[%s5991_s17 + $0x200] sm:$0xff] %v4745_v8   ;;  %v1372_v20 = vadd.f32 %v5975_v48, %v1371_v9  ;;  %v1884_v21 = vadd.f32 %v5975_v48, %v1883_v10  ;;  %v5762_v9 = vld [vmem:[%s5853_s26 + $0x3d0] sm:$0xff]  }
  0xf9   : > { %v5348_v11 = vpop.f32.mrf.mxu0  ;;  %v5476_v12 = vpop.f32.mrf.mxu1 }
  0xfa   : > { %v1383_v17 = vadd.f32 %v5348_v11, %v5975_v48  ;;  %v1895_v18 = vadd.f32 %v5476_v12, %v5975_v48 }
  0xfb   : > { %v1374_v22 = vpop.f32.mrf.mxu0  ;;  %v1886_v23 = vpop.f32.mrf.mxu1 }
  0xfc   : > { %v4440_v25 = vpack.c.bf16 %v1383_v17, %v1380_v15  ;;  %v4760_v26 = vpack.c.bf16 %v1895_v18, %v1892_v16  ;;  %v1375_v27 = vadd.f32 %v5975_v48, %v1374_v22  ;;  %v1887_v28 = vadd.f32 %v5975_v48, %v1886_v23  ;;  %v5763_v22 = vld [vmem:[%s5853_s26 + $0x1d8] sm:$0xff]  }
  0xfd   : > { %v5351_v29 = vpop.f32.mrf.mxu0  ;;  %5446 = vmatmul.mubr.bf16.gmra.mxu0 %v5751_v13  ;;  %v5479_v30 = vpop.f32.mrf.mxu1  ;;  %5574 = vmatmul.mubr.bf16.gmra.mxu1 %v5752_v14  ;;  %v5764_v23 = vld [vmem:[%s5853_s26 + $0x3d8] sm:$0xff]  }
  0xfe   : > { %5064 = vst [vmem:[%s5991_s17 + $0x18] sm:$0xff] %v4440_v25   ;;  %5128 = vst [vmem:[%s5991_s17 + $0x218] sm:$0xff] %v4760_v26   ;;  %v4435_v31 = vpack.c.bf16 %v1375_v27, %v1372_v20  ;;  %v4755_v32 = vpack.c.bf16 %v1887_v28, %v1884_v21  ;;  %5449 = vmatprep.mubr.bf16.mxu0 %v5753_v19  ;;  %5577 = vmatprep.mubr.bf16.mxu1 %v5754_v24  ;;  %v5765_v28 = vld [vmem:[%s5853_s26 + $0x1e0] sm:$0xff]  }
  0xff   : > { %v1387_v33 = vpop.f32.mrf.mxu0  ;;  %v1899_v34 = vpop.f32.mrf.mxu1  ;;  %v1396_v39 = vadd.f32 %v5351_v29, %v5975_v48  ;;  %v1908_v40 = vadd.f32 %v5479_v30, %v5975_v48 }
 0x100   : > { %5063 = vst [vmem:[%s5991_s17 + $0x10] sm:$0xff] %v4435_v31   ;;  %5127 = vst [vmem:[%s5991_s17 + $0x210] sm:$0xff] %v4755_v32   ;;  %v1388_v44 = vadd.f32 %v5975_v48, %v1387_v33  ;;  %v1900_v45 = vadd.f32 %v5975_v48, %v1899_v34  ;;  %v5766_v33 = vld [vmem:[%s5853_s26 + $0x3e0] sm:$0xff]  }
 0x101   : > { %v5352_v35 = vpop.f32.mrf.mxu0  ;;  %v5480_v36 = vpop.f32.mrf.mxu1 }
 0x102   : > { %v1399_v41 = vadd.f32 %v5352_v35, %v5975_v48  ;;  %v1911_v42 = vadd.f32 %v5480_v36, %v5975_v48 }
 0x103   : > { %v1390_v46 = vpop.f32.mrf.mxu0  ;;  %v1902_v47 = vpop.f32.mrf.mxu1 }
 0x104   : > { %v4450_v50 = vpack.c.bf16 %v1399_v41, %v1396_v39  ;;  %v4770_v51 = vpack.c.bf16 %v1911_v42, %v1908_v40  ;;  %v1391_v52 = vadd.f32 %v5975_v48, %v1390_v46  ;;  %v1903_v53 = vadd.f32 %v5975_v48, %v1902_v47  ;;  %v5767_v46 = vld [vmem:[%s5853_s26 + $0x1e8] sm:$0xff]  }
 0x105   : > { %v5355_v54 = vpop.f32.mrf.mxu0  ;;  %5450 = vmatmul.mubr.bf16.gmra.mxu0 %v5755_v37  ;;  %v5483_v55 = vpop.f32.mrf.mxu1  ;;  %5578 = vmatmul.mubr.bf16.gmra.mxu1 %v5756_v38  ;;  %v5768_v47 = vld [vmem:[%s5853_s26 + $0x3e8] sm:$0xff]  }
 0x106   : > { %5066 = vst [vmem:[%s5991_s17 + $0x28] sm:$0xff] %v4450_v50   ;;  %5130 = vst [vmem:[%s5991_s17 + $0x228] sm:$0xff] %v4770_v51   ;;  %v4445_v56 = vpack.c.bf16 %v1391_v52, %v1388_v44  ;;  %v4765_v57 = vpack.c.bf16 %v1903_v53, %v1900_v45  ;;  %5453 = vmatprep.mubr.bf16.mxu0 %v5757_v43  ;;  %5581 = vmatprep.mubr.bf16.mxu1 %v5758_v49  ;;  %v5769_v53 = vld [vmem:[%s5853_s26 + $0x1f0] sm:$0xff]  }
 0x107   : > { %v1403_v58 = vpop.f32.mrf.mxu0  ;;  %v1915_v59 = vpop.f32.mrf.mxu1  ;;  %v1412_v0 = vadd.f32 %v5355_v54, %v5975_v48  ;;  %v1924_v1 = vadd.f32 %v5483_v55, %v5975_v48 }
 0x108   : > { %5065 = vst [vmem:[%s5991_s17 + $0x20] sm:$0xff] %v4445_v56   ;;  %5129 = vst [vmem:[%s5991_s17 + $0x220] sm:$0xff] %v4765_v57   ;;  %v1404_v5 = vadd.f32 %v5975_v48, %v1403_v58  ;;  %v1916_v6 = vadd.f32 %v5975_v48, %v1915_v59  ;;  %v5770_v58 = vld [vmem:[%s5853_s26 + $0x3f0] sm:$0xff]  }
 0x109   : > { %v5356_v60 = vpop.f32.mrf.mxu0  ;;  %v5484_v61 = vpop.f32.mrf.mxu1 }
 0x10a   : > { %v1415_v2 = vadd.f32 %v5356_v60, %v5975_v48  ;;  %v1927_v3 = vadd.f32 %v5484_v61, %v5975_v48 }
 0x10b   : > { %v1406_v7 = vpop.f32.mrf.mxu0  ;;  %v1918_v8 = vpop.f32.mrf.mxu1 }
 0x10c   : > { %v4460_v10 = vpack.c.bf16 %v1415_v2, %v1412_v0  ;;  %v4780_v11 = vpack.c.bf16 %v1927_v3, %v1924_v1  ;;  %v1407_v12 = vadd.f32 %v5975_v48, %v1406_v7  ;;  %v1919_v13 = vadd.f32 %v5975_v48, %v1918_v8  ;;  %v5771_v7 = vld [vmem:[%s5853_s26 + $0x1f8] sm:$0xff]  }
 0x10d   : > { %v5359_v14 = vpop.f32.mrf.mxu0  ;;  %5454 = vmatmul.mubr.bf16.gmra.mxu0 %v5759_v62  ;;  %v5487_v15 = vpop.f32.mrf.mxu1  ;;  %5582 = vmatmul.mubr.bf16.gmra.mxu1 %v5760_v63  ;;  %v5772_v8 = vld [vmem:[%s5853_s26 + $0x3f8] sm:$0xff]  }
 0x10e   : > { %5068 = vst [vmem:[%s5991_s17 + $0x38] sm:$0xff] %v4460_v10   ;;  %5132 = vst [vmem:[%s5991_s17 + $0x238] sm:$0xff] %v4780_v11   ;;  %v4455_v16 = vpack.c.bf16 %v1407_v12, %v1404_v5  ;;  %v4775_v17 = vpack.c.bf16 %v1919_v13, %v1916_v6  ;;  %5457 = vmatprep.mubr.bf16.mxu0 %v5761_v4  ;;  %5585 = vmatprep.mubr.bf16.mxu1 %v5762_v9 }
 0x10f   : > { %v1419_v18 = vpop.f32.mrf.mxu0  ;;  %v1931_v19 = vpop.f32.mrf.mxu1  ;;  %v1428_v24 = vadd.f32 %v5359_v14, %v5975_v48  ;;  %v1940_v25 = vadd.f32 %v5487_v15, %v5975_v48 }
 0x110   : > { %5067 = vst [vmem:[%s5991_s17 + $0x30] sm:$0xff] %v4455_v16   ;;  %5131 = vst [vmem:[%s5991_s17 + $0x230] sm:$0xff] %v4775_v17   ;;  %v1420_v29 = vadd.f32 %v5975_v48, %v1419_v18  ;;  %v1932_v30 = vadd.f32 %v5975_v48, %v1931_v19 }
 0x111   : > { %v5360_v20 = vpop.f32.mrf.mxu0  ;;  %v5488_v21 = vpop.f32.mrf.mxu1 }
 0x112   : > { %v1431_v26 = vadd.f32 %v5360_v20, %v5975_v48  ;;  %v1943_v27 = vadd.f32 %v5488_v21, %v5975_v48 }
 0x113   : > { %v1422_v31 = vpop.f32.mrf.mxu0  ;;  %v1934_v32 = vpop.f32.mrf.mxu1 }
 0x114   : > { %v4470_v34 = vpack.c.bf16 %v1431_v26, %v1428_v24  ;;  %v4790_v35 = vpack.c.bf16 %v1943_v27, %v1940_v25  ;;  %v1423_v36 = vadd.f32 %v5975_v48, %v1422_v31  ;;  %v1935_v37 = vadd.f32 %v5975_v48, %v1934_v32 }
 0x115   : > { %v5363_v38 = vpop.f32.mrf.mxu0  ;;  %5458 = vmatmul.mubr.bf16.gmra.mxu0 %v5763_v22  ;;  %v5491_v39 = vpop.f32.mrf.mxu1  ;;  %5586 = vmatmul.mubr.bf16.gmra.mxu1 %v5764_v23 }
 0x116   : > { %5070 = vst [vmem:[%s5991_s17 + $0x48] sm:$0xff] %v4470_v34   ;;  %5134 = vst [vmem:[%s5991_s17 + $0x248] sm:$0xff] %v4790_v35   ;;  %v4465_v40 = vpack.c.bf16 %v1423_v36, %v1420_v29  ;;  %v4785_v41 = vpack.c.bf16 %v1935_v37, %v1932_v30  ;;  %5461 = vmatprep.mubr.bf16.mxu0 %v5765_v28  ;;  %5589 = vmatprep.mubr.bf16.mxu1 %v5766_v33 }
 0x117   : > { %v1435_v42 = vpop.f32.mrf.mxu0  ;;  %v1947_v43 = vpop.f32.mrf.mxu1  ;;  %v1444_v49 = vadd.f32 %v5363_v38, %v5975_v48  ;;  %v1956_v50 = vadd.f32 %v5491_v39, %v5975_v48 }
 0x118   : > { %5069 = vst [vmem:[%s5991_s17 + $0x40] sm:$0xff] %v4465_v40   ;;  %5133 = vst [vmem:[%s5991_s17 + $0x240] sm:$0xff] %v4785_v41   ;;  %v1436_v54 = vadd.f32 %v5975_v48, %v1435_v42  ;;  %v1948_v55 = vadd.f32 %v5975_v48, %v1947_v43 }
 0x119   : > { %v5364_v44 = vpop.f32.mrf.mxu0  ;;  %v5492_v45 = vpop.f32.mrf.mxu1 }
 0x11a   : > { %v1447_v51 = vadd.f32 %v5364_v44, %v5975_v48  ;;  %v1959_v52 = vadd.f32 %v5492_v45, %v5975_v48 }
 0x11b   : > { %v1438_v56 = vpop.f32.mrf.mxu0  ;;  %v1950_v57 = vpop.f32.mrf.mxu1 }
 0x11c   : > { %v4480_v59 = vpack.c.bf16 %v1447_v51, %v1444_v49  ;;  %v4800_v60 = vpack.c.bf16 %v1959_v52, %v1956_v50  ;;  %v1439_v61 = vadd.f32 %v5975_v48, %v1438_v56  ;;  %v1951_v62 = vadd.f32 %v5975_v48, %v1950_v57 }
 0x11d   : > { %v5367_v63 = vpop.f32.mrf.mxu0  ;;  %5462 = vmatmul.mubr.bf16.gmra.mxu0 %v5767_v46  ;;  %v5495_v0 = vpop.f32.mrf.mxu1  ;;  %5590 = vmatmul.mubr.bf16.gmra.mxu1 %v5768_v47 }
 0x11e   : > { %5072 = vst [vmem:[%s5991_s17 + $0x58] sm:$0xff] %v4480_v59   ;;  %5136 = vst [vmem:[%s5991_s17 + $0x258] sm:$0xff] %v4800_v60   ;;  %v4475_v1 = vpack.c.bf16 %v1439_v61, %v1436_v54  ;;  %v4795_v2 = vpack.c.bf16 %v1951_v62, %v1948_v55  ;;  %5465 = vmatprep.mubr.bf16.mxu0 %v5769_v53  ;;  %5593 = vmatprep.mubr.bf16.mxu1 %v5770_v58 }
 0x11f   : > { %v1451_v3 = vpop.f32.mrf.mxu0  ;;  %v1963_v4 = vpop.f32.mrf.mxu1  ;;  %v1460_v9 = vadd.f32 %v5367_v63, %v5975_v48  ;;  %v1972_v10 = vadd.f32 %v5495_v0, %v5975_v48 }
 0x120   : > { %5071 = vst [vmem:[%s5991_s17 + $0x50] sm:$0xff] %v4475_v1   ;;  %5135 = vst [vmem:[%s5991_s17 + $0x250] sm:$0xff] %v4795_v2   ;;  %v1452_v13 = vadd.f32 %v5975_v48, %v1451_v3  ;;  %v1964_v14 = vadd.f32 %v5975_v48, %v1963_v4 }
 0x121   : > { %v5368_v5 = vpop.f32.mrf.mxu0  ;;  %v5496_v6 = vpop.f32.mrf.mxu1 }
 0x122   : > { %v1463_v11 = vadd.f32 %v5368_v5, %v5975_v48  ;;  %v1975_v12 = vadd.f32 %v5496_v6, %v5975_v48 }
 0x123   : > { %v1454_v15 = vpop.f32.mrf.mxu0  ;;  %v1966_v16 = vpop.f32.mrf.mxu1 }
 0x124   : > { %v4490_v17 = vpack.c.bf16 %v1463_v11, %v1460_v9  ;;  %v4810_v18 = vpack.c.bf16 %v1975_v12, %v1972_v10  ;;  %v1455_v19 = vadd.f32 %v5975_v48, %v1454_v15  ;;  %v1967_v20 = vadd.f32 %v5975_v48, %v1966_v16 }
 0x125   : > { %v5371_v21 = vpop.f32.mrf.mxu0  ;;  %5466 = vmatmul.mubr.bf16.gmra.mxu0 %v5771_v7  ;;  %v5499_v22 = vpop.f32.mrf.mxu1  ;;  %5594 = vmatmul.mubr.bf16.gmra.mxu1 %v5772_v8 }
 0x126   : > { %5074 = vst [vmem:[%s5991_s17 + $0x68] sm:$0xff] %v4490_v17   ;;  %5138 = vst [vmem:[%s5991_s17 + $0x268] sm:$0xff] %v4810_v18   ;;  %v4485_v23 = vpack.c.bf16 %v1455_v19, %v1452_v13  ;;  %v4805_v24 = vpack.c.bf16 %v1967_v20, %v1964_v14  ;;  %v1476_v29 = vadd.f32 %v5371_v21, %v5975_v48 }
 0x127   : > { %v1467_v25 = vpop.f32.mrf.mxu0  ;;  %v1979_v26 = vpop.f32.mrf.mxu1  ;;  %v1988_v30 = vadd.f32 %v5499_v22, %v5975_v48 }
 0x128   : > { %5073 = vst [vmem:[%s5991_s17 + $0x60] sm:$0xff] %v4485_v23   ;;  %5137 = vst [vmem:[%s5991_s17 + $0x260] sm:$0xff] %v4805_v24   ;;  %v1468_v33 = vadd.f32 %v5975_v48, %v1467_v25  ;;  %v1980_v34 = vadd.f32 %v5975_v48, %v1979_v26 }
 0x129   : > { %v5372_v27 = vpop.f32.mrf.mxu0  ;;  %v5500_v28 = vpop.f32.mrf.mxu1 }
 0x12a   : > { %v1479_v31 = vadd.f32 %v5372_v27, %v5975_v48  ;;  %v1991_v32 = vadd.f32 %v5500_v28, %v5975_v48 }
 0x12b   : > { %v1470_v35 = vpop.f32.mrf.mxu0  ;;  %v1982_v36 = vpop.f32.mrf.mxu1 }
 0x12c   : > { %v4500_v37 = vpack.c.bf16 %v1479_v31, %v1476_v29  ;;  %v4820_v38 = vpack.c.bf16 %v1991_v32, %v1988_v30  ;;  %v1471_v39 = vadd.f32 %v5975_v48, %v1470_v35  ;;  %v1983_v40 = vadd.f32 %v5975_v48, %v1982_v36 }
 0x12d   : > { %v5375_v41 = vpop.f32.mrf.mxu0  ;;  %v5503_v42 = vpop.f32.mrf.mxu1 }
 0x12e   : > { %5076 = vst [vmem:[%s5991_s17 + $0x78] sm:$0xff] %v4500_v37   ;;  %5140 = vst [vmem:[%s5991_s17 + $0x278] sm:$0xff] %v4820_v38   ;;  %v4495_v43 = vpack.c.bf16 %v1471_v39, %v1468_v33  ;;  %v4815_v44 = vpack.c.bf16 %v1983_v40, %v1980_v34  ;;  %v1492_v50 = vadd.f32 %v5375_v41, %v5975_v48 }
 0x12f   : > { %v1483_v45 = vpop.f32.mrf.mxu0  ;;  %v1995_v46 = vpop.f32.mrf.mxu1  ;;  %v2004_v51 = vadd.f32 %v5503_v42, %v5975_v48 }
 0x130   : > { %5075 = vst [vmem:[%s5991_s17 + $0x70] sm:$0xff] %v4495_v43   ;;  %5139 = vst [vmem:[%s5991_s17 + $0x270] sm:$0xff] %v4815_v44   ;;  %v1484_v54 = vadd.f32 %v5975_v48, %v1483_v45  ;;  %v1996_v55 = vadd.f32 %v5975_v48, %v1995_v46 }
 0x131   : > { %v5376_v47 = vpop.f32.mrf.mxu0  ;;  %v5504_v49 = vpop.f32.mrf.mxu1 }
 0x132   : > { %v1495_v52 = vadd.f32 %v5376_v47, %v5975_v48  ;;  %v2007_v53 = vadd.f32 %v5504_v49, %v5975_v48 }
 0x133   : > { %v1486_v56 = vpop.f32.mrf.mxu0  ;;  %v1998_v57 = vpop.f32.mrf.mxu1 }
 0x134   : > { %v4510_v58 = vpack.c.bf16 %v1495_v52, %v1492_v50  ;;  %v4830_v59 = vpack.c.bf16 %v2007_v53, %v2004_v51  ;;  %v1487_v60 = vadd.f32 %v5975_v48, %v1486_v56  ;;  %v1999_v61 = vadd.f32 %v5975_v48, %v1998_v57 }
 0x135   : > { %v5379_v62 = vpop.f32.mrf.mxu0  ;;  %v5507_v63 = vpop.f32.mrf.mxu1 }
 0x136   : > { %5078 = vst [vmem:[%s5991_s17 + $0x88] sm:$0xff] %v4510_v58   ;;  %5142 = vst [vmem:[%s5991_s17 + $0x288] sm:$0xff] %v4830_v59   ;;  %v4505_v0 = vpack.c.bf16 %v1487_v60, %v1484_v54  ;;  %v4825_v1 = vpack.c.bf16 %v1999_v61, %v1996_v55  ;;  %v1508_v6 = vadd.f32 %v5379_v62, %v5975_v48 }
 0x137   : > { %v1499_v2 = vpop.f32.mrf.mxu0  ;;  %v2011_v3 = vpop.f32.mrf.mxu1  ;;  %v2020_v7 = vadd.f32 %v5507_v63, %v5975_v48 }
 0x138   : > { %5077 = vst [vmem:[%s5991_s17 + $0x80] sm:$0xff] %v4505_v0   ;;  %5141 = vst [vmem:[%s5991_s17 + $0x280] sm:$0xff] %v4825_v1   ;;  %v1500_v10 = vadd.f32 %v5975_v48, %v1499_v2  ;;  %v2012_v11 = vadd.f32 %v5975_v48, %v2011_v3 }
 0x139   : > { %v5380_v4 = vpop.f32.mrf.mxu0  ;;  %v5508_v5 = vpop.f32.mrf.mxu1 }
 0x13a   : > { %v1511_v8 = vadd.f32 %v5380_v4, %v5975_v48  ;;  %v2023_v9 = vadd.f32 %v5508_v5, %v5975_v48 }
 0x13b   : > { %v1502_v12 = vpop.f32.mrf.mxu0  ;;  %v2014_v13 = vpop.f32.mrf.mxu1 }
 0x13c   : > { %v4520_v14 = vpack.c.bf16 %v1511_v8, %v1508_v6  ;;  %v4840_v15 = vpack.c.bf16 %v2023_v9, %v2020_v7  ;;  %v1503_v16 = vadd.f32 %v5975_v48, %v1502_v12  ;;  %v2015_v17 = vadd.f32 %v5975_v48, %v2014_v13 }
 0x13d   : > { %v5383_v18 = vpop.f32.mrf.mxu0  ;;  %v5511_v19 = vpop.f32.mrf.mxu1 }
 0x13e   : > { %5080 = vst [vmem:[%s5991_s17 + $0x98] sm:$0xff] %v4520_v14   ;;  %5144 = vst [vmem:[%s5991_s17 + $0x298] sm:$0xff] %v4840_v15   ;;  %v4515_v20 = vpack.c.bf16 %v1503_v16, %v1500_v10  ;;  %v4835_v21 = vpack.c.bf16 %v2015_v17, %v2012_v11  ;;  %v1524_v26 = vadd.f32 %v5383_v18, %v5975_v48 }
 0x13f   : > { %v1515_v22 = vpop.f32.mrf.mxu0  ;;  %v2027_v23 = vpop.f32.mrf.mxu1  ;;  %v2036_v27 = vadd.f32 %v5511_v19, %v5975_v48 }
 0x140   : > { %5079 = vst [vmem:[%s5991_s17 + $0x90] sm:$0xff] %v4515_v20   ;;  %5143 = vst [vmem:[%s5991_s17 + $0x290] sm:$0xff] %v4835_v21   ;;  %v1516_v30 = vadd.f32 %v5975_v48, %v1515_v22  ;;  %v2028_v31 = vadd.f32 %v5975_v48, %v2027_v23 }
 0x141   : > { %v5384_v24 = vpop.f32.mrf.mxu0  ;;  %v5512_v25 = vpop.f32.mrf.mxu1 }
 0x142   : > { %v1527_v28 = vadd.f32 %v5384_v24, %v5975_v48  ;;  %v2039_v29 = vadd.f32 %v5512_v25, %v5975_v48 }
 0x143   : > { %v1518_v32 = vpop.f32.mrf.mxu0  ;;  %v2030_v33 = vpop.f32.mrf.mxu1 }
 0x144   : > { %v4530_v34 = vpack.c.bf16 %v1527_v28, %v1524_v26  ;;  %v4850_v35 = vpack.c.bf16 %v2039_v29, %v2036_v27  ;;  %v1519_v36 = vadd.f32 %v5975_v48, %v1518_v32  ;;  %v2031_v37 = vadd.f32 %v5975_v48, %v2030_v33 }
 0x145   : > { %v5387_v38 = vpop.f32.mrf.mxu0  ;;  %v5515_v39 = vpop.f32.mrf.mxu1 }
 0x146   : > { %5082 = vst [vmem:[%s5991_s17 + $0xa8] sm:$0xff] %v4530_v34   ;;  %5146 = vst [vmem:[%s5991_s17 + $0x2a8] sm:$0xff] %v4850_v35   ;;  %v4525_v40 = vpack.c.bf16 %v1519_v36, %v1516_v30  ;;  %v4845_v41 = vpack.c.bf16 %v2031_v37, %v2028_v31  ;;  %v1540_v46 = vadd.f32 %v5387_v38, %v5975_v48 }
 0x147   : > { %v1531_v42 = vpop.f32.mrf.mxu0  ;;  %v2043_v43 = vpop.f32.mrf.mxu1  ;;  %v2052_v47 = vadd.f32 %v5515_v39, %v5975_v48 }
 0x148   : > { %5081 = vst [vmem:[%s5991_s17 + $0xa0] sm:$0xff] %v4525_v40   ;;  %5145 = vst [vmem:[%s5991_s17 + $0x2a0] sm:$0xff] %v4845_v41   ;;  %v1532_v51 = vadd.f32 %v5975_v48, %v1531_v42  ;;  %v2044_v52 = vadd.f32 %v5975_v48, %v2043_v43 }
 0x149   : > { %v5388_v44 = vpop.f32.mrf.mxu0  ;;  %v5516_v45 = vpop.f32.mrf.mxu1 }
 0x14a   : > { %v1543_v49 = vadd.f32 %v5388_v44, %v5975_v48  ;;  %v2055_v50 = vadd.f32 %v5516_v45, %v5975_v48 }
 0x14b   : > { %v1534_v53 = vpop.f32.mrf.mxu0  ;;  %v2046_v54 = vpop.f32.mrf.mxu1 }
 0x14c   : > { %v4540_v55 = vpack.c.bf16 %v1543_v49, %v1540_v46  ;;  %v4860_v56 = vpack.c.bf16 %v2055_v50, %v2052_v47  ;;  %v1535_v57 = vadd.f32 %v5975_v48, %v1534_v53  ;;  %v2047_v58 = vadd.f32 %v5975_v48, %v2046_v54 }
 0x14d   : > { %v5391_v59 = vpop.f32.mrf.mxu0  ;;  %v5519_v60 = vpop.f32.mrf.mxu1 }
 0x14e   : > { %5084 = vst [vmem:[%s5991_s17 + $0xb8] sm:$0xff] %v4540_v55   ;;  %5148 = vst [vmem:[%s5991_s17 + $0x2b8] sm:$0xff] %v4860_v56   ;;  %v4535_v61 = vpack.c.bf16 %v1535_v57, %v1532_v51  ;;  %v4855_v62 = vpack.c.bf16 %v2047_v58, %v2044_v52  ;;  %v1556_v3 = vadd.f32 %v5391_v59, %v5975_v48 }
 0x14f   : > { %v1547_v63 = vpop.f32.mrf.mxu0  ;;  %v2059_v0 = vpop.f32.mrf.mxu1  ;;  %v2068_v4 = vadd.f32 %v5519_v60, %v5975_v48 }
 0x150   : > { %5083 = vst [vmem:[%s5991_s17 + $0xb0] sm:$0xff] %v4535_v61   ;;  %5147 = vst [vmem:[%s5991_s17 + $0x2b0] sm:$0xff] %v4855_v62   ;;  %v1548_v7 = vadd.f32 %v5975_v48, %v1547_v63  ;;  %v2060_v8 = vadd.f32 %v5975_v48, %v2059_v0 }
 0x151   : > { %v5392_v1 = vpop.f32.mrf.mxu0  ;;  %v5520_v2 = vpop.f32.mrf.mxu1 }
 0x152   : > { %v1559_v5 = vadd.f32 %v5392_v1, %v5975_v48  ;;  %v2071_v6 = vadd.f32 %v5520_v2, %v5975_v48 }
 0x153   : > { %v1550_v9 = vpop.f32.mrf.mxu0  ;;  %v2062_v10 = vpop.f32.mrf.mxu1 }
 0x154   : > { %v4550_v11 = vpack.c.bf16 %v1559_v5, %v1556_v3  ;;  %v4870_v12 = vpack.c.bf16 %v2071_v6, %v2068_v4  ;;  %v1551_v13 = vadd.f32 %v5975_v48, %v1550_v9  ;;  %v2063_v14 = vadd.f32 %v5975_v48, %v2062_v10 }
 0x155   : > { %v5395_v15 = vpop.f32.mrf.mxu0  ;;  %v5523_v16 = vpop.f32.mrf.mxu1 }
 0x156   : > { %5086 = vst [vmem:[%s5991_s17 + $0xc8] sm:$0xff] %v4550_v11   ;;  %5150 = vst [vmem:[%s5991_s17 + $0x2c8] sm:$0xff] %v4870_v12   ;;  %v4545_v17 = vpack.c.bf16 %v1551_v13, %v1548_v7  ;;  %v4865_v18 = vpack.c.bf16 %v2063_v14, %v2060_v8  ;;  %v1572_v23 = vadd.f32 %v5395_v15, %v5975_v48 }
 0x157   : > { %v1563_v19 = vpop.f32.mrf.mxu0  ;;  %v2075_v20 = vpop.f32.mrf.mxu1  ;;  %v2084_v24 = vadd.f32 %v5523_v16, %v5975_v48 }
 0x158   : > { %5085 = vst [vmem:[%s5991_s17 + $0xc0] sm:$0xff] %v4545_v17   ;;  %5149 = vst [vmem:[%s5991_s17 + $0x2c0] sm:$0xff] %v4865_v18   ;;  %v1564_v27 = vadd.f32 %v5975_v48, %v1563_v19  ;;  %v2076_v28 = vadd.f32 %v5975_v48, %v2075_v20 }
 0x159   : > { %v5396_v21 = vpop.f32.mrf.mxu0  ;;  %v5524_v22 = vpop.f32.mrf.mxu1 }
 0x15a   : > { %v1575_v25 = vadd.f32 %v5396_v21, %v5975_v48  ;;  %v2087_v26 = vadd.f32 %v5524_v22, %v5975_v48 }
 0x15b   : > { %v1566_v29 = vpop.f32.mrf.mxu0  ;;  %v2078_v30 = vpop.f32.mrf.mxu1 }
 0x15c   : > { %v4560_v31 = vpack.c.bf16 %v1575_v25, %v1572_v23  ;;  %v4880_v32 = vpack.c.bf16 %v2087_v26, %v2084_v24  ;;  %v1567_v33 = vadd.f32 %v5975_v48, %v1566_v29  ;;  %v2079_v34 = vadd.f32 %v5975_v48, %v2078_v30 }
 0x15d   : > { %v5399_v35 = vpop.f32.mrf.mxu0  ;;  %v5527_v36 = vpop.f32.mrf.mxu1 }
 0x15e   : > { %5088 = vst [vmem:[%s5991_s17 + $0xd8] sm:$0xff] %v4560_v31   ;;  %5152 = vst [vmem:[%s5991_s17 + $0x2d8] sm:$0xff] %v4880_v32   ;;  %v4555_v37 = vpack.c.bf16 %v1567_v33, %v1564_v27  ;;  %v4875_v38 = vpack.c.bf16 %v2079_v34, %v2076_v28  ;;  %v1588_v43 = vadd.f32 %v5399_v35, %v5975_v48 }
 0x15f   : > { %v1579_v39 = vpop.f32.mrf.mxu0  ;;  %v2091_v40 = vpop.f32.mrf.mxu1  ;;  %v2100_v44 = vadd.f32 %v5527_v36, %v5975_v48 }
 0x160   : > { %5087 = vst [vmem:[%s5991_s17 + $0xd0] sm:$0xff] %v4555_v37   ;;  %5151 = vst [vmem:[%s5991_s17 + $0x2d0] sm:$0xff] %v4875_v38   ;;  %v1580_v47 = vadd.f32 %v5975_v48, %v1579_v39  ;;  %v2092_v49 = vadd.f32 %v5975_v48, %v2091_v40 }
 0x161   : > { %v5400_v41 = vpop.f32.mrf.mxu0  ;;  %v5528_v42 = vpop.f32.mrf.mxu1 }
 0x162   : > { %v1591_v45 = vadd.f32 %v5400_v41, %v5975_v48  ;;  %v2103_v46 = vadd.f32 %v5528_v42, %v5975_v48 }
 0x163   : > { %v1582_v50 = vpop.f32.mrf.mxu0  ;;  %v2094_v51 = vpop.f32.mrf.mxu1 }
 0x164   : > { %v4570_v52 = vpack.c.bf16 %v1591_v45, %v1588_v43  ;;  %v4890_v53 = vpack.c.bf16 %v2103_v46, %v2100_v44  ;;  %v1583_v54 = vadd.f32 %v5975_v48, %v1582_v50  ;;  %v2095_v55 = vadd.f32 %v5975_v48, %v2094_v51 }
 0x165   : > { %v5403_v56 = vpop.f32.mrf.mxu0  ;;  %v5531_v57 = vpop.f32.mrf.mxu1 }
 0x166   : > { %5090 = vst [vmem:[%s5991_s17 + $0xe8] sm:$0xff] %v4570_v52   ;;  %5154 = vst [vmem:[%s5991_s17 + $0x2e8] sm:$0xff] %v4890_v53   ;;  %v4565_v58 = vpack.c.bf16 %v1583_v54, %v1580_v47  ;;  %v4885_v59 = vpack.c.bf16 %v2095_v55, %v2092_v49  ;;  %v1604_v0 = vadd.f32 %v5403_v56, %v5975_v48 }
 0x167   : > { %v1595_v60 = vpop.f32.mrf.mxu0  ;;  %v2107_v61 = vpop.f32.mrf.mxu1  ;;  %v2116_v1 = vadd.f32 %v5531_v57, %v5975_v48 }
 0x168   : > { %5089 = vst [vmem:[%s5991_s17 + $0xe0] sm:$0xff] %v4565_v58   ;;  %5153 = vst [vmem:[%s5991_s17 + $0x2e0] sm:$0xff] %v4885_v59   ;;  %v1596_v4 = vadd.f32 %v5975_v48, %v1595_v60  ;;  %v2108_v5 = vadd.f32 %v5975_v48, %v2107_v61 }
 0x169   : > { %v5404_v62 = vpop.f32.mrf.mxu0  ;;  %v5532_v63 = vpop.f32.mrf.mxu1 }
 0x16a   : > { %v1607_v2 = vadd.f32 %v5404_v62, %v5975_v48  ;;  %v2119_v3 = vadd.f32 %v5532_v63, %v5975_v48 }
 0x16b   : > { %v1598_v6 = vpop.f32.mrf.mxu0  ;;  %v2110_v7 = vpop.f32.mrf.mxu1 }
 0x16c   : > { %v4580_v8 = vpack.c.bf16 %v1607_v2, %v1604_v0  ;;  %v4900_v9 = vpack.c.bf16 %v2119_v3, %v2116_v1  ;;  %v1599_v10 = vadd.f32 %v5975_v48, %v1598_v6  ;;  %v2111_v11 = vadd.f32 %v5975_v48, %v2110_v7 }
 0x16d   : > { %v5407_v12 = vpop.f32.mrf.mxu0  ;;  %v5535_v13 = vpop.f32.mrf.mxu1 }
 0x16e   : > { %5092 = vst [vmem:[%s5991_s17 + $0xf8] sm:$0xff] %v4580_v8   ;;  %5156 = vst [vmem:[%s5991_s17 + $0x2f8] sm:$0xff] %v4900_v9   ;;  %v4575_v14 = vpack.c.bf16 %v1599_v10, %v1596_v4  ;;  %v4895_v15 = vpack.c.bf16 %v2111_v11, %v2108_v5  ;;  %v1620_v20 = vadd.f32 %v5407_v12, %v5975_v48 }
 0x16f   : > { %v1611_v16 = vpop.f32.mrf.mxu0  ;;  %v2123_v17 = vpop.f32.mrf.mxu1  ;;  %v2132_v21 = vadd.f32 %v5535_v13, %v5975_v48 }
 0x170   : > { %5091 = vst [vmem:[%s5991_s17 + $0xf0] sm:$0xff] %v4575_v14   ;;  %5155 = vst [vmem:[%s5991_s17 + $0x2f0] sm:$0xff] %v4895_v15   ;;  %v1612_v24 = vadd.f32 %v5975_v48, %v1611_v16  ;;  %v2124_v25 = vadd.f32 %v5975_v48, %v2123_v17  ;;  %v6241_v17 = vld [vmem:[%s6410_s2] ss:$0 sm:$0xff] }
 0x171   : > { %v5408_v18 = vpop.f32.mrf.mxu0  ;;  %v5536_v19 = vpop.f32.mrf.mxu1 }
 0x172   : > { %v1623_v22 = vadd.f32 %v5408_v18, %v5975_v48  ;;  %v2135_v23 = vadd.f32 %v5536_v19, %v5975_v48 }
 0x173   : > { %v1614_v26 = vpop.f32.mrf.mxu0  ;;  %v2126_v27 = vpop.f32.mrf.mxu1 }
 0x174   : > { %v4590_v28 = vpack.c.bf16 %v1623_v22, %v1620_v20  ;;  %v4910_v29 = vpack.c.bf16 %v2135_v23, %v2132_v21  ;;  %v1615_v30 = vadd.f32 %v5975_v48, %v1614_v26  ;;  %v2127_v31 = vadd.f32 %v5975_v48, %v2126_v27 }
 0x175   : > { %v5411_v32 = vpop.f32.mrf.mxu0  ;;  %v5539_v33 = vpop.f32.mrf.mxu1 }
 0x176   : > { %5094 = vst [vmem:[%s5991_s17 + $0x108] sm:$0xff] %v4590_v28   ;;  %5158 = vst [vmem:[%s5991_s17 + $0x308] sm:$0xff] %v4910_v29   ;;  %v4585_v34 = vpack.c.bf16 %v1615_v30, %v1612_v24  ;;  %v4905_v35 = vpack.c.bf16 %v2127_v31, %v2124_v25  ;;  %v1636_v40 = vadd.f32 %v5411_v32, %v5975_v48 }
 0x177   : > { %v1627_v36 = vpop.f32.mrf.mxu0  ;;  %v2139_v37 = vpop.f32.mrf.mxu1  ;;  %v2148_v41 = vadd.f32 %v5539_v33, %v5975_v48 }
 0x178   : > { %5093 = vst [vmem:[%s5991_s17 + $0x100] sm:$0xff] %v4585_v34   ;;  %5157 = vst [vmem:[%s5991_s17 + $0x300] sm:$0xff] %v4905_v35   ;;  %v1628_v44 = vadd.f32 %v5975_v48, %v1627_v36  ;;  %v2140_v45 = vadd.f32 %v5975_v48, %v2139_v37 }
 0x179   : > { %v5412_v38 = vpop.f32.mrf.mxu0  ;;  %v5540_v39 = vpop.f32.mrf.mxu1 }
 0x17a   : > { %v1639_v42 = vadd.f32 %v5412_v38, %v5975_v48  ;;  %v2151_v43 = vadd.f32 %v5540_v39, %v5975_v48 }
 0x17b   : > { %v1630_v46 = vpop.f32.mrf.mxu0  ;;  %v2142_v47 = vpop.f32.mrf.mxu1 }
 0x17c   : > { %v4600_v49 = vpack.c.bf16 %v1639_v42, %v1636_v40  ;;  %v4920_v50 = vpack.c.bf16 %v2151_v43, %v2148_v41  ;;  %v1631_v51 = vadd.f32 %v5975_v48, %v1630_v46  ;;  %v2143_v52 = vadd.f32 %v5975_v48, %v2142_v47 }
 0x17d   : > { %v5415_v53 = vpop.f32.mrf.mxu0  ;;  %v5543_v54 = vpop.f32.mrf.mxu1 }
 0x17e   : > { %5096 = vst [vmem:[%s5991_s17 + $0x118] sm:$0xff] %v4600_v49   ;;  %5160 = vst [vmem:[%s5991_s17 + $0x318] sm:$0xff] %v4920_v50   ;;  %v4595_v55 = vpack.c.bf16 %v1631_v51, %v1628_v44  ;;  %v4915_v56 = vpack.c.bf16 %v2143_v52, %v2140_v45  ;;  %v1652_v61 = vadd.f32 %v5415_v53, %v5975_v48 }
 0x17f   : > { %v1643_v57 = vpop.f32.mrf.mxu0  ;;  %v2155_v58 = vpop.f32.mrf.mxu1  ;;  %v2164_v62 = vadd.f32 %v5543_v54, %v5975_v48 }
 0x180   : > { %5095 = vst [vmem:[%s5991_s17 + $0x110] sm:$0xff] %v4595_v55   ;;  %5159 = vst [vmem:[%s5991_s17 + $0x310] sm:$0xff] %v4915_v56   ;;  %v1644_v1 = vadd.f32 %v5975_v48, %v1643_v57  ;;  %v2156_v2 = vadd.f32 %v5975_v48, %v2155_v58 }
 0x181   : > { %v5416_v59 = vpop.f32.mrf.mxu0  ;;  %v5544_v60 = vpop.f32.mrf.mxu1 }
 0x182   : > { %v1655_v63 = vadd.f32 %v5416_v59, %v5975_v48  ;;  %v2167_v0 = vadd.f32 %v5544_v60, %v5975_v48 }
 0x183   : > { %v1646_v3 = vpop.f32.mrf.mxu0  ;;  %v2158_v4 = vpop.f32.mrf.mxu1 }
 0x184   : > { %v4610_v5 = vpack.c.bf16 %v1655_v63, %v1652_v61  ;;  %v4930_v6 = vpack.c.bf16 %v2167_v0, %v2164_v62  ;;  %v1647_v7 = vadd.f32 %v5975_v48, %v1646_v3  ;;  %v2159_v8 = vadd.f32 %v5975_v48, %v2158_v4 }
 0x185   : > { %v5419_v9 = vpop.f32.mrf.mxu0  ;;  %v5547_v10 = vpop.f32.mrf.mxu1 }
 0x186   : > { %5098 = vst [vmem:[%s5991_s17 + $0x128] sm:$0xff] %v4610_v5   ;;  %5162 = vst [vmem:[%s5991_s17 + $0x328] sm:$0xff] %v4930_v6   ;;  %v4605_v11 = vpack.c.bf16 %v1647_v7, %v1644_v1  ;;  %v4925_v12 = vpack.c.bf16 %v2159_v8, %v2156_v2  ;;  %v1668_v48 = vadd.f32 %v6241_v17, %v5419_v9 }
 0x187   : > { %v1659_v13 = vpop.f32.mrf.mxu0  ;;  %v2171_v14 = vpop.f32.mrf.mxu1  ;;  %v2180_v18 = vadd.f32 %v6241_v17, %v5547_v10 }
 0x188   : > { %5097 = vst [vmem:[%s5991_s17 + $0x120] sm:$0xff] %v4605_v11   ;;  %5161 = vst [vmem:[%s5991_s17 + $0x320] sm:$0xff] %v4925_v12   ;;  %v1660_v21 = vadd.f32 %v6241_v17, %v1659_v13  ;;  %v2172_v22 = vadd.f32 %v6241_v17, %v2171_v14 }
 0x189   : > { %v5420_v15 = vpop.f32.mrf.mxu0  ;;  %v5548_v16 = vpop.f32.mrf.mxu1 }
 0x18a   : > { %v1671_v19 = vadd.f32 %v6241_v17, %v5420_v15  ;;  %v2183_v20 = vadd.f32 %v6241_v17, %v5548_v16 }
 0x18b   : > { %v1662_v23 = vpop.f32.mrf.mxu0  ;;  %v2174_v24 = vpop.f32.mrf.mxu1 }
 0x18c   : > { %v4620_v25 = vpack.c.bf16 %v1671_v19, %v1668_v48  ;;  %v4940_v26 = vpack.c.bf16 %v2183_v20, %v2180_v18  ;;  %v1663_v27 = vadd.f32 %v6241_v17, %v1662_v23  ;;  %v2175_v28 = vadd.f32 %v6241_v17, %v2174_v24 }
 0x18d   : > { %v5423_v29 = vpop.f32.mrf.mxu0  ;;  %v5551_v30 = vpop.f32.mrf.mxu1 }
 0x18e   : > { %5100 = vst [vmem:[%s5991_s17 + $0x138] sm:$0xff] %v4620_v25   ;;  %5164 = vst [vmem:[%s5991_s17 + $0x338] sm:$0xff] %v4940_v26   ;;  %v4615_v31 = vpack.c.bf16 %v1663_v27, %v1660_v21  ;;  %v4935_v32 = vpack.c.bf16 %v2175_v28, %v2172_v22  ;;  %v1684_v37 = vadd.f32 %v6241_v17, %v5423_v29 }
 0x18f   : > { %v1675_v33 = vpop.f32.mrf.mxu0  ;;  %v2187_v34 = vpop.f32.mrf.mxu1  ;;  %v2196_v38 = vadd.f32 %v6241_v17, %v5551_v30 }
 0x190   : > { %5099 = vst [vmem:[%s5991_s17 + $0x130] sm:$0xff] %v4615_v31   ;;  %5163 = vst [vmem:[%s5991_s17 + $0x330] sm:$0xff] %v4935_v32   ;;  %v1676_v41 = vadd.f32 %v6241_v17, %v1675_v33  ;;  %v2188_v42 = vadd.f32 %v6241_v17, %v2187_v34 }
 0x191   : > { %v5424_v35 = vpop.f32.mrf.mxu0  ;;  %v5552_v36 = vpop.f32.mrf.mxu1 }
 0x192   : > { %v1687_v39 = vadd.f32 %v6241_v17, %v5424_v35  ;;  %v2199_v40 = vadd.f32 %v6241_v17, %v5552_v36 }
 0x193   : > { %v1678_v43 = vpop.f32.mrf.mxu0  ;;  %v2190_v44 = vpop.f32.mrf.mxu1 }
 0x194   : > { %v4630_v45 = vpack.c.bf16 %v1687_v39, %v1684_v37  ;;  %v4950_v46 = vpack.c.bf16 %v2199_v40, %v2196_v38  ;;  %v1679_v47 = vadd.f32 %v6241_v17, %v1678_v43  ;;  %v2191_v49 = vadd.f32 %v6241_v17, %v2190_v44 }
 0x195   : > { %v5427_v50 = vpop.f32.mrf.mxu0  ;;  %v5555_v51 = vpop.f32.mrf.mxu1 }
 0x196   : > { %5102 = vst [vmem:[%s5991_s17 + $0x148] sm:$0xff] %v4630_v45   ;;  %5166 = vst [vmem:[%s5991_s17 + $0x348] sm:$0xff] %v4950_v46   ;;  %v4625_v52 = vpack.c.bf16 %v1679_v47, %v1676_v41  ;;  %v4945_v53 = vpack.c.bf16 %v2191_v49, %v2188_v42  ;;  %v1700_v58 = vadd.f32 %v6241_v17, %v5427_v50 }
 0x197   : > { %v1691_v54 = vpop.f32.mrf.mxu0  ;;  %v2203_v55 = vpop.f32.mrf.mxu1  ;;  %v2212_v59 = vadd.f32 %v6241_v17, %v5555_v51 }
 0x198   : > { %5101 = vst [vmem:[%s5991_s17 + $0x140] sm:$0xff] %v4625_v52   ;;  %5165 = vst [vmem:[%s5991_s17 + $0x340] sm:$0xff] %v4945_v53   ;;  %v1692_v62 = vadd.f32 %v6241_v17, %v1691_v54  ;;  %v2204_v63 = vadd.f32 %v6241_v17, %v2203_v55 }
 0x199   : > { %v5428_v56 = vpop.f32.mrf.mxu0  ;;  %v5556_v57 = vpop.f32.mrf.mxu1 }
 0x19a   : > { %v1703_v60 = vadd.f32 %v6241_v17, %v5428_v56  ;;  %v2215_v61 = vadd.f32 %v6241_v17, %v5556_v57 }
 0x19b   : > { %v1694_v0 = vpop.f32.mrf.mxu0  ;;  %v2206_v1 = vpop.f32.mrf.mxu1 }
 0x19c   : > { %v4640_v2 = vpack.c.bf16 %v1703_v60, %v1700_v58  ;;  %v4960_v3 = vpack.c.bf16 %v2215_v61, %v2212_v59  ;;  %v1695_v4 = vadd.f32 %v6241_v17, %v1694_v0  ;;  %v2207_v5 = vadd.f32 %v6241_v17, %v2206_v1 }
 0x19d   : > { %v5431_v6 = vpop.f32.mrf.mxu0  ;;  %v5559_v7 = vpop.f32.mrf.mxu1 }
 0x19e   : > { %5104 = vst [vmem:[%s5991_s17 + $0x158] sm:$0xff] %v4640_v2   ;;  %5168 = vst [vmem:[%s5991_s17 + $0x358] sm:$0xff] %v4960_v3   ;;  %v4635_v8 = vpack.c.bf16 %v1695_v4, %v1692_v62  ;;  %v4955_v9 = vpack.c.bf16 %v2207_v5, %v2204_v63  ;;  %v1716_v14 = vadd.f32 %v6241_v17, %v5431_v6 }
 0x19f   : > { %v1707_v10 = vpop.f32.mrf.mxu0  ;;  %v2219_v11 = vpop.f32.mrf.mxu1  ;;  %v2228_v15 = vadd.f32 %v6241_v17, %v5559_v7 }
 0x1a0   : > { %5103 = vst [vmem:[%s5991_s17 + $0x150] sm:$0xff] %v4635_v8   ;;  %5167 = vst [vmem:[%s5991_s17 + $0x350] sm:$0xff] %v4955_v9   ;;  %v1708_v18 = vadd.f32 %v6241_v17, %v1707_v10  ;;  %v2220_v19 = vadd.f32 %v6241_v17, %v2219_v11 }
 0x1a1   : > { %v5432_v12 = vpop.f32.mrf.mxu0  ;;  %v5560_v13 = vpop.f32.mrf.mxu1 }
 0x1a2   : > { %v1719_v16 = vadd.f32 %v6241_v17, %v5432_v12  ;;  %v2231_v48 = vadd.f32 %v6241_v17, %v5560_v13 }
 0x1a3   : > { %v1710_v20 = vpop.f32.mrf.mxu0  ;;  %v2222_v21 = vpop.f32.mrf.mxu1 }
 0x1a4   : > { %v4650_v22 = vpack.c.bf16 %v1719_v16, %v1716_v14  ;;  %v4970_v23 = vpack.c.bf16 %v2231_v48, %v2228_v15  ;;  %v1711_v24 = vadd.f32 %v6241_v17, %v1710_v20  ;;  %v2223_v25 = vadd.f32 %v6241_v17, %v2222_v21 }
 0x1a5   : > { %v5435_v26 = vpop.f32.mrf.mxu0  ;;  %v5563_v27 = vpop.f32.mrf.mxu1 }
 0x1a6   : > { %5106 = vst [vmem:[%s5991_s17 + $0x168] sm:$0xff] %v4650_v22   ;;  %5170 = vst [vmem:[%s5991_s17 + $0x368] sm:$0xff] %v4970_v23   ;;  %v4645_v28 = vpack.c.bf16 %v1711_v24, %v1708_v18  ;;  %v4965_v29 = vpack.c.bf16 %v2223_v25, %v2220_v19  ;;  %v1732_v34 = vadd.f32 %v6241_v17, %v5435_v26 }
 0x1a7   : > { %v1723_v30 = vpop.f32.mrf.mxu0  ;;  %v2235_v31 = vpop.f32.mrf.mxu1  ;;  %v2244_v35 = vadd.f32 %v6241_v17, %v5563_v27 }
 0x1a8   : > { %5105 = vst [vmem:[%s5991_s17 + $0x160] sm:$0xff] %v4645_v28   ;;  %5169 = vst [vmem:[%s5991_s17 + $0x360] sm:$0xff] %v4965_v29   ;;  %v1724_v38 = vadd.f32 %v6241_v17, %v1723_v30  ;;  %v2236_v39 = vadd.f32 %v6241_v17, %v2235_v31 }
 0x1a9   : > { %v5436_v32 = vpop.f32.mrf.mxu0  ;;  %v5564_v33 = vpop.f32.mrf.mxu1 }
 0x1aa   : > { %v1735_v36 = vadd.f32 %v6241_v17, %v5436_v32  ;;  %v2247_v37 = vadd.f32 %v6241_v17, %v5564_v33 }
 0x1ab   : > { %v1726_v40 = vpop.f32.mrf.mxu0  ;;  %v2238_v41 = vpop.f32.mrf.mxu1 }
 0x1ac   : > { %v4660_v42 = vpack.c.bf16 %v1735_v36, %v1732_v34  ;;  %v4980_v43 = vpack.c.bf16 %v2247_v37, %v2244_v35  ;;  %v1727_v44 = vadd.f32 %v6241_v17, %v1726_v40  ;;  %v2239_v45 = vadd.f32 %v6241_v17, %v2238_v41 }
 0x1ad   : > { %v5439_v46 = vpop.f32.mrf.mxu0  ;;  %v5567_v47 = vpop.f32.mrf.mxu1 }
 0x1ae   : > { %5108 = vst [vmem:[%s5991_s17 + $0x178] sm:$0xff] %v4660_v42   ;;  %5172 = vst [vmem:[%s5991_s17 + $0x378] sm:$0xff] %v4980_v43   ;;  %v4655_v49 = vpack.c.bf16 %v1727_v44, %v1724_v38  ;;  %v4975_v50 = vpack.c.bf16 %v2239_v45, %v2236_v39  ;;  %v1748_v55 = vadd.f32 %v6241_v17, %v5439_v46 }
 0x1af   : > { %v1739_v51 = vpop.f32.mrf.mxu0  ;;  %v2251_v52 = vpop.f32.mrf.mxu1  ;;  %v2260_v56 = vadd.f32 %v6241_v17, %v5567_v47 }
 0x1b0   : > { %5107 = vst [vmem:[%s5991_s17 + $0x170] sm:$0xff] %v4655_v49   ;;  %5171 = vst [vmem:[%s5991_s17 + $0x370] sm:$0xff] %v4975_v50   ;;  %v1740_v59 = vadd.f32 %v6241_v17, %v1739_v51  ;;  %v2252_v60 = vadd.f32 %v6241_v17, %v2251_v52 }
 0x1b1   : > { %v5440_v53 = vpop.f32.mrf.mxu0  ;;  %v5568_v54 = vpop.f32.mrf.mxu1 }
 0x1b2   : > { %v1751_v57 = vadd.f32 %v6241_v17, %v5440_v53  ;;  %v2263_v58 = vadd.f32 %v6241_v17, %v5568_v54 }
 0x1b3   : > { %v1742_v61 = vpop.f32.mrf.mxu0  ;;  %v2254_v62 = vpop.f32.mrf.mxu1 }
 0x1b4   : > { %v4670_v63 = vpack.c.bf16 %v1751_v57, %v1748_v55  ;;  %v4990_v0 = vpack.c.bf16 %v2263_v58, %v2260_v56  ;;  %v1743_v1 = vadd.f32 %v6241_v17, %v1742_v61  ;;  %v2255_v2 = vadd.f32 %v6241_v17, %v2254_v62 }
 0x1b5   : > { %v5443_v3 = vpop.f32.mrf.mxu0  ;;  %v5571_v4 = vpop.f32.mrf.mxu1 }
 0x1b6   : > { %5110 = vst [vmem:[%s5991_s17 + $0x188] sm:$0xff] %v4670_v63   ;;  %5174 = vst [vmem:[%s5991_s17 + $0x388] sm:$0xff] %v4990_v0   ;;  %v4665_v5 = vpack.c.bf16 %v1743_v1, %v1740_v59  ;;  %v4985_v6 = vpack.c.bf16 %v2255_v2, %v2252_v60  ;;  %v1764_v11 = vadd.f32 %v6241_v17, %v5443_v3 }
 0x1b7   : > { %v1755_v7 = vpop.f32.mrf.mxu0  ;;  %v2267_v8 = vpop.f32.mrf.mxu1  ;;  %v2276_v12 = vadd.f32 %v6241_v17, %v5571_v4 }
 0x1b8   : > { %5109 = vst [vmem:[%s5991_s17 + $0x180] sm:$0xff] %v4665_v5   ;;  %5173 = vst [vmem:[%s5991_s17 + $0x380] sm:$0xff] %v4985_v6   ;;  %v1756_v15 = vadd.f32 %v6241_v17, %v1755_v7  ;;  %v2268_v16 = vadd.f32 %v6241_v17, %v2267_v8 }
 0x1b9   : > { %v5444_v9 = vpop.f32.mrf.mxu0  ;;  %v5572_v10 = vpop.f32.mrf.mxu1 }
 0x1ba   : > { %v1767_v13 = vadd.f32 %v6241_v17, %v5444_v9  ;;  %v2279_v14 = vadd.f32 %v6241_v17, %v5572_v10 }
 0x1bb   : > { %v1758_v48 = vpop.f32.mrf.mxu0  ;;  %v2270_v18 = vpop.f32.mrf.mxu1 }
 0x1bc   : > { %v4680_v19 = vpack.c.bf16 %v1767_v13, %v1764_v11  ;;  %v5000_v20 = vpack.c.bf16 %v2279_v14, %v2276_v12  ;;  %v1759_v21 = vadd.f32 %v6241_v17, %v1758_v48  ;;  %v2271_v22 = vadd.f32 %v6241_v17, %v2270_v18 }
 0x1bd   : > { %v5447_v23 = vpop.f32.mrf.mxu0  ;;  %v5575_v24 = vpop.f32.mrf.mxu1 }
 0x1be   : > { %5112 = vst [vmem:[%s5991_s17 + $0x198] sm:$0xff] %v4680_v19   ;;  %5176 = vst [vmem:[%s5991_s17 + $0x398] sm:$0xff] %v5000_v20   ;;  %v4675_v25 = vpack.c.bf16 %v1759_v21, %v1756_v15  ;;  %v4995_v26 = vpack.c.bf16 %v2271_v22, %v2268_v16  ;;  %v1780_v31 = vadd.f32 %v6241_v17, %v5447_v23 }
 0x1bf   : > { %v1771_v27 = vpop.f32.mrf.mxu0  ;;  %v2283_v28 = vpop.f32.mrf.mxu1  ;;  %v2292_v32 = vadd.f32 %v6241_v17, %v5575_v24 }
 0x1c0   : > { %5111 = vst [vmem:[%s5991_s17 + $0x190] sm:$0xff] %v4675_v25   ;;  %5175 = vst [vmem:[%s5991_s17 + $0x390] sm:$0xff] %v4995_v26   ;;  %v1772_v35 = vadd.f32 %v6241_v17, %v1771_v27  ;;  %v2284_v36 = vadd.f32 %v6241_v17, %v2283_v28 }
 0x1c1   : > { %v5448_v29 = vpop.f32.mrf.mxu0  ;;  %v5576_v30 = vpop.f32.mrf.mxu1 }
 0x1c2   : > { %v1783_v33 = vadd.f32 %v6241_v17, %v5448_v29  ;;  %v2295_v34 = vadd.f32 %v6241_v17, %v5576_v30 }
 0x1c3   : > { %v1774_v37 = vpop.f32.mrf.mxu0  ;;  %v2286_v38 = vpop.f32.mrf.mxu1 }
 0x1c4   : > { %v4690_v39 = vpack.c.bf16 %v1783_v33, %v1780_v31  ;;  %v5010_v40 = vpack.c.bf16 %v2295_v34, %v2292_v32  ;;  %v1775_v41 = vadd.f32 %v6241_v17, %v1774_v37  ;;  %v2287_v42 = vadd.f32 %v6241_v17, %v2286_v38 }
 0x1c5   : > { %v5451_v43 = vpop.f32.mrf.mxu0  ;;  %v5579_v44 = vpop.f32.mrf.mxu1 }
 0x1c6   : > { %5114 = vst [vmem:[%s5991_s17 + $0x1a8] sm:$0xff] %v4690_v39   ;;  %5178 = vst [vmem:[%s5991_s17 + $0x3a8] sm:$0xff] %v5010_v40   ;;  %v4685_v45 = vpack.c.bf16 %v1775_v41, %v1772_v35  ;;  %v5005_v46 = vpack.c.bf16 %v2287_v42, %v2284_v36  ;;  %v1796_v52 = vadd.f32 %v6241_v17, %v5451_v43 }
 0x1c7   : > { %v1787_v47 = vpop.f32.mrf.mxu0  ;;  %v2299_v49 = vpop.f32.mrf.mxu1  ;;  %v2308_v53 = vadd.f32 %v6241_v17, %v5579_v44 }
 0x1c8   : > { %5113 = vst [vmem:[%s5991_s17 + $0x1a0] sm:$0xff] %v4685_v45   ;;  %5177 = vst [vmem:[%s5991_s17 + $0x3a0] sm:$0xff] %v5005_v46   ;;  %v1788_v56 = vadd.f32 %v6241_v17, %v1787_v47  ;;  %v2300_v57 = vadd.f32 %v6241_v17, %v2299_v49 }
 0x1c9   : > { %v5452_v50 = vpop.f32.mrf.mxu0  ;;  %v5580_v51 = vpop.f32.mrf.mxu1 }
 0x1ca   : > { %v1799_v54 = vadd.f32 %v6241_v17, %v5452_v50  ;;  %v2311_v55 = vadd.f32 %v6241_v17, %v5580_v51 }
 0x1cb   : > { %v1790_v58 = vpop.f32.mrf.mxu0  ;;  %v2302_v59 = vpop.f32.mrf.mxu1 }
 0x1cc   : > { %v4700_v60 = vpack.c.bf16 %v1799_v54, %v1796_v52  ;;  %v5020_v61 = vpack.c.bf16 %v2311_v55, %v2308_v53  ;;  %v1791_v62 = vadd.f32 %v6241_v17, %v1790_v58  ;;  %v2303_v63 = vadd.f32 %v6241_v17, %v2302_v59 }
 0x1cd   : > { %v5455_v0 = vpop.f32.mrf.mxu0  ;;  %v5583_v1 = vpop.f32.mrf.mxu1 }
 0x1ce   : > { %5116 = vst [vmem:[%s5991_s17 + $0x1b8] sm:$0xff] %v4700_v60   ;;  %5180 = vst [vmem:[%s5991_s17 + $0x3b8] sm:$0xff] %v5020_v61   ;;  %v4695_v2 = vpack.c.bf16 %v1791_v62, %v1788_v56  ;;  %v5015_v3 = vpack.c.bf16 %v2303_v63, %v2300_v57  ;;  %v1812_v8 = vadd.f32 %v6241_v17, %v5455_v0 }
 0x1cf   : > { %v1803_v4 = vpop.f32.mrf.mxu0  ;;  %v2315_v5 = vpop.f32.mrf.mxu1  ;;  %v2324_v9 = vadd.f32 %v6241_v17, %v5583_v1 }
 0x1d0   : > { %5115 = vst [vmem:[%s5991_s17 + $0x1b0] sm:$0xff] %v4695_v2   ;;  %5179 = vst [vmem:[%s5991_s17 + $0x3b0] sm:$0xff] %v5015_v3   ;;  %v1804_v12 = vadd.f32 %v6241_v17, %v1803_v4  ;;  %v2316_v13 = vadd.f32 %v6241_v17, %v2315_v5 }
 0x1d1   : > { %v5456_v6 = vpop.f32.mrf.mxu0  ;;  %v5584_v7 = vpop.f32.mrf.mxu1 }
 0x1d2   : > { %v1815_v10 = vadd.f32 %v6241_v17, %v5456_v6  ;;  %v2327_v11 = vadd.f32 %v6241_v17, %v5584_v7 }
 0x1d3   : > { %v1806_v14 = vpop.f32.mrf.mxu0  ;;  %v2318_v15 = vpop.f32.mrf.mxu1 }
 0x1d4   : > { %v4710_v16 = vpack.c.bf16 %v1815_v10, %v1812_v8  ;;  %v5030_v48 = vpack.c.bf16 %v2327_v11, %v2324_v9  ;;  %v1807_v18 = vadd.f32 %v6241_v17, %v1806_v14  ;;  %v2319_v19 = vadd.f32 %v6241_v17, %v2318_v15 }
 0x1d5   : > { %v5459_v20 = vpop.f32.mrf.mxu0  ;;  %v5587_v21 = vpop.f32.mrf.mxu1 }
 0x1d6   : > { %5118 = vst [vmem:[%s5991_s17 + $0x1c8] sm:$0xff] %v4710_v16   ;;  %5182 = vst [vmem:[%s5991_s17 + $0x3c8] sm:$0xff] %v5030_v48   ;;  %v4705_v22 = vpack.c.bf16 %v1807_v18, %v1804_v12  ;;  %v5025_v23 = vpack.c.bf16 %v2319_v19, %v2316_v13  ;;  %v1828_v28 = vadd.f32 %v6241_v17, %v5459_v20 }
 0x1d7   : > { %v1819_v24 = vpop.f32.mrf.mxu0  ;;  %v2331_v25 = vpop.f32.mrf.mxu1  ;;  %v2340_v29 = vadd.f32 %v6241_v17, %v5587_v21 }
 0x1d8   : > { %5117 = vst [vmem:[%s5991_s17 + $0x1c0] sm:$0xff] %v4705_v22   ;;  %5181 = vst [vmem:[%s5991_s17 + $0x3c0] sm:$0xff] %v5025_v23   ;;  %v1820_v32 = vadd.f32 %v6241_v17, %v1819_v24  ;;  %v2332_v33 = vadd.f32 %v6241_v17, %v2331_v25 }
 0x1d9   : > { %v5460_v26 = vpop.f32.mrf.mxu0  ;;  %v5588_v27 = vpop.f32.mrf.mxu1 }
 0x1da   : > { %v1831_v30 = vadd.f32 %v6241_v17, %v5460_v26  ;;  %v2343_v31 = vadd.f32 %v6241_v17, %v5588_v27 }
 0x1db   : > { %v1822_v34 = vpop.f32.mrf.mxu0  ;;  %v2334_v35 = vpop.f32.mrf.mxu1 }
 0x1dc   : > { %v4720_v36 = vpack.c.bf16 %v1831_v30, %v1828_v28  ;;  %v5040_v37 = vpack.c.bf16 %v2343_v31, %v2340_v29  ;;  %v1823_v38 = vadd.f32 %v6241_v17, %v1822_v34  ;;  %v2335_v39 = vadd.f32 %v6241_v17, %v2334_v35 }
 0x1dd   : > { %v5463_v40 = vpop.f32.mrf.mxu0  ;;  %v5591_v41 = vpop.f32.mrf.mxu1 }
 0x1de   : > { %5120 = vst [vmem:[%s5991_s17 + $0x1d8] sm:$0xff] %v4720_v36   ;;  %5184 = vst [vmem:[%s5991_s17 + $0x3d8] sm:$0xff] %v5040_v37   ;;  %v4715_v42 = vpack.c.bf16 %v1823_v38, %v1820_v32  ;;  %v5035_v43 = vpack.c.bf16 %v2335_v39, %v2332_v33  ;;  %v1844_v49 = vadd.f32 %v6241_v17, %v5463_v40 }
 0x1df   : > { %v1835_v44 = vpop.f32.mrf.mxu0  ;;  %v2347_v45 = vpop.f32.mrf.mxu1  ;;  %v2356_v50 = vadd.f32 %v6241_v17, %v5591_v41 }
 0x1e0   : > { %5119 = vst [vmem:[%s5991_s17 + $0x1d0] sm:$0xff] %v4715_v42   ;;  %5183 = vst [vmem:[%s5991_s17 + $0x3d0] sm:$0xff] %v5035_v43   ;;  %v1836_v53 = vadd.f32 %v6241_v17, %v1835_v44  ;;  %v2348_v54 = vadd.f32 %v6241_v17, %v2347_v45 }
 0x1e1   : > { %v5464_v46 = vpop.f32.mrf.mxu0  ;;  %v5592_v47 = vpop.f32.mrf.mxu1 }
 0x1e2   : > { %v1847_v51 = vadd.f32 %v6241_v17, %v5464_v46  ;;  %v2359_v52 = vadd.f32 %v6241_v17, %v5592_v47 }
 0x1e3   : > { %v1838_v55 = vpop.f32.mrf.mxu0  ;;  %v2350_v56 = vpop.f32.mrf.mxu1 }
 0x1e4   : > { %v4730_v57 = vpack.c.bf16 %v1847_v51, %v1844_v49  ;;  %v5050_v58 = vpack.c.bf16 %v2359_v52, %v2356_v50  ;;  %v1839_v59 = vadd.f32 %v6241_v17, %v1838_v55  ;;  %v2351_v60 = vadd.f32 %v6241_v17, %v2350_v56 }
 0x1e5   : > { %v5467_v61 = vpop.f32.mrf.mxu0  ;;  %v5595_v62 = vpop.f32.mrf.mxu1 }
 0x1e6   : > { %5122 = vst [vmem:[%s5991_s17 + $0x1e8] sm:$0xff] %v4730_v57   ;;  %5186 = vst [vmem:[%s5991_s17 + $0x3e8] sm:$0xff] %v5050_v58   ;;  %v4725_v63 = vpack.c.bf16 %v1839_v59, %v1836_v53  ;;  %v5045_v0 = vpack.c.bf16 %v2351_v60, %v2348_v54  ;;  %v1860_v5 = vadd.f32 %v6241_v17, %v5467_v61 }
 0x1e7   : > { %v1851_v1 = vpop.f32.mrf.mxu0  ;;  %v2363_v2 = vpop.f32.mrf.mxu1  ;;  %v2372_v6 = vadd.f32 %v6241_v17, %v5595_v62 }
 0x1e8   : > { %5121 = vst [vmem:[%s5991_s17 + $0x1e0] sm:$0xff] %v4725_v63   ;;  %5185 = vst [vmem:[%s5991_s17 + $0x3e0] sm:$0xff] %v5045_v0   ;;  %v1852_v9 = vadd.f32 %v6241_v17, %v1851_v1  ;;  %v2364_v10 = vadd.f32 %v6241_v17, %v2363_v2 }
 0x1e9   : > { %v5468_v3 = vpop.f32.mrf.mxu0  ;;  %v5596_v4 = vpop.f32.mrf.mxu1 }
 0x1ea   : > { %v1863_v7 = vadd.f32 %v6241_v17, %v5468_v3  ;;  %v2375_v8 = vadd.f32 %v6241_v17, %v5596_v4 }
 0x1eb   : > { %v1854_v11 = vpop.f32.mrf.mxu0  ;;  %v2366_v12 = vpop.f32.mrf.mxu1 }
 0x1ec   : > { %v4740_v13 = vpack.c.bf16 %v1863_v7, %v1860_v5  ;;  %v5060_v14 = vpack.c.bf16 %v2375_v8, %v2372_v6  ;;  %v1855_v15 = vadd.f32 %v6241_v17, %v1854_v11  ;;  %v2367_v16 = vadd.f32 %v6241_v17, %v2366_v12 }
 0x1ee   : > { %5124 = vst [vmem:[%s5991_s17 + $0x1f8] sm:$0xff] %v4740_v13   ;;  %5188 = vst [vmem:[%s5991_s17 + $0x3f8] sm:$0xff] %v5060_v14   ;;  %v4735_v48 = vpack.c.bf16 %v1855_v15, %v1852_v9  ;;  %v5055_v18 = vpack.c.bf16 %v2367_v16, %v2364_v10 }
 0x1f0   : > { %5123 = vst [vmem:[%s5991_s17 + $0x1f0] sm:$0xff] %v4735_v48   ;;  %5187 = vst [vmem:[%s5991_s17 + $0x3f0] sm:$0xff] %v5055_v18  }
 0x1f1 PF: > { %s13_s14 = sadd.s32 1, %s5796_s14   ;;  %s6412_s12 = smov %s5792_s13 }
 0x1f2   : > { %p10_p5 = scmp.ge.s32.totalorder %s13_s14, 4   ;;  %s6413_s13 = smov %s6415_s15 }
 0x1f4   :  { %12 = sbr.rel (!%p10_p5) target bundleno = 2 (0x2), region = 68 }

</bundles_post_ra>
